<compile_context>
chip_gen: v7x
topology: tpu7x:2x2x1
jax: 0.10.0
libtpu: 0.0.40
codegen_flags: <defaults>
</compile_context>

<pallas_src>
import functools

import jax
import jax.numpy as jnp
import numpy as np
from jax.experimental import pallas as pl
from jax.experimental.pallas import tpu as pltpu

_LANE = 128
_TARGET_GRID_STEPS = 8            # >= 4 steps per v7x TensorCore so DMA pipelines
_FALLBACK_VMEM_BUDGET = 48 << 20  # if get_tpu_info() unavailable (sized for v7x's 64 MiB)


def _round_up(x, m):
    return (x + m - 1) // m * m


def _vmem_budget_bytes():
    """Chip-aware VMEM budget: ~75% of physical (v5e/v6e 128 MiB -> 96, v7x 64 -> 48)."""
    try:
        cap = int(pltpu.get_tpu_info().vmem_capacity_bytes)
        return max(16 << 20, cap * 3 // 4)
    except Exception:
        return _FALLBACK_VMEM_BUDGET


def _finer_mlp_kernel(x_ref, *refs, num_layers, omegas, is_last_flags,
                      matmul_dtype, epilogue_dtype):
    """refs = (w0, b0, w1, b1, ..., o_ref). All layers fused; weights VMEM-resident."""
    o_ref = refs[-1]
    h = x_ref[...].astype(matmul_dtype)          # cast to MXU operand dtype once
    for l in range(num_layers):
        w_ref = refs[2 * l]
        b_ref = refs[2 * l + 1]
        # MXU matmul with f32 accumulation; bias stays f32.
        y = jnp.dot(h, w_ref[...], preferred_element_type=jnp.float32) + b_ref[...]
        if is_last_flags[l]:
            h = y
        else:
            # torch.no_grad() on `scale` only affects autodiff; forward value identical.
            y_e = y.astype(epilogue_dtype)       # f32 by default (v5e-safe)
            act = jnp.sin(omegas[l] * (jnp.abs(y_e) + 1.0) * y_e)
            # Keep the activation in the MXU operand dtype: it is cast before the
            # next matmul anyway; storing bf16 halves inter-layer VMEM ld/st bytes.
            h = act.astype(matmul_dtype)
    o_ref[...] = h.astype(o_ref.dtype)


def _prep_params(params, matmul_dtype):
    """Zero-pad every layer's out-dim (and matching next in-dim) to a multiple of 128.

    Padded columns produce y == 0 exactly -> sin(0) == 0, and padded input rows of
    the next layer's weights are zero, so numerics are unchanged.  Weights are
    pre-cast to the MXU operand dtype (halves resident + DMA bytes for bf16).
    NOTE: hidden dims are NOT padded up to 256 to "fill" the wide MXU -- the MXU
    has slack here and that would only add VPU/DMA work.
    """
    prepped = []
    prev_out_pad = None
    prev_out = None
    for idx, (w_t, b) in enumerate(params):
        cin, cout = w_t.shape
        if idx > 0:
            assert cin == prev_out, "layer in_features must match previous out_features"
            cin_pad = prev_out_pad
        else:
            cin_pad = cin
        cout_pad = _round_up(cout, _LANE)
        w_p = jnp.pad(w_t.astype(matmul_dtype),
                      ((0, cin_pad - cin), (0, cout_pad - cout)))
        b_p = jnp.pad(jnp.asarray(b).reshape(1, -1).astype(jnp.float32),
                      ((0, 0), (0, cout_pad - cout)))
        prepped.append((w_p, b_p))
        prev_out_pad, prev_out = cout_pad, cout
    return prepped


def finer_mlp_forward(x, params, *, omega_0=30.0, is_last_flags=None, tm=2048,
                      matmul_dtype=jnp.bfloat16, out_dtype=None,
                      epilogue_dtype=jnp.float32, x_buffer_count=3,
                      return_padded=False):
    """Fused FINER MLP.  params: list of (w_t [Cin,Cout], b [1,Cout] or [Cout])."""
    N, cin = x.shape
    L = len(params)
    if is_last_flags is None:
        is_last_flags = tuple([False] * (L - 1) + [True])
    is_last_flags = tuple(bool(f) for f in is_last_flags)
    if isinstance(omega_0, (int, float)):
        omegas = tuple([float(omega_0)] * L)
    else:
        omegas = tuple(float(o) for o in omega_0)
    matmul_dtype = np.dtype(matmul_dtype)
    epilogue_dtype = np.dtype(epilogue_dtype)
    if out_dtype is None:
        # bf16 padded writeback halves the dominant HBM output stream (the real
        # columns are typically a few of 128 lanes).  Pass out_dtype=x.dtype to
        # keep a full-precision output.
        out_dtype = matmul_dtype if matmul_dtype == np.dtype(jnp.bfloat16) else np.dtype(x.dtype)
    out_dtype = np.dtype(out_dtype)

    prepped = _prep_params(params, matmul_dtype)
    cout_last = params[-1][0].shape[1]
    cout_pads = [w.shape[1] for w, _ in prepped]
    cout_pad_last = cout_pads[-1]
    weight_bytes = sum(int(np.prod(w.shape)) * w.dtype.itemsize
                       + int(np.prod(b.shape)) * b.dtype.itemsize
                       for w, b in prepped)

    budget = _vmem_budget_bytes()
    x_bufs = max(2, int(x_buffer_count)) if x_buffer_count else 2

    def _vmem_bytes(tm_):
        # Lane-accurate estimate: a (tm, cin) f32 tile is padded to 128 lanes in VMEM.
        cin_lane = _round_up(cin, _LANE)
        widest = max(cout_pads + [cin_lane])
        return (x_bufs * tm_ * cin_lane * x.dtype.itemsize        # pipelined x tiles
                + 2 * tm_ * cout_pad_last * out_dtype.itemsize    # double-buffered out tile
                + 2 * weight_bytes                                # resident weights/biases (2x-buffered)
                + 3 * tm_ * widest * 4                            # f32 y + epilogue temporaries
                + tm_ * widest * matmul_dtype.itemsize            # inter-layer activation
                + (4 << 20))                                      # Mosaic internal scratch margin

    # Row tile: big enough to amortize ~0.35 us/grid-step, but keep >= ~8 grid
    # steps (>= 4 per v7x TensorCore) so input/output DMA overlaps compute, and
    # stay inside the chip-aware VMEM budget.
    tm_cap = max(8, _round_up(pl.cdiv(N, _TARGET_GRID_STEPS), 8))
    tm = min(max(8, _round_up(int(tm), 8)), tm_cap)
    while tm > 64 and _vmem_bytes(tm) > budget:
        tm = max(64, _round_up(tm // 2, 8))

    # Prefer a tile size that divides N: the wrapper-side jnp.pad of x costs a
    # full extra HBM read+write of the input, so avoid it when a nearby divisor exists.
    if N % tm != 0 and N % 8 == 0:
        for cand in range(tm, max(8, (tm * 5) // 8) - 1, -8):
            if N % cand == 0:
                tm = cand
                break

    n_pad = _round_up(N, tm)
    x_p = x if n_pad == N else jnp.pad(x, ((0, n_pad - N), (0, 0)))
    grid = (n_pad // tm,)

    flops = 2 * n_pad * sum(w.shape[0] * w.shape[1] for w, _ in prepped)
    transcendentals = n_pad * sum(w.shape[1]
                                  for (w, _), last in zip(prepped, is_last_flags)
                                  if not last)
    bytes_accessed = (n_pad * cin * x.dtype.itemsize + weight_bytes
                      + n_pad * cout_pad_last * out_dtype.itemsize)

    kernel = functools.partial(
        _finer_mlp_kernel,
        num_layers=L, omegas=omegas, is_last_flags=is_last_flags,
        matmul_dtype=matmul_dtype, epilogue_dtype=epilogue_dtype)
    flat_params = [a for wb in prepped for a in wb]

    def _call(deep_x_buffering):
        x_kwargs = {}
        if deep_x_buffering:
            # 3-deep buffering on the streaming input hides DMA jitter, biggest
            # win on v5e's lower HBM bandwidth; the x tile is small so the extra
            # buffer is nearly free in VMEM.
            x_kwargs["pipeline_mode"] = pl.Buffered(x_bufs)
        in_specs = [pl.BlockSpec((tm, cin), lambda i: (i, 0), **x_kwargs)]
        for w_p, b_p in prepped:
            # TODO(synk): pl.Buffered(1) on these constant-index specs would halve
            # resident weight VMEM for very wide FINER nets; negligible at hidden=128.
            in_specs.append(pl.BlockSpec(w_p.shape, lambda i: (0, 0)))   # resident weight
            in_specs.append(pl.BlockSpec(b_p.shape, lambda i: (0, 0)))   # resident bias
        out_specs = pl.BlockSpec((tm, cout_pad_last), lambda i: (i, 0))
        return pl.pallas_call(
            kernel,
            out_shape=jax.ShapeDtypeStruct((n_pad, cout_pad_last), out_dtype),
            grid_spec=pltpu.PrefetchScalarGridSpec(
                num_scalar_prefetch=0,
                grid=grid,
                in_specs=in_specs,
                out_specs=out_specs,
            ),
            compiler_params=pltpu.CompilerParams(
                dimension_semantics=("parallel",),
                # Limit = chip budget (not the tight per-tm estimate): leaves
                # headroom for Mosaic internal scratch, esp. on v7x's 64 MiB VMEM.
                vmem_limit_bytes=int(budget),
            ),
            cost_estimate=pl.CostEstimate(
                flops=int(flops),
                transcendentals=int(transcendentals),
                bytes_accessed=int(bytes_accessed),
            ),
        )(x_p, *flat_params)

    if x_bufs != 2:
        try:
            out = jax.block_until_ready(_call(True))
        except Exception:
            # pipeline_mode/Buffered not supported on this jax/libtpu -> default 2-deep.
            out = _call(False)
    else:
        out = _call(False)

    if return_padded:
        return out                      # (n_pad, cout_pad_last); slice fuses into the consumer
    return out[:N, :cout_last]


def finer_layer_forward(x, w_t, b, *, omega_0=30.0, is_last=False, tm=2048,
                        matmul_dtype=jnp.bfloat16, out_dtype=None):
    """Single FinerLayer (matches the PyTorch module one-to-one)."""
    return finer_mlp_forward(x, [(w_t, b)], omega_0=omega_0,
                             is_last_flags=(is_last,), tm=tm,
                             matmul_dtype=matmul_dtype, out_dtype=out_dtype)


def init_finer_params(key, in_features, out_features, *, is_first, omega_0,
                      first_bias_scale=None):
    """Deterministic parameter init matching FinerLayer.__init__ (jax RNG, not torch)."""
    kw, kb = jax.random.split(key)
    if is_first:
        bound = 1.0 / in_features
    else:
        bound = np.sqrt(6.0 / in_features) / omega_0
    # nn.Linear weight is [out, in]; we store the transpose [in, out] for the kernel.
    w_t = jax.random.uniform(kw, (in_features, out_features),
                             minval=-bound, maxval=bound, dtype=jnp.float32)
    if is_first and first_bias_scale is not None:
        b_bound = first_bias_scale
    else:
        b_bound = 1.0 / np.sqrt(in_features)   # nn.Linear default bias init
    b = jax.random.uniform(kb, (1, out_features),
                           minval=-b_bound, maxval=b_bound, dtype=jnp.float32)
    return w_t, b


def finer_layer_ref(x, w_t, b, *, omega_0, is_last, matmul_dtype=jnp.float32):
    """Pure-JAX reference (mirrors the optional bf16 operand cast of the kernel)."""
    b = jnp.asarray(b).reshape(1, -1).astype(jnp.float32)
    y = jnp.dot(x.astype(matmul_dtype), w_t.astype(matmul_dtype),
                preferred_element_type=jnp.float32) + b
    if is_last:
        return y
    return jnp.sin(omega_0 * (jnp.abs(y) + 1.0) * y)


if __name__ == "__main__":
    key = jax.random.PRNGKey(0)
    k_x, k0, k1, k2 = jax.random.split(key, 4)

    N = 2048
    in_features = 32
    hidden = 128
    out_features = 3
    omega_0 = 30.0
    first_bias_scale = 0.5

    x = jax.random.uniform(k_x, (N, in_features), minval=-1.0, maxval=1.0,
                           dtype=jnp.float32)

    params = [
        init_finer_params(k0, in_features, hidden, is_first=True, omega_0=omega_0,
                          first_bias_scale=first_bias_scale),
        init_finer_params(k1, hidden, hidden, is_first=False, omega_0=omega_0),
        init_finer_params(k2, hidden, out_features, is_first=False, omega_0=omega_0),
    ]
    flags = (False, False, True)

    # Fused FINER MLP: one pallas_call, weights VMEM-resident, bf16 MXU operands
    # and bf16 inter-layer activations, f32 accumulation + f32 sin epilogue,
    # lane-padded (128) bf16 output storage, >= 8 grid steps (tm divides N).
    out = finer_mlp_forward(x, params, omega_0=omega_0, is_last_flags=flags,
                            tm=512, matmul_dtype=jnp.bfloat16)
    out = jax.block_until_ready(out)
    assert out.shape == (N, out_features)

    # Reference chain (mirrors the bf16 operand cast so the check tests the kernel,
    # not bf16 rounding; omega_0=30 amplifies matmul error otherwise).
    acts = [x]
    for (w_t, b), last in zip(params, flags):
        acts.append(finer_layer_ref(acts[-1], w_t, b, omega_0=omega_0,
                                    is_last=last, matmul_dtype=jnp.bfloat16))
    np.testing.assert_allclose(np.asarray(out.astype(jnp.float32)),
                               np.asarray(acts[-1]), atol=2e-2, rtol=2e-2)

    # Standalone single FinerLayer path (f32 MXU operands, f32 out, plain linear last layer).
    w_t, b = params[-1]
    single = finer_layer_forward(acts[2], w_t, b, omega_0=omega_0, is_last=True,
                                 tm=512, matmul_dtype=jnp.float32)
    single = jax.block_until_ready(single)
    single_ref = finer_layer_ref(acts[2], w_t, b, omega_0=omega_0, is_last=True,
                                 matmul_dtype=jnp.float32)
    np.testing.assert_allclose(np.asarray(single.astype(jnp.float32)),
                               np.asarray(single_ref), atol=1e-2, rtol=1e-2)

    print("KERNEL_OK")
</pallas_src>

<mosaic_0001>
module attributes {stable_mosaic.version = 11 : i64} {
  func.func @_finer_mlp_kernel(%arg0: i32, %arg1: memref<256x32xf32, #tpu.memory_space<vmem>>, %arg2: memref<32x128xbf16, #tpu.memory_space<vmem>>, %arg3: memref<1x128xf32, #tpu.memory_space<vmem>>, %arg4: memref<128x128xbf16, #tpu.memory_space<vmem>>, %arg5: memref<1x128xf32, #tpu.memory_space<vmem>>, %arg6: memref<128x128xbf16, #tpu.memory_space<vmem>>, %arg7: memref<1x128xf32, #tpu.memory_space<vmem>>, %arg8: memref<256x128xbf16, #tpu.memory_space<vmem>>) attributes {dimension_semantics = [#tpu.dimension_semantics<parallel>], iteration_bounds = array<i64: 8>, scalar_prefetch = 0 : i64, scratch_operands = 0 : i64, tpu.core_type = #tpu.core_type<tc>, window_params = [{transform_indices = @transform_0, window_bounds = array<i64: 256, 32>}, {pipeline_mode = #tpu.pipeline_mode<synchronous>, transform_indices = @transform_1, window_bounds = array<i64: 32, 128>}, {pipeline_mode = #tpu.pipeline_mode<synchronous>, transform_indices = @transform_2, window_bounds = array<i64: 1, 128>}, {pipeline_mode = #tpu.pipeline_mode<synchronous>, transform_indices = @transform_3, window_bounds = array<i64: 128, 128>}, {pipeline_mode = #tpu.pipeline_mode<synchronous>, transform_indices = @transform_4, window_bounds = array<i64: 1, 128>}, {pipeline_mode = #tpu.pipeline_mode<synchronous>, transform_indices = @transform_5, window_bounds = array<i64: 128, 128>}, {pipeline_mode = #tpu.pipeline_mode<synchronous>, transform_indices = @transform_6, window_bounds = array<i64: 1, 128>}, {transform_indices = @transform_7, window_bounds = array<i64: 256, 128>}]} {
    %c0 = arith.constant 0 : index
    %c0_0 = arith.constant 0 : index
    %0 = vector.load %arg1[%c0, %c0_0] : memref<256x32xf32, #tpu.memory_space<vmem>>, vector<256x32xf32>
    %1 = arith.truncf %0 : vector<256x32xf32> to vector<256x32xbf16>
    %c0_1 = arith.constant 0 : index
    %c0_2 = arith.constant 0 : index
    %2 = vector.load %arg2[%c0_1, %c0_2] : memref<32x128xbf16, #tpu.memory_space<vmem>>, vector<32x128xbf16>
    %cst = arith.constant dense<0.000000e+00> : vector<256x128xf32>
    %3 = tpu.matmul %1, %2, %cst {dimension_numbers = #tpu.dot_dimension_numbers<[1], [0], [0], [1], [0, 0, 1, 1], [], []>} : vector<256x32xbf16>, vector<32x128xbf16>, vector<256x128xf32> -> vector<256x128xf32>
    %c0_3 = arith.constant 0 : index
    %c0_4 = arith.constant 0 : index
    %4 = vector.load %arg3[%c0_3, %c0_4] : memref<1x128xf32, #tpu.memory_space<vmem>>, vector<1x128xf32>
    %5 = vector.broadcast %4 : vector<1x128xf32> to vector<256x128xf32>
    %6 = arith.addf %3, %5 : vector<256x128xf32>
    %7 = math.absf %6 : vector<256x128xf32>
    %cst_5 = arith.constant 1.000000e+00 : f32
    %8 = vector.broadcast %cst_5 : f32 to vector<256x128xf32>
    %9 = arith.addf %7, %8 : vector<256x128xf32>
    %cst_6 = arith.constant 3.000000e+01 : f32
    %10 = vector.broadcast %cst_6 : f32 to vector<256x128xf32>
    %11 = arith.mulf %10, %9 : vector<256x128xf32>
    %12 = arith.mulf %11, %6 : vector<256x128xf32>
    %13 = math.sin %12 : vector<256x128xf32>
    %14 = arith.truncf %13 : vector<256x128xf32> to vector<256x128xbf16>
    %c0_7 = arith.constant 0 : index
    %c0_8 = arith.constant 0 : index
    %15 = vector.load %arg4[%c0_7, %c0_8] : memref<128x128xbf16, #tpu.memory_space<vmem>>, vector<128x128xbf16>
    %cst_9 = arith.constant dense<0.000000e+00> : vector<256x128xf32>
    %16 = tpu.matmul %14, %15, %cst_9 {dimension_numbers = #tpu.dot_dimension_numbers<[1], [0], [0], [1], [0, 0, 1, 1], [], []>} : vector<256x128xbf16>, vector<128x128xbf16>, vector<256x128xf32> -> vector<256x128xf32>
    %c0_10 = arith.constant 0 : index
    %c0_11 = arith.constant 0 : index
    %17 = vector.load %arg5[%c0_10, %c0_11] : memref<1x128xf32, #tpu.memory_space<vmem>>, vector<1x128xf32>
    %18 = vector.broadcast %17 : vector<1x128xf32> to vector<256x128xf32>
    %19 = arith.addf %16, %18 : vector<256x128xf32>
    %20 = math.absf %19 : vector<256x128xf32>
    %cst_12 = arith.constant 1.000000e+00 : f32
    %21 = vector.broadcast %cst_12 : f32 to vector<256x128xf32>
    %22 = arith.addf %20, %21 : vector<256x128xf32>
    %cst_13 = arith.constant 3.000000e+01 : f32
    %23 = vector.broadcast %cst_13 : f32 to vector<256x128xf32>
    %24 = arith.mulf %23, %22 : vector<256x128xf32>
    %25 = arith.mulf %24, %19 : vector<256x128xf32>
    %26 = math.sin %25 : vector<256x128xf32>
    %27 = arith.truncf %26 : vector<256x128xf32> to vector<256x128xbf16>
    %c0_14 = arith.constant 0 : index
    %c0_15 = arith.constant 0 : index
    %28 = vector.load %arg6[%c0_14, %c0_15] : memref<128x128xbf16, #tpu.memory_space<vmem>>, vector<128x128xbf16>
    %cst_16 = arith.constant dense<0.000000e+00> : vector<256x128xf32>
    %29 = tpu.matmul %27, %28, %cst_16 {dimension_numbers = #tpu.dot_dimension_numbers<[1], [0], [0], [1], [0, 0, 1, 1], [], []>} : vector<256x128xbf16>, vector<128x128xbf16>, vector<256x128xf32> -> vector<256x128xf32>
    %c0_17 = arith.constant 0 : index
    %c0_18 = arith.constant 0 : index
    %30 = vector.load %arg7[%c0_17, %c0_18] : memref<1x128xf32, #tpu.memory_space<vmem>>, vector<1x128xf32>
    %31 = vector.broadcast %30 : vector<1x128xf32> to vector<256x128xf32>
    %32 = arith.addf %29, %31 : vector<256x128xf32>
    %33 = arith.truncf %32 : vector<256x128xf32> to vector<256x128xbf16>
    %c0_19 = arith.constant 0 : index
    %c0_20 = arith.constant 0 : index
    %34 = vector.load %arg8[%c0_19, %c0_20] : memref<256x128xbf16, #tpu.memory_space<vmem>>, vector<256x128xbf16>
    tpu.vector_store %arg8[%c0_19, %c0_20], %33 {strides = array<i32>} : memref<256x128xbf16, #tpu.memory_space<vmem>>, vector<256x128xbf16>,
    return
  }
  func.func @transform_0(%arg0: i32) -> (i32, i32) {
    %c0_i32 = arith.constant 0 : i32
    %c0_i32_0 = arith.constant 0 : i32
    return %arg0, %c0_i32 : i32, i32
  }
  func.func @transform_1(%arg0: i32) -> (i32, i32) {
    %c0_i32 = arith.constant 0 : i32
    %c0_i32_0 = arith.constant 0 : i32
    %c0_i32_1 = arith.constant 0 : i32
    return %c0_i32, %c0_i32_0 : i32, i32
  }
  func.func @transform_2(%arg0: i32) -> (i32, i32) {
    %c0_i32 = arith.constant 0 : i32
    %c0_i32_0 = arith.constant 0 : i32
    %c0_i32_1 = arith.constant 0 : i32
    return %c0_i32, %c0_i32_0 : i32, i32
  }
  func.func @transform_3(%arg0: i32) -> (i32, i32) {
    %c0_i32 = arith.constant 0 : i32
    %c0_i32_0 = arith.constant 0 : i32
    %c0_i32_1 = arith.constant 0 : i32
    return %c0_i32, %c0_i32_0 : i32, i32
  }
  func.func @transform_4(%arg0: i32) -> (i32, i32) {
    %c0_i32 = arith.constant 0 : i32
    %c0_i32_0 = arith.constant 0 : i32
    %c0_i32_1 = arith.constant 0 : i32
    return %c0_i32, %c0_i32_0 : i32, i32
  }
  func.func @transform_5(%arg0: i32) -> (i32, i32) {
    %c0_i32 = arith.constant 0 : i32
    %c0_i32_0 = arith.constant 0 : i32
    %c0_i32_1 = arith.constant 0 : i32
    return %c0_i32, %c0_i32_0 : i32, i32
  }
  func.func @transform_6(%arg0: i32) -> (i32, i32) {
    %c0_i32 = arith.constant 0 : i32
    %c0_i32_0 = arith.constant 0 : i32
    %c0_i32_1 = arith.constant 0 : i32
    return %c0_i32, %c0_i32_0 : i32, i32
  }
  func.func @transform_7(%arg0: i32) -> (i32, i32) {
    %c0_i32 = arith.constant 0 : i32
    %c0_i32_0 = arith.constant 0 : i32
    return %arg0, %c0_i32 : i32, i32
  }
}

</mosaic_0001>

<bundles_post_ra>
// kernel: tpu_custom_call.1
= control target key start
LH: loop header
LB: loop body
LE: loop exit
PB: predicated region body
PF: predicated region fallthrough
CT: control target
= control target key end

     0   :  { %12 = vsyncpa [#allocation3], 0  ;;  %s16102_s0 = inlined_call_operand.vmem [shape: f32[2048,32], index: 0, kind: input, shape index: {}]   ;;  %s16103_s1 = inlined_call_operand.vmem [shape: bf16[32,128], index: 1, kind: input, shape index: {}]   ;;  %s16104_s2 = inlined_call_operand.vmem [shape: f32[1,128], index: 2, kind: input, shape index: {}]   ;;  %s16105_s3 = inlined_call_operand.vmem [shape: bf16[128,128], index: 3, kind: input, shape index: {}]   ;;  %s16106_s4 = inlined_call_operand.vmem [shape: f32[1,128], index: 4, kind: input, shape index: {}]   ;;  %s16107_s5 = inlined_call_operand.vmem [shape: bf16[128,128], index: 5, kind: input, shape index: {}]   ;;  %s16108_s6 = inlined_call_operand.vmem [shape: f32[1,128], index: 6, kind: input, shape index: {}]   ;;  %s16109_s7 = inlined_call_operand.hbm [shape: bf16[2048,128], index: 7, kind: output, shape index: {}]  }
   0x1   :  { %14 = vsyncpa [#allocation3 + $0x1], 0  ;;  %s9571_s24 = smov 0   ;;  %s9573_s25 = smov 0  }
   0x2   :  { %s9575_s26 = smov 0   ;;  %s9577_s27 = smov 0  }
   0x3 LB: > { %s9592_s28 = sadd.s32 4294967295, %s9520_s27   ;;  %s8206_s29 = sadd.s32 4294967294, %s9520_s27   ;;  %s9520_s27 = sphi %s9577_s27, %s17019_s27   ;;  %s9516_s26 = sphi %s9575_s26, %s17018_s26   ;;  %s9512_s25 = sphi %s9573_s25, %s17017_s25   ;;  %s9508_s24 = sphi %s9571_s24, %s17016_s24  }
   0x4   : > { %s9596_s30 = sadd.s32 1, %s9520_s27   ;;  %s179_s8 = sadd.s32 1, %s9516_s26 }
   0x5   : > { %s176_s9 = ssub.s32 %s9520_s27, %s9596_s30  ;;  %p189_p0 = scmp.ne.s32.totalorder %s9516_s26, %s9512_s25 }
   0x6   : > { %p177_p1 = scmp.eq.s32.totalorder %s176_s9, 0  ;;  %p190_p2 = scmp.eq.s32.totalorder %s9592_s28, 7 }
   0x7   : > { %p195_p3 = scmp.ne.s32.totalorder %s9512_s25, %s9508_s24  ;;  %p196_p4 = scmp.eq.s32.totalorder %s8206_s29, 7 }
   0x8   : > { %s9607_s10 = scalar_select %p177_p1, %s9516_s26, %s179_s8  }
   0x9   : > { %p9609_p5 = por %p190_p2, %p189_p0  ;;  %p9613_p6 = por %p196_p4, %p195_p3 }
   0xa   : > { %p8209_p7 = scmp.ge.s32.totalorder %s9520_s27, 1  ;;  %p241_p8 = scmp.lt.s32.totalorder %s9520_s27, 9 }
   0xc   : > { %p242_p9 = pnand %p8209_p7, %p241_p8 }
   0xe   : > { %245 = sbr.rel (%p242_p9) target bundleno = 2248 (0x8c8), region = 48 }
  0x15   : > { %v9176_v0 = vld [vmem:[%s16103_s1] sm:$0xff]   ;;  %s8211_s15 = sshll.u32 %s9592_s28, 5  ;;  %v9177_v1 = vld [vmem:[%s16103_s1 + $0x8] sm:$0xff]   ;;  %vm352_vm0 = vcmask 261120   ;;  %s8575_s23 = sshll.u32 %s9592_s28, 11 }
  0x16   : > { %p274_p10 = scmp.lt.s32.totalorder %s8211_s15, 255  ;;  %8737 = vmatprep.subr.bf16.mxu0 %v9176_v0  ;;  %8869 = vmatprep.subr.bf16.mxu1 %v9176_v0  ;;  %v9682_v50 = vld [vmem:[%s16104_s2] ss:$0 sm:$0xff]  ;;  %s16053_s13 = scalar_lea.hbm %s16109_s7, %s8575_s23 }
  0x17   : > { %8738 = vmatpush3.bf16.msra.mxu0 %v9176_v0  ;;  %8871 = vmatpush3.bf16.msra.mxu1 %v9176_v0 }
  0x18   : > { %s17021_s15 = smov (!%p274_p10, %s8211_s15), 255  ;;  %8739 = vmatprep.subr.bf16.mxu0 %v9177_v1  ;;  %8870 = vmatprep.subr.bf16.mxu1 %v9177_v1 }
  0x19   : > { %s8212_s18 = sshll.u32 %s17021_s15, 3  ;;  %s9528_s15 = smov [#allocation2]  }
  0x1a   : > { %s9629_s21 = scalar_lea.vmem %s16102_s0, %s8212_s18  ;;  %s270_s18 = sand.u32 1, %s9512_s25  }
  0x1b   : > { %8740 = vmatpush3.bf16.msra.mxu0 %v9177_v1  ;;  %8872 = vmatpush3.bf16.msra.mxu1 %v9177_v1  ;;  %v281_v2 = vld [vmem:[%s9629_s21] sm:$0xff]  ;;  %v282_v3 = vld [vmem:[%s9629_s21 + $0x8] sm:$0xff]  ;;  %v283_v7 = vld [vmem:[%s9629_s21 + $0x10] sm:$0xff]  ;;  %s16061_s28 = scalar_lea.sflag [#allocation3], %s270_s18  ;;  %s9462_s16 = sshll.u32 %s9528_s15, 4  ;;  %s9463_s16 = int_to_ptr.vmem [resolvable:$false] %s9462_s16 }
  0x1c   : > { %v297_v4 = vld [vmem:[%s9629_s21 + $0x80] sm:$0xff]  ;;  %v313_v5 = vpack.c.bf16 %v282_v3, %v281_v2  ;;  %v298_v6 = vld [vmem:[%s9629_s21 + $0x88] sm:$0xff]  ;;  %v284_v8 = vld [vmem:[%s9629_s21 + $0x18] sm:$0xff]  ;;  %s9464_s17 = scalar_lea.vmem %s9463_s16, 4096 }
  0x1d   : > { %v321_v9 = vpack.c.bf16 %v298_v6, %v297_v4  ;;  %v314_v10 = vpack.c.bf16 %v284_v8, %v283_v7  ;;  %v299_v11 = vld [vmem:[%s9629_s21 + $0x90] sm:$0xff]  ;;  %v300_v12 = vld [vmem:[%s9629_s21 + $0x98] sm:$0xff]  ;;  %v285_v13 = vld [vmem:[%s9629_s21 + $0x20] sm:$0xff] }
  0x1e   : > { %8741 = vmatprep.mubr.msk.bf16.mxu0 %vm352_vm0, %v313_v5  ;;  %v322_v14 = vpack.c.bf16 %v300_v12, %v299_v11  ;;  %v286_v15 = vld [vmem:[%s9629_s21 + $0x28] sm:$0xff]  ;;  %v301_v16 = vld [vmem:[%s9629_s21 + $0xa0] sm:$0xff]  ;;  %v287_v20 = vld [vmem:[%s9629_s21 + $0x30] sm:$0xff] }
  0x1f   : > { %v302_v17 = vld [vmem:[%s9629_s21 + $0xa8] sm:$0xff]  ;;  %8757 = vmatprep.mubr.msk.bf16.mxu1 %vm352_vm0, %v321_v9  ;;  %8742 = vmatmul.mubr.msk.bf16.vlgmr.msra.gmra.mrb[0].mxu0 %vm352_vm0, %v314_v10  ;;  %v315_v18 = vpack.c.bf16 %v286_v15, %v285_v13  ;;  %v288_v21 = vld [vmem:[%s9629_s21 + $0x38] sm:$0xff]  ;;  %v303_v22 = vld [vmem:[%s9629_s21 + $0xb0] sm:$0xff] }
  0x20   : > { %v323_v19 = vpack.c.bf16 %v302_v17, %v301_v16  ;;  %8758 = vmatmul.mubr.msk.bf16.vlgmr.msra.gmra.mrb[0].mxu1 %vm352_vm0, %v322_v14  ;;  %v304_v23 = vld [vmem:[%s9629_s21 + $0xb8] sm:$0xff]  ;;  %v289_v24 = vld [vmem:[%s9629_s21 + $0x40] sm:$0xff]  ;;  %v290_v25 = vld [vmem:[%s9629_s21 + $0x48] sm:$0xff]  ;;  %v316_v28 = vpack.c.bf16 %v288_v21, %v287_v20 }
  0x21   : > { %8745 = vmatprep.mubr.msk.bf16.mxu0 %vm352_vm0, %v315_v18  ;;  %v305_v26 = vld [vmem:[%s9629_s21 + $0xc0] sm:$0xff]  ;;  %v306_v27 = vld [vmem:[%s9629_s21 + $0xc8] sm:$0xff]  ;;  %v324_v29 = vpack.c.bf16 %v304_v23, %v303_v22  ;;  %v317_v30 = vpack.c.bf16 %v290_v25, %v289_v24  ;;  %v291_v32 = vld [vmem:[%s9629_s21 + $0x50] sm:$0xff] }
  0x22   : > { %8761 = vmatprep.mubr.msk.bf16.mxu1 %vm352_vm0, %v323_v19  ;;  %v325_v31 = vpack.c.bf16 %v306_v27, %v305_v26  ;;  %v292_v33 = vld [vmem:[%s9629_s21 + $0x58] sm:$0xff]  ;;  %v307_v34 = vld [vmem:[%s9629_s21 + $0xd0] sm:$0xff]  ;;  %v293_v36 = vld [vmem:[%s9629_s21 + $0x60] sm:$0xff] }
  0x23   : > { %v308_v35 = vld [vmem:[%s9629_s21 + $0xd8] sm:$0xff]  ;;  %v294_v37 = vld [vmem:[%s9629_s21 + $0x68] sm:$0xff]  ;;  %v309_v38 = vld [vmem:[%s9629_s21 + $0xe0] sm:$0xff]  ;;  %v318_v40 = vpack.c.bf16 %v292_v33, %v291_v32 }
  0x24   : > { %v310_v39 = vld [vmem:[%s9629_s21 + $0xe8] sm:$0xff]  ;;  %v326_v41 = vpack.c.bf16 %v308_v35, %v307_v34  ;;  %v319_v42 = vpack.c.bf16 %v294_v37, %v293_v36  ;;  %v295_v44 = vld [vmem:[%s9629_s21 + $0x70] sm:$0xff]  ;;  %v296_v45 = vld [vmem:[%s9629_s21 + $0x78] sm:$0xff] }
  0x25   : > { %v327_v43 = vpack.c.bf16 %v310_v39, %v309_v38  ;;  %v311_v46 = vld [vmem:[%s9629_s21 + $0xf0] sm:$0xff]  ;;  %v312_v47 = vld [vmem:[%s9629_s21 + $0xf8] sm:$0xff]  ;;  %v320_v48 = vpack.c.bf16 %v296_v45, %v295_v44  ;;  %v16122_v45 = vmov 683565275   ;;  %s8210_s21 = sshll.u32 %s270_s18, 7 }
  0x26   : > { %v328_v49 = vpack.c.bf16 %v312_v47, %v311_v46  ;;  %v16119_v47 = vmov 2475754826   ;;  %s16004_s22 = scalar_lea.vmem [#allocation2], %s8210_s21 }
  0x27   : > { %8746 = vmatmul.mubr.msk.bf16.gmra.mrb[4].mxu0 %vm352_vm0, %v316_v28  ;;  %s8144_s29 = sshll.u32 %s16004_s22, 4  ;;  %s16055_s29 = int_to_ptr.vmem [resolvable:$true] %s8144_s29 }
  0x28   : > { %8762 = vmatmul.mubr.msk.bf16.gmra.mrb[4].mxu1 %vm352_vm0, %v324_v29  ;;  %8749 = vmatprep.mubr.msk.bf16.mxu0 %vm352_vm0, %v317_v30  ;;  %s9458_s14 = scalar_lea.vmem %s16055_s29, 2048  ;;  %p9465_p0 = scmp.lt.s32.totalorder %s16055_s29, %s9463_s16 }
  0x29   : > { %8765 = vmatprep.mubr.msk.bf16.mxu1 %vm352_vm0, %v325_v31  ;;  %p9459_p11 = scmp.ne.s32.totalorder %s16055_s29, %s9458_s14  ;;  %p9466_p1 = scmp.lt.s32.totalorder %s9464_s17, %s9458_s14 }
  0x2b   : > { %p9460_p12 = pnand %p9459_p11, %p9609_p5  ;;  %p9467_p2 = por %p9466_p1, %p9465_p0 }
  0x2d   : > { %p9461_p13 = pneg %p9460_p12 }
  0x2f   : > { %8750 = vmatmul.mubr.msk.bf16.gmra.mrb[8].mxu0 %vm352_vm0, %v318_v40  ;;  %p9468_p3 = pnand %p9467_p2, %p9461_p13 }
  0x30   : > { %8766 = vmatmul.mubr.msk.bf16.gmra.mrb[8].mxu1 %vm352_vm0, %v326_v41  ;;  %8753 = vmatprep.mubr.msk.bf16.mxu0 %vm352_vm0, %v319_v42 }
  0x31   : > { %8769 = vmatprep.mubr.msk.bf16.mxu1 %vm352_vm0, %v327_v43 }
  0x37   : > { %8754 = vmatmul.mubr.msk.bf16.gmra.mrb[12].mxu0 %vm352_vm0, %v320_v48 }
  0x38   : > { %8770 = vmatmul.mubr.msk.bf16.gmra.mrb[12].mxu1 %vm352_vm0, %v328_v49 }
  0xf2   : > { %v8743_v51 = vpop.f32.mrb[0].mxu0 }
  0xf3   : > { %v444_v52 = vadd.f32 %v8743_v51, %v9682_v50  ;;  %v8759_v53 = vpop.f32.mrb[0].mxu1  ;;  %v435_v54 = vpop.f32.mrb[1].mxu0  ;;  %v16115_v51 = vmov 2131351028  }
  0xf4   : > { %v508_v55 = vadd.f32 %v8759_v53, %v9682_v50  ;;  %v436_v56 = vadd.f32 %v9682_v50, %v435_v54  ;;  %v499_v57 = vpop.f32.mrb[1].mxu1  ;;  %v9687_v58 = vpop.f32.mrb[2].mxu0  ;;  %v16117_v53 = vmov 2102212464  }
  0xf5   : > { %v564_v59 = vand.u32 2147483647, %v444_v52  ;;  %v500_v60 = vadd.f32 %v9682_v50, %v499_v57  ;;  %v9690_v61 = vpop.f32.mrb[2].mxu1  ;;  %v9692_v62 = vpop.f32.mrb[3].mxu0 }
  0xf6   : > { %v580_v63 = vand.u32 2147483647, %v508_v55  ;;  %v562_v0 = vand.u32 2147483647, %v436_v56  ;;  %v9694_v1 = vpop.f32.mrb[3].mxu1 }
  0xf7   : > { %v596_v2 = vadd.f32 1.0, %v564_v59  ;;  %v578_v3 = vand.u32 2147483647, %v500_v60 }
  0xf8   : > { %v612_v4 = vadd.f32 1.0, %v580_v63  ;;  %v594_v5 = vadd.f32 1.0, %v562_v0 }
  0xf9   : > { %v628_v6 = vmul.f32 30.0, %v596_v2  ;;  %v610_v7 = vadd.f32 1.0, %v578_v3  ;;  %v16131_v2 = vmov 1326507024  }
  0xfa   : > { %v644_v8 = vmul.f32 30.0, %v612_v4  ;;  %v626_v9 = vmul.f32 30.0, %v594_v5  ;;  %v9704_v16 = vpop.f32.mrb[4].mxu0 }
  0xfb   : > { %v9696_v10 = vmul.f32 %v628_v6, %v444_v52  ;;  %v642_v13 = vmul.f32 30.0, %v610_v7 }
  0xfc   : > { %v9698_v11 = vmul.f32 %v644_v8, %v508_v55  ;;  %v9700_v12 = vmul.f32 %v626_v9, %v436_v56  ;;  %v16133_v55 = vmov 920167782  }
  0xfd   : > { %16408 = vst [vmem:[#allocation5_spill] sm:$0xff] %v9696_v10  ;;  %v898_v14 = vand.u32 2147483647, %v9696_v10  ;;  %v901_v15 = vand.u32 2139095040, %v9696_v10  ;;  %v9713_v24 = vmul.f32 %v642_v13, %v500_v60 }
  0xfe   : > { %16409 = vst [vmem:[#allocation6_spill] sm:$0xff] %v9698_v11  ;;  %16410 = vst [vmem:[#allocation7_spill] sm:$0xff] %v9700_v12  ;;  %v16110_v17 = vand.u32 2147483647, %v9698_v11  ;;  %v2565_v18 = vand.u32 2139095040, %v9698_v11  ;;  %v693_v23 = vand.u32 2139095040, %v9700_v12 }
  0xff   : > { %v902_v19 = vshrl.u32 %v901_v15, 23  ;;  %v905_v20 = vand.u32 8388607, %v898_v14  ;;  %16411 = vst [vmem:[#allocation8_spill] sm:$0xff] %v9713_v24  ;;  %v2357_v33 = vand.u32 2139095040, %v9713_v24 }
 0x100   : > { %v2566_v21 = vshrl.u32 %v2565_v18, 23  ;;  %v2569_v22 = vand.u32 8388607, %v16110_v17  ;;  %v694_v27 = vshrl.u32 %v693_v23, 23  ;;  %v16112_v35 = vand.u32 2147483647, %v9700_v12 }
 0x101   : > { %v8240_v25 = vadd.s32 4294967169, %v902_v19  ;;  %v906_v28 = vor.u32 8388608, %v905_v20  ;;  %v9725_v43 = vshrl.u32 %v2357_v33, 23 }
 0x102   : > { %v8304_v26 = vadd.s32 4294967169, %v2566_v21  ;;  %v2570_v30 = vor.u32 8388608, %v2569_v22  ;;  %v8232_v32 = vadd.s32 4294967169, %v694_v27 }
 0x103   : > { %v908_v29 = vadd.s32 1, %v8240_v25  ;;  %v9717_v38 = vshll.u32 %v906_v28, 8 }
 0x104   : > { %v2572_v31 = vadd.s32 1, %v8304_v26  ;;  %v9721_v41 = vshll.u32 %v2570_v30, 8  ;;  %v9723_v42 = vadd.s32 1, %v8232_v32 }
 0x105   : > { %vm909_vm1 = vcmp.gt.s32.totalorder %v908_v29, 0 }
 0x106   : > { %v910_v34 = vsel %vm909_vm1, %v908_v29, 0  ;;  %vm2573_vm2 = vcmp.gt.s32.totalorder %v2572_v31, 0  ;;  %vm701_vm7 = vcmp.gt.s32.totalorder %v9723_v42, 0 }
 0x107   : > { %v911_v36 = vshrl.u32 %v910_v34, 5  ;;  %v912_v37 = vand.u32 31, %v910_v34  ;;  %v2574_v39 = vsel %vm2573_vm2, %v2572_v31, 0  ;;  %v9753_v34 = vpop.f32.mrb[4].mxu1 }
 0x108   : > { %v9719_v40 = vshrl.u32 %v2574_v39, 5  ;;  %v2576_v49 = vand.u32 31, %v2574_v39 }
 0x109   : > { %v913_v44 = vsub.s32 32, %v912_v37  ;;  %v915_v46 = vshll.u32 %v16122_v45, %v912_v37  ;;  %v918_v48 = vshll.u32 %v16119_v47, %v912_v37  ;;  %v921_v52 = vshll.u32 %v16115_v51, %v912_v37 }
 0x10a   : > { %v924_v54 = vshll.u32 %v16117_v53, %v912_v37  ;;  %v927_v56 = vshll.u32 %v16133_v55, %v912_v37  ;;  %vm930_vm3 = vcmp.lt.s32.totalorder %v911_v36, 1  ;;  %vm931_vm4 = vcmp.lt.s32.totalorder %v911_v36, 2 }
 0x10b   : > { %v916_v57 = vshrl.u32 %v16119_v47, %v913_v44  ;;  %v919_v59 = vshrl.u32 %v16115_v51, %v913_v44  ;;  %v922_v60 = vshrl.u32 %v16117_v53, %v913_v44  ;;  %v914_v63 = vshrl.u32 %v16122_v45, %v913_v44 }
 0x10c   : > { %v925_v0 = vshrl.u32 %v16133_v55, %v913_v44  ;;  %v928_v3 = vshrl.u32 %v16131_v2, %v913_v44  ;;  %vm932_vm5 = vcmp.lt.s32.totalorder %v911_v36, 3  ;;  %v2577_v7 = vsub.s32 32, %v2576_v49 }
 0x10d   : > { %v917_v4 = vor.u32 %v916_v57, %v915_v46  ;;  %v920_v5 = vor.u32 %v919_v59, %v918_v48  ;;  %v923_v6 = vor.u32 %v922_v60, %v921_v52  ;;  %vm933_vm6 = vcmp.lt.s32.totalorder %v911_v36, 4 }
 0x10e   : > { %v926_v8 = vor.u32 %v925_v0, %v924_v54  ;;  %v929_v9 = vor.u32 %v928_v3, %v927_v56  ;;  %v2579_v13 = vshll.u32 %v16122_v45, %v2576_v49  ;;  %v2582_v25 = vshll.u32 %v16119_v47, %v2576_v49 }
 0x10f   : > { %v934_v15 = vsel %vm930_vm3, %v914_v63, %v917_v4  ;;  %v935_v18 = vsel %vm933_vm6, %v923_v6, 2102212464  ;;  %v938_v19 = vsel %vm930_vm3, %v917_v4, %v920_v5  ;;  %v942_v20 = vsel %vm930_vm3, %v920_v5, %v923_v6 }
 0x110   : > { %v936_v21 = vsel %vm932_vm5, %v920_v5, %v935_v18  ;;  %v939_v22 = vsel %vm933_vm6, %v926_v8, 920167782  ;;  %v943_v23 = vsel %vm933_vm6, %v929_v9, 1326507024  ;;  %v2578_v28 = vshrl.u32 %v16122_v45, %v2577_v7 }
 0x111   : > { %v940_v26 = vsel %vm932_vm5, %v923_v6, %v939_v22  ;;  %v944_v27 = vsel %vm932_vm5, %v926_v8, %v943_v23  ;;  %v2580_v29 = vshrl.u32 %v16119_v47, %v2577_v7  ;;  %v937_v30 = vsel %vm931_vm4, %v934_v15, %v936_v21 }
 0x112   : > { %v941_v31 = vsel %vm931_vm4, %v938_v19, %v940_v26  ;;  %v945_v32 = vsel %vm931_vm4, %v942_v20, %v944_v27  ;;  %v2583_v33 = vshrl.u32 %v16115_v51, %v2577_v7  ;;  %v2585_v54 = vshll.u32 %v16115_v51, %v2576_v49 }
 0x113   : > { %v9756_v37 = vmul.u32.u64.low %v9717_v38, %v945_v32  ;;  %v9757_v39 = vmul.u32.u64.high %v9717_v38, %v945_v32, %v9756_v37  ;;  %v9760_v44 = vmul.u32.u64.low %v9717_v38, %v941_v31  ;;  %v9761_v46 = vmul.u32.u64.high %v9717_v38, %v941_v31, %v9760_v44 }
 0x114   : > { %v2581_v48 = vor.u32 %v2580_v29, %v2579_v13  ;;  %v2584_v52 = vor.u32 %v2583_v33, %v2582_v25  ;;  %v2586_v36 = vshrl.u32 %v16117_v53, %v2577_v7  ;;  %v2588_v56 = vshll.u32 %v16117_v53, %v2576_v49 }
 0x115   : > { %v2589_v57 = vshrl.u32 %v16133_v55, %v2577_v7  ;;  %v2591_v59 = vshll.u32 %v16133_v55, %v2576_v49  ;;  %v2592_v60 = vshrl.u32 %v16131_v2, %v2577_v7  ;;  %v953_v63 = vmul.u32 %v9717_v38, %v937_v30 }
 0x116   : > { %v2587_v0 = vor.u32 %v2586_v36, %v2585_v54  ;;  %vm2594_vm8 = vcmp.lt.s32.totalorder %v9719_v40, 1  ;;  %vm2595_vm9 = vcmp.lt.s32.totalorder %v9719_v40, 2  ;;  %vm955_vm10 = vc.u32 %v9757_v39, %v9760_v44 }
 0x117   : > { %v956_v3 = vadd.s32 1, %v9761_v46  ;;  %v2590_v4 = vor.u32 %v2589_v57, %v2588_v56  ;;  %vm2596_vm11 = vcmp.lt.s32.totalorder %v9719_v40, 3  ;;  %v2593_v5 = vor.u32 %v2592_v60, %v2591_v59 }
 0x118   : > { %vm2597_vm12 = vcmp.lt.s32.totalorder %v9719_v40, 4  ;;  %v2598_v49 = vsel %vm2594_vm8, %v2578_v28, %v2581_v48  ;;  %v2602_v6 = vsel %vm2594_vm8, %v2581_v48, %v2584_v52  ;;  %v2606_v9 = vsel %vm2594_vm8, %v2584_v52, %v2587_v0 }
 0x119   : > { %v957_v38 = vsel %vm955_vm10, %v956_v3, %v9761_v46  ;;  %v2599_v7 = vsel %vm2597_vm12, %v2587_v0, 2102212464  ;;  %v2603_v8 = vsel %vm2597_vm12, %v2590_v4, 920167782  ;;  %v2607_v19 = vsel %vm2597_vm12, %v2593_v5, 1326507024 }
 0x11a   : > { %v958_v13 = vadd.s32 %v957_v38, %v953_v63  ;;  %v2600_v15 = vsel %vm2596_vm11, %v2584_v52, %v2599_v7  ;;  %v2604_v18 = vsel %vm2596_vm11, %v2587_v0, %v2603_v8  ;;  %v2608_v22 = vsel %vm2596_vm11, %v2590_v4, %v2607_v19 }
 0x11b   : > { %v2601_v20 = vsel %vm2595_vm9, %v2598_v49, %v2600_v15  ;;  %v2605_v21 = vsel %vm2595_vm9, %v2602_v6, %v2604_v18  ;;  %v702_v23 = vsel %vm701_vm7, %v9723_v42, 0  ;;  %v2609_v26 = vsel %vm2595_vm9, %v2606_v9, %v2608_v22  ;;  %v9826_v49 = vpop.f32.mrb[5].mxu0 }
 0x11c   : > { %v959_v25 = vadd.s32 536870912, %v958_v13  ;;  %v9789_v27 = vmul.u32.u64.low %v9721_v41, %v2605_v21  ;;  %v9790_v28 = vmul.u32.u64.high %v9721_v41, %v2605_v21, %v9789_v27  ;;  %v9799_v31 = vadd.f32 %v9687_v58, %v9682_v50 }
 0x11d   : > { %v9794_v29 = vmul.u32.u64.low %v9721_v41, %v2609_v26  ;;  %v9795_v30 = vmul.u32.u64.high %v9721_v41, %v2609_v26, %v9794_v29  ;;  %v697_v42 = vand.u32 8388607, %v16112_v35  ;;  %v704_v40 = vand.u32 31, %v702_v23 }
 0x11e   : > { %v9801_v32 = vshrl.u32 %v959_v25, 30  ;;  %v2617_v33 = vmul.u32 %v9721_v41, %v2601_v20  ;;  %v2620_v46 = vadd.s32 1, %v9790_v28  ;;  %v8296_v52 = vadd.s32 4294967169, %v9725_v43 }
 0x11f   : > { %v705_v48 = vsub.s32 32, %v704_v40  ;;  %vm2619_vm13 = vc.u32 %v9795_v30, %v9789_v27  ;;  %v703_v58 = vshrl.u32 %v702_v23, 5  ;;  %v565_v54 = vand.u32 2147483647, %v9799_v31 }
 0x120   : > { %v961_v37 = vshll.u32 %v9801_v32, 30  ;;  %v9814_v36 = vadd.f32 %v9690_v61, %v9682_v50  ;;  %v2621_v41 = vsel %vm2619_vm13, %v2620_v46, %v9790_v28  ;;  %v698_v57 = vor.u32 8388608, %v697_v42 }
 0x121   : > { %v707_v59 = vshll.u32 %v16122_v45, %v704_v40  ;;  %v2622_v60 = vadd.s32 %v2621_v41, %v2617_v33  ;;  %v708_v43 = vshrl.u32 %v16119_v47, %v705_v48  ;;  %v710_v63 = vshll.u32 %v16119_v47, %v704_v40 }
 0x122   : > { %v9816_v56 = vsub.s32 %v958_v13, %v961_v37  ;;  %v711_v0 = vshrl.u32 %v16115_v51, %v705_v48  ;;  %v713_v4 = vshll.u32 %v16115_v51, %v704_v40  ;;  %v714_v61 = vshrl.u32 %v16117_v53, %v705_v48 }
 0x123   : > { %v2364_v5 = vadd.s32 1, %v8296_v52  ;;  %v2623_v6 = vadd.s32 536870912, %v2622_v60  ;;  %v709_v38 = vor.u32 %v708_v43, %v707_v59  ;;  %vm722_vm14 = vcmp.lt.s32.totalorder %v703_v58, 1 }
 0x124   : > { %v964_v3 = vsub.s32 0, %v9816_v56  ;;  %v712_v7 = vor.u32 %v711_v0, %v710_v63  ;;  %v715_v9 = vor.u32 %v714_v61, %v713_v4  ;;  %v716_v13 = vshll.u32 %v16117_v53, %v704_v40 }
 0x125   : > { %v717_v15 = vshrl.u32 %v16133_v55, %v705_v48  ;;  %v9831_v18 = vshrl.u32 %v2623_v6, 30  ;;  %v719_v19 = vshll.u32 %v16133_v55, %v704_v40  ;;  %v720_v20 = vshrl.u32 %v16131_v2, %v705_v48 }
 0x126   : > { %v8241_v8 = vmin.u32 %v964_v3, %v9816_v56  ;;  %vm725_vm15 = vcmp.lt.s32.totalorder %v703_v58, 4  ;;  %vm723_vm0 = vcmp.lt.s32.totalorder %v703_v58, 2  ;;  %v706_v26 = vshrl.u32 %v16122_v45, %v705_v48 }
 0x127   : > { %16412 = vst [vmem:[#allocation9_spill] sm:$0xff] %v9831_v18  ;;  %v718_v22 = vor.u32 %v717_v15, %v716_v13  ;;  %v727_v23 = vsel %vm725_vm15, %v715_v9, 2102212464  ;;  %v2625_v25 = vshll.u32 %v9831_v18, 30  ;;  %v721_v28 = vor.u32 %v720_v20, %v719_v19 }
 0x128   : > { %v966_v21 = vclz %v8241_v8  ;;  %vm724_vm1 = vcmp.lt.s32.totalorder %v703_v58, 3  ;;  %v730_v29 = vsel %vm722_vm14, %v709_v38, %v712_v7  ;;  %v734_v40 = vsel %vm722_vm14, %v712_v7, %v715_v9 }
 0x129   : > { %v731_v42 = vsel %vm725_vm15, %v718_v22, 920167782  ;;  %vm2365_vm2 = vcmp.gt.s32.totalorder %v2364_v5, 0  ;;  %v726_v33 = vsel %vm722_vm14, %v706_v26, %v709_v38  ;;  %v728_v37 = vsel %vm724_vm1, %v712_v7, %v727_v23 }
 0x12a   : > { %v732_v46 = vsel %vm724_vm1, %v715_v9, %v731_v42  ;;  %v735_v52 = vsel %vm725_vm15, %v721_v28, 1326507024  ;;  %v8242_v41 = vadd.s32 4294967294, %v966_v21  ;;  %v9843_v59 = vsub.s32 %v2622_v60, %v2625_v25 }
 0x12b   : > { %v736_v43 = vsel %vm724_vm1, %v718_v22, %v735_v52  ;;  %v2366_v48 = vsel %vm2365_vm2, %v2364_v5, 0  ;;  %v733_v63 = vsel %vm723_vm0, %v730_v29, %v732_v46  ;;  %v738_v3 = vshll.u32 %v698_v57, 8 }
 0x12c   : > { %v737_v0 = vsel %vm723_vm0, %v734_v40, %v736_v43  ;;  %v2368_v4 = vand.u32 31, %v2366_v48  ;;  %v597_v61 = vadd.f32 1.0, %v565_v54  ;;  %v581_v6 = vand.u32 2147483647, %v9814_v36 }
 0x12d   : > { %v729_v38 = vsel %vm723_vm0, %v726_v33, %v728_v37  ;;  %v9849_v7 = vmul.u32.u64.low %v738_v3, %v737_v0  ;;  %v9850_v8 = vmul.u32.u64.high %v738_v3, %v737_v0, %v9849_v7  ;;  %v16111_v9 = vand.u32 2147483647, %v9713_v24 }
 0x12e   : > { %vm8243_vm3 = vcmp.lt.s32.totalorder %v8242_v41, 0  ;;  %v2628_v60 = vsub.s32 0, %v9843_v59  ;;  %v9854_v5 = vmul.u32.u64.low %v738_v3, %v733_v63  ;;  %v9855_v13 = vmul.u32.u64.high %v738_v3, %v733_v63, %v9854_v5 }
 0x12f   : > { %v2369_v15 = vsub.s32 32, %v2368_v4  ;;  %v629_v57 = vmul.f32 30.0, %v597_v61  ;;  %v613_v19 = vadd.f32 1.0, %v581_v6  ;;  %v9860_v54 = vadd.f32 %v9682_v50, %v9692_v62 }
 0x130   : > { %v9862_v58 = vsel %vm8243_vm3, 0, %v8242_v41  ;;  %v745_v20 = vmul.u32 %v738_v3, %v729_v38  ;;  %vm747_vm4 = vc.u32 %v9850_v8, %v9854_v5  ;;  %v2361_v21 = vand.u32 8388607, %v16111_v9 }
 0x131   : > { %v8305_v22 = vmin.u32 %v2628_v60, %v9843_v59  ;;  %v748_v23 = vadd.s32 1, %v9855_v13  ;;  %v2367_v25 = vshrl.u32 %v2366_v48, 5  ;;  %v2371_v26 = vshll.u32 %v16122_v45, %v2368_v4 }
 0x132   : > { %v2372_v28 = vshrl.u32 %v16119_v47, %v2369_v15  ;;  %v2374_v62 = vshll.u32 %v16119_v47, %v2368_v4  ;;  %v2377_v29 = vshll.u32 %v16115_v51, %v2368_v4  ;;  %v2380_v42 = vshll.u32 %v16117_v53, %v2368_v4 }
 0x133   : > { %v749_v40 = vsel %vm747_vm4, %v748_v23, %v9855_v13  ;;  %v2375_v33 = vshrl.u32 %v16115_v51, %v2369_v15  ;;  %v2378_v37 = vshrl.u32 %v16117_v53, %v2369_v15  ;;  %v2381_v46 = vshrl.u32 %v16133_v55, %v2369_v15 }
 0x134   : > { %v974_v52 = vsub.s32 4294967266, %v9862_v58  ;;  %v750_v41 = vadd.s32 %v749_v40, %v745_v20  ;;  %v563_v43 = vand.u32 2147483647, %v9860_v54  ;;  %v9883_v48 = vadd.f32 %v9682_v50, %v9694_v1 }
 0x135   : > { %v2362_v63 = vor.u32 8388608, %v2361_v21  ;;  %vm2386_vm5 = vcmp.lt.s32.totalorder %v2367_v25, 1  ;;  %v9886_v0 = vmul.f32 %v629_v57, %v9799_v31  ;;  %v645_v3 = vmul.f32 30.0, %v613_v19 }
 0x136   : > { %v2630_v61 = vclz %v8305_v22  ;;  %v751_v6 = vadd.s32 536870912, %v750_v41  ;;  %v2373_v38 = vor.u32 %v2372_v28, %v2371_v26  ;;  %v2383_v7 = vshll.u32 %v16133_v55, %v2368_v4 }
 0x137   : > { %16413 = vst [vmem:[#allocation10_spill] sm:$0xff] %v9886_v0  ;;  %v2376_v60 = vor.u32 %v2375_v33, %v2374_v62  ;;  %v2379_v13 = vor.u32 %v2378_v37, %v2377_v29  ;;  %v2382_v20 = vor.u32 %v2381_v46, %v2380_v42  ;;  %v2384_v23 = vshrl.u32 %v16131_v2, %v2369_v15  ;;  %v9903_v29 = vpop.f32.mrb[5].mxu1 }
 0x138   : > { %v975_v40 = vadd.s32 127, %v974_v52  ;;  %v9890_v17 = vshrl.u32 %v751_v6, 30  ;;  %v2370_v1 = vshrl.u32 %v16122_v45, %v2369_v15  ;;  %vm2389_vm6 = vcmp.lt.s32.totalorder %v2367_v25, 4 }
 0x139   : > { %v2385_v21 = vor.u32 %v2384_v23, %v2383_v7  ;;  %v2391_v31 = vsel %vm2389_vm6, %v2379_v13, 2102212464  ;;  %v2402_v57 = vshll.u32 %v2362_v63, 8  ;;  %v9895_v19 = vmul.f32 %v645_v3, %v9814_v36 }
 0x13a   : > { %16414 = vst [vmem:[#allocation11_spill] sm:$0xff] %v9890_v17  ;;  %v970_v4 = vsub.s32 32, %v9862_v58  ;;  %v8306_v22 = vadd.s32 4294967294, %v2630_v61  ;;  %v753_v26 = vshll.u32 %v9890_v17, 30  ;;  %vm2388_vm7 = vcmp.lt.s32.totalorder %v2367_v25, 3 }
 0x13b   : > { %16415 = vst [vmem:[#allocation12_spill] sm:$0xff] %v9895_v19  ;;  %v954_v28 = vadd.s32 %v9760_v44, %v9757_v39  ;;  %vm2387_vm8 = vcmp.lt.s32.totalorder %v2367_v25, 2  ;;  %v2394_v15 = vsel %vm2386_vm5, %v2373_v38, %v2376_v60  ;;  %v2395_v62 = vsel %vm2389_vm6, %v2382_v20, 920167782 }
 0x13c   : > { %v976_v42 = vshll.u32 %v975_v40, 23  ;;  %v984_v36 = vsub.s32 4, %v9801_v32  ;;  %v2390_v33 = vsel %vm2386_vm5, %v2370_v1, %v2373_v38  ;;  %v2392_v37 = vsel %vm2388_vm7, %v2376_v60, %v2391_v31 }
 0x13d   : > { %v9908_v46 = vsub.s32 %v750_v41, %v753_v26  ;;  %v2396_v52 = vsel %vm2388_vm7, %v2379_v13, %v2395_v62  ;;  %v2398_v39 = vsel %vm2386_vm5, %v2376_v60, %v2379_v13  ;;  %v2399_v44 = vsel %vm2389_vm6, %v2385_v21, 1326507024 }
 0x13e   : > { %v972_v63 = vshrl.u32 %v954_v28, %v970_v4  ;;  %vm8307_vm9 = vcmp.lt.s32.totalorder %v8306_v22, 0  ;;  %v2397_v3 = vsel %vm2387_vm8, %v2394_v15, %v2396_v52  ;;  %v2400_v61 = vsel %vm2388_vm7, %v2382_v20, %v2399_v44 }
 0x13f   : > { %v2393_v6 = vsel %vm2387_vm8, %v2390_v33, %v2392_v37  ;;  %v2401_v38 = vsel %vm2387_vm8, %v2398_v39, %v2400_v61  ;;  %v9917_v7 = vmul.u32.u64.low %v2402_v57, %v2397_v3  ;;  %v9918_v23 = vmul.u32.u64.high %v2402_v57, %v2397_v3, %v9917_v7 }
 0x140   : > { %v971_v41 = vshll.u32 %v9816_v56, %v9862_v58  ;;  %v977_v60 = vor.u32 4788187, %v976_v42  ;;  %v9923_v13 = vmul.u32.u64.low %v2402_v57, %v2401_v38  ;;  %v9924_v40 = vmul.u32.u64.high %v2402_v57, %v2401_v38, %v9923_v13 }
 0x141   : > { %v9926_v1 = vsel %vm8307_vm9, 0, %v8306_v22  ;;  %v756_v21 = vsub.s32 0, %v9908_v46  ;;  %v1005_v20 = vand.u32 2139095040, %v9886_v0  ;;  %v579_v25 = vand.u32 2147483647, %v9883_v48  ;;  %v9958_v13 = vpop.f32.mrb[6].mxu0 }
 0x142   : > { %vm900_vm10 = vcmp.lt.s32.totalorder %v9696_v10, 0  ;;  %v973_v31 = vor.u32 %v972_v63, %v971_v41  ;;  %v2409_v4 = vmul.u32 %v2402_v57, %v2393_v6  ;;  %v2669_v26 = vand.u32 2139095040, %v9895_v19 }
 0x143   : > { %v985_v56 = vsel %vm900_vm10, %v984_v36, %v9801_v32  ;;  %v2412_v58 = vadd.s32 1, %v9918_v23  ;;  %v1006_v22 = vshrl.u32 %v1005_v20, 23  ;;  %v595_v28 = vadd.f32 1.0, %v563_v43 }
 0x144   : > { %v978_v15 = vand.u32 2147483647, %v977_v60  ;;  %v2638_v62 = vsub.s32 4294967266, %v9926_v1  ;;  %vm2411_vm11 = vc.u32 %v9924_v40, %v9917_v7  ;;  %v2670_v42 = vshrl.u32 %v2669_v26, 23 }
 0x145   : > { %v8233_v33 = vmin.u32 %v756_v21, %v9908_v46  ;;  %v2413_v57 = vsel %vm2411_vm11, %v2412_v58, %v9918_v23  ;;  %v16113_v37 = vand.u32 2147483647, %v9886_v0  ;;  %v8244_v52 = vadd.s32 4294967169, %v1006_v22 }
 0x146   : > { %vm9945_vm12 = vcmp.le.f32.partialorder %v898_v14, 0.7853982  ;;  %v980_v43 = vcvt.s32.f32 %v973_v31  ;;  %v2414_v36 = vadd.s32 %v2413_v57, %v2409_v4  ;;  %v8308_v39 = vadd.s32 4294967169, %v2670_v42 }
 0x147   : > { %v987_v44 = vsel %vm9945_vm12, 0, %v985_v56  ;;  %v1012_v63 = vadd.s32 1, %v8244_v52  ;;  %v9951_v3 = vadd.f32 1.0, %v579_v25  ;;  %v2634_v6 = vsub.s32 32, %v9926_v1 }
 0x148   : > { %v981_v61 = vmul.f32 %v980_v43, %v978_v15  ;;  %v2639_v38 = vadd.s32 127, %v2638_v62  ;;  %v2415_v23 = vadd.s32 536870912, %v2414_v36  ;;  %v758_v41 = vclz %v8233_v33 }
 0x149   : > { %v1009_v14 = vand.u32 8388607, %v16113_v37  ;;  %vm1013_vm13 = vcmp.gt.s32.totalorder %v1012_v63, 0  ;;  %v9956_v60 = vmul.f32 30.0, %v595_v28  ;;  %v2618_v21 = vadd.s32 %v9789_v27, %v9795_v30 }
 0x14a   : > { %v9962_v20 = vshrl.u32 %v2415_v23, 30  ;;  %v1014_v25 = vsel %vm1013_vm13, %v1012_v63, 0  ;;  %v2676_v31 = vadd.s32 1, %v8308_v39  ;;  %v9964_v4 = vadd.s32 3, %v987_v44 }
 0x14b   : > { %v2635_v26 = vshll.u32 %v9843_v59, %v9926_v1  ;;  %v9970_v56 = vadd.s32 %v9854_v5, %v9850_v8  ;;  %v1016_v58 = vand.u32 31, %v1014_v25  ;;  %v982_v22 = vxor.u32 2147483648, %v981_v61 }
 0x14c   : > { %16418 = vst [vmem:[#allocation13_spill] sm:$0xff] %v9962_v20  ;;  %v2636_v28 = vshrl.u32 %v2618_v21, %v2634_v6  ;;  %v2640_v15 = vshll.u32 %v2639_v38, 23  ;;  %v2417_v62 = vshll.u32 %v9962_v20, 30  ;;  %v8234_v27 = vadd.s32 4294967294, %v758_v41 }
 0x14d   : > { %v1010_v30 = vor.u32 8388608, %v1009_v14  ;;  %v1017_v42 = vsub.s32 32, %v1016_v58  ;;  %v16114_v33 = vand.u32 2147483647, %v9895_v19  ;;  %v1015_v52 = vshrl.u32 %v1014_v25, 5 }
 0x14e   : > { %v9974_v57 = vsub.s32 %v2414_v36, %v2417_v62  ;;  %v1019_v59 = vshll.u32 %v16122_v45, %v1016_v58  ;;  %vm2677_vm14 = vcmp.gt.s32.totalorder %v2676_v31, 0  ;;  %v1022_v5 = vshll.u32 %v16119_v47, %v1016_v58 }
 0x14f   : > { %v1020_v8 = vshrl.u32 %v16119_v47, %v1017_v42  ;;  %v1023_v1 = vshrl.u32 %v16115_v51, %v1017_v42  ;;  %v1026_v43 = vshrl.u32 %v16117_v53, %v1017_v42  ;;  %v1025_v44 = vshll.u32 %v16115_v51, %v1016_v58 }
 0x150   : > { %v2420_v39 = vsub.s32 0, %v9974_v57  ;;  %v1028_v63 = vshll.u32 %v16117_v53, %v1016_v58  ;;  %v1029_v36 = vshrl.u32 %v16133_v55, %v1017_v42  ;;  %v1031_v23 = vshll.u32 %v16133_v55, %v1016_v58 }
 0x151   : > { %v1021_v6 = vor.u32 %v1020_v8, %v1019_v59  ;;  %v1024_v38 = vor.u32 %v1023_v1, %v1022_v5  ;;  %v1032_v41 = vshrl.u32 %v16131_v2, %v1017_v42  ;;  %v9989_v14 = vsel %vm900_vm10, %v982_v22, %v981_v61 }
 0x152   : > { %v9991_v21 = vor.u32 %v2636_v28, %v2635_v26  ;;  %v1027_v25 = vor.u32 %v1026_v43, %v1025_v44  ;;  %v1030_v62 = vor.u32 %v1029_v36, %v1028_v63  ;;  %v9993_v9 = vor.u32 4788187, %v2640_v15 }
 0x153   : > { %v1033_v35 = vor.u32 %v1032_v41, %v1031_v23  ;;  %v1050_v37 = vshll.u32 %v1010_v30, 8  ;;  %v2673_v59 = vand.u32 8388607, %v16114_v33  ;;  %vm8235_vm15 = vcmp.lt.s32.totalorder %v8234_v27, 0 }
 0x154   : > { %vm1034_vm0 = vcmp.lt.s32.totalorder %v1015_v52, 1  ;;  %vm1037_vm1 = vcmp.lt.s32.totalorder %v1015_v52, 4  ;;  %v2678_v58 = vsel %vm2677_vm14, %v2676_v31, 0  ;;  %v8297_v8 = vmin.u32 %v2420_v39, %v9974_v57 }
 0x155   : > { %vm1036_vm2 = vcmp.lt.s32.totalorder %v1015_v52, 3  ;;  %v1042_v61 = vsel %vm1034_vm0, %v1021_v6, %v1024_v38  ;;  %v1043_v26 = vsel %vm1037_vm1, %v1030_v62, 920167782  ;;  %vm1035_vm3 = vcmp.lt.s32.totalorder %v1015_v52, 2 }
 0x156   : > { %v1039_v22 = vsel %vm1037_vm1, %v1027_v25, 2102212464  ;;  %v1044_v28 = vsel %vm1036_vm2, %v1027_v25, %v1043_v26  ;;  %v1046_v15 = vsel %vm1034_vm0, %v1024_v38, %v1027_v25  ;;  %v10001_v30 = vsel %vm8235_vm15, 0, %v8234_v27 }
 0x157   : > { %v1018_v5 = vshrl.u32 %v16122_v45, %v1017_v42  ;;  %v1045_v1 = vsel %vm1035_vm3, %v1042_v61, %v1044_v28  ;;  %v1047_v43 = vsel %vm1037_vm1, %v1033_v35, 1326507024  ;;  %v2674_v39 = vor.u32 8388608, %v2673_v59 }
 0x158   : > { %v1048_v44 = vsel %vm1036_vm2, %v1030_v62, %v1047_v43  ;;  %v10005_v31 = vmul.u32.u64.low %v1050_v37, %v1045_v1  ;;  %v10006_v63 = vmul.u32.u64.high %v1050_v37, %v1045_v1, %v10005_v31  ;;  %v1040_v23 = vsel %vm1036_vm2, %v1024_v38, %v1039_v22 }
 0x159   : > { %v1038_v36 = vsel %vm1034_vm0, %v1018_v5, %v1021_v6  ;;  %v1049_v41 = vsel %vm1035_vm3, %v1046_v15, %v1048_v44  ;;  %v2680_v26 = vand.u32 31, %v2678_v58  ;;  %v766_v25 = vsub.s32 4294967266, %v10001_v30 }
 0x15a   : > { %v2422_v42 = vclz %v8297_v8  ;;  %v10015_v35 = vmul.f32 %v9956_v60, %v9860_v54  ;;  %v10017_v62 = vmul.u32.u64.low %v1050_v37, %v1049_v41  ;;  %v10018_v61 = vmul.u32.u64.high %v1050_v37, %v1049_v41, %v10017_v62 }
 0x15b   : > { %v2679_v28 = vshrl.u32 %v2678_v58, 5  ;;  %v2681_v59 = vsub.s32 32, %v2680_v26  ;;  %v1041_v6 = vsel %vm1035_vm3, %v1038_v36, %v1040_v23  ;;  %v1060_v38 = vadd.s32 1, %v10006_v63 }
 0x15c   : > { %16419 = vst [vmem:[#allocation14_spill] sm:$0xff] %v10015_v35  ;;  %v2683_v22 = vshll.u32 %v16122_v45, %v2680_v26  ;;  %v2686_v15 = vshll.u32 %v16119_v47, %v2680_v26  ;;  %v2689_v54 = vshll.u32 %v16115_v51, %v2680_v26  ;;  %v10027_v60 = vshll.u32 %v2674_v39, 8 }
 0x15d   : > { %v2684_v5 = vshrl.u32 %v16119_v47, %v2681_v59  ;;  %v2687_v8 = vshrl.u32 %v16115_v51, %v2681_v59  ;;  %v762_v1 = vsub.s32 32, %v10001_v30  ;;  %v767_v58 = vadd.s32 127, %v766_v25 }
 0x15e   : > { %v8298_v43 = vadd.s32 4294967294, %v2422_v42  ;;  %v2690_v52 = vshrl.u32 %v16117_v53, %v2681_v59  ;;  %v1057_v44 = vmul.u32 %v1050_v37, %v1041_v6  ;;  %vm1059_vm4 = vc.u32 %v10018_v61, %v10005_v31 }
 0x15f   : > { %v2692_v36 = vshll.u32 %v16117_v53, %v2680_v26  ;;  %vm2698_vm5 = vcmp.lt.s32.totalorder %v2679_v28, 1  ;;  %v1061_v23 = vsel %vm1059_vm4, %v1060_v38, %v10006_v63  ;;  %v2685_v41 = vor.u32 %v2684_v5, %v2683_v22 }
 0x160   : > { %v2688_v62 = vor.u32 %v2687_v8, %v2686_v15  ;;  %v2691_v33 = vor.u32 %v2690_v52, %v2689_v54  ;;  %v1062_v39 = vadd.s32 %v1061_v23, %v1057_v44  ;;  %v2693_v51 = vshrl.u32 %v16133_v55, %v2681_v59  ;;  %v10042_v15 = vpop.f32.mrb[6].mxu1 }
 0x161   : > { %v2695_v25 = vshll.u32 %v16133_v55, %v2680_v26  ;;  %v2696_v42 = vshrl.u32 %v16131_v2, %v2681_v59  ;;  %v2682_v37 = vshrl.u32 %v16122_v45, %v2681_v59  ;;  %vm2700_vm6 = vcmp.lt.s32.totalorder %v2679_v28, 3 }
 0x162   : > { %vm2701_vm7 = vcmp.lt.s32.totalorder %v2679_v28, 4  ;;  %v797_v6 = vand.u32 2139095040, %v10015_v35  ;;  %v1063_v53 = vadd.s32 536870912, %v1062_v39  ;;  %v2694_v47 = vor.u32 %v2693_v51, %v2692_v36 }
 0x163   : > { %v2697_v27 = vor.u32 %v2696_v42, %v2695_v25  ;;  %v2703_v63 = vsel %vm2701_vm7, %v2691_v33, 2102212464  ;;  %vm8299_vm8 = vcmp.lt.s32.totalorder %v8298_v43, 0  ;;  %vm2699_vm9 = vcmp.lt.s32.totalorder %v2679_v28, 2 }
 0x164   : > { %v2706_v38 = vsel %vm2698_vm5, %v2685_v41, %v2688_v62  ;;  %v2710_v22 = vsel %vm2698_vm5, %v2688_v62, %v2691_v33  ;;  %v764_v26 = vshrl.u32 %v9970_v56, %v762_v1  ;;  %v10045_v5 = vshrl.u32 %v1063_v53, 30 }
 0x165   : > { %v2707_v59 = vsel %vm2701_vm7, %v2694_v47, 920167782  ;;  %v2711_v8 = vsel %vm2701_vm7, %v2697_v27, 1326507024  ;;  %v2702_v54 = vsel %vm2698_vm5, %v2682_v37, %v2685_v41  ;;  %v2704_v51 = vsel %vm2700_vm6, %v2688_v62, %v2703_v63 }
 0x166   : > { %v2708_v52 = vsel %vm2700_vm6, %v2691_v33, %v2707_v59  ;;  %v2712_v44 = vsel %vm2700_vm6, %v2694_v47, %v2711_v8  ;;  %v10051_v36 = vsel %vm8299_vm8, 0, %v8298_v43  ;;  %v1065_v23 = vshll.u32 %v10045_v5, 30 }
 0x167   : > { %v2709_v25 = vsel %vm2699_vm9, %v2706_v38, %v2708_v52  ;;  %v2713_v56 = vsel %vm2699_vm9, %v2710_v22, %v2712_v44  ;;  %v768_v53 = vshll.u32 %v767_v58, 23  ;;  %v798_v41 = vshrl.u32 %v797_v6, 23 }
 0x168   : > { %v10057_v1 = vmul.u32.u64.low %v10027_v60, %v2713_v56  ;;  %v10058_v27 = vmul.u32.u64.high %v10027_v60, %v2713_v56, %v10057_v1  ;;  %v10060_v42 = vsub.s32 %v1062_v39, %v1065_v23  ;;  %v2705_v33 = vsel %vm2699_vm9, %v2702_v54, %v2704_v51 }
 0x169   : > { %v10064_v47 = vmul.u32.u64.low %v10027_v60, %v2709_v25  ;;  %v10065_v43 = vmul.u32.u64.high %v10027_v60, %v2709_v25, %v10064_v47  ;;  %v2644_v62 = vcvt.s32.f32 %v9991_v21  ;;  %v2430_v37 = vsub.s32 4294967266, %v10051_v36 }
 0x16a   : > { %v16121_v58 = vand.u32 2147483647, %v10015_v35  ;;  %v8236_v63 = vadd.s32 4294967169, %v798_v41  ;;  %v986_v39 = vsel %vm9945_vm12, %v9696_v10, %v9989_v14  ;;  %v763_v28 = vshll.u32 %v9908_v46, %v10001_v30 }
 0x16b   : > { %v1068_v6 = vsub.s32 0, %v10060_v42  ;;  %v643_v38 = vmul.f32 30.0, %v9951_v3  ;;  %v16420_v22 = vand.u32 2147483647, %v9993_v9  ;;  %v2721_v59 = vmul.u32 %v10027_v60, %v2705_v33 }
 0x16c   : > { %vm2723_vm10 = vc.u32 %v10058_v27, %v10064_v47  ;;  %v804_v8 = vadd.s32 1, %v8236_v63  ;;  %v10086_v54 = vor.u32 %v764_v26, %v763_v28  ;;  %v10088_v32 = vor.u32 4788187, %v768_v53  ;;  %v10113_v63 = vpop.f32.mrb[7].mxu0 }
 0x16d   : > { %v10081_v21 = vmul.f32 %v2644_v62, %v16420_v22  ;;  %v8245_v46 = vmin.u32 %v1068_v6, %v10060_v42  ;;  %v2724_v14 = vadd.s32 1, %v10065_v43  ;;  %9194 = vcosq.f32 %v986_v39 }
 0x16e   : > { %v10092_v3 = vadd.s32 127, %v2430_v37  ;;  %v801_v9 = vand.u32 8388607, %v16121_v58  ;;  %vm805_vm11 = vcmp.gt.s32.totalorder %v804_v8, 0  ;;  %v10098_v26 = vmul.f32 %v643_v38, %v9883_v48 }
 0x16f   : > { %v1070_v30 = vclz %v8245_v46  ;;  %v2725_v60 = vsel %vm2723_vm10, %v2724_v14, %v10065_v43  ;;  %v806_v51 = vsel %vm805_vm11, %v804_v8, 0  ;;  %9196 = vsinq.f32 %v986_v39 }
 0x170   : > { %16421 = vst [vmem:[#allocation15_spill] sm:$0xff] %v10098_v26  ;;  %v10101_v52 = vand.u32 3, %v9964_v4  ;;  %v2726_v44 = vadd.s32 %v2725_v60, %v2721_v59  ;;  %v808_v23 = vand.u32 31, %v806_v51  ;;  %v802_v62 = vor.u32 8388608, %v801_v9 }
 0x171   : > { %v8246_v1 = vadd.s32 4294967294, %v1070_v30  ;;  %v2461_v4 = vand.u32 2139095040, %v10098_v26  ;;  %v10111_v37 = vadd.f32 %v9704_v16, %v9682_v50  ;;  %v807_v28 = vshrl.u32 %v806_v51, 5 }
 0x172   : > { %16422 = vst [vmem:[#allocation16_spill] sm:$0xff] %v10101_v52  ;;  %v2727_v43 = vadd.s32 536870912, %v2726_v44  ;;  %v809_v48 = vsub.s32 32, %v808_v23  ;;  %v811_v6 = vshll.u32 %v16122_v45, %v808_v23  ;;  %v16424_v38 = vmov 2475754826  }
 0x173   : > { %vm8247_vm12 = vcmp.lt.s32.totalorder %v8246_v1, 0  ;;  %v814_v59 = vshll.u32 %v16424_v38, %v808_v23  ;;  %v16425_v8 = vmov 2131351028   ;;  %v16426_v9 = vmov 2102212464  }
 0x174   : > { %v10115_v39 = vshrl.u32 %v2727_v43, 30  ;;  %v812_v22 = vshrl.u32 %v16424_v38, %v809_v48  ;;  %v815_v46 = vshrl.u32 %v16425_v8, %v809_v48  ;;  %v817_v14 = vshll.u32 %v16425_v8, %v808_v23 }
 0x175   : > { %v820_v30 = vshll.u32 %v16426_v9, %v808_v23  ;;  %v1073_v60 = vsel %vm8247_vm12, 0, %v8246_v1  ;;  %v818_v16 = vshrl.u32 %v16426_v9, %v809_v48  ;;  %v821_v43 = vshrl.u32 %v16133_v55, %v809_v48 }
 0x176   : > { %16423 = vst [vmem:[#allocation17_spill] sm:$0xff] %v10115_v39  ;;  %v2729_v50 = vshll.u32 %v10115_v39, 30  ;;  %v813_v51 = vor.u32 %v812_v22, %v811_v6  ;;  %v816_v58 = vor.u32 %v815_v46, %v814_v59  ;;  %v823_v25 = vshll.u32 %v16133_v55, %v808_v23 }
 0x177   : > { %v824_v33 = vshrl.u32 %v16131_v2, %v809_v48  ;;  %v10128_v41 = vpop.eup %9194  ;;  %v1058_v53 = vadd.s32 %v10005_v31, %v10018_v61  ;;  %v819_v1 = vor.u32 %v818_v16, %v817_v14  ;;  %v822_v45 = vor.u32 %v821_v43, %v820_v30 }
 0x178   : > { %16427 = vst [vmem:[#allocation18_spill] sm:$0xff] %v10128_v41  ;;  %v10132_v56 = vsub.s32 %v2726_v44, %v2729_v50  ;;  %v1078_v39 = vsub.s32 4294967266, %v1073_v60  ;;  %v842_v20 = vshll.u32 %v802_v62, 8  ;;  %v1074_v22 = vsub.s32 32, %v1073_v60 }
 0x179   : > { %v825_v18 = vor.u32 %v824_v33, %v823_v25  ;;  %v10135_v6 = vpop.eup %9196  ;;  %vm826_vm13 = vcmp.lt.s32.totalorder %v807_v28, 1  ;;  %v2462_v23 = vshrl.u32 %v2461_v4, 23  ;;  %v568_v59 = vand.u32 2147483647, %v10111_v37 }
 0x17a   : > { %16428 = vst [vmem:[#allocation19_spill] sm:$0xff] %v10135_v6  ;;  %v2732_v46 = vsub.s32 0, %v10132_v56  ;;  %v16429_v2 = vmov 683565275   ;;  %vm829_vm14 = vcmp.lt.s32.totalorder %v807_v28, 4  ;;  %v834_v61 = vsel %vm826_vm13, %v813_v51, %v816_v58 }
 0x17b   : > { %v810_v31 = vshrl.u32 %v16429_v2, %v809_v48  ;;  %vm828_vm15 = vcmp.lt.s32.totalorder %v807_v28, 3  ;;  %v831_v44 = vsel %vm829_vm14, %v819_v1, 2102212464  ;;  %v835_v25 = vsel %vm829_vm14, %v822_v45, 920167782 }
 0x17c   : > { %v838_v33 = vsel %vm826_vm13, %v816_v58, %v819_v1  ;;  %vm16208_vm0 = vcmp.lt.s32.totalorder %v9698_v11, 0  ;;  %v1079_v62 = vadd.s32 127, %v1078_v39  ;;  %vm827_vm1 = vcmp.lt.s32.totalorder %v807_v28, 2 }
 0x17d   : > { %v836_v14 = vsel %vm828_vm15, %v819_v1, %v835_v25  ;;  %v839_v4 = vsel %vm829_vm14, %v825_v18, 1326507024  ;;  %v1076_v30 = vshrl.u32 %v1058_v53, %v1074_v22  ;;  %v830_v50 = vsel %vm826_vm13, %v810_v31, %v813_v51 }
 0x17e   : > { %v837_v16 = vsel %vm827_vm1, %v834_v61, %v836_v14  ;;  %v840_v48 = vsel %vm828_vm15, %v822_v45, %v839_v4  ;;  %vm1004_vm2 = vcmp.lt.s32.totalorder %v9886_v0, 0  ;;  %v832_v43 = vsel %vm828_vm15, %v816_v58, %v831_v44 }
 0x17f   : > { %v841_v55 = vsel %vm827_vm1, %v838_v33, %v840_v48  ;;  %v10147_v10 = vmul.u32.u64.low %v842_v20, %v837_v16  ;;  %v10148_v41 = vmul.u32.u64.high %v842_v20, %v837_v16, %v10147_v10  ;;  %v8309_v39 = vmin.u32 %v2732_v46, %v10132_v56 }
 0x180   : > { %v10152_v52 = vmul.u32.u64.low %v842_v20, %v841_v55  ;;  %v10153_v1 = vmul.u32.u64.high %v842_v20, %v841_v55, %v10152_v52  ;;  %v8300_v18 = vadd.s32 4294967169, %v2462_v23  ;;  %v16430_v53 = vand.u32 2147483647, %v10088_v32 }
 0x181   : > { %v16431_v51 = vcvt.s32.f32 %v10086_v54  ;;  %v2410_v58 = vadd.s32 %v9917_v7, %v9924_v40  ;;  %v2427_v22 = vshll.u32 %v9974_v57, %v10051_v36  ;;  %v1080_v31 = vshll.u32 %v1079_v62, 23 }
 0x182   : > { %v1075_v61 = vshll.u32 %v10060_v42, %v1073_v60  ;;  %v833_v46 = vsel %vm827_vm1, %v830_v50, %v832_v43  ;;  %v16432_v55 = vand.u32 2147483647, %v10098_v26  ;;  %v2468_v23 = vadd.s32 1, %v8300_v18  ;;  %v10182_v60 = vld [vmem:[%s16104_s2] ss:$0 sm:$0xff] }
 0x183   : > { %v10159_v45 = vmul.f32 %v16431_v51, %v16430_v53  ;;  %v16433_v32 = vsub.s32 32, %v10051_v36  ;;  %v16434_v44 = vshll.u32 %v10092_v3, 23  ;;  %v1088_v7 = vsub.s32 4, %v10045_v5 }
 0x184   : > { %v2465_v52 = vand.u32 8388607, %v16432_v55  ;;  %v852_v40 = vadd.s32 1, %v10148_v41  ;;  %v10177_v57 = vor.u32 %v1076_v30, %v1075_v61  ;;  %v2734_v42 = vclz %v8309_v39 }
 0x185   : > { %v2428_v54 = vshrl.u32 %v2410_v58, %v16433_v32  ;;  %v10173_v25 = vor.u32 4788187, %v16434_v44  ;;  %v600_v28 = vadd.f32 1.0, %v568_v59  ;;  %v10186_v36 = vadd.f32 %v10182_v60, %v9753_v34 }
 0x186   : > { %v10188_v3 = vor.u32 4788187, %v1080_v31  ;;  %v849_v33 = vmul.u32 %v842_v20, %v833_v46  ;;  %vm851_vm3 = vc.u32 %v10153_v1, %v10147_v10  ;;  %vm2469_vm4 = vcmp.gt.s32.totalorder %v2468_v23, 0 }
 0x187   : > { %v16435_v62 = vxor.u32 2147483648, %v10081_v21  ;;  %v853_v4 = vsel %vm851_vm3, %v852_v40, %v10148_v41  ;;  %v2466_v34 = vor.u32 8388608, %v2465_v52  ;;  %v10201_v30 = vor.u32 %v2428_v54, %v2427_v22 }
 0x188   : > { %v854_v50 = vadd.s32 %v853_v4, %v849_v33  ;;  %v2470_v16 = vsel %vm2469_vm4, %v2468_v23, 0  ;;  %v10207_v48 = vsel %vm1004_vm2, %v1088_v7, %v10045_v5  ;;  %v8310_v43 = vadd.s32 4294967294, %v2734_v42 }
 0x189   : > { %v10197_v59 = vsel %vm16208_vm0, %v16435_v62, %v10081_v21  ;;  %v2472_v39 = vand.u32 31, %v2470_v16  ;;  %v632_v21 = vmul.f32 30.0, %v600_v28  ;;  %v1082_v18 = vand.u32 2147483647, %v10188_v3 }
 0x18a   : > { %16436 = vst [vmem:[#allocation20_spill] sm:$0xff] %v10197_v59  ;;  %v1084_v53 = vcvt.s32.f32 %v10177_v57  ;;  %v855_v41 = vadd.s32 536870912, %v854_v50  ;;  %v584_v51 = vand.u32 2147483647, %v10186_v36  ;;  %v2471_v58 = vshrl.u32 %v2470_v16, 5 }
 0x18b   : > { %v2473_v22 = vsub.s32 32, %v2472_v39  ;;  %v2475_v31 = vshll.u32 %v16429_v2, %v2472_v39  ;;  %v10213_v61 = vshll.u32 %v2466_v34, 8  ;;  %v2478_v5 = vshll.u32 %v16424_v38, %v2472_v39 }
 0x18c   : > { %v10215_v46 = vshrl.u32 %v855_v41, 30  ;;  %v2481_v55 = vshll.u32 %v16425_v8, %v2472_v39  ;;  %v2484_v52 = vshll.u32 %v16426_v9, %v2472_v39  ;;  %vm8311_vm5 = vcmp.lt.s32.totalorder %v8310_v43, 0 }
 0x18d   : > { %v2476_v23 = vshrl.u32 %v16424_v38, %v2473_v22  ;;  %v2479_v32 = vshrl.u32 %v16425_v8, %v2473_v22  ;;  %v10223_v54 = vmul.f32 %v632_v21, %v10111_v37  ;;  %v2482_v7 = vshrl.u32 %v16426_v9, %v2473_v22  ;;  %v10233_v37 = vpop.f32.mrb[7].mxu1 }
 0x18e   : > { %16437 = vst [vmem:[#allocation21_spill] sm:$0xff] %v10215_v46  ;;  %v857_v44 = vshll.u32 %v10215_v46, 30  ;;  %v16439_v40 = vmov 920167782   ;;  %v2474_v28 = vshrl.u32 %v16429_v2, %v2473_v22  ;;  %v16440_v62 = vmov 1326507024  }
 0x18f   : > { %16438 = vst [vmem:[#allocation22_spill] sm:$0xff] %v10223_v54  ;;  %v2485_v57 = vshrl.u32 %v16439_v40, %v2473_v22  ;;  %v2487_v42 = vshll.u32 %v16439_v40, %v2472_v39  ;;  %v2477_v3 = vor.u32 %v2476_v23, %v2475_v31  ;;  %v2480_v33 = vor.u32 %v2479_v32, %v2478_v5 }
 0x190   : > { %v2488_v4 = vshrl.u32 %v16440_v62, %v2473_v22  ;;  %v10231_v34 = vsub.s32 %v854_v50, %v857_v44  ;;  %v2483_v16 = vor.u32 %v2482_v7, %v2481_v55  ;;  %vm2490_vm6 = vcmp.lt.s32.totalorder %v2471_v58, 1 }
 0x191   : > { %v2486_v41 = vor.u32 %v2485_v57, %v2484_v52  ;;  %vm692_vm7 = vcmp.lt.s32.totalorder %v9700_v12, 0  ;;  %v16441_v21 = vand.u32 2147483647, %v9886_v0  ;;  %v2737_v39 = vsel %vm8311_vm5, 0, %v8310_v43 }
 0x192   : > { %v2489_v31 = vor.u32 %v2488_v4, %v2487_v42  ;;  %vm2492_vm9 = vcmp.lt.s32.totalorder %v2471_v58, 3  ;;  %v1317_v50 = vand.u32 2139095040, %v10223_v54  ;;  %v860_v22 = vsub.s32 0, %v10231_v34 }
 0x193   : > { %vm10238_vm8 = vcmp.le.f32.partialorder %v16441_v21, 0.7853982  ;;  %vm2491_vm10 = vcmp.lt.s32.totalorder %v2471_v58, 2  ;;  %vm2493_vm11 = vcmp.lt.s32.totalorder %v2471_v58, 4  ;;  %v2498_v5 = vsel %vm2490_vm6, %v2477_v3, %v2480_v33 }
 0x194   : > { %v2494_v55 = vsel %vm2490_vm6, %v2474_v28, %v2477_v3  ;;  %v2495_v52 = vsel %vm2493_vm11, %v2483_v16, 2102212464  ;;  %v2499_v23 = vsel %vm2493_vm11, %v2486_v41, 920167782  ;;  %v2502_v32 = vsel %vm2490_vm6, %v2480_v33, %v2483_v16 }
 0x195   : > { %v8237_v44 = vmin.u32 %v860_v22, %v10231_v34  ;;  %v2496_v7 = vsel %vm2492_vm9, %v2480_v33, %v2495_v52  ;;  %v2500_v57 = vsel %vm2492_vm9, %v2483_v16, %v2499_v23  ;;  %v2503_v43 = vsel %vm2493_vm11, %v2489_v31, 1326507024 }
 0x196   : > { %v1085_v42 = vmul.f32 %v1084_v53, %v1082_v18  ;;  %v2501_v4 = vsel %vm2491_vm10, %v2498_v5, %v2500_v57  ;;  %v2504_v21 = vsel %vm2492_vm9, %v2486_v41, %v2503_v43  ;;  %v1318_v14 = vshrl.u32 %v1317_v50, 23 }
 0x197   : > { %v2497_v59 = vsel %vm2491_vm10, %v2494_v55, %v2496_v7  ;;  %v2505_v28 = vsel %vm2491_vm10, %v2502_v32, %v2504_v21  ;;  %v10253_v3 = vmul.u32.u64.low %v10213_v61, %v2501_v4  ;;  %v10254_v11 = vmul.u32.u64.high %v10213_v61, %v2501_v4, %v10253_v3 }
 0x198   : > { %v2738_v22 = vsub.s32 32, %v2737_v39  ;;  %v10258_v33 = vmul.u32.u64.low %v10213_v61, %v2505_v28  ;;  %v10259_v16 = vmul.u32.u64.high %v10213_v61, %v2505_v28, %v10258_v33  ;;  %v8256_v18 = vadd.s32 4294967169, %v1318_v14 }
 0x199   : > { %v2436_v53 = vcvt.s32.f32 %v10201_v30  ;;  %v2742_v31 = vsub.s32 4294967266, %v2737_v39  ;;  %v862_v41 = vclz %v8237_v44  ;;  %v616_v50 = vadd.f32 1.0, %v584_v51 }
 0x19a   : > { %v2722_v58 = vadd.s32 %v10064_v47, %v10058_v27  ;;  %v2513_v5 = vmul.u32 %v10213_v61, %v2497_v59  ;;  %v16139_v55 = vand.u32 2147483647, %v10223_v54  ;;  %v1324_v52 = vadd.s32 1, %v8256_v18 }
 0x19b   : > { %v16444_v23 = vxor.u32 2147483648, %v10159_v45  ;;  %v16446_v14 = vand.u32 2147483647, %v10173_v25  ;;  %v1091_v27 = vsel %vm10238_vm8, 0, %v10207_v48  ;;  %v2516_v47 = vadd.s32 1, %v10254_v11 }
 0x19c   : > { %v1086_v59 = vxor.u32 2147483648, %v1085_v42  ;;  %v2740_v51 = vshrl.u32 %v2722_v58, %v2738_v22  ;;  %vm2515_vm12 = vc.u32 %v10259_v16, %v10253_v3  ;;  %vm1325_vm13 = vcmp.gt.s32.totalorder %v1324_v52, 0 }
 0x19d   : > { %v10271_v32 = vsel %vm692_vm7, %v16444_v23, %v10159_v45  ;;  %v10275_v30 = vmul.f32 %v2436_v53, %v16446_v14  ;;  %v2743_v61 = vadd.s32 127, %v2742_v31  ;;  %v8238_v44 = vadd.s32 4294967294, %v862_v41  ;;  %v10314_v23 = vpop.f32.mrb[8].mxu0 }
 0x19e   : > { %16445 = vst [vmem:[#allocation23_spill] sm:$0xff] %v10271_v32  ;;  %v2517_v45 = vsel %vm2515_vm12, %v2516_v47, %v10254_v11  ;;  %v648_v7 = vmul.f32 30.0, %v616_v50  ;;  %v2739_v25 = vshll.u32 %v10132_v56, %v2737_v39  ;;  %v1321_v43 = vand.u32 8388607, %v16139_v55 }
 0x19f   : > { %v2518_v57 = vadd.s32 %v2517_v45, %v2513_v5  ;;  %v1326_v48 = vsel %vm1325_vm13, %v1324_v52, 0  ;;  %v10288_v21 = vadd.s32 3, %v1091_v27  ;;  %v10292_v22 = vadd.f32 %v10182_v60, %v9826_v49 }
 0x1a0   : > { %v1328_v28 = vand.u32 31, %v1326_v48  ;;  %v10296_v11 = vsel %vm1004_vm2, %v1086_v59, %v1085_v42  ;;  %v10298_v33 = vor.u32 %v2740_v51, %v2739_v25  ;;  %v10302_v39 = vadd.f32 %v10182_v60, %v9903_v29 }
 0x1a1   : > { %v2519_v56 = vadd.s32 536870912, %v2518_v57  ;;  %v2744_v18 = vshll.u32 %v2743_v61, 23  ;;  %vm8239_vm14 = vcmp.lt.s32.totalorder %v8238_v44, 0  ;;  %v10305_v31 = vmul.f32 %v648_v7, %v10186_v36 }
 0x1a2   : > { %v1329_v53 = vsub.s32 32, %v1328_v28  ;;  %v1322_v49 = vor.u32 8388608, %v1321_v43  ;;  %v1327_v50 = vshrl.u32 %v1326_v48, 5  ;;  %v1331_v42 = vshll.u32 %v16429_v2, %v1328_v28 }
 0x1a3   : > { %16447 = vst [vmem:[#allocation24_spill] sm:$0xff] %v10305_v31  ;;  %v10307_v41 = vshrl.u32 %v2519_v56, 30  ;;  %v1334_v5 = vshll.u32 %v16424_v38, %v1328_v28  ;;  %v1337_v52 = vshll.u32 %v16425_v8, %v1328_v28  ;;  %v1340_v29 = vshll.u32 %v16426_v9, %v1328_v28 }
 0x1a4   : > { %v1332_v58 = vshrl.u32 %v16424_v38, %v1329_v53  ;;  %v1335_v36 = vshrl.u32 %v16425_v8, %v1329_v53  ;;  %v1338_v27 = vshrl.u32 %v16426_v9, %v1329_v53  ;;  %v1341_v47 = vshrl.u32 %v16439_v40, %v1329_v53 }
 0x1a5   : > { %16448 = vst [vmem:[#allocation25_spill] sm:$0xff] %v10307_v41  ;;  %v2521_v14 = vshll.u32 %v10307_v41, 30  ;;  %v2745_v59 = vor.u32 4788187, %v2744_v18  ;;  %v1343_v61 = vshll.u32 %v16439_v40, %v1328_v28  ;;  %v1344_v45 = vshrl.u32 %v16440_v62, %v1329_v53 }
 0x1a6   : > { %v1333_v51 = vor.u32 %v1332_v58, %v1331_v42  ;;  %vm16246_vm15 = vcmp.lt.s32.totalorder %v9713_v24, 0  ;;  %v1336_v25 = vor.u32 %v1335_v36, %v1334_v5  ;;  %v1339_v43 = vor.u32 %v1338_v27, %v1337_v52 }
 0x1a7   : > { %v10323_v7 = vsub.s32 %v2518_v57, %v2521_v14  ;;  %v1342_v48 = vor.u32 %v1341_v47, %v1340_v29  ;;  %v10326_v56 = vsel %vm8239_vm14, 0, %v8238_v44  ;;  %v1345_v55 = vor.u32 %v1344_v45, %v1343_v61 }
 0x1a8   : > { %v1362_v4 = vshll.u32 %v1322_v49, 8  ;;  %vm1346_vm1 = vcmp.lt.s32.totalorder %v1327_v50, 1  ;;  %vm1349_vm2 = vcmp.lt.s32.totalorder %v1327_v50, 4  ;;  %v2981_v28 = vand.u32 2139095040, %v10305_v31 }
 0x1a9   : > { %v2524_v18 = vsub.s32 0, %v10323_v7  ;;  %vm1347_vm3 = vcmp.lt.s32.totalorder %v1327_v50, 2  ;;  %vm1348_vm4 = vcmp.lt.s32.totalorder %v1327_v50, 3  ;;  %v1354_v57 = vsel %vm1346_vm1, %v1333_v51, %v1336_v25 }
 0x1aa   : > { %v1355_v42 = vsel %vm1349_vm2, %v1342_v48, 920167782  ;;  %v1351_v5 = vsel %vm1349_vm2, %v1339_v43, 2102212464  ;;  %v1358_v52 = vsel %vm1346_vm1, %v1336_v25, %v1339_v43  ;;  %v1330_v49 = vshrl.u32 %v16429_v2, %v1329_v53 }
 0x1ab   : > { %v8301_v58 = vmin.u32 %v2524_v18, %v10323_v7  ;;  %v1356_v44 = vsel %vm1348_vm4, %v1339_v43, %v1355_v42  ;;  %v1359_v14 = vsel %vm1349_vm2, %v1345_v55, 1326507024  ;;  %v566_v36 = vand.u32 2147483647, %v10292_v22 }
 0x1ac   : > { %v1357_v29 = vsel %vm1347_vm3, %v1354_v57, %v1356_v44  ;;  %v870_v27 = vsub.s32 4294967266, %v10326_v56  ;;  %v1360_v47 = vsel %vm1348_vm4, %v1342_v48, %v1359_v14  ;;  %v1350_v18 = vsel %vm1346_vm1, %v1330_v49, %v1333_v51 }
 0x1ad   : > { %v10338_v61 = vmul.u32.u64.low %v1362_v4, %v1357_v29  ;;  %v10339_v45 = vmul.u32.u64.high %v1362_v4, %v1357_v29, %v10338_v61  ;;  %v1352_v41 = vsel %vm1348_vm4, %v1336_v25, %v1351_v5  ;;  %v1361_v42 = vsel %vm1347_vm3, %v1358_v52, %v1360_v47 }
 0x1ae   : > { %v2982_v43 = vshrl.u32 %v2981_v28, 23  ;;  %v2526_v6 = vclz %v8301_v58  ;;  %v10344_v53 = vmul.u32.u64.low %v1362_v4, %v1361_v42  ;;  %v10345_v46 = vmul.u32.u64.high %v1362_v4, %v1361_v42, %v10344_v53 }
 0x1af   : > { %v16449_v55 = vand.u32 2147483647, %v10305_v31  ;;  %v16450_v48 = vxor.u32 2147483648, %v10275_v30  ;;  %v10357_v51 = vand.u32 3, %v10288_v21  ;;  %v2746_v25 = vand.u32 2147483647, %v2745_v59 }
 0x1b0   : > { %v8320_v5 = vadd.s32 4294967169, %v2982_v43  ;;  %v10363_v28 = vsel %vm10238_vm8, %v9886_v0, %v10296_v11  ;;  %v1353_v58 = vsel %vm1347_vm3, %v1350_v18, %v1352_v41  ;;  %v1372_v52 = vadd.s32 1, %v10339_v45 }
 0x1b1   : > { %v2985_v57 = vand.u32 8388607, %v16449_v55  ;;  %v10354_v44 = vsel %vm16246_vm15, %v16450_v48, %v10275_v30  ;;  %16452 = vst [vmem:[#allocation27_spill] sm:$0xff] %v10357_v51  ;;  %v598_v49 = vadd.f32 1.0, %v566_v36  ;;  %v2748_v29 = vcvt.s32.f32 %v10298_v33 }
 0x1b2   : > { %16451 = vst [vmem:[#allocation26_spill] sm:$0xff] %v10354_v44  ;;  %v850_v30 = vadd.s32 %v10147_v10, %v10153_v1  ;;  %v866_v21 = vsub.s32 32, %v10326_v56  ;;  %v2988_v59 = vadd.s32 1, %v8320_v5  ;;  %v10371_v14 = vadd.s32 127, %v870_v27 }
 0x1b3   : > { %v8302_v47 = vadd.s32 4294967294, %v2526_v6  ;;  %v2986_v42 = vor.u32 8388608, %v2985_v57  ;;  %v582_v20 = vand.u32 2147483647, %v10302_v39  ;;  %v10374_v11 = vmul.f32 %v2748_v29, %v2746_v25  ;;  %v10395_v25 = vpop.f32.mrb[8].mxu1 }
 0x1b4   : > { %v1369_v41 = vmul.u32 %v1362_v4, %v1353_v58  ;;  %vm1371_vm5 = vc.u32 %v10345_v46, %v10338_v61  ;;  %vm2989_vm6 = vcmp.gt.s32.totalorder %v2988_v59, 0  ;;  %v10380_v33 = vadd.s32 %v10253_v3, %v10259_v16 }
 0x1b5   : > { %v1373_v10 = vsel %vm1371_vm5, %v1372_v52, %v10339_v45  ;;  %v2990_v1 = vsel %vm2989_vm6, %v2988_v59, 0  ;;  %v630_v50 = vmul.f32 30.0, %v598_v49  ;;  %v867_v6 = vshll.u32 %v10231_v34, %v10326_v56 }
 0x1b6   : > { %v868_v36 = vshrl.u32 %v850_v30, %v866_v21  ;;  %v1374_v27 = vadd.s32 %v1373_v10, %v1369_v41  ;;  %v2992_v18 = vand.u32 31, %v2990_v1  ;;  %v872_v4 = vshll.u32 %v10371_v14, 23 }
 0x1b7   : > { %vm8303_vm8 = vcmp.lt.s32.totalorder %v8302_v47, 0  ;;  %v10386_v43 = vshll.u32 %v2986_v42, 8  ;;  %v614_v53 = vadd.f32 1.0, %v582_v20  ;;  %v2991_v45 = vshrl.u32 %v2990_v1, 5 }
 0x1b8   : > { %v1375_v55 = vadd.s32 536870912, %v1374_v27  ;;  %v2993_v57 = vsub.s32 32, %v2992_v18  ;;  %v2995_v3 = vshll.u32 %v16429_v2, %v2992_v18  ;;  %v2998_v16 = vshll.u32 %v16424_v38, %v2992_v18 }
 0x1b9   : > { %v3001_v48 = vshll.u32 %v16425_v8, %v2992_v18  ;;  %v3004_v34 = vshll.u32 %v16426_v9, %v2992_v18  ;;  %v10393_v56 = vmul.f32 %v630_v50, %v10292_v22  ;;  %v10397_v5 = vsel %vm8303_vm8, 0, %v8302_v47 }
 0x1ba   : > { %v10399_v58 = vshrl.u32 %v1375_v55, 30  ;;  %v2996_v52 = vshrl.u32 %v16424_v38, %v2993_v57  ;;  %v2999_v49 = vshrl.u32 %v16425_v8, %v2993_v57  ;;  %v2994_v29 = vshrl.u32 %v16429_v2, %v2993_v57 }
 0x1bb   : > { %v3002_v30 = vshrl.u32 %v16426_v9, %v2993_v57  ;;  %v3005_v21 = vshrl.u32 %v16439_v40, %v2993_v57  ;;  %v3007_v59 = vshll.u32 %v16439_v40, %v2992_v18  ;;  %v3008_v47 = vshrl.u32 %v16440_v62, %v2993_v57 }
 0x1bc   : > { %16453 = vst [vmem:[#allocation28_spill] sm:$0xff] %v10399_v58  ;;  %v1377_v22 = vshll.u32 %v10399_v58, 30  ;;  %v2997_v14 = vor.u32 %v2996_v52, %v2995_v3  ;;  %v3000_v42 = vor.u32 %v2999_v49, %v2998_v16  ;;  %vm3010_vm9 = vcmp.lt.s32.totalorder %v2991_v45, 1 }
 0x1bd   : > { %v3003_v20 = vor.u32 %v3002_v30, %v3001_v48  ;;  %v3006_v41 = vor.u32 %v3005_v21, %v3004_v34  ;;  %v646_v10 = vmul.f32 30.0, %v614_v53  ;;  %v2530_v1 = vsub.s32 32, %v10397_v5 }
 0x1be   : > { %v10410_v50 = vsub.s32 %v1374_v27, %v1377_v22  ;;  %v3009_v55 = vor.u32 %v3008_v47, %v3007_v59  ;;  %vm3012_vm10 = vcmp.lt.s32.totalorder %v2991_v45, 3  ;;  %vm3011_vm11 = vcmp.lt.s32.totalorder %v2991_v45, 2 }
 0x1bf   : > { %vm3013_vm12 = vcmp.lt.s32.totalorder %v2991_v45, 4  ;;  %v3018_v44 = vsel %vm3010_vm9, %v2997_v14, %v3000_v42  ;;  %v1109_v18 = vand.u32 2139095040, %v10393_v56  ;;  %v3014_v24 = vsel %vm3010_vm9, %v2994_v29, %v2997_v14 }
 0x1c0   : > { %v3015_v3 = vsel %vm3013_vm12, %v3003_v20, 2102212464  ;;  %v3019_v16 = vsel %vm3013_vm12, %v3006_v41, 920167782  ;;  %v3022_v52 = vsel %vm3010_vm9, %v3000_v42, %v3003_v20  ;;  %v3023_v53 = vsel %vm3013_vm12, %v3009_v55, 1326507024 }
 0x1c1   : > { %v3016_v57 = vsel %vm3012_vm10, %v3000_v42, %v3015_v3  ;;  %v3020_v48 = vsel %vm3012_vm10, %v3003_v20, %v3019_v16  ;;  %v10416_v34 = vmul.f32 %v646_v10, %v10302_v39  ;;  %v2534_v27 = vsub.s32 4294967266, %v10397_v5 }
 0x1c2   : > { %v1380_v49 = vsub.s32 0, %v10410_v50  ;;  %v3021_v30 = vsel %vm3011_vm11, %v3018_v44, %v3020_v48  ;;  %v3024_v21 = vsel %vm3012_vm10, %v3006_v41, %v3023_v53  ;;  %v3017_v29 = vsel %vm3011_vm11, %v3014_v24, %v3016_v57 }
 0x1c3   : > { %16454 = vst [vmem:[#allocation29_spill] sm:$0xff] %v10416_v34  ;;  %v3025_v59 = vsel %vm3011_vm11, %v3022_v52, %v3024_v21  ;;  %v10425_v22 = vmul.u32.u64.low %v10386_v43, %v3021_v30  ;;  %v10426_v14 = vmul.u32.u64.high %v10386_v43, %v3021_v30, %v10425_v22  ;;  %v873_v42 = vor.u32 4788187, %v872_v4 }
 0x1c4   : > { %v10430_v39 = vmul.u32.u64.low %v10386_v43, %v3025_v59  ;;  %v10431_v47 = vmul.u32.u64.high %v10386_v43, %v3025_v59, %v10430_v39  ;;  %v1110_v20 = vshrl.u32 %v1109_v18, 23  ;;  %v869_v10 = vor.u32 %v868_v36, %v867_v6 }
 0x1c5   : > { %v16147_v44 = vand.u32 2147483647, %v10393_v56  ;;  %v2773_v41 = vand.u32 2139095040, %v10416_v34  ;;  %v10437_v24 = vadd.f32 %v10182_v60, %v9958_v13  ;;  %v2532_v45 = vshrl.u32 %v10380_v33, %v2530_v1 }
 0x1c6   : > { %v2535_v55 = vadd.s32 127, %v2534_v27  ;;  %v3033_v3 = vmul.u32 %v10386_v43, %v3017_v29  ;;  %v8248_v4 = vadd.s32 4294967169, %v1110_v20  ;;  %v8257_v16 = vmin.u32 %v1380_v49, %v10410_v50 }
 0x1c7   : > { %v3036_v52 = vadd.s32 1, %v10426_v14  ;;  %v2774_v18 = vshrl.u32 %v2773_v41, 23  ;;  %v10445_v6 = vadd.f32 %v10182_v60, %v10042_v15  ;;  %v874_v36 = vand.u32 2147483647, %v873_v42 }
 0x1c8   : > { %v2531_v13 = vshll.u32 %v10323_v7, %v10397_v5  ;;  %vm3035_vm13 = vc.u32 %v10431_v47, %v10425_v22  ;;  %v1116_v33 = vadd.s32 1, %v8248_v4  ;;  %v876_v1 = vcvt.s32.f32 %v869_v10 }
 0x1c9   : > { %v3037_v43 = vsel %vm3035_vm13, %v3036_v52, %v10426_v14  ;;  %v8312_v57 = vadd.s32 4294967169, %v2774_v18  ;;  %v569_v48 = vand.u32 2147483647, %v10437_v24  ;;  %v2536_v27 = vshll.u32 %v2535_v55, 23 }
 0x1ca   : > { %v10453_v53 = vor.u32 %v2532_v45, %v2531_v13  ;;  %v3038_v49 = vadd.s32 %v3037_v43, %v3033_v3  ;;  %v1113_v15 = vand.u32 8388607, %v16147_v44  ;;  %9198 = vcosq.f32 %v10363_v28  ;;  %v10471_v3 = vpop.f32.mrb[9].mxu0 }
 0x1cb   : > { %v1382_v5 = vclz %v8257_v16  ;;  %vm1117_vm14 = vcmp.gt.s32.totalorder %v1116_v33, 0  ;;  %v10459_v30 = vmul.f32 %v876_v1, %v874_v36  ;;  %v2780_v59 = vadd.s32 1, %v8312_v57 }
 0x1cc   : > { %v3039_v21 = vadd.s32 536870912, %v3038_v49  ;;  %v1118_v29 = vsel %vm1117_vm14, %v1116_v33, 0  ;;  %v10463_v14 = vadd.s32 %v10338_v61, %v10345_v46  ;;  %v601_v39 = vadd.f32 1.0, %v569_v48 }
 0x1cd   : > { %v1120_v42 = vand.u32 31, %v1118_v29  ;;  %v585_v20 = vand.u32 2147483647, %v10445_v6  ;;  %v10466_v10 = vor.u32 4788187, %v2536_v27  ;;  %v1114_v55 = vor.u32 8388608, %v1113_v15 }
 0x1ce   : > { %v10469_v45 = vshrl.u32 %v3039_v21, 30  ;;  %v8258_v4 = vadd.s32 4294967294, %v1382_v5  ;;  %v1119_v16 = vshrl.u32 %v1118_v29, 5  ;;  %vm2781_vm1 = vcmp.gt.s32.totalorder %v2780_v59, 0 }
 0x1cf   : > { %v1121_v52 = vsub.s32 32, %v1120_v42  ;;  %v1123_v61 = vshll.u32 %v16429_v2, %v1120_v42  ;;  %v1126_v36 = vshll.u32 %v16424_v38, %v1120_v42  ;;  %v1129_v1 = vshll.u32 %v16425_v8, %v1120_v42 }
 0x1d0   : > { %16455 = vst [vmem:[#allocation30_spill] sm:$0xff] %v10469_v45  ;;  %v3041_v46 = vshll.u32 %v10469_v45, 30  ;;  %v1132_v48 = vshll.u32 %v16426_v9, %v1120_v42  ;;  %v1135_v15 = vshll.u32 %v16439_v40, %v1120_v42  ;;  %v10489_v45 = vmul.f32 30.0, %v601_v39 }
 0x1d1   : > { %v1124_v13 = vshrl.u32 %v16424_v38, %v1121_v52  ;;  %v1127_v33 = vshrl.u32 %v16425_v8, %v1121_v52  ;;  %v1130_v43 = vshrl.u32 %v16426_v9, %v1121_v52  ;;  %v1133_v27 = vshrl.u32 %v16439_v40, %v1121_v52 }
 0x1d2   : > { %v10481_v57 = vsub.s32 %v3038_v49, %v3041_v46  ;;  %v1136_v44 = vshrl.u32 %v16440_v62, %v1121_v52  ;;  %vm8259_vm2 = vcmp.lt.s32.totalorder %v8258_v4, 0  ;;  %v1154_v58 = vshll.u32 %v1114_v55, 8 }
 0x1d3   : > { %v1125_v5 = vor.u32 %v1124_v13, %v1123_v61  ;;  %v1128_v21 = vor.u32 %v1127_v33, %v1126_v36  ;;  %v1131_v29 = vor.u32 %v1130_v43, %v1129_v1  ;;  %v1134_v18 = vor.u32 %v1133_v27, %v1132_v48 }
 0x1d4   : > { %v3044_v41 = vsub.s32 0, %v10481_v57  ;;  %v10491_v49 = vpop.eup %9198  ;;  %v1137_v46 = vor.u32 %v1136_v44, %v1135_v15  ;;  %v16457_v0 = vand.u32 2147483647, %v10416_v34  ;;  %v1122_v61 = vshrl.u32 %v16429_v2, %v1121_v52 }
 0x1d5   : > { %16456 = vst [vmem:[#allocation31_spill] sm:$0xff] %v10491_v49  ;;  %vm1138_vm3 = vcmp.lt.s32.totalorder %v1119_v16, 1  ;;  %vm1141_vm4 = vcmp.lt.s32.totalorder %v1119_v16, 4  ;;  %v2782_v36 = vsel %vm2781_vm1, %v2780_v59, 0  ;;  %vm1140_vm5 = vcmp.lt.s32.totalorder %v1119_v16, 3 }
 0x1d6   : > { %v2777_v42 = vand.u32 8388607, %v16457_v0  ;;  %v1143_v13 = vsel %vm1141_vm4, %v1131_v29, 2102212464  ;;  %v1146_v33 = vsel %vm1138_vm3, %v1125_v5, %v1128_v21  ;;  %v1147_v1 = vsel %vm1141_vm4, %v1134_v18, 920167782 }
 0x1d7   : > { %v8321_v39 = vmin.u32 %v3044_v41, %v10481_v57  ;;  %vm1139_vm6 = vcmp.lt.s32.totalorder %v1119_v16, 2  ;;  %v1148_v43 = vsel %vm1140_vm5, %v1131_v29, %v1147_v1  ;;  %v1150_v48 = vsel %vm1138_vm3, %v1128_v21, %v1131_v29 }
 0x1d8   : > { %v10499_v44 = vsel %vm8259_vm2, 0, %v8258_v4  ;;  %v1142_v55 = vsel %vm1138_vm3, %v1122_v61, %v1125_v5  ;;  %v1149_v0 = vsel %vm1139_vm6, %v1146_v33, %v1148_v43  ;;  %v1151_v52 = vsel %vm1141_vm4, %v1137_v46, 1326507024 }
 0x1d9   : > { %v1144_v27 = vsel %vm1140_vm5, %v1128_v21, %v1143_v13  ;;  %v1152_v15 = vsel %vm1140_vm5, %v1134_v18, %v1151_v52  ;;  %v10502_v7 = vmul.u32.u64.low %v1154_v58, %v1149_v0  ;;  %v10503_v59 = vmul.u32.u64.high %v1154_v58, %v1149_v0, %v10502_v7 }
 0x1da   : > { %v1153_v49 = vsel %vm1139_vm6, %v1150_v48, %v1152_v15  ;;  %v2778_v51 = vor.u32 8388608, %v2777_v42  ;;  %v2784_v41 = vand.u32 31, %v2782_v36  ;;  %v10507_v32 = vadd.f32 1.0, %v585_v20 }
 0x1db   : > { %v1390_v29 = vsub.s32 4294967266, %v10499_v44  ;;  %v3046_v4 = vclz %v8321_v39  ;;  %v10510_v1 = vmul.u32.u64.low %v1154_v58, %v1153_v49  ;;  %v10511_v5 = vmul.u32.u64.high %v1154_v58, %v1153_v49, %v10510_v1 }
 0x1dc   : > { %v1386_v46 = vsub.s32 32, %v10499_v44  ;;  %v1145_v18 = vsel %vm1139_vm6, %v1142_v55, %v1144_v27  ;;  %v2783_v21 = vshrl.u32 %v2782_v36, 5  ;;  %v2785_v61 = vsub.s32 32, %v2784_v41 }
 0x1dd   : > { %v1164_v42 = vadd.s32 1, %v10503_v59  ;;  %v2787_v20 = vshll.u32 %v16429_v2, %v2784_v41  ;;  %v2790_v33 = vshll.u32 %v16424_v38, %v2784_v41  ;;  %v2793_v43 = vshll.u32 %v16425_v8, %v2784_v41 }
 0x1de   : > { %v2788_v39 = vshrl.u32 %v16424_v38, %v2785_v61  ;;  %v2791_v49 = vshrl.u32 %v16425_v8, %v2785_v61  ;;  %v10523_v48 = vshll.u32 %v2778_v51, 8  ;;  %v1391_v16 = vadd.s32 127, %v1390_v29  ;;  %v10531_v51 = vpop.f32.mrb[9].mxu1 }
 0x1df   : > { %v8322_v36 = vadd.s32 4294967294, %v3046_v4  ;;  %v1161_v55 = vmul.u32 %v1154_v58, %v1145_v18  ;;  %vm1163_vm8 = vc.u32 %v10511_v5, %v10502_v7  ;;  %v2786_v52 = vshrl.u32 %v16429_v2, %v2785_v61 }
 0x1e0   : > { %v1165_v0 = vsel %vm1163_vm8, %v1164_v42, %v10503_v59  ;;  %v2794_v27 = vshrl.u32 %v16426_v9, %v2785_v61  ;;  %vm2802_vm9 = vcmp.lt.s32.totalorder %v2783_v21, 1  ;;  %v2789_v1 = vor.u32 %v2788_v39, %v2787_v20 }
 0x1e1   : > { %v1166_v15 = vadd.s32 %v1165_v0, %v1161_v55  ;;  %v2792_v13 = vor.u32 %v2791_v49, %v2790_v33  ;;  %v2796_v12 = vshll.u32 %v16426_v9, %v2784_v41  ;;  %v2797_v58 = vshrl.u32 %v16439_v40, %v2785_v61 }
 0x1e2   : > { %v2795_v29 = vor.u32 %v2794_v27, %v2793_v43  ;;  %v2799_v4 = vshll.u32 %v16439_v40, %v2784_v41  ;;  %v2800_v18 = vshrl.u32 %v16440_v62, %v2785_v61  ;;  %v1392_v59 = vshll.u32 %v1391_v16, 23 }
 0x1e3   : > { %v1167_v42 = vadd.s32 536870912, %v1166_v15  ;;  %vm2805_vm10 = vcmp.lt.s32.totalorder %v2783_v21, 4  ;;  %v10538_v17 = vmul.f32 %v10489_v45, %v10437_v24  ;;  %v2798_v20 = vor.u32 %v2797_v58, %v2796_v12 }
 0x1e4   : > { %v2801_v33 = vor.u32 %v2800_v18, %v2799_v4  ;;  %vm2804_vm11 = vcmp.lt.s32.totalorder %v2783_v21, 3  ;;  %v2807_v39 = vsel %vm2805_vm10, %v2795_v29, 2102212464  ;;  %vm8323_vm12 = vcmp.lt.s32.totalorder %v8322_v36, 0 }
 0x1e5   : > { %v10540_v49 = vshrl.u32 %v1167_v42, 30  ;;  %vm2803_vm13 = vcmp.lt.s32.totalorder %v2783_v21, 2  ;;  %v2810_v43 = vsel %vm2802_vm9, %v2789_v1, %v2792_v13  ;;  %vm16207_vm14 = vcmp.lt.s32.totalorder %v9895_v19, 0 }
 0x1e6   : > { %vm796_vm1 = vcmp.lt.s32.totalorder %v10015_v35, 0  ;;  %v2806_v41 = vsel %vm2802_vm9, %v2786_v52, %v2789_v1  ;;  %v2811_v61 = vsel %vm2805_vm10, %v2798_v20, 920167782  ;;  %v2814_v24 = vsel %vm2802_vm9, %v2792_v13, %v2795_v29 }
 0x1e7   : > { %16458 = vst [vmem:[#allocation32_spill] sm:$0xff] %v10540_v49  ;;  %v2815_v45 = vsel %vm2805_vm10, %v2801_v33, 1326507024  ;;  %v1169_v12 = vshll.u32 %v10540_v49, 30  ;;  %v2808_v16 = vsel %vm2804_vm11, %v2792_v13, %v2807_v39  ;;  %v2812_v55 = vsel %vm2804_vm11, %v2795_v29, %v2811_v61 }
 0x1e8   : > { %v2816_v0 = vsel %vm2804_vm11, %v2798_v20, %v2815_v45  ;;  %v1388_v27 = vshrl.u32 %v10463_v14, %v1386_v46  ;;  %v2813_v58 = vsel %vm2803_vm13, %v2810_v43, %v2812_v55  ;;  %v16159_v18 = vand.u32 2147483647, %v10538_v17 }
 0x1e9   : > { %v2817_v4 = vsel %vm2803_vm13, %v2814_v24, %v2816_v0  ;;  %v10553_v42 = vsel %vm8323_vm12, 0, %v8322_v36  ;;  %v10555_v52 = vsub.s32 %v1166_v15, %v1169_v12  ;;  %v2809_v13 = vsel %vm2803_vm13, %v2806_v41, %v2808_v16 }
 0x1ea   : > { %v10558_v1 = vmul.u32.u64.low %v10523_v48, %v2817_v4  ;;  %v10559_v33 = vmul.u32.u64.high %v10523_v48, %v2817_v4, %v10558_v1  ;;  %v10563_v29 = vmul.u32.u64.low %v10523_v48, %v2813_v58  ;;  %v10564_v14 = vmul.u32.u64.high %v10523_v48, %v2813_v58, %v10563_v29 }
 0x1eb   : > { %v1421_v46 = vand.u32 2139095040, %v10538_v17  ;;  %v878_v20 = vxor.u32 2147483648, %v10459_v30  ;;  %v1393_v39 = vor.u32 4788187, %v1392_v59  ;;  %v1172_v36 = vsub.s32 0, %v10555_v52 }
 0x1ec   : > { %v649_v15 = vmul.f32 30.0, %v10507_v32  ;;  %9200 = vsinq.f32 %v10363_v28  ;;  %v16459_v43 = vand.u32 2147483647, %v10466_v10  ;;  %v16460_v21 = vcvt.s32.f32 %v10453_v53 }
 0x1ed   : > { %v16461_v61 = vshll.u32 %v10410_v50, %v10499_v44  ;;  %v1422_v45 = vshrl.u32 %v1421_v46, 23  ;;  %v3054_v12 = vsub.s32 4294967266, %v10553_v42  ;;  %v8249_v59 = vmin.u32 %v1172_v36, %v10555_v52 }
 0x1ee   : > { %v10576_v41 = vmul.f32 %v16460_v21, %v16459_v43  ;;  %v2825_v16 = vmul.u32 %v10523_v48, %v2809_v13  ;;  %vm2827_vm2 = vc.u32 %v10559_v33, %v10563_v29  ;;  %v2828_v32 = vadd.s32 1, %v10564_v14 }
 0x1ef   : > { %v1389_v24 = vor.u32 %v1388_v27, %v16461_v61  ;;  %v8260_v28 = vadd.s32 4294967169, %v1422_v45  ;;  %v1425_v53 = vand.u32 8388607, %v16159_v18  ;;  %v10590_v10 = vmul.f32 %v649_v15, %v10445_v6 }
 0x1f0   : > { %v16463_v50 = vxor.u32 2147483648, %v10374_v11  ;;  %v10602_v48 = vsel %vm796_vm1, %v878_v20, %v10459_v30  ;;  %v1394_v55 = vand.u32 2147483647, %v1393_v39  ;;  %v1174_v0 = vclz %v8249_v59 }
 0x1f1   : > { %16462 = vst [vmem:[#allocation33_spill] sm:$0xff] %v10590_v10  ;;  %16465 = vst [vmem:[#allocation35_spill] sm:$0xff] %v10602_v48  ;;  %v3050_v58 = vsub.s32 32, %v10553_v42  ;;  %v2829_v6 = vsel %vm2827_vm2, %v2828_v32, %v10564_v14  ;;  %v1428_v4 = vadd.s32 1, %v8260_v28  ;;  %v1396_v1 = vcvt.s32.f32 %v1389_v24 }
 0x1f2   : > { %v10597_v44 = vsel %vm16207_vm14, %v16463_v50, %v10374_v11  ;;  %v3034_v13 = vadd.s32 %v10425_v22, %v10431_v47  ;;  %v10609_v11 = vadd.s32 127, %v3054_v12  ;;  %v2830_v46 = vadd.s32 %v2829_v6, %v2825_v16  ;;  %v10640_v16 = vpop.f32.mrb[10].mxu0 }
 0x1f3   : > { %16464 = vst [vmem:[#allocation34_spill] sm:$0xff] %v10597_v44  ;;  %v1426_v36 = vor.u32 8388608, %v1425_v53  ;;  %vm1429_vm3 = vcmp.gt.s32.totalorder %v1428_v4, 0  ;;  %v3085_v30 = vand.u32 2139095040, %v10590_v10  ;;  %v10614_v20 = vadd.f32 %v10182_v60, %v10113_v63  ;;  %v10724_v44 = vpop.f32.mrb[10].mxu1 }
 0x1f4   : > { %v10616_v39 = vmul.f32 %v1396_v1, %v1394_v55  ;;  %v8250_v15 = vadd.s32 4294967294, %v1174_v0  ;;  %v2831_v14 = vadd.s32 536870912, %v2830_v46  ;;  %v1430_v43 = vsel %vm1429_vm3, %v1428_v4, 0 }
 0x1f5   : > { %v3051_v21 = vshll.u32 %v10481_v57, %v10553_v42  ;;  %v3052_v22 = vshrl.u32 %v3034_v13, %v3050_v58  ;;  %v10622_v47 = vadd.s32 %v10502_v7, %v10511_v5  ;;  %v1432_v61 = vand.u32 31, %v1430_v43 }
 0x1f6   : > { %v3056_v24 = vshll.u32 %v10609_v11, 23  ;;  %v10625_v45 = vshrl.u32 %v2831_v14, 30  ;;  %v10629_v63 = vadd.f32 %v10182_v60, %v10233_v37  ;;  %v10633_v12 = vadd.f32 %v10182_v60, %v10314_v23  ;;  %v10635_v59 = vpop.eup %9200 }
 0x1f7   : > { %16467 = vst [vmem:[#allocation37_spill] sm:$0xff] %v10635_v59  ;;  %v1433_v57 = vsub.s32 32, %v1432_v61  ;;  %v10637_v42 = vshll.u32 %v1426_v36, 8  ;;  %v3086_v7 = vshrl.u32 %v3085_v30, 23  ;;  %v567_v5 = vand.u32 2147483647, %v10614_v20 }
 0x1f8   : > { %16466 = vst [vmem:[#allocation36_spill] sm:$0xff] %v10625_v45  ;;  %vm8251_vm4 = vcmp.lt.s32.totalorder %v8250_v15, 0  ;;  %v2833_v32 = vshll.u32 %v10625_v45, 30  ;;  %v1435_v37 = vshll.u32 %v16429_v2, %v1432_v61  ;;  %v1438_v28 = vshll.u32 %v16424_v38, %v1432_v61 }
 0x1f9   : > { %v1436_v60 = vshrl.u32 %v16424_v38, %v1433_v57  ;;  %v1439_v23 = vshrl.u32 %v16425_v8, %v1433_v57  ;;  %v1441_v53 = vshll.u32 %v16425_v8, %v1432_v61  ;;  %v1442_v50 = vshrl.u32 %v16426_v9, %v1433_v57 }
 0x1fa   : > { %v10649_v55 = vsub.s32 %v2830_v46, %v2833_v32  ;;  %v1431_v0 = vshrl.u32 %v1430_v43, 5  ;;  %v1444_v58 = vshll.u32 %v16426_v9, %v1432_v61  ;;  %v1445_v6 = vshrl.u32 %v16439_v40, %v1433_v57 }
 0x1fb   : > { %v1437_v4 = vor.u32 %v1436_v60, %v1435_v37  ;;  %v1440_v1 = vor.u32 %v1439_v23, %v1438_v28  ;;  %v1443_v13 = vor.u32 %v1442_v50, %v1441_v53  ;;  %v16160_v11 = vand.u32 2147483647, %v10590_v10 }
 0x1fc   : > { %v2836_v36 = vsub.s32 0, %v10649_v55  ;;  %v1446_v30 = vor.u32 %v1445_v6, %v1444_v58  ;;  %v599_v14 = vadd.f32 1.0, %v567_v5  ;;  %v583_v18 = vand.u32 2147483647, %v10629_v63 }
 0x1fd   : > { %v10657_v27 = vsel %vm8251_vm4, 0, %v8250_v15  ;;  %v1447_v46 = vshll.u32 %v16439_v40, %v1432_v61  ;;  %v1448_v43 = vshrl.u32 %v16440_v62, %v1433_v57  ;;  %v8324_v32 = vadd.s32 4294967169, %v3086_v7 }
 0x1fe   : > { %v8313_v37 = vmin.u32 %v2836_v36, %v10649_v55  ;;  %vm1450_vm5 = vcmp.lt.s32.totalorder %v1431_v0, 1  ;;  %vm1452_vm6 = vcmp.lt.s32.totalorder %v1431_v0, 3  ;;  %vm1453_vm8 = vcmp.lt.s32.totalorder %v1431_v0, 4 }
 0x1ff   : > { %v1449_v28 = vor.u32 %v1448_v43, %v1447_v46  ;;  %v1455_v60 = vsel %vm1453_vm8, %v1443_v13, 2102212464  ;;  %v1458_v23 = vsel %vm1450_vm5, %v1437_v4, %v1440_v1  ;;  %v1459_v5 = vsel %vm1453_vm8, %v1446_v30, 920167782 }
 0x200   : > { %v2838_v53 = vclz %v8313_v37  ;;  %v1434_v50 = vshrl.u32 %v16429_v2, %v1433_v57  ;;  %vm1451_vm9 = vcmp.lt.s32.totalorder %v1431_v0, 2  ;;  %v1460_v15 = vsel %vm1452_vm6, %v1443_v13, %v1459_v5 }
 0x201   : > { %v1461_v61 = vsel %vm1451_vm9, %v1458_v23, %v1460_v15  ;;  %v1462_v7 = vsel %vm1450_vm5, %v1440_v1, %v1443_v13  ;;  %v1463_v58 = vsel %vm1453_vm8, %v1449_v28, 1326507024  ;;  %v10669_v6 = vand.u32 8388607, %v16160_v11 }
 0x202   : > { %v1182_v36 = vsub.s32 4294967266, %v10657_v27  ;;  %v1454_v46 = vsel %vm1450_vm5, %v1434_v50, %v1437_v4  ;;  %v1456_v43 = vsel %vm1452_vm6, %v1440_v1, %v1455_v60  ;;  %v1464_v57 = vsel %vm1452_vm6, %v1446_v30, %v1463_v58 }
 0x203   : > { %v1465_v37 = vsel %vm1451_vm9, %v1462_v7, %v1464_v57  ;;  %v10677_v5 = vmul.u32.u64.low %v10637_v42, %v1461_v61  ;;  %v10678_v23 = vmul.u32.u64.high %v10637_v42, %v1461_v61, %v10677_v5  ;;  %v3092_v13 = vadd.s32 1, %v8324_v32 }
 0x204   : > { %v10681_v28 = vor.u32 %v3052_v22, %v3051_v21  ;;  %v8314_v15 = vadd.s32 4294967294, %v2838_v53  ;;  %v10684_v11 = vmul.u32.u64.low %v10637_v42, %v1465_v37  ;;  %v10685_v45 = vmul.u32.u64.high %v10637_v42, %v1465_v37, %v10684_v11 }
 0x205   : > { %v10687_v4 = vor.u32 4788187, %v3056_v24  ;;  %v1457_v1 = vsel %vm1451_vm9, %v1454_v46, %v1456_v43  ;;  %vm3093_vm10 = vcmp.gt.s32.totalorder %v3092_v13, 0  ;;  %v631_v30 = vmul.f32 30.0, %v599_v14 }
 0x206   : > { %v1178_v60 = vsub.s32 32, %v10657_v27  ;;  %v10691_v50 = vadd.s32 127, %v1182_v36  ;;  %v3094_v61 = vsel %vm3093_vm10, %v3092_v13, 0  ;;  %v10693_v7 = vadd.f32 1.0, %v583_v18 }
 0x207   : > { %v1476_v21 = vadd.s32 1, %v10678_v23  ;;  %v3090_v22 = vor.u32 8388608, %v10669_v6  ;;  %v3096_v32 = vand.u32 31, %v3094_v61  ;;  %vm8315_vm11 = vcmp.lt.s32.totalorder %v8314_v15, 0 }
 0x208   : > { %v1473_v0 = vmul.u32 %v10637_v42, %v1457_v1  ;;  %vm1475_vm12 = vc.u32 %v10685_v45, %v10677_v5  ;;  %v1180_v6 = vshrl.u32 %v10622_v47, %v1178_v60  ;;  %v1184_v36 = vshll.u32 %v10691_v50, 23 }
 0x209   : > { %v1477_v14 = vsel %vm1475_vm12, %v1476_v21, %v10678_v23  ;;  %v3097_v18 = vsub.s32 32, %v3096_v32  ;;  %v3099_v53 = vshll.u32 %v16429_v2, %v3096_v32  ;;  %v3102_v58 = vshll.u32 %v16424_v38, %v3096_v32 }
 0x20a   : > { %v1478_v46 = vadd.s32 %v1477_v14, %v1473_v0  ;;  %v3105_v43 = vshll.u32 %v16425_v8, %v3096_v32  ;;  %v3095_v57 = vshrl.u32 %v3094_v61, 5  ;;  %v10712_v23 = vsel %vm8315_vm11, 0, %v8314_v15 }
 0x20b   : > { %v3100_v42 = vshrl.u32 %v16424_v38, %v3097_v18  ;;  %v3103_v37 = vshrl.u32 %v16425_v8, %v3097_v18  ;;  %v3106_v13 = vshrl.u32 %v16426_v9, %v3097_v18  ;;  %v3108_v21 = vshll.u32 %v16426_v9, %v3096_v32 }
 0x20c   : > { %v1479_v1 = vadd.s32 536870912, %v1478_v46  ;;  %v10716_v11 = vmul.f32 %v631_v30, %v10614_v20  ;;  %v3098_v47 = vshrl.u32 %v16429_v2, %v3097_v18  ;;  %v3109_v61 = vshrl.u32 %v16439_v40, %v3097_v18 }
 0x20d   : > { %v3101_v60 = vor.u32 %v3100_v42, %v3099_v53  ;;  %v3104_v50 = vor.u32 %v3103_v37, %v3102_v58  ;;  %v3107_v14 = vor.u32 %v3106_v13, %v3105_v43  ;;  %v3111_v24 = vshll.u32 %v16439_v40, %v3096_v32 }
 0x20e   : > { %v10720_v0 = vshrl.u32 %v1479_v1, 30  ;;  %v3112_v15 = vshrl.u32 %v16440_v62, %v3097_v18  ;;  %v2846_v19 = vsub.s32 4294967266, %v10712_v23  ;;  %v3110_v49 = vor.u32 %v3109_v61, %v3108_v21 }
 0x20f   : > { %vm3114_vm13 = vcmp.lt.s32.totalorder %v3095_v57, 1  ;;  %vm3116_vm2 = vcmp.lt.s32.totalorder %v3095_v57, 3  ;;  %vm3115_vm3 = vcmp.lt.s32.totalorder %v3095_v57, 2  ;;  %vm3117_vm4 = vcmp.lt.s32.totalorder %v3095_v57, 4 }
 0x210   : > { %16468 = vst [vmem:[#allocation38_spill] sm:$0xff] %v10720_v0  ;;  %v1481_v20 = vshll.u32 %v10720_v0, 30  ;;  %v3113_v30 = vor.u32 %v3112_v15, %v3111_v24  ;;  %v3119_v53 = vsel %vm3117_vm4, %v3107_v14, 2102212464  ;;  %v3122_v58 = vsel %vm3114_vm13, %v3101_v60, %v3104_v50 }
 0x211   : > { %v3123_v43 = vsel %vm3117_vm4, %v3110_v49, 920167782  ;;  %v3130_v42 = vshll.u32 %v3090_v22, 8  ;;  %v3118_v18 = vsel %vm3114_vm13, %v3098_v47, %v3101_v60  ;;  %v3120_v37 = vsel %vm3116_vm2, %v3104_v50, %v3119_v53 }
 0x212   : > { %v10729_v32 = vsub.s32 %v1478_v46, %v1481_v20  ;;  %v3124_v13 = vsel %vm3116_vm2, %v3107_v14, %v3123_v43  ;;  %v2842_v1 = vsub.s32 32, %v10712_v23  ;;  %v3126_v24 = vsel %vm3114_vm13, %v3104_v50, %v3107_v14 }
 0x213   : > { %v3125_v21 = vsel %vm3115_vm3, %v3122_v58, %v3124_v13  ;;  %v3127_v61 = vsel %vm3117_vm4, %v3113_v30, 1326507024  ;;  %v2847_v15 = vadd.s32 127, %v2846_v19  ;;  %v16170_v46 = vand.u32 2147483647, %v10716_v11 }
 0x214   : > { %v1484_v0 = vsub.s32 0, %v10729_v32  ;;  %v3128_v22 = vsel %vm3116_vm2, %v3110_v49, %v3127_v61  ;;  %v3121_v47 = vsel %vm3115_vm3, %v3118_v18, %v3120_v37  ;;  %v1213_v19 = vand.u32 2139095040, %v10716_v11 }
 0x215   : > { %v3129_v60 = vsel %vm3115_vm3, %v3126_v24, %v3128_v22  ;;  %v10742_v20 = vmul.u32.u64.low %v3130_v42, %v3125_v21  ;;  %v10743_v53 = vmul.u32.u64.high %v3130_v42, %v3125_v21, %v10742_v20  ;;  %v3058_v14 = vand.u32 2147483647, %v10687_v4 }
 0x216   : > { %v8261_v58 = vmin.u32 %v1484_v0, %v10729_v32  ;;  %v10747_v43 = vmul.u32.u64.low %v3130_v42, %v3129_v60  ;;  %v10748_v50 = vmul.u32.u64.high %v3130_v42, %v3129_v60, %v10747_v43  ;;  %v1185_v49 = vor.u32 4788187, %v1184_v36 }
 0x217   : > { %v2826_v30 = vadd.s32 %v10563_v29, %v10559_v33  ;;  %v647_v57 = vmul.f32 30.0, %v10693_v7  ;;  %v16469_v18 = vshll.u32 %v10555_v52, %v10657_v27  ;;  %v3137_v21 = vmul.u32 %v3130_v42, %v3121_v47 }
 0x218   : > { %v1486_v13 = vclz %v8261_v58  ;;  %v1214_v0 = vshrl.u32 %v1213_v19, 23  ;;  %v2848_v61 = vshll.u32 %v2847_v15, 23  ;;  %v3140_v22 = vadd.s32 1, %v10743_v53 }
 0x219   : > { %v1181_v37 = vor.u32 %v1180_v6, %v16469_v18  ;;  %v2844_v24 = vshrl.u32 %v2826_v30, %v2842_v1  ;;  %v1217_v4 = vand.u32 8388607, %v16170_v46  ;;  %vm3139_vm5 = vc.u32 %v10748_v50, %v10742_v20 }
 0x21a   : > { %v8262_v36 = vadd.s32 4294967294, %v1486_v13  ;;  %v8252_v33 = vadd.s32 4294967169, %v1214_v0  ;;  %v16470_v29 = vand.u32 2147483647, %v10633_v12  ;;  %v1186_v52 = vand.u32 2147483647, %v1185_v49 }
 0x21b   : > { %v2843_v27 = vshll.u32 %v10649_v55, %v10712_v23  ;;  %v3141_v6 = vsel %vm3139_vm5, %v3140_v22, %v10743_v53  ;;  %v10769_v42 = vmul.f32 %v647_v57, %v10629_v63  ;;  %v3060_v15 = vcvt.s32.f32 %v10681_v28  ;;  %v10783_v57 = vpop.f32.mrb[11].mxu0 }
 0x21c   : > { %v604_v7 = vadd.f32 1.0, %v16470_v29  ;;  %v3142_v47 = vadd.s32 %v3141_v6, %v3137_v21  ;;  %v1220_v60 = vadd.s32 1, %v8252_v33  ;;  %v1188_v58 = vcvt.s32.f32 %v1181_v37  ;;  %16472 = vst [vmem:[#allocation40_spill] sm:$0xff] %v10783_v57 }
 0x21d   : > { %16471 = vst [vmem:[#allocation39_spill] sm:$0xff] %v10769_v42  ;;  %v10773_v43 = vor.u32 %v2844_v24, %v2843_v27  ;;  %v10775_v19 = vor.u32 4788187, %v2848_v61  ;;  %vm8263_vm6 = vcmp.lt.s32.totalorder %v8262_v36, 0  ;;  %v1218_v30 = vor.u32 8388608, %v1217_v4 }
 0x21e   : > { %v3143_v49 = vadd.s32 536870912, %v3142_v47  ;;  %v16169_v55 = vand.u32 2147483647, %v10769_v42  ;;  %v636_v23 = vmul.f32 30.0, %v604_v7  ;;  %v10778_v53 = vmul.f32 %v3060_v15, %v3058_v14  ;;  %v10796_v61 = vld [vmem:[%s16104_s2] ss:$0 sm:$0xff] }
 0x21f   : > { %v10780_v63 = vmul.f32 %v1188_v58, %v1186_v52  ;;  %vm1221_vm8 = vcmp.gt.s32.totalorder %v1220_v60, 0  ;;  %v2877_v28 = vand.u32 2139095040, %v10769_v42  ;;  %v1474_v18 = vadd.s32 %v10677_v5, %v10685_v45 }
 0x220   : > { %v10787_v37 = vsel %vm8263_vm6, 0, %v8262_v36  ;;  %v10789_v13 = vshrl.u32 %v3143_v49, 30  ;;  %v1222_v21 = vsel %vm1221_vm8, %v1220_v60, 0  ;;  %v10800_v22 = vadd.f32 %v10796_v61, %v10395_v25 }
 0x221   : > { %v1224_v24 = vand.u32 31, %v1222_v21  ;;  %v10803_v5 = vshll.u32 %v1218_v30, 8  ;;  %v10807_v4 = vand.u32 8388607, %v16169_v55  ;;  %v10810_v36 = vmul.f32 %v636_v23, %v10633_v12 }
 0x222   : > { %16473 = vst [vmem:[#allocation41_spill] sm:$0xff] %v10789_v13  ;;  %v3145_v45 = vshll.u32 %v10789_v13, 30  ;;  %v1490_v33 = vsub.s32 32, %v10787_v37  ;;  %v1494_v29 = vsub.s32 4294967266, %v10787_v37  ;;  %v2878_v52 = vshrl.u32 %v2877_v28, 23 }
 0x223   : > { %16474 = vst [vmem:[#allocation42_spill] sm:$0xff] %v10810_v36  ;;  %v1225_v7 = vsub.s32 32, %v1224_v24  ;;  %v1223_v25 = vshrl.u32 %v1222_v21, 5  ;;  %v1227_v6 = vshll.u32 %v16429_v2, %v1224_v24  ;;  %v1230_v15 = vshll.u32 %v16424_v38, %v1224_v24 }
 0x224   : > { %v10814_v27 = vsub.s32 %v3142_v47, %v3145_v45  ;;  %v1233_v12 = vshll.u32 %v16425_v8, %v1224_v24  ;;  %v1236_v23 = vshll.u32 %v16426_v9, %v1224_v24  ;;  %v1239_v28 = vshll.u32 %v16439_v40, %v1224_v24 }
 0x225   : > { %v1228_v60 = vshrl.u32 %v16424_v38, %v1225_v7  ;;  %v1231_v58 = vshrl.u32 %v16425_v8, %v1225_v7  ;;  %v1234_v49 = vshrl.u32 %v16426_v9, %v1225_v7  ;;  %v1237_v47 = vshrl.u32 %v16439_v40, %v1225_v7 }
 0x226   : > { %v3148_v30 = vsub.s32 0, %v10814_v27  ;;  %v1240_v46 = vshrl.u32 %v16440_v62, %v1225_v7  ;;  %v1492_v1 = vshrl.u32 %v1474_v18, %v1490_v33  ;;  %v2882_v13 = vor.u32 8388608, %v10807_v4 }
 0x227   : > { %v1229_v21 = vor.u32 %v1228_v60, %v1227_v6  ;;  %v1232_v45 = vor.u32 %v1231_v58, %v1230_v15  ;;  %v1235_v55 = vor.u32 %v1234_v49, %v1233_v12  ;;  %v1238_v0 = vor.u32 %v1237_v47, %v1236_v23 }
 0x228   : > { %v8325_v14 = vmin.u32 %v3148_v30, %v10814_v27  ;;  %v1495_v59 = vadd.s32 127, %v1494_v29  ;;  %v1241_v48 = vor.u32 %v1240_v46, %v1239_v28  ;;  %vm1245_vm9 = vcmp.lt.s32.totalorder %v1223_v25, 4 }
 0x229   : > { %v8316_v35 = vadd.s32 4294967169, %v2878_v52  ;;  %v1226_v57 = vshrl.u32 %v16429_v2, %v1225_v7  ;;  %vm1242_vm10 = vcmp.lt.s32.totalorder %v1223_v25, 1  ;;  %v1247_v24 = vsel %vm1245_vm9, %v1235_v55, 2102212464 }
 0x22a   : > { %v3150_v42 = vclz %v8325_v14  ;;  %vm1243_vm11 = vcmp.lt.s32.totalorder %v1223_v25, 2  ;;  %vm1244_vm12 = vcmp.lt.s32.totalorder %v1223_v25, 3  ;;  %v1250_v6 = vsel %vm1242_vm10, %v1229_v21, %v1232_v45 }
 0x22b   : > { %v1251_v18 = vsel %vm1245_vm9, %v1238_v0, 920167782  ;;  %v1246_v15 = vsel %vm1242_vm10, %v1226_v57, %v1229_v21  ;;  %v1254_v58 = vsel %vm1242_vm10, %v1232_v45, %v1235_v55  ;;  %v1248_v4 = vsel %vm1244_vm12, %v1232_v45, %v1247_v24 }
 0x22c   : > { %v8326_v33 = vadd.s32 4294967294, %v3150_v42  ;;  %v1252_v60 = vsel %vm1244_vm12, %v1235_v55, %v1251_v18  ;;  %v1255_v29 = vsel %vm1245_vm9, %v1241_v48, 1326507024  ;;  %v2884_v14 = vadd.s32 1, %v8316_v35 }
 0x22d   : > { %v1253_v46 = vsel %vm1243_vm11, %v1250_v6, %v1252_v60  ;;  %v1256_v7 = vsel %vm1244_vm12, %v1238_v0, %v1255_v29  ;;  %v1496_v49 = vshll.u32 %v1495_v59, 23  ;;  %v10841_v42 = vadd.s32 %v10742_v20, %v10748_v50 }
 0x22e   : > { %vm8327_vm13 = vcmp.lt.s32.totalorder %v8326_v33, 0  ;;  %v10835_v52 = vmul.u32.u64.low %v10803_v5, %v1253_v46  ;;  %v10836_v12 = vmul.u32.u64.high %v10803_v5, %v1253_v46, %v10835_v52  ;;  %v1257_v55 = vsel %vm1243_vm11, %v1254_v58, %v1256_v7 }
 0x22f   : > { %vm2885_vm2 = vcmp.gt.s32.totalorder %v2884_v14, 0  ;;  %v1491_v57 = vshll.u32 %v10729_v32, %v10787_v37  ;;  %v1249_v35 = vsel %vm1243_vm11, %v1246_v15, %v1248_v4  ;;  %v588_v0 = vand.u32 2147483647, %v10800_v22 }
 0x230   : > { %v2886_v48 = vsel %vm2885_vm2, %v2884_v14, 0  ;;  %v10848_v30 = vsel %vm8327_vm13, 0, %v8326_v33  ;;  %v10851_v23 = vmul.u32.u64.low %v10803_v5, %v1257_v55  ;;  %v10852_v59 = vmul.u32.u64.high %v10803_v5, %v1257_v55, %v10851_v23 }
 0x231   : > { %v2888_v47 = vand.u32 31, %v2886_v48  ;;  %v10854_v20 = vor.u32 %v1492_v1, %v1491_v57  ;;  %v1268_v50 = vadd.s32 1, %v10836_v12  ;;  %v10857_v28 = vshll.u32 %v2882_v13, 8 }
 0x232   : > { %v10860_v37 = vor.u32 4788187, %v1496_v49  ;;  %v1265_v25 = vmul.u32 %v10803_v5, %v1249_v35  ;;  %v3158_v24 = vsub.s32 4294967266, %v10848_v30  ;;  %v2887_v6 = vshrl.u32 %v2886_v48, 5 }
 0x233   : > { %v2889_v21 = vsub.s32 32, %v2888_v47  ;;  %v2891_v45 = vshll.u32 %v16429_v2, %v2888_v47  ;;  %v2894_v18 = vshll.u32 %v16424_v38, %v2888_v47  ;;  %v1733_v1 = vand.u32 2139095040, %v10810_v36 }
 0x234   : > { %vm1267_vm3 = vc.u32 %v10852_v59, %v10835_v52  ;;  %v2897_v33 = vshll.u32 %v16425_v8, %v2888_v47  ;;  %v2900_v15 = vshll.u32 %v16426_v9, %v2888_v47  ;;  %v2903_v4 = vshll.u32 %v16439_v40, %v2888_v47 }
 0x235   : > { %v2892_v13 = vshrl.u32 %v16424_v38, %v2889_v21  ;;  %v1269_v5 = vsel %vm1267_vm3, %v1268_v50, %v10836_v12  ;;  %v2890_v60 = vshrl.u32 %v16429_v2, %v2889_v21  ;;  %v2895_v58 = vshrl.u32 %v16425_v8, %v2889_v21  ;;  %v10880_v50 = vpop.f32.mrb[11].mxu1 }
 0x236   : > { %v1270_v46 = vadd.s32 %v1269_v5, %v1265_v25  ;;  %v2898_v14 = vshrl.u32 %v16426_v9, %v2889_v21  ;;  %v2901_v7 = vshrl.u32 %v16439_v40, %v2889_v21  ;;  %v3154_v49 = vsub.s32 32, %v10848_v30 }
 0x237   : > { %v2893_v29 = vor.u32 %v2892_v13, %v2891_v45  ;;  %v2896_v55 = vor.u32 %v2895_v58, %v2894_v18  ;;  %v2904_v57 = vshrl.u32 %v16440_v62, %v2889_v21  ;;  %vm2906_vm4 = vcmp.lt.s32.totalorder %v2887_v6, 1 }
 0x238   : > { %v3159_v35 = vadd.s32 127, %v3158_v24  ;;  %v1271_v12 = vadd.s32 536870912, %v1270_v46  ;;  %v2899_v48 = vor.u32 %v2898_v14, %v2897_v33  ;;  %v2902_v23 = vor.u32 %v2901_v7, %v2900_v15 }
 0x239   : > { %v2905_v32 = vor.u32 %v2904_v57, %v2903_v4  ;;  %vm2907_vm5 = vcmp.lt.s32.totalorder %v2887_v6, 2  ;;  %vm2908_vm6 = vcmp.lt.s32.totalorder %v2887_v6, 3  ;;  %vm2909_vm8 = vcmp.lt.s32.totalorder %v2887_v6, 4 }
 0x23a   : > { %v10882_v47 = vshrl.u32 %v1271_v12, 30  ;;  %v2910_v25 = vsel %vm2906_vm4, %v2890_v60, %v2893_v29  ;;  %v2911_v45 = vsel %vm2909_vm8, %v2899_v48, 2102212464  ;;  %v2914_v18 = vsel %vm2906_vm4, %v2893_v29, %v2896_v55 }
 0x23b   : > { %v2912_v21 = vsel %vm2908_vm6, %v2896_v55, %v2911_v45  ;;  %v2915_v13 = vsel %vm2909_vm8, %v2902_v23, 920167782  ;;  %v2918_v24 = vsel %vm2906_vm4, %v2896_v55, %v2899_v48  ;;  %v1734_v33 = vshrl.u32 %v1733_v1, 23 }
 0x23c   : > { %16475 = vst [vmem:[#allocation43_spill] sm:$0xff] %v10882_v47  ;;  %vm16229_vm9 = vcmp.lt.s32.totalorder %v10098_v26, 0  ;;  %vm1316_vm10 = vcmp.lt.s32.totalorder %v10223_v54, 0  ;;  %v1498_v15 = vand.u32 2147483647, %v10860_v37  ;;  %v1273_v5 = vshll.u32 %v10882_v47, 30 }
 0x23d   : > { %v2916_v58 = vsel %vm2908_vm6, %v2899_v48, %v2915_v13  ;;  %v2919_v60 = vsel %vm2909_vm8, %v2905_v32, 1326507024  ;;  %v3156_v4 = vshrl.u32 %v10841_v42, %v3154_v49  ;;  %v2913_v29 = vsel %vm2907_vm5, %v2910_v25, %v2912_v21 }
 0x23e   : > { %v2917_v14 = vsel %vm2907_vm5, %v2914_v18, %v2916_v58  ;;  %v2920_v7 = vsel %vm2908_vm6, %v2902_v23, %v2919_v60  ;;  %v10897_v1 = vsub.s32 %v1270_v46, %v1273_v5  ;;  %v3160_v12 = vshll.u32 %v3159_v35, 23 }
 0x23f   : > { %v2921_v55 = vsel %vm2907_vm5, %v2918_v24, %v2920_v7  ;;  %v10901_v57 = vmul.u32.u64.low %v10857_v28, %v2917_v14  ;;  %v10902_v37 = vmul.u32.u64.high %v10857_v28, %v2917_v14, %v10901_v57  ;;  %v8272_v42 = vadd.s32 4294967169, %v1734_v33 }
 0x240   : > { %v10906_v32 = vmul.u32.u64.low %v10857_v28, %v2921_v55  ;;  %v10907_v48 = vmul.u32.u64.high %v10857_v28, %v2921_v55, %v10906_v32  ;;  %v1500_v49 = vcvt.s32.f32 %v10854_v20  ;;  %v3155_v23 = vshll.u32 %v10814_v27, %v10848_v30 }
 0x241   : > { %v1276_v46 = vsub.s32 0, %v10897_v1  ;;  %v620_v6 = vadd.f32 1.0, %v588_v0  ;;  %v16476_v25 = vand.u32 2147483647, %v10775_v19  ;;  %v16477_v45 = vcvt.s32.f32 %v10773_v43 }
 0x242   : > { %v2929_v18 = vmul.u32 %v10857_v28, %v2913_v29  ;;  %v1740_v21 = vadd.s32 1, %v8272_v42  ;;  %v10924_v20 = vadd.f32 %v10796_v61, %v10471_v3  ;;  %v10926_v13 = vmul.f32 %v1500_v49, %v1498_v15 }
 0x243   : > { %v10919_v35 = vmul.f32 %v16477_v45, %v16476_v25  ;;  %v3157_v27 = vor.u32 %v3156_v4, %v3155_v23  ;;  %v8253_v30 = vmin.u32 %v1276_v46, %v10897_v1  ;;  %v2932_v0 = vadd.s32 1, %v10902_v37 }
 0x244   : > { %v3161_v24 = vor.u32 4788187, %v3160_v12  ;;  %vm2931_vm11 = vc.u32 %v10907_v48, %v10901_v57  ;;  %v16478_v43 = vand.u32 2147483647, %v10810_v36  ;;  %vm1741_vm12 = vcmp.gt.s32.totalorder %v1740_v21, 0 }
 0x245   : > { %v1278_v28 = vclz %v8253_v30  ;;  %v2933_v33 = vsel %vm2931_vm11, %v2932_v0, %v10902_v37  ;;  %v1742_v3 = vsel %vm1741_vm12, %v1740_v21, 0  ;;  %v652_v5 = vmul.f32 30.0, %v620_v6 }
 0x246   : > { %v1737_v19 = vand.u32 8388607, %v16478_v43  ;;  %v16479_v15 = vxor.u32 2147483648, %v10576_v41  ;;  %v16481_v60 = vxor.u32 2147483648, %v10616_v39  ;;  %v2934_v29 = vadd.s32 %v2933_v33, %v2929_v18 }
 0x247   : > { %v1744_v14 = vand.u32 31, %v1742_v3  ;;  %v8254_v12 = vadd.s32 4294967294, %v1278_v28  ;;  %v3162_v23 = vand.u32 2147483647, %v3161_v24  ;;  %v10954_v6 = vmul.f32 %v652_v5, %v10800_v22  ;;  %v10968_v28 = vpop.f32.mrb[12].mxu0 }
 0x248   : > { %v10940_v58 = vsel %vm16229_vm9, %v16479_v15, %v10576_v41  ;;  %v10947_v4 = vsel %vm1316_vm10, %v16481_v60, %v10616_v39  ;;  %v3164_v41 = vcvt.s32.f32 %v3157_v27  ;;  %v2935_v42 = vadd.s32 536870912, %v2934_v29 }
 0x249   : > { %16480 = vst [vmem:[#allocation44_spill] sm:$0xff] %v10940_v58  ;;  %16482 = vst [vmem:[#allocation45_spill] sm:$0xff] %v10947_v4  ;;  %v1745_v49 = vsub.s32 32, %v1744_v14  ;;  %v1738_v46 = vor.u32 8388608, %v1737_v19  ;;  %v570_v39 = vand.u32 2147483647, %v10924_v20  ;;  %v1747_v18 = vshll.u32 %v16429_v2, %v1744_v14 }
 0x24a   : > { %16483 = vst [vmem:[#allocation46_spill] sm:$0xff] %v10954_v6  ;;  %v10957_v25 = vshrl.u32 %v2935_v42, 30  ;;  %v1743_v45 = vshrl.u32 %v1742_v3, 5  ;;  %vm8255_vm13 = vcmp.lt.s32.totalorder %v8254_v12, 0  ;;  %v1750_v30 = vshll.u32 %v16424_v38, %v1744_v14 }
 0x24b   : > { %v1748_v21 = vshrl.u32 %v16424_v38, %v1745_v49  ;;  %v1751_v27 = vshrl.u32 %v16425_v8, %v1745_v49  ;;  %v1753_v0 = vshll.u32 %v16425_v8, %v1744_v14  ;;  %v1754_v22 = vshrl.u32 %v16426_v9, %v1745_v49 }
 0x24c   : > { %16484 = vst [vmem:[#allocation47_spill] sm:$0xff] %v10957_v25  ;;  %v2937_v24 = vshll.u32 %v10957_v25, 30  ;;  %v1756_v43 = vshll.u32 %v16426_v9, %v1744_v14  ;;  %v1757_v19 = vshrl.u32 %v16439_v40, %v1745_v49  ;;  %v1759_v5 = vshll.u32 %v16439_v40, %v1744_v14 }
 0x24d   : > { %v1749_v33 = vor.u32 %v1748_v21, %v1747_v18  ;;  %v1752_v3 = vor.u32 %v1751_v27, %v1750_v30  ;;  %v1760_v15 = vshrl.u32 %v16440_v62, %v1745_v49  ;;  %vm16205_vm2 = vcmp.lt.s32.totalorder %v10305_v31, 0 }
 0x24e   : > { %v10973_v60 = vsel %vm8255_vm13, 0, %v8254_v12  ;;  %v10975_v42 = vsub.s32 %v2934_v29, %v2937_v24  ;;  %v1755_v32 = vor.u32 %v1754_v22, %v1753_v0  ;;  %v1758_v37 = vor.u32 %v1757_v19, %v1756_v43 }
 0x24f   : > { %v10977_v55 = vmul.f32 %v3164_v41, %v3162_v23  ;;  %v1761_v7 = vor.u32 %v1760_v15, %v1759_v5  ;;  %v1778_v25 = vshll.u32 %v1738_v46, 8  ;;  %v602_v58 = vadd.f32 1.0, %v570_v39 }
 0x250   : > { %vm1108_vm3 = vcmp.lt.s32.totalorder %v10393_v56, 0  ;;  %vm16206_vm4 = vcmp.lt.s32.totalorder %v10416_v34, 0  ;;  %v2940_v14 = vsub.s32 0, %v10975_v42  ;;  %v1746_v18 = vshrl.u32 %v16429_v2, %v1745_v49 }
 0x251   : > { %vm1762_vm5 = vcmp.lt.s32.totalorder %v1743_v45, 1  ;;  %v3397_v12 = vand.u32 2139095040, %v10954_v6  ;;  %v1282_v29 = vsub.s32 32, %v10973_v60  ;;  %vm1764_vm6 = vcmp.lt.s32.totalorder %v1743_v45, 3 }
 0x252   : > { %vm1765_vm8 = vcmp.lt.s32.totalorder %v1743_v45, 4  ;;  %v1770_v41 = vsel %vm1762_vm5, %v1749_v33, %v1752_v3  ;;  %v8317_v23 = vmin.u32 %v2940_v14, %v10975_v42  ;;  %v1774_v21 = vsel %vm1762_vm5, %v1752_v3, %v1755_v32 }
 0x253   : > { %v1767_v46 = vsel %vm1765_vm8, %v1755_v32, 2102212464  ;;  %v1771_v39 = vsel %vm1765_vm8, %v1758_v37, 920167782  ;;  %v1286_v30 = vsub.s32 4294967266, %v10973_v60  ;;  %vm1763_vm11 = vcmp.lt.s32.totalorder %v1743_v45, 2 }
 0x254   : > { %v1772_v27 = vsel %vm1764_vm6, %v1755_v32, %v1771_v39  ;;  %v1775_v0 = vsel %vm1765_vm8, %v1761_v7, 1326507024  ;;  %v2942_v24 = vclz %v8317_v23  ;;  %v1766_v49 = vsel %vm1762_vm5, %v1746_v18, %v1749_v33 }
 0x255   : > { %v1773_v22 = vsel %vm1763_vm11, %v1770_v41, %v1772_v27  ;;  %v1776_v43 = vsel %vm1764_vm6, %v1758_v37, %v1775_v0  ;;  %v1768_v19 = vsel %vm1764_vm6, %v1752_v3, %v1767_v46  ;;  %v3398_v47 = vshrl.u32 %v3397_v12, 23 }
 0x256   : > { %v1777_v5 = vsel %vm1763_vm11, %v1774_v21, %v1776_v43  ;;  %v10989_v15 = vmul.u32.u64.low %v1778_v25, %v1773_v22  ;;  %v10990_v26 = vmul.u32.u64.high %v1778_v25, %v1773_v22, %v10989_v15  ;;  %v8318_v14 = vadd.s32 4294967294, %v2942_v24 }
 0x257   : > { %v10993_v4 = vmul.u32.u64.low %v1778_v25, %v1777_v5  ;;  %v10994_v54 = vmul.u32.u64.high %v1778_v25, %v1777_v5, %v10993_v4  ;;  %v16485_v7 = vxor.u32 2147483648, %v10778_v53  ;;  %vm1420_vm12 = vcmp.lt.s32.totalorder %v10538_v17, 0 }
 0x258   : > { %v1287_v37 = vadd.s32 127, %v1286_v30  ;;  %v11006_v33 = vadd.f32 %v10796_v61, %v10531_v51  ;;  %v1266_v3 = vadd.s32 %v10835_v52, %v10852_v59  ;;  %v1769_v4 = vsel %vm1763_vm11, %v1766_v49, %v1768_v19 }
 0x259   : > { %v11001_v32 = vsel %vm16205_vm2, %v16485_v7, %v10778_v53  ;;  %v16186_v18 = vand.u32 2147483647, %v10954_v6  ;;  %v8336_v12 = vadd.s32 4294967169, %v3398_v47  ;;  %v16487_v41 = vxor.u32 2147483648, %v10780_v63 }
 0x25a   : > { %16486 = vst [vmem:[#allocation48_spill] sm:$0xff] %v11001_v32  ;;  %v16488_v23 = vxor.u32 2147483648, %v10919_v35  ;;  %v16490_v52 = vxor.u32 2147483648, %v10926_v13  ;;  %v1788_v47 = vadd.s32 1, %v10990_v26  ;;  %vm8319_vm13 = vcmp.lt.s32.totalorder %v8318_v14, 0 }
 0x25b   : > { %v11017_v53 = vsel %vm1108_vm3, %v16487_v41, %v10780_v63  ;;  %v1284_v63 = vshrl.u32 %v1266_v3, %v1282_v29  ;;  %v634_v46 = vmul.f32 30.0, %v602_v58  ;;  %v1288_v39 = vshll.u32 %v1287_v37, 23 }
 0x25c   : > { %v11024_v51 = vsel %vm16206_vm4, %v16488_v23, %v10919_v35  ;;  %v11031_v59 = vsel %vm1420_vm12, %v16490_v52, %v10926_v13  ;;  %v1785_v21 = vmul.u32 %v1778_v25, %v1769_v4  ;;  %vm1787_vm5 = vc.u32 %v10994_v54, %v10989_v15 }
 0x25d   : > { %16489 = vst [vmem:[#allocation49_spill] sm:$0xff] %v11024_v51  ;;  %v3404_v35 = vadd.s32 1, %v8336_v12  ;;  %v1789_v30 = vsel %vm1787_vm5, %v1788_v47, %v10990_v26  ;;  %v3401_v27 = vand.u32 8388607, %v16186_v18  ;;  %v586_v13 = vand.u32 2147483647, %v11006_v33 }
 0x25e   : > { %v11043_v0 = vadd.f32 %v10796_v61, %v10640_v16  ;;  %v1283_v58 = vshll.u32 %v10897_v1, %v10973_v60  ;;  %v11047_v29 = vsel %vm8319_vm13, 0, %v8318_v14  ;;  %v1790_v25 = vadd.s32 %v1789_v30, %v1785_v21 }
 0x25f   : > { %vm3405_vm6 = vcmp.gt.s32.totalorder %v3404_v35, 0  ;;  %v11051_v24 = vadd.s32 %v10901_v57, %v10907_v48  ;;  %v11054_v49 = vmul.f32 %v634_v46, %v10924_v20  ;;  %v11058_v22 = vadd.f32 %v10796_v61, %v10724_v44 }
 0x260   : > { %v3406_v26 = vsel %vm3405_vm6, %v3404_v35, 0  ;;  %v11060_v16 = vor.u32 %v1284_v63, %v1283_v58  ;;  %v11062_v43 = vor.u32 4788187, %v1288_v39  ;;  %v1791_v1 = vadd.s32 536870912, %v1790_v25  ;;  %v11077_v63 = vpop.f32.mrb[12].mxu1 }
 0x261   : > { %16491 = vst [vmem:[#allocation50_spill] sm:$0xff] %v11054_v49  ;;  %v3408_v60 = vand.u32 31, %v3406_v26  ;;  %v2946_v19 = vsub.s32 32, %v11047_v29  ;;  %v3402_v5 = vor.u32 8388608, %v3401_v27  ;;  %v3407_v14 = vshrl.u32 %v3406_v26, 5 }
 0x262   : > { %v618_v57 = vadd.f32 1.0, %v586_v13  ;;  %v11065_v48 = vshrl.u32 %v1791_v1, 30  ;;  %v1525_v12 = vand.u32 2139095040, %v11054_v49  ;;  %v2950_v41 = vsub.s32 4294967266, %v11047_v29 }
 0x263   : > { %v3409_v7 = vsub.s32 32, %v3408_v60  ;;  %v3411_v20 = vshll.u32 %v16429_v2, %v3408_v60  ;;  %v3414_v37 = vshll.u32 %v16424_v38, %v3408_v60  ;;  %v3417_v44 = vshll.u32 %v16425_v8, %v3408_v60 }
 0x264   : > { %16492 = vst [vmem:[#allocation51_spill] sm:$0xff] %v11065_v48  ;;  %v3420_v3 = vshll.u32 %v16426_v9, %v3408_v60  ;;  %v3423_v4 = vshll.u32 %v16439_v40, %v3408_v60  ;;  %v1793_v23 = vshll.u32 %v11065_v48, 30  ;;  %vm3426_vm8 = vcmp.lt.s32.totalorder %v3407_v14, 1 }
 0x265   : > { %v3412_v52 = vshrl.u32 %v16424_v38, %v3409_v7  ;;  %v3415_v47 = vshrl.u32 %v16425_v8, %v3409_v7  ;;  %v3410_v46 = vshrl.u32 %v16429_v2, %v3409_v7  ;;  %v3418_v39 = vshrl.u32 %v16426_v9, %v3409_v7 }
 0x266   : > { %v3421_v21 = vshrl.u32 %v16439_v40, %v3409_v7  ;;  %v3424_v35 = vshrl.u32 %v16440_v62, %v3409_v7  ;;  %v11083_v30 = vsub.s32 %v1790_v25, %v1793_v23  ;;  %v1526_v60 = vshrl.u32 %v1525_v12, 23 }
 0x267   : > { %v3413_v27 = vor.u32 %v3412_v52, %v3411_v20  ;;  %v3416_v13 = vor.u32 %v3415_v47, %v3414_v37  ;;  %v3419_v58 = vor.u32 %v3418_v39, %v3417_v44  ;;  %vm3428_vm11 = vcmp.lt.s32.totalorder %v3407_v14, 3 }
 0x268   : > { %v3422_v26 = vor.u32 %v3421_v21, %v3420_v3  ;;  %v3425_v1 = vor.u32 %v3424_v35, %v3423_v4  ;;  %v1796_v18 = vsub.s32 0, %v11083_v30  ;;  %vm3429_vm13 = vcmp.lt.s32.totalorder %v3407_v14, 4 }
 0x269   : > { %v3442_v45 = vshll.u32 %v3402_v5, 8  ;;  %vm3427_vm5 = vcmp.lt.s32.totalorder %v3407_v14, 2  ;;  %v3431_v32 = vsel %vm3429_vm13, %v3419_v58, 2102212464  ;;  %v3434_v31 = vsel %vm3426_vm8, %v3413_v27, %v3416_v13 }
 0x26a   : > { %v16189_v7 = vand.u32 2147483647, %v11054_v49  ;;  %v8273_v25 = vmin.u32 %v1796_v18, %v11083_v30  ;;  %v3430_v20 = vsel %vm3426_vm8, %v3410_v46, %v3413_v27  ;;  %v3435_v37 = vsel %vm3429_vm13, %v3422_v26, 920167782 }
 0x26b   : > { %v3438_v44 = vsel %vm3426_vm8, %v3416_v13, %v3419_v58  ;;  %v3432_v3 = vsel %vm3428_vm11, %v3416_v13, %v3431_v32  ;;  %v3436_v4 = vsel %vm3428_vm11, %v3419_v58, %v3435_v37  ;;  %v3439_v12 = vsel %vm3429_vm13, %v3425_v1, 1326507024 }
 0x26c   : > { %v8264_v23 = vadd.s32 4294967169, %v1526_v60  ;;  %v2951_v5 = vadd.s32 127, %v2950_v41  ;;  %v1798_v52 = vclz %v8273_v25  ;;  %v3437_v47 = vsel %vm3427_vm5, %v3434_v31, %v3436_v4 }
 0x26d   : > { %v3440_v39 = vsel %vm3428_vm11, %v3422_v26, %v3439_v12  ;;  %v11096_v18 = vmul.u32.u64.low %v3442_v45, %v3437_v47  ;;  %v11097_v35 = vmul.u32.u64.high %v3442_v45, %v3437_v47, %v11096_v18  ;;  %v3433_v32 = vsel %vm3427_vm5, %v3430_v20, %v3432_v3 }
 0x26e   : > { %v3441_v21 = vsel %vm3427_vm5, %v3438_v44, %v3440_v39  ;;  %v1532_v46 = vadd.s32 1, %v8264_v23  ;;  %v8274_v27 = vadd.s32 4294967294, %v1798_v52  ;;  %v2948_v1 = vshrl.u32 %v11051_v24, %v2946_v19 }
 0x26f   : > { %v11101_v13 = vmul.u32.u64.low %v3442_v45, %v3441_v21  ;;  %v11102_v58 = vmul.u32.u64.high %v3442_v45, %v3441_v21, %v11101_v13  ;;  %v1529_v31 = vand.u32 8388607, %v16189_v7  ;;  %v2952_v26 = vshll.u32 %v2951_v5, 23 }
 0x270   : > { %vm1533_vm6 = vcmp.gt.s32.totalorder %v1532_v46, 0  ;;  %vm8275_vm8 = vcmp.lt.s32.totalorder %v8274_v27, 0  ;;  %v650_v25 = vmul.f32 30.0, %v618_v57  ;;  %v2947_v37 = vshll.u32 %v10975_v42, %v11047_v29 }
 0x271   : > { %v1534_v60 = vsel %vm1533_vm6, %v1532_v46, 0  ;;  %v3449_v14 = vmul.u32 %v3442_v45, %v3433_v32  ;;  %v3452_v20 = vadd.s32 1, %v11097_v35  ;;  %v11112_v4 = vsel %vm8275_vm8, 0, %v8274_v27  ;;  %v11129_v46 = vpop.f32.mrb[13].mxu0 }
 0x272   : > { %v1536_v44 = vand.u32 31, %v1534_v60  ;;  %v573_v24 = vand.u32 2147483647, %v11043_v0  ;;  %v11116_v12 = vor.u32 %v2948_v1, %v2947_v37  ;;  %vm3451_vm11 = vc.u32 %v11102_v58, %v11096_v18 }
 0x273   : > { %v1530_v57 = vor.u32 8388608, %v1529_v31  ;;  %v11120_v42 = vor.u32 4788187, %v2952_v26  ;;  %v3453_v45 = vsel %vm3451_vm11, %v3452_v20, %v11097_v35  ;;  %v1535_v29 = vshrl.u32 %v1534_v60, 5 }
 0x274   : > { %v1537_v23 = vsub.s32 32, %v1536_v44  ;;  %v11124_v5 = vmul.f32 %v650_v25, %v11006_v33  ;;  %v1806_v52 = vsub.s32 4294967266, %v11112_v4  ;;  %v3454_v47 = vadd.s32 %v3453_v45, %v3449_v14 }
 0x275   : > { %v1539_v27 = vshll.u32 %v16429_v2, %v1536_v44  ;;  %v1542_v32 = vshll.u32 %v16424_v38, %v1536_v44  ;;  %v1545_v13 = vshll.u32 %v16425_v8, %v1536_v44  ;;  %v1548_v33 = vshll.u32 %v16426_v9, %v1536_v44 }
 0x276   : > { %v1540_v39 = vshrl.u32 %v16424_v38, %v1537_v23  ;;  %v1543_v21 = vshrl.u32 %v16425_v8, %v1537_v23  ;;  %v1546_v35 = vshrl.u32 %v16426_v9, %v1537_v23  ;;  %v3455_v1 = vadd.s32 536870912, %v3454_v47 }
 0x277   : > { %v1549_v31 = vshrl.u32 %v16439_v40, %v1537_v23  ;;  %v11137_v26 = vshll.u32 %v1530_v57, 8  ;;  %v16192_v14 = vand.u32 2147483647, %v11124_v5  ;;  %v1551_v7 = vshll.u32 %v16439_v40, %v1536_v44 }
 0x278   : > { %v1541_v60 = vor.u32 %v1540_v39, %v1539_v27  ;;  %v1544_v25 = vor.u32 %v1543_v21, %v1542_v32  ;;  %v1547_v37 = vor.u32 %v1546_v35, %v1545_v13  ;;  %v11140_v20 = vshrl.u32 %v3455_v1, 30 }
 0x279   : > { %v1550_v45 = vor.u32 %v1549_v31, %v1548_v33  ;;  %v1552_v19 = vshrl.u32 %v16440_v62, %v1537_v23  ;;  %v1807_v3 = vadd.s32 127, %v1806_v52  ;;  %vm1557_vm13 = vcmp.lt.s32.totalorder %v1535_v29, 4 }
 0x27a   : > { %16493 = vst [vmem:[#allocation52_spill] sm:$0xff] %v11140_v20  ;;  %v3189_v41 = vand.u32 2139095040, %v11124_v5  ;;  %v605_v51 = vadd.f32 1.0, %v573_v24  ;;  %v3457_v57 = vshll.u32 %v11140_v20, 30  ;;  %vm1554_vm5 = vcmp.lt.s32.totalorder %v1535_v29, 1 }
 0x27b   : > { %v1553_v34 = vor.u32 %v1552_v19, %v1551_v7  ;;  %v1559_v39 = vsel %vm1557_vm13, %v1547_v37, 2102212464  ;;  %v1538_v21 = vshrl.u32 %v16429_v2, %v1537_v23  ;;  %vm1556_vm6 = vcmp.lt.s32.totalorder %v1535_v29, 3 }
 0x27c   : > { %v1562_v27 = vsel %vm1554_vm5, %v1541_v60, %v1544_v25  ;;  %v1563_v32 = vsel %vm1557_vm13, %v1550_v45, 920167782  ;;  %v11149_v44 = vsub.s32 %v3454_v47, %v3457_v57  ;;  %vm1555_vm8 = vcmp.lt.s32.totalorder %v1535_v29, 2 }
 0x27d   : > { %v1564_v52 = vsel %vm1556_vm6, %v1547_v37, %v1563_v32  ;;  %v1566_v13 = vsel %vm1554_vm5, %v1544_v25, %v1547_v37  ;;  %vm16195_vm11 = vcmp.lt.s32.totalorder %v10590_v10, 0  ;;  %v1558_v24 = vsel %vm1554_vm5, %v1538_v21, %v1541_v60 }
 0x27e   : > { %v1560_v35 = vsel %vm1556_vm6, %v1544_v25, %v1559_v39  ;;  %v1565_v7 = vsel %vm1555_vm8, %v1562_v27, %v1564_v52  ;;  %v1567_v19 = vsel %vm1557_vm13, %v1553_v34, 1326507024  ;;  %v3460_v1 = vsub.s32 0, %v11149_v44 }
 0x27f   : > { %v1568_v23 = vsel %vm1556_vm6, %v1550_v45, %v1567_v19  ;;  %v11156_v33 = vmul.u32.u64.low %v11137_v26, %v1565_v7  ;;  %v11157_v31 = vmul.u32.u64.high %v11137_v26, %v1565_v7, %v11156_v33  ;;  %v1802_v47 = vsub.s32 32, %v11112_v4 }
 0x280   : > { %v1808_v57 = vshll.u32 %v1807_v3, 23  ;;  %v1569_v37 = vsel %vm1555_vm8, %v1566_v13, %v1568_v23  ;;  %v3190_v32 = vshrl.u32 %v3189_v41, 23  ;;  %v8337_v60 = vmin.u32 %v3460_v1, %v11149_v44 }
 0x281   : > { %v11164_v25 = vmul.u32.u64.low %v11137_v26, %v1569_v37  ;;  %v11165_v39 = vmul.u32.u64.high %v11137_v26, %v1569_v37, %v11164_v25  ;;  %v3193_v34 = vand.u32 8388607, %v16192_v14  ;;  %v1786_v45 = vadd.s32 %v10989_v15, %v10994_v54 }
 0x282   : > { %v1561_v21 = vsel %vm1555_vm8, %v1558_v24, %v1560_v35  ;;  %v8328_v27 = vadd.s32 4294967169, %v3190_v32  ;;  %v637_v52 = vmul.f32 30.0, %v605_v51  ;;  %v16494_v3 = vand.u32 2147483647, %v11062_v43 }
 0x283   : > { %v16495_v41 = vcvt.s32.f32 %v11060_v16  ;;  %v2956_v7 = vcvt.s32.f32 %v11116_v12  ;;  %v3462_v19 = vclz %v8337_v60  ;;  %v1580_v1 = vadd.s32 1, %v11157_v31 }
 0x284   : > { %v2954_v23 = vand.u32 2147483647, %v11120_v42  ;;  %v1804_v37 = vshrl.u32 %v1786_v45, %v1802_v47  ;;  %v3196_v25 = vadd.s32 1, %v8328_v27  ;;  %v16496_v54 = vand.u32 2147483647, %v11058_v22 }
 0x285   : > { %v11176_v13 = vmul.f32 %v16495_v41, %v16494_v3  ;;  %v11183_v29 = vor.u32 4788187, %v1808_v57  ;;  %v1577_v51 = vmul.u32 %v11137_v26, %v1561_v21  ;;  %vm1579_vm13 = vc.u32 %v11165_v39, %v11156_v33 }
 0x286   : > { %v621_v15 = vadd.f32 1.0, %v16496_v54  ;;  %v3194_v16 = vor.u32 8388608, %v3193_v34  ;;  %v1803_v43 = vshll.u32 %v11083_v30, %v11112_v4  ;;  %v1581_v12 = vsel %vm1579_vm13, %v1580_v1, %v11157_v31 }
 0x287   : > { %vm3197_vm5 = vcmp.gt.s32.totalorder %v3196_v25, 0  ;;  %v11192_v42 = vmul.f32 %v637_v52, %v11043_v0  ;;  %v16497_v24 = vxor.u32 2147483648, %v10977_v55  ;;  %v8338_v26 = vadd.s32 4294967294, %v3462_v19 }
 0x288   : > { %v1582_v47 = vadd.s32 %v1581_v12, %v1577_v51  ;;  %v3198_v57 = vsel %vm3197_vm5, %v3196_v25, 0  ;;  %v11202_v60 = vmul.f32 %v2956_v7, %v2954_v23  ;;  %v11204_v30 = vor.u32 %v1804_v37, %v1803_v43  ;;  %v11219_v25 = vpop.f32.mrb[13].mxu1 }
 0x289   : > { %v11199_v35 = vsel %vm16195_vm11, %v16497_v24, %v10977_v55  ;;  %v3200_v4 = vand.u32 31, %v3198_v57  ;;  %v11207_v34 = vshll.u32 %v3194_v16, 8  ;;  %v653_v45 = vmul.f32 30.0, %v621_v15 }
 0x28a   : > { %16498 = vst [vmem:[#allocation53_spill] sm:$0xff] %v11199_v35  ;;  %v1583_v31 = vadd.s32 536870912, %v1582_v47  ;;  %v1837_v52 = vand.u32 2139095040, %v11192_v42  ;;  %vm8339_vm6 = vcmp.lt.s32.totalorder %v8338_v26, 0  ;;  %v3199_v19 = vshrl.u32 %v3198_v57, 5 }
 0x28b   : > { %v3201_v21 = vsub.s32 32, %v3200_v4  ;;  %v3203_v55 = vshll.u32 %v16429_v2, %v3200_v4  ;;  %v3206_v27 = vshll.u32 %v16424_v38, %v3200_v4  ;;  %v3209_v41 = vshll.u32 %v16425_v8, %v3200_v4 }
 0x28c   : > { %v11212_v3 = vshrl.u32 %v1583_v31, 30  ;;  %v3212_v7 = vshll.u32 %v16426_v9, %v3200_v4  ;;  %v16196_v51 = vand.u32 2147483647, %v11192_v42  ;;  %v11225_v16 = vmul.f32 %v653_v45, %v11058_v22 }
 0x28d   : > { %v3204_v1 = vshrl.u32 %v16424_v38, %v3201_v21  ;;  %v3207_v23 = vshrl.u32 %v16425_v8, %v3201_v21  ;;  %v3210_v37 = vshrl.u32 %v16426_v9, %v3201_v21  ;;  %v3213_v15 = vshrl.u32 %v16439_v40, %v3201_v21 }
 0x28e   : > { %16499 = vst [vmem:[#allocation54_spill] sm:$0xff] %v11212_v3  ;;  %v1585_v54 = vshll.u32 %v11212_v3, 30  ;;  %16500 = vst [vmem:[#allocation55_spill] sm:$0xff] %v11225_v16  ;;  %v11227_v43 = vsel %vm8339_vm6, 0, %v8338_v26  ;;  %v3215_v57 = vshll.u32 %v16439_v40, %v3200_v4  ;;  %vm1212_vm8 = vcmp.lt.s32.totalorder %v10716_v11, 0 }
 0x28f   : > { %v3205_v12 = vor.u32 %v3204_v1, %v3203_v55  ;;  %v3208_v24 = vor.u32 %v3207_v23, %v3206_v27  ;;  %v3202_v14 = vshrl.u32 %v16429_v2, %v3201_v21  ;;  %v3211_v0 = vor.u32 %v3210_v37, %v3209_v41 }
 0x290   : > { %v11231_v31 = vsub.s32 %v1582_v47, %v1585_v54  ;;  %v3214_v32 = vor.u32 %v3213_v15, %v3212_v7  ;;  %v3216_v20 = vshrl.u32 %v16440_v62, %v3201_v21  ;;  %vm3218_vm13 = vcmp.lt.s32.totalorder %v3199_v19, 1 }
 0x291   : > { %vm3220_vm5 = vcmp.lt.s32.totalorder %v3199_v19, 3  ;;  %v1838_v22 = vshrl.u32 %v1837_v52, 23  ;;  %v3470_v26 = vsub.s32 4294967266, %v11227_v43  ;;  %vm3219_vm6 = vcmp.lt.s32.totalorder %v3199_v19, 2 }
 0x292   : > { %v1588_v45 = vsub.s32 0, %v11231_v31  ;;  %vm3221_vm11 = vcmp.lt.s32.totalorder %v3199_v19, 4  ;;  %v3217_v4 = vor.u32 %v3216_v20, %v3215_v57  ;;  %v3226_v47 = vsel %vm3218_vm13, %v3205_v12, %v3208_v24 }
 0x293   : > { %v3223_v55 = vsel %vm3221_vm11, %v3211_v0, 2102212464  ;;  %v3227_v27 = vsel %vm3221_vm11, %v3214_v32, 920167782  ;;  %v3222_v41 = vsel %vm3218_vm13, %v3202_v14, %v3205_v12  ;;  %v1841_v52 = vand.u32 8388607, %v16196_v51 }
 0x294   : > { %v8265_v1 = vmin.u32 %v1588_v45, %v11231_v31  ;;  %v3228_v21 = vsel %vm3220_vm5, %v3211_v0, %v3227_v27  ;;  %v3224_v7 = vsel %vm3220_vm5, %v3208_v24, %v3223_v55  ;;  %v3230_v37 = vsel %vm3218_vm13, %v3208_v24, %v3211_v0 }
 0x295   : > { %v3229_v23 = vsel %vm3219_vm6, %v3226_v47, %v3228_v21  ;;  %v3231_v20 = vsel %vm3221_vm11, %v3217_v4, 1326507024  ;;  %v3466_v54 = vsub.s32 32, %v11227_v43  ;;  %v3471_v15 = vadd.s32 127, %v3470_v26  ;;  %v16502_v21 = vld [vmem:[#allocation40_spill] sm:$0xff] }
 0x296   : > { %v1590_v57 = vclz %v8265_v1  ;;  %v3232_v45 = vsel %vm3220_vm5, %v3214_v32, %v3231_v20  ;;  %v11250_v12 = vmul.u32.u64.low %v11207_v34, %v3229_v23  ;;  %v11251_v27 = vmul.u32.u64.high %v11207_v34, %v3229_v23, %v11250_v12 }
 0x297   : > { %v3233_v14 = vsel %vm3219_vm6, %v3230_v37, %v3232_v45  ;;  %v8276_v51 = vadd.s32 4294967169, %v1838_v22  ;;  %v3225_v47 = vsel %vm3219_vm6, %v3222_v41, %v3224_v7  ;;  %v16501_v26 = vxor.u32 2147483648, %v11176_v13 }
 0x298   : > { %v8266_v55 = vadd.s32 4294967294, %v1590_v57  ;;  %v11256_v0 = vmul.u32.u64.low %v11207_v34, %v3233_v14  ;;  %v11257_v24 = vmul.u32.u64.high %v11207_v34, %v3233_v14, %v11256_v0  ;;  %v3450_v1 = vadd.s32 %v11096_v18, %v11102_v58 }
 0x299   : > { %v11264_v32 = vsel %vm1212_vm8, %v16501_v26, %v11176_v13  ;;  %v1844_v22 = vadd.s32 1, %v8276_v51  ;;  %v1812_v19 = vcvt.s32.f32 %v11204_v30  ;;  %v3501_v41 = vand.u32 2139095040, %v11225_v16 }
 0x29a   : > { %vm8267_vm11 = vcmp.lt.s32.totalorder %v8266_v55, 0  ;;  %v11273_v7 = vadd.f32 %v10796_v61, %v16502_v21  ;;  %v3241_v13 = vmul.u32 %v11207_v34, %v3225_v47  ;;  %v3244_v37 = vadd.s32 1, %v11251_v27 }
 0x29b   : > { %v11275_v23 = vsel %vm8267_vm11, 0, %v8266_v55  ;;  %vm1845_vm13 = vcmp.gt.s32.totalorder %v1844_v22, 0  ;;  %v16503_v20 = vand.u32 2147483647, %v11183_v29  ;;  %v3468_v58 = vshrl.u32 %v3450_v1, %v3466_v54  ;;  %v11294_v54 = vpop.f32.mrb[14].mxu0 }
 0x29c   : > { %v3472_v30 = vshll.u32 %v3471_v15, 23  ;;  %v1842_v51 = vor.u32 8388608, %v1841_v52  ;;  %v1594_v57 = vsub.s32 32, %v11275_v23  ;;  %v1598_v45 = vsub.s32 4294967266, %v11275_v23 }
 0x29d   : > { %v11281_v18 = vmul.f32 %v1812_v19, %v16503_v20  ;;  %vm3243_vm5 = vc.u32 %v11257_v24, %v11250_v12  ;;  %v1846_v14 = vsel %vm1845_vm13, %v1844_v22, 0  ;;  %v3467_v34 = vshll.u32 %v11149_v44, %v11227_v43 }
 0x29e   : > { %v3245_v55 = vsel %vm3243_vm5, %v3244_v37, %v11251_v27  ;;  %v3502_v47 = vshrl.u32 %v3501_v41, 23  ;;  %v11292_v29 = vadd.f32 %v10796_v61, %v10880_v50  ;;  %v1578_v52 = vadd.s32 %v11156_v33, %v11165_v39 }
 0x29f   : > { %v3246_v15 = vadd.s32 %v3245_v55, %v3241_v13  ;;  %v1848_v0 = vand.u32 31, %v1846_v14  ;;  %v11299_v1 = vor.u32 %v3468_v58, %v3467_v34  ;;  %v11301_v22 = vor.u32 4788187, %v3472_v30 }
 0x2a0   : > { %v11303_v44 = vshll.u32 %v1842_v51, 8  ;;  %v1596_v27 = vshrl.u32 %v1578_v52, %v1594_v57  ;;  %v1599_v61 = vadd.s32 127, %v1598_v45  ;;  %v1847_v41 = vshrl.u32 %v1846_v14, 5 }
 0x2a1   : > { %v3247_v50 = vadd.s32 536870912, %v3246_v15  ;;  %v1849_v19 = vsub.s32 32, %v1848_v0  ;;  %v1851_v21 = vshll.u32 %v16429_v2, %v1848_v0  ;;  %v1854_v33 = vshll.u32 %v16424_v38, %v1848_v0 }
 0x2a2   : > { %v8340_v39 = vadd.s32 4294967169, %v3502_v47  ;;  %v1857_v58 = vshll.u32 %v16425_v8, %v1848_v0  ;;  %v1860_v51 = vshll.u32 %v16426_v9, %v1848_v0  ;;  %v1863_v45 = vshll.u32 %v16439_v40, %v1848_v0 }
 0x2a3   : > { %v11308_v13 = vshrl.u32 %v3247_v50, 30  ;;  %v1852_v37 = vshrl.u32 %v16424_v38, %v1849_v19  ;;  %v1855_v20 = vshrl.u32 %v16425_v8, %v1849_v19  ;;  %v1858_v30 = vshrl.u32 %v16426_v9, %v1849_v19 }
 0x2a4   : > { %v1861_v57 = vshrl.u32 %v16439_v40, %v1849_v19  ;;  %v1864_v47 = vshrl.u32 %v16440_v62, %v1849_v19  ;;  %v1600_v52 = vshll.u32 %v1599_v61, 23  ;;  %vm1866_vm6 = vcmp.lt.s32.totalorder %v1847_v41, 1 }
 0x2a5   : > { %16504 = vst [vmem:[#allocation40_spill] sm:$0xff] %v11308_v13  ;;  %v3249_v14 = vshll.u32 %v11308_v13, 30  ;;  %v1853_v34 = vor.u32 %v1852_v37, %v1851_v21  ;;  %v1856_v55 = vor.u32 %v1855_v20, %v1854_v33  ;;  %v1859_v50 = vor.u32 %v1858_v30, %v1857_v58 }
 0x2a6   : > { %v1862_v4 = vor.u32 %v1861_v57, %v1860_v51  ;;  %v1850_v43 = vshrl.u32 %v16429_v2, %v1849_v19  ;;  %v1865_v35 = vor.u32 %v1864_v47, %v1863_v45  ;;  %vm1869_vm11 = vcmp.lt.s32.totalorder %v1847_v41, 4 }
 0x2a7   : > { %v11319_v26 = vsub.s32 %v3246_v15, %v3249_v14  ;;  %vm1868_vm13 = vcmp.lt.s32.totalorder %v1847_v41, 3  ;;  %v1871_v10 = vsel %vm1869_vm11, %v1859_v50, 2102212464  ;;  %v1874_v48 = vsel %vm1866_vm6, %v1853_v34, %v1856_v55 }
 0x2a8   : > { %v1875_v0 = vsel %vm1869_vm11, %v1862_v4, 920167782  ;;  %vm1867_vm5 = vcmp.lt.s32.totalorder %v1847_v41, 2  ;;  %v1878_v33 = vsel %vm1866_vm6, %v1856_v55, %v1859_v50  ;;  %v1870_v37 = vsel %vm1866_vm6, %v1850_v43, %v1853_v34 }
 0x2a9   : > { %v3252_v13 = vsub.s32 0, %v11319_v26  ;;  %v1876_v21 = vsel %vm1868_vm13, %v1859_v50, %v1875_v0  ;;  %v1872_v61 = vsel %vm1868_vm13, %v1856_v55, %v1871_v10  ;;  %v1879_v58 = vsel %vm1869_vm11, %v1865_v35, 1326507024 }
 0x2aa   : > { %v1877_v20 = vsel %vm1867_vm5, %v1874_v48, %v1876_v21  ;;  %v1880_v30 = vsel %vm1868_vm13, %v1862_v4, %v1879_v58  ;;  %v3474_v57 = vand.u32 2147483647, %v11301_v22  ;;  %v1595_v45 = vshll.u32 %v11231_v31, %v11275_v23 }
 0x2ab   : > { %v8329_v15 = vmin.u32 %v3252_v13, %v11319_v26  ;;  %v11326_v19 = vmul.u32.u64.low %v11303_v44, %v1877_v20  ;;  %v11327_v51 = vmul.u32.u64.high %v11303_v44, %v1877_v20, %v11326_v19  ;;  %v1881_v14 = vsel %vm1867_vm5, %v1878_v33, %v1880_v30 }
 0x2ac   : > { %v3508_v43 = vadd.s32 1, %v8340_v39  ;;  %v11335_v48 = vmul.u32.u64.low %v11303_v44, %v1881_v14  ;;  %v11336_v35 = vmul.u32.u64.high %v11303_v44, %v1881_v14, %v11335_v48  ;;  %v16505_v4 = vand.u32 2147483647, %v11225_v16 }
 0x2ad   : > { %v3254_v10 = vclz %v8329_v15  ;;  %v3476_v34 = vcvt.s32.f32 %v11299_v1  ;;  %v11341_v55 = vor.u32 %v1596_v27, %v1595_v45  ;;  %v1873_v22 = vsel %vm1867_vm5, %v1870_v37, %v1872_v61 }
 0x2ae   : > { %v3505_v13 = vand.u32 8388607, %v16505_v4  ;;  %vm3509_vm6 = vcmp.gt.s32.totalorder %v3508_v43, 0  ;;  %v11344_v47 = vor.u32 4788187, %v1600_v52  ;;  %v1892_v23 = vadd.s32 1, %v11327_v51 }
 0x2af   : > { %v8330_v31 = vadd.s32 4294967294, %v3254_v10  ;;  %v3510_v39 = vsel %vm3509_vm6, %v3508_v43, 0  ;;  %v11347_v50 = vmul.f32 %v3476_v34, %v3474_v57  ;;  %v16506_v21 = vand.u32 2147483647, %v11273_v7 }
 0x2b0   : > { %v3512_v0 = vand.u32 31, %v3510_v39  ;;  %v587_v20 = vand.u32 2147483647, %v11292_v29  ;;  %v1889_v1 = vmul.u32 %v11303_v44, %v1873_v22  ;;  %vm1891_vm13 = vc.u32 %v11336_v35, %v11326_v19 }
 0x2b1   : > { %v603_v33 = vadd.f32 1.0, %v16506_v21  ;;  %vm8331_vm11 = vcmp.lt.s32.totalorder %v8330_v31, 0  ;;  %v3506_v27 = vor.u32 8388608, %v3505_v13  ;;  %v3242_v41 = vadd.s32 %v11250_v12, %v11257_v24 }
 0x2b2   : > { %v11357_v52 = vsel %vm8331_vm11, 0, %v8330_v31  ;;  %v1893_v37 = vsel %vm1891_vm13, %v1892_v23, %v11327_v51  ;;  %v3513_v61 = vsub.s32 32, %v3512_v0  ;;  %v1602_v58 = vand.u32 2147483647, %v11344_v47 }
 0x2b3   : > { %v1604_v15 = vcvt.s32.f32 %v11341_v55  ;;  %v3262_v30 = vsub.s32 4294967266, %v11357_v52  ;;  %v1894_v57 = vadd.s32 %v1893_v37, %v1889_v1  ;;  %v3515_v44 = vshll.u32 %v16429_v2, %v3512_v0 }
 0x2b4   : > { %v3516_v45 = vshrl.u32 %v16424_v38, %v3513_v61  ;;  %v3518_v14 = vshll.u32 %v16424_v38, %v3512_v0  ;;  %v3519_v12 = vshrl.u32 %v16425_v8, %v3513_v61  ;;  %v3511_v43 = vshrl.u32 %v3510_v39, 5 }
 0x2b5   : > { %v1895_v24 = vadd.s32 536870912, %v1894_v57  ;;  %v3521_v51 = vshll.u32 %v16425_v8, %v3512_v0  ;;  %v11368_v10 = vshll.u32 %v3506_v27, 8  ;;  %v3522_v48 = vshrl.u32 %v16426_v9, %v3513_v61 }
 0x2b6   : > { %v3524_v4 = vshll.u32 %v16426_v9, %v3512_v0  ;;  %v635_v13 = vmul.f32 30.0, %v603_v33  ;;  %v619_v34 = vadd.f32 1.0, %v587_v20  ;;  %v3263_v55 = vadd.s32 127, %v3262_v30  ;;  %v11382_v30 = vpop.f32.mrb[14].mxu1 }
 0x2b7   : > { %v11372_v22 = vshrl.u32 %v1895_v24, 30  ;;  %v3514_v47 = vshrl.u32 %v16429_v2, %v3513_v61  ;;  %v3525_v31 = vshrl.u32 %v16439_v40, %v3513_v61  ;;  %v3517_v23 = vor.u32 %v3516_v45, %v3515_v44 }
 0x2b8   : > { %v3520_v21 = vor.u32 %v3519_v12, %v3518_v14  ;;  %v3527_v39 = vshll.u32 %v16439_v40, %v3512_v0  ;;  %v3528_v1 = vshrl.u32 %v16440_v62, %v3513_v61  ;;  %v3523_v37 = vor.u32 %v3522_v48, %v3521_v51  ;;  %v16508_v61 = vld [vmem:[#allocation39_spill] sm:$0xff] }
 0x2b9   : > { %16507 = vst [vmem:[#allocation56_spill] sm:$0xff] %v11372_v22  ;;  %v1897_v27 = vshll.u32 %v11372_v22, 30  ;;  %v3526_v3 = vor.u32 %v3525_v31, %v3524_v4  ;;  %vm3530_vm5 = vcmp.lt.s32.totalorder %v3511_v43, 1  ;;  %vm3532_vm6 = vcmp.lt.s32.totalorder %v3511_v43, 3 }
 0x2ba   : > { %v3529_v33 = vor.u32 %v3528_v1, %v3527_v39  ;;  %vm3533_vm11 = vcmp.lt.s32.totalorder %v3511_v43, 4  ;;  %v11380_v20 = vmul.f32 %v635_v13, %v11273_v7  ;;  %v3258_v44 = vsub.s32 32, %v11357_v52 }
 0x2bb   : > { %v11385_v45 = vsub.s32 %v1894_v57, %v1897_v27  ;;  %vm3531_vm13 = vcmp.lt.s32.totalorder %v3511_v43, 2  ;;  %v3535_v0 = vsel %vm3533_vm11, %v3523_v37, 2102212464  ;;  %vm16228_vm2 = vcmp.lt.s32.totalorder %v16508_v61, 0 }
 0x2bc   : > { %v3264_v14 = vshll.u32 %v3263_v55, 23  ;;  %v3534_v12 = vsel %vm3530_vm5, %v3514_v47, %v3517_v23  ;;  %v3538_v24 = vsel %vm3530_vm5, %v3517_v23, %v3520_v21  ;;  %v3539_v51 = vsel %vm3533_vm11, %v3526_v3, 920167782 }
 0x2bd   : > { %v1900_v7 = vsub.s32 0, %v11385_v45  ;;  %v3536_v48 = vsel %vm3532_vm6, %v3520_v21, %v3535_v0  ;;  %v3540_v4 = vsel %vm3532_vm6, %v3523_v37, %v3539_v51  ;;  %v3542_v57 = vsel %vm3530_vm5, %v3520_v21, %v3523_v37 }
 0x2be   : > { %vm1732_vm4 = vcmp.lt.s32.totalorder %v10810_v36, 0  ;;  %v1605_v13 = vmul.f32 %v1604_v15, %v1602_v58  ;;  %v3541_v31 = vsel %vm3531_vm13, %v3538_v24, %v3540_v4  ;;  %v3543_v55 = vsel %vm3533_vm11, %v3529_v33, 1326507024 }
 0x2bf   : > { %v651_v47 = vmul.f32 30.0, %v619_v34  ;;  %vm16219_vm14 = vcmp.lt.s32.totalorder %v10954_v6, 0  ;;  %v3260_v23 = vshrl.u32 %v3242_v41, %v3258_v44  ;;  %v8277_v39 = vmin.u32 %v1900_v7, %v11385_v45 }
 0x2c0   : > { %v3544_v1 = vsel %vm3532_vm6, %v3526_v3, %v3543_v55  ;;  %v1629_v27 = vand.u32 2139095040, %v11380_v20  ;;  %vm1524_vm0 = vcmp.lt.s32.totalorder %v11054_v49, 0  ;;  %v3537_v21 = vsel %vm3531_vm13, %v3534_v12, %v3536_v48 }
 0x2c1   : > { %v3545_v58 = vsel %vm3531_vm13, %v3542_v57, %v3544_v1  ;;  %v11407_v15 = vmul.u32.u64.low %v11368_v10, %v3541_v31  ;;  %v11408_v37 = vmul.u32.u64.high %v11368_v10, %v3541_v31, %v11407_v15  ;;  %v3265_v34 = vor.u32 4788187, %v3264_v14  ;;  %v11424_v14 = vld [vmem:[%s16104_s2] ss:$0 sm:$0xff] }
 0x2c2   : > { %v1902_v33 = vclz %v8277_v39  ;;  %v11412_v41 = vmul.u32.u64.low %v11368_v10, %v3545_v58  ;;  %v11413_v44 = vmul.u32.u64.high %v11368_v10, %v3545_v58, %v11412_v41  ;;  %v1814_v3 = vxor.u32 2147483648, %v11281_v18 }
 0x2c3   : > { %v3259_v0 = vshll.u32 %v11319_v26, %v11357_v52  ;;  %v16209_v12 = vand.u32 2147483647, %v11380_v20  ;;  %v1630_v43 = vshrl.u32 %v1629_v27, 23  ;;  %v3478_v24 = vxor.u32 2147483648, %v11347_v50 }
 0x2c4   : > { %v8278_v51 = vadd.s32 4294967294, %v1902_v33  ;;  %v3553_v7 = vmul.u32 %v11368_v10, %v3537_v21  ;;  %v11428_v48 = vadd.f32 %v11424_v14, %v10968_v28  ;;  %v3556_v26 = vadd.s32 1, %v11408_v37 }
 0x2c5   : > { %v3261_v4 = vor.u32 %v3260_v23, %v3259_v0  ;;  %v8268_v52 = vadd.s32 4294967169, %v1630_v43  ;;  %v11432_v57 = vmul.f32 %v651_v47, %v11292_v29  ;;  %v16509_v31 = vxor.u32 2147483648, %v11202_v60  ;;  %v11472_v43 = vpop.f32.mrb[15].mxu0 }
 0x2c6   : > { %v1606_v55 = vxor.u32 2147483648, %v1605_v13  ;;  %v3266_v39 = vand.u32 2147483647, %v3265_v34  ;;  %vm3555_vm5 = vc.u32 %v11413_v44, %v11407_v15  ;;  %vm8279_vm6 = vcmp.lt.s32.totalorder %v8278_v51, 0 }
 0x2c7   : > { %v11439_v10 = vsel %vm16228_vm2, %v16509_v31, %v11202_v60  ;;  %v3557_v28 = vsel %vm3555_vm5, %v3556_v26, %v11408_v37  ;;  %v1633_v23 = vand.u32 8388607, %v16209_v12  ;;  %v1636_v29 = vadd.s32 1, %v8268_v52 }
 0x2c8   : > { %16510 = vst [vmem:[#allocation57_spill] sm:$0xff] %v11439_v10  ;;  %v11449_v47 = vsel %vm1732_vm4, %v1814_v3, %v11281_v18  ;;  %v3558_v1 = vadd.s32 %v3557_v28, %v3553_v7  ;;  %v576_v60 = vand.u32 2147483647, %v11428_v48  ;;  %v11454_v27 = vadd.f32 %v11424_v14, %v11077_v63 }
 0x2c9   : > { %16511 = vst [vmem:[#allocation58_spill] sm:$0xff] %v11449_v47  ;;  %v11459_v21 = vsel %vm16219_vm14, %v3478_v24, %v11347_v50  ;;  %v3268_v58 = vcvt.s32.f32 %v3261_v4  ;;  %vm1637_vm11 = vcmp.gt.s32.totalorder %v1636_v29, 0  ;;  %v3293_v37 = vand.u32 2139095040, %v11432_v57 }
 0x2ca   : > { %16512 = vst [vmem:[#allocation59_spill] sm:$0xff] %v11459_v21  ;;  %v11464_v18 = vsel %vm1524_vm0, %v1606_v55, %v1605_v13  ;;  %v11466_v34 = vsel %vm8279_vm6, 0, %v8278_v51  ;;  %v3559_v33 = vadd.s32 536870912, %v3558_v1  ;;  %v1638_v41 = vsel %vm1637_vm11, %v1636_v29, 0 }
 0x2cb   : > { %16513 = vst [vmem:[#allocation60_spill] sm:$0xff] %v11464_v18  ;;  %v11468_v3 = vmul.f32 %v3268_v58, %v3266_v39  ;;  %v1890_v63 = vadd.s32 %v11326_v19, %v11336_v35  ;;  %v1634_v0 = vor.u32 8388608, %v1633_v23  ;;  %v1640_v50 = vand.u32 31, %v1638_v41 }
 0x2cc   : > { %v11474_v24 = vshrl.u32 %v3559_v33, 30  ;;  %v608_v4 = vadd.f32 1.0, %v576_v60  ;;  %v1906_v51 = vsub.s32 32, %v11466_v34  ;;  %v1910_v26 = vsub.s32 4294967266, %v11466_v34 }
 0x2cd   : > { %v1641_v52 = vsub.s32 32, %v1640_v50  ;;  %v3294_v31 = vshrl.u32 %v3293_v37, 23  ;;  %v1639_v19 = vshrl.u32 %v1638_v41, 5  ;;  %v1643_v35 = vshll.u32 %v16429_v2, %v1640_v50 }
 0x2ce   : > { %16514 = vst [vmem:[#allocation61_spill] sm:$0xff] %v11474_v24  ;;  %v3561_v55 = vshll.u32 %v11474_v24, 30  ;;  %v1646_v39 = vshll.u32 %v16424_v38, %v1640_v50  ;;  %v1649_v29 = vshll.u32 %v16425_v8, %v1640_v50  ;;  %v1652_v33 = vshll.u32 %v16426_v9, %v1640_v50 }
 0x2cf   : > { %v1644_v28 = vshrl.u32 %v16424_v38, %v1641_v52  ;;  %v1647_v23 = vshrl.u32 %v16425_v8, %v1641_v52  ;;  %v1650_v60 = vshrl.u32 %v16426_v9, %v1641_v52  ;;  %v1653_v37 = vshrl.u32 %v16439_v40, %v1641_v52 }
 0x2d0   : > { %v11487_v58 = vsub.s32 %v3558_v1, %v3561_v55  ;;  %v1655_v41 = vshll.u32 %v16439_v40, %v1640_v50  ;;  %v1656_v24 = vshrl.u32 %v16440_v62, %v1641_v52  ;;  %v1674_v10 = vshll.u32 %v1634_v0, 8 }
 0x2d1   : > { %v1645_v12 = vor.u32 %v1644_v28, %v1643_v35  ;;  %v1648_v13 = vor.u32 %v1647_v23, %v1646_v39  ;;  %v1651_v7 = vor.u32 %v1650_v60, %v1649_v29  ;;  %v1654_v6 = vor.u32 %v1653_v37, %v1652_v33 }
 0x2d2   : > { %v3564_v21 = vsub.s32 0, %v11487_v58  ;;  %v16515_v61 = vand.u32 2147483647, %v11432_v57  ;;  %v1908_v1 = vshrl.u32 %v1890_v63, %v1906_v51  ;;  %v1911_v55 = vadd.s32 127, %v1910_v26 }
 0x2d3   : > { %v1657_v47 = vor.u32 %v1656_v24, %v1655_v41  ;;  %v8332_v36 = vadd.s32 4294967169, %v3294_v31  ;;  %v1642_v50 = vshrl.u32 %v16429_v2, %v1641_v52  ;;  %vm1658_vm13 = vcmp.lt.s32.totalorder %v1639_v19, 1 }
 0x2d4   : > { %v11496_v22 = vand.u32 8388607, %v16515_v61  ;;  %v8341_v18 = vmin.u32 %v3564_v21, %v11487_v58  ;;  %vm1661_vm5 = vcmp.lt.s32.totalorder %v1639_v19, 4  ;;  %vm1660_vm6 = vcmp.lt.s32.totalorder %v1639_v19, 3 }
 0x2d5   : > { %v1663_v35 = vsel %vm1661_vm5, %v1651_v7, 2102212464  ;;  %v1666_v39 = vsel %vm1658_vm13, %v1645_v12, %v1648_v13  ;;  %v1667_v28 = vsel %vm1661_vm5, %v1654_v6, 920167782  ;;  %vm1659_vm11 = vcmp.lt.s32.totalorder %v1639_v19, 2 }
 0x2d6   : > { %v3566_v23 = vclz %v8341_v18  ;;  %v1668_v0 = vsel %vm1660_vm6, %v1651_v7, %v1667_v28  ;;  %v1670_v29 = vsel %vm1658_vm13, %v1648_v13, %v1651_v7  ;;  %v1662_v61 = vsel %vm1658_vm13, %v1642_v50, %v1645_v12 }
 0x2d7   : > { %v1669_v63 = vsel %vm1659_vm11, %v1666_v39, %v1668_v0  ;;  %v1671_v51 = vsel %vm1661_vm5, %v1657_v47, 1326507024  ;;  %v3300_v24 = vadd.s32 1, %v8332_v36  ;;  %v1664_v26 = vsel %vm1660_vm6, %v1648_v13, %v1663_v35 }
 0x2d8   : > { %v1672_v31 = vsel %vm1660_vm6, %v1654_v6, %v1671_v51  ;;  %v11501_v21 = vmul.u32.u64.low %v1674_v10, %v1669_v63  ;;  %v11502_v60 = vmul.u32.u64.high %v1674_v10, %v1669_v63, %v11501_v21  ;;  %v1907_v52 = vshll.u32 %v11385_v45, %v11466_v34 }
 0x2d9   : > { %v8342_v33 = vadd.s32 4294967294, %v3566_v23  ;;  %v1673_v18 = vsel %vm1659_vm11, %v1670_v29, %v1672_v31  ;;  %vm3301_vm14 = vcmp.gt.s32.totalorder %v3300_v24, 0  ;;  %v640_v41 = vmul.f32 30.0, %v608_v4 }
 0x2da   : > { %v11508_v37 = vmul.u32.u64.low %v1674_v10, %v1673_v18  ;;  %v11509_v7 = vmul.u32.u64.high %v1674_v10, %v1673_v18, %v11508_v37  ;;  %v3302_v12 = vsel %vm3301_vm14, %v3300_v24, 0  ;;  %v11513_v36 = vadd.s32 %v11407_v15, %v11413_v44 }
 0x2db   : > { %v1665_v6 = vsel %vm1659_vm11, %v1662_v61, %v1664_v26  ;;  %v3304_v47 = vand.u32 31, %v3302_v12  ;;  %v11518_v13 = vadd.f32 %v11424_v14, %v11129_v46  ;;  %v11520_v45 = vor.u32 %v1908_v1, %v1907_v52  ;;  %v11544_v52 = vpop.f32.mrb[15].mxu1 }
 0x2dc   : > { %v1912_v34 = vshll.u32 %v1911_v55, 23  ;;  %v1684_v50 = vadd.s32 1, %v11502_v60  ;;  %v3298_v35 = vor.u32 8388608, %v11496_v22  ;;  %vm8343_vm14 = vcmp.lt.s32.totalorder %v8342_v33, 0 }
 0x2dd   : > { %v3305_v4 = vsub.s32 32, %v3304_v47  ;;  %v3307_v39 = vshll.u32 %v16429_v2, %v3304_v47  ;;  %v3310_v15 = vshll.u32 %v16424_v38, %v3304_v47  ;;  %v1681_v44 = vmul.u32 %v1674_v10, %v1665_v6 }
 0x2de   : > { %vm1683_vm13 = vc.u32 %v11509_v7, %v11501_v21  ;;  %v3313_v46 = vshll.u32 %v16425_v8, %v3304_v47  ;;  %v11530_v19 = vmul.f32 %v640_v41, %v11428_v48  ;;  %v3303_v55 = vshrl.u32 %v3302_v12, 5 }
 0x2df   : > { %v1685_v1 = vsel %vm1683_vm13, %v1684_v50, %v11502_v60  ;;  %v3308_v22 = vshrl.u32 %v16424_v38, %v3305_v4  ;;  %v3311_v28 = vshrl.u32 %v16425_v8, %v3305_v4  ;;  %v11535_v23 = vor.u32 4788187, %v1912_v34 }
 0x2e0   : > { %v11537_v0 = vsel %vm8343_vm14, 0, %v8342_v33  ;;  %v1686_v10 = vadd.s32 %v1685_v1, %v1681_v44  ;;  %v3314_v29 = vshrl.u32 %v16426_v9, %v3305_v4  ;;  %v3316_v51 = vshll.u32 %v16426_v9, %v3304_v47 }
 0x2e1   : > { %v3309_v61 = vor.u32 %v3308_v22, %v3307_v39  ;;  %v3312_v63 = vor.u32 %v3311_v28, %v3310_v15  ;;  %v3317_v48 = vshrl.u32 %v16439_v40, %v3305_v4  ;;  %v1916_v24 = vcvt.s32.f32 %v11520_v45 }
 0x2e2   : > { %v1687_v26 = vadd.s32 536870912, %v1686_v10  ;;  %v3306_v31 = vshrl.u32 %v16429_v2, %v3305_v4  ;;  %v3315_v60 = vor.u32 %v3314_v29, %v3313_v46  ;;  %v3319_v33 = vshll.u32 %v16439_v40, %v3304_v47 }
 0x2e3   : > { %v3318_v18 = vor.u32 %v3317_v48, %v3316_v51  ;;  %v3320_v37 = vshrl.u32 %v16440_v62, %v3305_v4  ;;  %vm3322_vm5 = vcmp.lt.s32.totalorder %v3303_v55, 1  ;;  %v3574_v12 = vsub.s32 4294967266, %v11537_v0 }
 0x2e4   : > { %v11549_v41 = vshrl.u32 %v1687_v26, 30  ;;  %vm3324_vm6 = vcmp.lt.s32.totalorder %v3303_v55, 3  ;;  %v3338_v6 = vshll.u32 %v3298_v35, 8  ;;  %vm3323_vm11 = vcmp.lt.s32.totalorder %v3303_v55, 2 }
 0x2e5   : > { %v3321_v34 = vor.u32 %v3320_v37, %v3319_v33  ;;  %vm3325_vm14 = vcmp.lt.s32.totalorder %v3303_v55, 4  ;;  %v3330_v45 = vsel %vm3322_vm5, %v3309_v61, %v3312_v63  ;;  %v3326_v39 = vsel %vm3322_vm5, %v3306_v31, %v3309_v61 }
 0x2e6   : > { %16516 = vst [vmem:[#allocation62_spill] sm:$0xff] %v11549_v41  ;;  %v1689_v50 = vshll.u32 %v11549_v41, 30  ;;  %v3327_v15 = vsel %vm3325_vm14, %v3315_v60, 2102212464  ;;  %v3331_v44 = vsel %vm3325_vm14, %v3318_v18, 920167782  ;;  %v3334_v46 = vsel %vm3322_vm5, %v3312_v63, %v3315_v60 }
 0x2e7   : > { %v3328_v47 = vsel %vm3324_vm6, %v3312_v63, %v3327_v15  ;;  %v3332_v4 = vsel %vm3324_vm6, %v3315_v60, %v3331_v44  ;;  %v3335_v1 = vsel %vm3325_vm14, %v3321_v34, 1326507024  ;;  %v3570_v22 = vsub.s32 32, %v11537_v0 }
 0x2e8   : > { %v11555_v28 = vsub.s32 %v1686_v10, %v1689_v50  ;;  %v3333_v35 = vsel %vm3323_vm11, %v3330_v45, %v3332_v4  ;;  %v16220_v29 = vand.u32 2147483647, %v11530_v19  ;;  %v3575_v51 = vadd.s32 127, %v3574_v12 }
 0x2e9   : > { %v3336_v48 = vsel %vm3324_vm6, %v3318_v18, %v3335_v1  ;;  %v11560_v61 = vmul.u32.u64.low %v3338_v6, %v3333_v35  ;;  %v11561_v26 = vmul.u32.u64.high %v3338_v6, %v3333_v35, %v11560_v61  ;;  %v3329_v63 = vsel %vm3323_vm11, %v3326_v39, %v3328_v47 }
 0x2ea   : > { %v1692_v31 = vsub.s32 0, %v11555_v28  ;;  %v3337_v60 = vsel %vm3323_vm11, %v3334_v46, %v3336_v48  ;;  %v2149_v10 = vand.u32 2139095040, %v11530_v19  ;;  %v1914_v33 = vand.u32 2147483647, %v11535_v23 }
 0x2eb   : > { %v11569_v37 = vmul.u32.u64.low %v3338_v6, %v3337_v60  ;;  %v11570_v34 = vmul.u32.u64.high %v3338_v6, %v3337_v60, %v11569_v37  ;;  %v16517_v12 = vand.u32 2147483647, %v11454_v27  ;;  %v3572_v45 = vshrl.u32 %v11513_v36, %v3570_v22 }
 0x2ec   : > { %v8269_v50 = vmin.u32 %v1692_v31, %v11555_v28  ;;  %v2150_v15 = vshrl.u32 %v2149_v10, 23  ;;  %v574_v44 = vand.u32 2147483647, %v11518_v13  ;;  %v3576_v39 = vshll.u32 %v3575_v51, 23 }
 0x2ed   : > { %v624_v18 = vadd.f32 1.0, %v16517_v12  ;;  %v3345_v55 = vmul.u32 %v3338_v6, %v3329_v63  ;;  %v3348_v47 = vadd.s32 1, %v11561_v26  ;;  %v2153_v1 = vand.u32 8388607, %v16220_v29 }
 0x2ee   : > { %v1694_v46 = vclz %v8269_v50  ;;  %v8288_v23 = vadd.s32 4294967169, %v2150_v15  ;;  %v606_v35 = vadd.f32 1.0, %v574_v44  ;;  %v3571_v48 = vshll.u32 %v11487_v58, %v11537_v0 }
 0x2ef   : > { %v656_v4 = vmul.f32 30.0, %v624_v18  ;;  %vm3347_vm13 = vc.u32 %v11570_v34, %v11560_v61  ;;  %v11589_v6 = vadd.f32 %v11424_v14, %v11219_v25  ;;  %v11591_v22 = vmul.f32 %v1916_v24, %v1914_v33 }
 0x2f0   : > { %v8270_v51 = vadd.s32 4294967294, %v1694_v46  ;;  %v3349_v31 = vsel %vm3347_vm13, %v3348_v47, %v11561_v26  ;;  %v2156_v63 = vadd.s32 1, %v8288_v23  ;;  %v11594_v60 = vor.u32 %v3572_v45, %v3571_v48 }
 0x2f1   : > { %v11585_v36 = vmul.f32 %v656_v4, %v11454_v27  ;;  %v11596_v10 = vor.u32 4788187, %v3576_v39  ;;  %v3350_v58 = vadd.s32 %v3349_v31, %v3345_v55  ;;  %v2154_v27 = vor.u32 8388608, %v2153_v1 }
 0x2f2   : > { %vm8271_vm5 = vcmp.lt.s32.totalorder %v8270_v51, 0  ;;  %vm2157_vm6 = vcmp.gt.s32.totalorder %v2156_v63, 0  ;;  %v638_v37 = vmul.f32 30.0, %v606_v35  ;;  %v1682_v33 = vadd.s32 %v11501_v21, %v11509_v7 }
 0x2f3   : > { %v3813_v0 = vand.u32 2139095040, %v11585_v36  ;;  %v1697_v12 = vsel %vm8271_vm5, 0, %v8270_v51  ;;  %v3351_v25 = vadd.s32 536870912, %v3350_v58  ;;  %v2158_v18 = vsel %vm2157_vm6, %v2156_v63, 0 }
 0x2f4   : > { %v1698_v26 = vsub.s32 32, %v1697_v12  ;;  %v1702_v50 = vsub.s32 4294967266, %v1697_v12  ;;  %v2159_v45 = vshrl.u32 %v2158_v18, 5  ;;  %v3578_v15 = vand.u32 2147483647, %v11596_v10 }
 0x2f5   : > { %v3814_v24 = vshrl.u32 %v3813_v0, 23  ;;  %v3580_v44 = vcvt.s32.f32 %v11594_v60  ;;  %v11603_v39 = vshrl.u32 %v3351_v25, 30  ;;  %v2160_v55 = vand.u32 31, %v2158_v18 }
 0x2f6   : > { %v11605_v47 = vshll.u32 %v2154_v27, 8  ;;  %v11609_v46 = vmul.f32 %v638_v37, %v11518_v13  ;;  %v590_v23 = vand.u32 2147483647, %v11589_v6  ;;  %v1699_v21 = vshll.u32 %v11555_v28, %v1697_v12 }
 0x2f7   : > { %16518 = vst [vmem:[#allocation63_spill] sm:$0xff] %v11603_v39  ;;  %v3353_v7 = vshll.u32 %v11603_v39, 30  ;;  %v2161_v1 = vsub.s32 32, %v2160_v55  ;;  %v8352_v35 = vadd.s32 4294967169, %v3814_v24  ;;  %v1700_v48 = vshrl.u32 %v1682_v33, %v1698_v26 }
 0x2f8   : > { %v1703_v51 = vadd.s32 127, %v1702_v50  ;;  %v2163_v31 = vshll.u32 %v16429_v2, %v2160_v55  ;;  %vm2178_vm11 = vcmp.lt.s32.totalorder %v2159_v45, 1  ;;  %v2166_v13 = vshll.u32 %v16424_v38, %v2160_v55 }
 0x2f9   : > { %v11615_v63 = vsub.s32 %v3350_v58, %v3353_v7  ;;  %v2164_v60 = vshrl.u32 %v16424_v38, %v2161_v1  ;;  %v2167_v10 = vshrl.u32 %v16425_v8, %v2161_v1  ;;  %v2169_v0 = vshll.u32 %v16425_v8, %v2160_v55 }
 0x2fa   : > { %v2170_v28 = vshrl.u32 %v16426_v9, %v2161_v1  ;;  %v2172_v27 = vshll.u32 %v16426_v9, %v2160_v55  ;;  %v2173_v37 = vshrl.u32 %v16439_v40, %v2161_v1  ;;  %vm2179_vm14 = vcmp.lt.s32.totalorder %v2159_v45, 2 }
 0x2fb   : > { %v3356_v12 = vsub.s32 0, %v11615_v63  ;;  %v2165_v25 = vor.u32 %v2164_v60, %v2163_v31  ;;  %v2168_v18 = vor.u32 %v2167_v10, %v2166_v13  ;;  %v2175_v33 = vshll.u32 %v16439_v40, %v2160_v55 }
 0x2fc   : > { %v2171_v58 = vor.u32 %v2170_v28, %v2169_v0  ;;  %v2174_v24 = vor.u32 %v2173_v37, %v2172_v27  ;;  %v2176_v26 = vshrl.u32 %v16440_v62, %v2161_v1  ;;  %v1701_v50 = vor.u32 %v1700_v48, %v1699_v21 }
 0x2fd   : > { %v1704_v7 = vshll.u32 %v1703_v51, 23  ;;  %v8333_v29 = vmin.u32 %v3356_v12, %v11615_v63  ;;  %vm2181_vm13 = vcmp.lt.s32.totalorder %v2159_v45, 4  ;;  %v2162_v4 = vshrl.u32 %v16429_v2, %v2161_v1 }
 0x2fe   : > { %v2177_v39 = vor.u32 %v2176_v26, %v2175_v33  ;;  %v2183_v41 = vsel %vm2181_vm13, %v2171_v58, 2102212464  ;;  %v2186_v49 = vsel %vm2178_vm11, %v2165_v25, %v2168_v18  ;;  %vm2180_vm5 = vcmp.lt.s32.totalorder %v2159_v45, 3 }
 0x2ff   : > { %v3358_v31 = vclz %v8333_v29  ;;  %v2187_v60 = vsel %vm2181_vm13, %v2174_v24, 920167782  ;;  %v2190_v13 = vsel %vm2178_vm11, %v2168_v18, %v2171_v58  ;;  %v2182_v55 = vsel %vm2178_vm11, %v2162_v4, %v2165_v25 }
 0x300   : > { %v2184_v10 = vsel %vm2180_vm5, %v2168_v18, %v2183_v41  ;;  %v2188_v0 = vsel %vm2180_vm5, %v2171_v58, %v2187_v60  ;;  %v2191_v21 = vsel %vm2181_vm13, %v2177_v39, 1326507024  ;;  %v1705_v48 = vor.u32 4788187, %v1704_v7 }
 0x301   : > { %v8334_v51 = vadd.s32 4294967294, %v3358_v31  ;;  %v2189_v28 = vsel %vm2179_vm14, %v2186_v49, %v2188_v0  ;;  %v2192_v27 = vsel %vm2180_vm5, %v2174_v24, %v2191_v21  ;;  %v16519_v29 = vand.u32 2147483647, %v11585_v36 }
 0x302   : > { %v2193_v1 = vsel %vm2179_vm14, %v2190_v13, %v2192_v27  ;;  %v11635_v37 = vmul.u32.u64.low %v11605_v47, %v2189_v28  ;;  %v11636_v12 = vmul.u32.u64.high %v11605_v47, %v2189_v28, %v11635_v37  ;;  %v2185_v41 = vsel %vm2179_vm14, %v2182_v55, %v2184_v10 }
 0x303   : > { %v3817_v33 = vand.u32 8388607, %v16519_v29  ;;  %vm8335_vm6 = vcmp.lt.s32.totalorder %v8334_v51, 0  ;;  %v11643_v39 = vmul.u32.u64.low %v11605_v47, %v2193_v1  ;;  %v11644_v4 = vmul.u32.u64.high %v11605_v47, %v2193_v1, %v11643_v39 }
 0x304   : > { %v11647_v25 = vmul.f32 %v3580_v44, %v3578_v15  ;;  %v11649_v18 = vsel %vm8335_vm6, 0, %v8334_v51  ;;  %v3820_v58 = vadd.s32 1, %v8352_v35  ;;  %v1706_v26 = vand.u32 2147483647, %v1705_v48 }
 0x305   : > { %v1708_v7 = vcvt.s32.f32 %v1701_v50  ;;  %v622_v31 = vadd.f32 1.0, %v590_v23  ;;  %v2201_v60 = vmul.u32 %v11605_v47, %v2185_v41  ;;  %v2204_v45 = vadd.s32 1, %v11636_v12 }
 0x306   : > { %v3818_v13 = vor.u32 8388608, %v3817_v33  ;;  %vm3821_vm11 = vcmp.gt.s32.totalorder %v3820_v58, 0  ;;  %v3362_v55 = vsub.s32 32, %v11649_v18  ;;  %v3366_v10 = vsub.s32 4294967266, %v11649_v18 }
 0x307   : > { %vm2203_vm14 = vc.u32 %v11644_v4, %v11635_v37  ;;  %v16227_v15 = vand.u32 2147483647, %v11609_v46  ;;  %v3346_v23 = vadd.s32 %v11560_v61, %v11570_v34  ;;  %v3822_v35 = vsel %vm3821_vm11, %v3820_v58, 0 }
 0x308   : > { %v2205_v47 = vsel %vm2203_vm14, %v2204_v45, %v11636_v12  ;;  %v11663_v50 = vmul.f32 %v1708_v7, %v1706_v26  ;;  %v1941_v21 = vand.u32 2139095040, %v11609_v46  ;;  %v654_v48 = vmul.f32 30.0, %v622_v31 }
 0x309   : > { %v2206_v0 = vadd.s32 %v2205_v47, %v2201_v60  ;;  %v3823_v28 = vshrl.u32 %v3822_v35, 5  ;;  %v3824_v27 = vand.u32 31, %v3822_v35  ;;  %v11668_v1 = vshll.u32 %v3818_v13, 8 }
 0x30a   : > { %v3364_v29 = vshrl.u32 %v3346_v23, %v3362_v55  ;;  %v3367_v33 = vadd.s32 127, %v3366_v10  ;;  %v11672_v61 = vand.u32 8388607, %v16227_v15  ;;  %v1942_v60 = vshrl.u32 %v1941_v21, 23 }
 0x30b   : > { %v2207_v41 = vadd.s32 536870912, %v2206_v0  ;;  %v3825_v34 = vsub.s32 32, %v3824_v27  ;;  %v3827_v12 = vshll.u32 %v16429_v2, %v3824_v27  ;;  %v3830_v39 = vshll.u32 %v16424_v38, %v3824_v27 }
 0x30c   : > { %v3833_v58 = vshll.u32 %v16425_v8, %v3824_v27  ;;  %v3836_v7 = vshll.u32 %v16426_v9, %v3824_v27  ;;  %v3839_v31 = vshll.u32 %v16439_v40, %v3824_v27  ;;  %vm3842_vm13 = vcmp.lt.s32.totalorder %v3823_v28, 1 }
 0x30d   : > { %v11677_v26 = vshrl.u32 %v2207_v41, 30  ;;  %v3828_v45 = vshrl.u32 %v16424_v38, %v3825_v34  ;;  %v3831_v13 = vshrl.u32 %v16425_v8, %v3825_v34  ;;  %v3834_v55 = vshrl.u32 %v16426_v9, %v3825_v34 }
 0x30e   : > { %vm16240_vm5 = vcmp.lt.s32.totalorder %v11124_v5, 0  ;;  %v3826_v23 = vshrl.u32 %v16429_v2, %v3825_v34  ;;  %v3837_v47 = vshrl.u32 %v16439_v40, %v3825_v34  ;;  %v3840_v35 = vshrl.u32 %v16440_v62, %v3825_v34 }
 0x30f   : > { %16520 = vst [vmem:[#allocation64_spill] sm:$0xff] %v11677_v26  ;;  %v2209_v10 = vshll.u32 %v11677_v26, 30  ;;  %v3368_v41 = vshll.u32 %v3367_v33, 23  ;;  %v3829_v27 = vor.u32 %v3828_v45, %v3827_v12  ;;  %v3832_v21 = vor.u32 %v3831_v13, %v3830_v39 }
 0x310   : > { %v3835_v15 = vor.u32 %v3834_v55, %v3833_v58  ;;  %v3838_v24 = vor.u32 %v3837_v47, %v3836_v7  ;;  %v3841_v51 = vor.u32 %v3840_v35, %v3839_v31  ;;  %v8280_v49 = vadd.s32 4294967169, %v1942_v60 }
 0x311   : > { %v11689_v44 = vsub.s32 %v2206_v0, %v2209_v10  ;;  %vm16247_vm6 = vcmp.lt.s32.totalorder %v11192_v42, 0  ;;  %vm16232_vm11 = vcmp.lt.s32.totalorder %v11225_v16, 0  ;;  %vm3843_vm14 = vcmp.lt.s32.totalorder %v3823_v28, 2 }
 0x312   : > { %vm3844_vm2 = vcmp.lt.s32.totalorder %v3823_v28, 3  ;;  %vm3845_vm9 = vcmp.lt.s32.totalorder %v3823_v28, 4  ;;  %v3850_v26 = vsel %vm3842_vm13, %v3829_v27, %v3832_v21  ;;  %v3846_v33 = vsel %vm3842_vm13, %v3826_v23, %v3829_v27 }
 0x313   : > { %v2212_v34 = vsub.s32 0, %v11689_v44  ;;  %v3847_v12 = vsel %vm3845_vm9, %v3835_v15, 2102212464  ;;  %v3851_v39 = vsel %vm3845_vm9, %v3838_v24, 920167782  ;;  %v3854_v7 = vsel %vm3842_vm13, %v3832_v21, %v3835_v15 }
 0x314   : > { %v3848_v0 = vsel %vm3844_vm2, %v3832_v21, %v3847_v12  ;;  %v3852_v58 = vsel %vm3844_vm2, %v3835_v15, %v3851_v39  ;;  %v3855_v31 = vsel %vm3845_vm9, %v3841_v51, 1326507024  ;;  %v11700_v55 = vmul.f32 %v654_v48, %v11589_v6  ;;  %v9178_v15 = vld [vmem:[%s16105_s3] sm:$0xff]  }
 0x315   : > { %v8289_v60 = vmin.u32 %v2212_v34, %v11689_v44  ;;  %v3853_v45 = vsel %vm3843_vm14, %v3850_v26, %v3852_v58  ;;  %v3856_v13 = vsel %vm3844_vm2, %v3838_v24, %v3855_v31  ;;  %v3849_v10 = vsel %vm3843_vm14, %v3846_v33, %v3848_v0  ;;  %8773 = vmatprep.subr.bf16.mxu1 %v9178_v15 }
 0x316   : > { %16521 = vst [vmem:[#allocation65_spill] sm:$0xff] %v11700_v55  ;;  %v3857_v47 = vsel %vm3843_vm14, %v3854_v7, %v3856_v13  ;;  %v11705_v23 = vmul.u32.u64.low %v11668_v1, %v3853_v45  ;;  %v11706_v35 = vmul.u32.u64.high %v11668_v1, %v3853_v45, %v11705_v23  ;;  %v1948_v6 = vadd.s32 1, %v8280_v49  ;;  %8774 = vmatpush3.bf16.msra.mxu1 %v9178_v15 }
 0x317   : > { %v2214_v51 = vclz %v8289_v60  ;;  %v11713_v26 = vmul.u32.u64.low %v11668_v1, %v3857_v47  ;;  %v11714_v24 = vmul.u32.u64.high %v11668_v1, %v3857_v47, %v11713_v26  ;;  %v16522_v48 = vxor.u32 2147483648, %v11468_v3 }
 0x318   : > { %vm1628_vm9 = vcmp.lt.s32.totalorder %v11380_v20, 0  ;;  %v1710_v27 = vxor.u32 2147483648, %v11663_v50  ;;  %v1946_v21 = vor.u32 8388608, %v11672_v61  ;;  %v16524_v34 = vshll.u32 %v11615_v63, %v11649_v18  ;;  %v9179_v61 = vld [vmem:[%s16105_s3 + $0x8] sm:$0xff]  }
 0x319   : > { %v11721_v28 = vsel %vm16240_vm5, %v16522_v48, %v11468_v3  ;;  %v3369_v12 = vor.u32 4788187, %v3368_v41  ;;  %v3865_v49 = vmul.u32 %v11668_v1, %v3849_v10  ;;  %vm1949_vm2 = vcmp.gt.s32.totalorder %v1948_v6, 0  ;;  %8775 = vmatprep.subr.bf16.mxu1 %v9179_v61 }
 0x31a   : > { %16523 = vst [vmem:[#allocation66_spill] sm:$0xff] %v11721_v28  ;;  %v3365_v33 = vor.u32 %v3364_v29, %v16524_v34  ;;  %v8290_v39 = vadd.s32 4294967294, %v2214_v51  ;;  %v3868_v3 = vadd.s32 1, %v11706_v35  ;;  %v1950_v0 = vsel %vm1949_vm2, %v1948_v6, 0  ;;  %8776 = vmatpush3.bf16.msra.mxu1 %v9179_v61  ;;  %v9181_v61 = vld [vmem:[%s16105_s3 + $0x18] sm:$0xff]  }
 0x31b   : > { %v3605_v58 = vand.u32 2139095040, %v11700_v55  ;;  %v16525_v7 = vxor.u32 2147483648, %v11591_v22  ;;  %v16526_v18 = vxor.u32 2147483648, %v11647_v25  ;;  %vm3867_vm13 = vc.u32 %v11714_v24, %v11705_v23 }
 0x31c   : > { %v11753_v29 = vadd.f32 %v11424_v14, %v11294_v54  ;;  %v11758_v41 = vsel %vm1628_vm9, %v1710_v27, %v11663_v50  ;;  %v3869_v31 = vsel %vm3867_vm13, %v3868_v3, %v11706_v35  ;;  %v3370_v60 = vand.u32 2147483647, %v3369_v12 }
 0x31d   : > { %v11740_v63 = vsel %vm16247_vm6, %v16525_v7, %v11591_v22  ;;  %v11747_v1 = vsel %vm16232_vm11, %v16526_v18, %v11647_v25  ;;  %v11762_v22 = vadd.s32 %v11635_v37, %v11644_v4  ;;  %v1952_v25 = vand.u32 31, %v1950_v0  ;;  %v9180_v37 = vld [vmem:[%s16105_s3 + $0x10] sm:$0xff]  }
 0x31e   : > { %16527 = vst [vmem:[#allocation67_spill] sm:$0xff] %v11747_v1  ;;  %v3372_v45 = vcvt.s32.f32 %v3365_v33  ;;  %v3870_v13 = vadd.s32 %v3869_v31, %v3865_v49  ;;  %v11765_v10 = vshll.u32 %v1946_v21, 8  ;;  %vm8291_vm14 = vcmp.lt.s32.totalorder %v8290_v39, 0  ;;  %8777 = vmatprep.subr.bf16.mxu1 %v9180_v37 }
 0x31f   : > { %v1953_v54 = vsub.s32 32, %v1952_v25  ;;  %v16233_v47 = vand.u32 2147483647, %v11700_v55  ;;  %v3606_v50 = vshrl.u32 %v3605_v58, 23  ;;  %v1951_v15 = vshrl.u32 %v1950_v0, 5  ;;  %8778 = vmatpush3.bf16.msra.mxu1 %v9180_v37 }
 0x320   : > { %v3871_v4 = vadd.s32 536870912, %v3870_v13  ;;  %v1955_v35 = vshll.u32 %v16429_v2, %v1952_v25  ;;  %v1958_v51 = vshll.u32 %v16424_v38, %v1952_v25  ;;  %v1961_v48 = vshll.u32 %v16425_v8, %v1952_v25  ;;  %8779 = vmatprep.subr.bf16.mxu1 %v9181_v61 }
 0x321   : > { %v1956_v26 = vshrl.u32 %v16424_v38, %v1953_v54  ;;  %v1959_v6 = vshrl.u32 %v16425_v8, %v1953_v54  ;;  %v1962_v27 = vshrl.u32 %v16426_v9, %v1953_v54  ;;  %v11777_v21 = vsel %vm8291_vm14, 0, %v8290_v39 }
 0x322   : > { %v11779_v34 = vshrl.u32 %v3871_v4, 30  ;;  %v1964_v33 = vshll.u32 %v16426_v9, %v1952_v25  ;;  %v1965_v12 = vshrl.u32 %v16439_v40, %v1953_v54  ;;  %v11783_v49 = vmul.f32 %v3372_v45, %v3370_v60 }
 0x323   : > { %v1957_v3 = vor.u32 %v1956_v26, %v1955_v35  ;;  %v1960_v0 = vor.u32 %v1959_v6, %v1958_v51  ;;  %v1963_v58 = vor.u32 %v1962_v27, %v1961_v48  ;;  %v8344_v18 = vadd.s32 4294967169, %v3606_v50  ;;  %8780 = vmatpush3.bf16.msra.mxu1 %v9181_v61  ;;  %v9182_v48 = vld [vmem:[%s16105_s3 + $0x20] sm:$0xff]  }
 0x324   : > { %16528 = vst [vmem:[#allocation68_spill] sm:$0xff] %v11779_v34  ;;  %v3873_v7 = vshll.u32 %v11779_v34, 30  ;;  %v1966_v39 = vor.u32 %v1965_v12, %v1964_v33  ;;  %v11791_v31 = vand.u32 8388607, %v16233_v47  ;;  %v2218_v4 = vsub.s32 32, %v11777_v21  ;;  %8781 = vmatprep.subr.bf16.mxu1 %v9182_v48 }
 0x325   : > { %v2222_v60 = vsub.s32 4294967266, %v11777_v21  ;;  %v1967_v45 = vshll.u32 %v16439_v40, %v1952_v25  ;;  %v1968_v37 = vshrl.u32 %v16440_v62, %v1953_v54  ;;  %vm1970_vm2 = vcmp.lt.s32.totalorder %v1951_v15, 1 }
 0x326   : > { %v11797_v35 = vsub.s32 %v3870_v13, %v3873_v7  ;;  %vm1972_vm13 = vcmp.lt.s32.totalorder %v1951_v15, 3  ;;  %vm1973_vm14 = vcmp.lt.s32.totalorder %v1951_v15, 4  ;;  %v1978_v26 = vsel %vm1970_vm2, %v1957_v3, %v1960_v0 }
 0x327   : > { %v1969_v50 = vor.u32 %v1968_v37, %v1967_v45  ;;  %v1975_v51 = vsel %vm1973_vm14, %v1963_v58, 2102212464  ;;  %v1979_v6 = vsel %vm1973_vm14, %v1966_v39, 920167782  ;;  %v1954_v27 = vshrl.u32 %v16429_v2, %v1953_v54  ;;  %8782 = vmatpush3.bf16.msra.mxu1 %v9182_v48 }
 0x328   : > { %v3876_v25 = vsub.s32 0, %v11797_v35  ;;  %vm1971_vm11 = vcmp.lt.s32.totalorder %v1951_v15, 2  ;;  %v1980_v13 = vsel %vm1972_vm13, %v1963_v58, %v1979_v6  ;;  %v2223_v33 = vadd.s32 127, %v2222_v60  ;;  %v9184_v15 = vld [vmem:[%s16105_s3 + $0x30] sm:$0xff]  }
 0x329   : > { %v1981_v12 = vsel %vm1971_vm11, %v1978_v26, %v1980_v13  ;;  %v1982_v61 = vsel %vm1970_vm2, %v1960_v0, %v1963_v58  ;;  %v1983_v7 = vsel %vm1973_vm14, %v1969_v50, 1326507024  ;;  %v1974_v37 = vsel %vm1970_vm2, %v1954_v27, %v1957_v3  ;;  %v9183_v58 = vld [vmem:[%s16105_s3 + $0x28] sm:$0xff]  }
 0x32a   : > { %v8353_v45 = vmin.u32 %v3876_v25, %v11797_v35  ;;  %v1976_v47 = vsel %vm1972_vm13, %v1960_v0, %v1975_v51  ;;  %v1984_v34 = vsel %vm1972_vm13, %v1966_v39, %v1983_v7  ;;  %v2220_v54 = vshrl.u32 %v11762_v22, %v2218_v4  ;;  %8783 = vmatprep.subr.bf16.mxu1 %v9183_v58 }
 0x32b   : > { %v1985_v6 = vsel %vm1971_vm11, %v1982_v61, %v1984_v34  ;;  %v11815_v60 = vmul.u32.u64.low %v11765_v10, %v1981_v12  ;;  %v11816_v26 = vmul.u32.u64.high %v11765_v10, %v1981_v12, %v11815_v60  ;;  %v577_v39 = vand.u32 2147483647, %v11753_v29  ;;  %8784 = vmatpush3.bf16.msra.mxu1 %v9183_v58 }
 0x32c   : > { %v3878_v50 = vclz %v8353_v45  ;;  %v11823_v3 = vmul.u32.u64.low %v11765_v10, %v1985_v6  ;;  %v11824_v0 = vmul.u32.u64.high %v11765_v10, %v1985_v6, %v11823_v3  ;;  %v2219_v22 = vshll.u32 %v11689_v44, %v11777_v21  ;;  %8785 = vmatprep.subr.bf16.mxu1 %v9184_v15 }
 0x32d   : > { %v2224_v34 = vshll.u32 %v2223_v33, 23  ;;  %v1977_v4 = vsel %vm1971_vm11, %v1974_v37, %v1976_v47  ;;  %v3612_v51 = vadd.s32 1, %v8344_v18  ;;  %v3610_v25 = vor.u32 8388608, %v11791_v31 }
 0x32e   : > { %v8354_v48 = vadd.s32 4294967294, %v3878_v50  ;;  %v11833_v27 = vadd.f32 %v11424_v14, %v11382_v30  ;;  %v11837_v13 = vadd.f32 %v11424_v14, %v11472_v43  ;;  %v11839_v12 = vor.u32 %v2220_v54, %v2219_v22  ;;  %v9185_v54 = vld [vmem:[%s16105_s3 + $0x38] sm:$0xff]  }
 0x32f   : > { %v3866_v44 = vadd.s32 %v11705_v23, %v11714_v24  ;;  %v1996_v47 = vadd.s32 1, %v11816_v26  ;;  %vm3613_vm11 = vcmp.gt.s32.totalorder %v3612_v51, 0  ;;  %v1993_v30 = vmul.u32 %v11765_v10, %v1977_v4  ;;  %8786 = vmatpush3.bf16.msra.mxu1 %v9184_v15 }
 0x330   : > { %vm8355_vm2 = vcmp.lt.s32.totalorder %v8354_v48, 0  ;;  %vm1995_vm13 = vc.u32 %v11824_v0, %v11815_v60  ;;  %v3614_v14 = vsel %vm3613_vm11, %v3612_v51, 0  ;;  %v11850_v43 = vor.u32 4788187, %v2224_v34  ;;  %8787 = vmatprep.subr.bf16.mxu1 %v9185_v54 }
 0x331   : > { %v11852_v21 = vsel %vm8355_vm2, 0, %v8354_v48  ;;  %v1997_v23 = vsel %vm1995_vm13, %v1996_v47, %v11816_v26  ;;  %v3616_v24 = vand.u32 31, %v3614_v14  ;;  %v11856_v33 = vshll.u32 %v3610_v25, 8 }
 0x332   : > { %v3886_v18 = vsub.s32 4294967266, %v11852_v21  ;;  %v1998_v31 = vadd.s32 %v1997_v23, %v1993_v30  ;;  %v609_v61 = vadd.f32 1.0, %v577_v39  ;;  %v593_v37 = vand.u32 2147483647, %v11833_v27 }
 0x333   : > { %v3617_v10 = vsub.s32 32, %v3616_v24  ;;  %v3619_v7 = vshll.u32 %v16429_v2, %v3616_v24  ;;  %v3622_v45 = vshll.u32 %v16424_v38, %v3616_v24  ;;  %v3615_v26 = vshrl.u32 %v3614_v14, 5  ;;  %8788 = vmatpush3.bf16.msra.mxu1 %v9185_v54 }
 0x334   : > { %v1999_v6 = vadd.s32 536870912, %v1998_v31  ;;  %v3625_v58 = vshll.u32 %v16425_v8, %v3616_v24  ;;  %v3628_v50 = vshll.u32 %v16426_v9, %v3616_v24  ;;  %v3887_v3 = vadd.s32 127, %v3886_v18 }
 0x335   : > { %v3620_v39 = vshrl.u32 %v16424_v38, %v3617_v10  ;;  %v3623_v22 = vshrl.u32 %v16425_v8, %v3617_v10  ;;  %v3626_v34 = vshrl.u32 %v16426_v9, %v3617_v10  ;;  %v3618_v51 = vshrl.u32 %v16429_v2, %v3617_v10 }
 0x336   : > { %v11869_v4 = vshrl.u32 %v1999_v6, 30  ;;  %v3629_v48 = vshrl.u32 %v16439_v40, %v3617_v10  ;;  %v641_v25 = vmul.f32 30.0, %v609_v61  ;;  %v3631_v30 = vshll.u32 %v16439_v40, %v3616_v24 }
 0x337   : > { %v3621_v47 = vor.u32 %v3620_v39, %v3619_v7  ;;  %v3624_v15 = vor.u32 %v3623_v22, %v3622_v45  ;;  %v625_v14 = vadd.f32 1.0, %v593_v37  ;;  %v3882_v23 = vsub.s32 32, %v11852_v21 }
 0x338   : > { %v2001_v18 = vshll.u32 %v11869_v4, 30  ;;  %v3627_v1 = vor.u32 %v3626_v34, %v3625_v58  ;;  %v3630_v16 = vor.u32 %v3629_v48, %v3628_v50  ;;  %v3888_v55 = vshll.u32 %v3887_v3, 23 }
 0x339   : > { %v3632_v6 = vshrl.u32 %v16440_v62, %v3617_v10  ;;  %vm3634_vm14 = vcmp.lt.s32.totalorder %v3615_v26, 1  ;;  %vm3636_vm11 = vcmp.lt.s32.totalorder %v3615_v26, 3  ;;  %vm3635_vm2 = vcmp.lt.s32.totalorder %v3615_v26, 2 }
 0x33a   : > { %v11877_v28 = vsub.s32 %v1998_v31, %v2001_v18  ;;  %vm3637_vm13 = vcmp.lt.s32.totalorder %v3615_v26, 4  ;;  %v3638_v61 = vsel %vm3634_vm14, %v3618_v51, %v3621_v47  ;;  %v3642_v45 = vsel %vm3634_vm14, %v3621_v47, %v3624_v15 }
 0x33b   : > { %v3633_v7 = vor.u32 %v3632_v6, %v3631_v30  ;;  %v3639_v24 = vsel %vm3637_vm13, %v3627_v1, 2102212464  ;;  %v3643_v37 = vsel %vm3637_vm13, %v3630_v16, 920167782  ;;  %v3884_v54 = vshrl.u32 %v3866_v44, %v3882_v23 }
 0x33c   : > { %v2004_v58 = vsub.s32 0, %v11877_v28  ;;  %v3640_v50 = vsel %vm3636_vm11, %v3624_v15, %v3639_v24  ;;  %v3644_v10 = vsel %vm3636_vm11, %v3627_v1, %v3643_v37  ;;  %vm16245_vm5 = vcmp.lt.s32.totalorder %v11432_v57, 0 }
 0x33d   : > { %v3883_v31 = vshll.u32 %v11797_v35, %v11852_v21  ;;  %v3645_v3 = vsel %vm3635_vm2, %v3642_v45, %v3644_v10  ;;  %v3646_v39 = vsel %vm3634_vm14, %v3624_v15, %v3627_v1  ;;  %v3647_v22 = vsel %vm3637_vm13, %v3633_v7, 1326507024 }
 0x33e   : > { %v3889_v34 = vor.u32 4788187, %v3888_v55  ;;  %v8281_v51 = vmin.u32 %v2004_v58, %v11877_v28  ;;  %v3641_v44 = vsel %vm3635_vm2, %v3638_v61, %v3640_v50  ;;  %v3648_v48 = vsel %vm3636_vm11, %v3630_v16, %v3647_v22 }
 0x33f   : > { %v3649_v47 = vsel %vm3635_vm2, %v3646_v39, %v3648_v48  ;;  %v11894_v30 = vmul.u32.u64.low %v11856_v33, %v3645_v3  ;;  %v11895_v23 = vmul.u32.u64.high %v11856_v33, %v3645_v3, %v11894_v30  ;;  %v11899_v35 = vmul.f32 %v641_v25, %v11753_v29 }
 0x340   : > { %v3885_v21 = vor.u32 %v3884_v54, %v3883_v31  ;;  %v2006_v1 = vclz %v8281_v51  ;;  %v11902_v55 = vmul.u32.u64.low %v11856_v33, %v3649_v47  ;;  %v11903_v15 = vmul.u32.u64.high %v11856_v33, %v3649_v47, %v11902_v55 }
 0x341   : > { %v3374_v18 = vxor.u32 2147483648, %v11783_v49  ;;  %v2226_v16 = vand.u32 2147483647, %v11850_v43  ;;  %v16242_v26 = vand.u32 2147483647, %v11899_v35  ;;  %v2253_v6 = vand.u32 2139095040, %v11899_v35 }
 0x342   : > { %v2228_v61 = vcvt.s32.f32 %v11839_v12  ;;  %v3890_v7 = vand.u32 2147483647, %v3889_v34  ;;  %v8282_v24 = vadd.s32 4294967294, %v2006_v1  ;;  %v3657_v29 = vmul.u32 %v11856_v33, %v3641_v44  ;;  %v9453_v44 = vld [vmem:[%s16104_s2] ss:$0 sm:$0xff] }
 0x343   : > { %v3660_v25 = vadd.s32 1, %v11895_v23  ;;  %v2254_v45 = vshrl.u32 %v2253_v6, 23  ;;  %v657_v37 = vmul.f32 30.0, %v625_v14  ;;  %v575_v54 = vand.u32 2147483647, %v11837_v13 }
 0x344   : > { %v3892_v58 = vcvt.s32.f32 %v3885_v21  ;;  %vm8283_vm14 = vcmp.lt.s32.totalorder %v8282_v24, 0  ;;  %vm3659_vm11 = vc.u32 %v11903_v15, %v11894_v30  ;;  %v2257_v43 = vand.u32 8388607, %v16242_v26 }
 0x345   : > { %v11917_v50 = vmul.f32 %v2228_v61, %v2226_v16  ;;  %v2009_v12 = vsel %vm8283_vm14, 0, %v8282_v24  ;;  %v3661_v10 = vsel %vm3659_vm11, %v3660_v25, %v11895_v23  ;;  %v8292_v33 = vadd.s32 4294967169, %v2254_v45 }
 0x346   : > { %v11923_v14 = vsel %vm16245_vm5, %v3374_v18, %v11783_v49  ;;  %v11925_v31 = vmul.f32 %v3892_v58, %v3890_v7  ;;  %v2014_v3 = vsub.s32 4294967266, %v2009_v12  ;;  %v3662_v39 = vadd.s32 %v3661_v10, %v3657_v29 }
 0x347   : > { %16529 = vst [vmem:[#allocation69_spill] sm:$0xff] %v11923_v14  ;;  %v2260_v22 = vadd.s32 1, %v8292_v33  ;;  %v11928_v34 = vmul.f32 %v657_v37, %v11833_v27  ;;  %v607_v51 = vadd.f32 1.0, %v575_v54  ;;  %v11934_v48 = vadd.f32 %v9453_v44, %v11544_v52 }
 0x348   : > { %v2010_v47 = vsub.s32 32, %v2009_v12  ;;  %v2015_v23 = vadd.s32 127, %v2014_v3  ;;  %v3663_v49 = vadd.s32 536870912, %v3662_v39  ;;  %v2258_v21 = vor.u32 8388608, %v2257_v43 }
 0x349   : > { %v1994_v55 = vadd.s32 %v11815_v60, %v11824_v0  ;;  %vm2261_vm2 = vcmp.gt.s32.totalorder %v2260_v22, 0  ;;  %v16241_v27 = vand.u32 2147483647, %v11928_v34  ;;  %v2011_v52 = vshll.u32 %v11877_v28, %v2009_v12 }
 0x34a   : > { %v2016_v16 = vshll.u32 %v2015_v23, 23  ;;  %v11941_v6 = vshrl.u32 %v3663_v49, 30  ;;  %v2262_v61 = vsel %vm2261_vm2, %v2260_v22, 0  ;;  %v639_v24 = vmul.f32 30.0, %v607_v51 }
 0x34b   : > { %v2264_v7 = vand.u32 31, %v2262_v61  ;;  %v591_v29 = vand.u32 2147483647, %v11934_v48  ;;  %v2012_v25 = vshrl.u32 %v1994_v55, %v2010_v47  ;;  %v11946_v37 = vshll.u32 %v2258_v21, 8 }
 0x34c   : > { %16530 = vst [vmem:[#allocation70_spill] sm:$0xff] %v11941_v6  ;;  %v3665_v45 = vshll.u32 %v11941_v6, 30  ;;  %v3917_v60 = vand.u32 2139095040, %v11928_v34  ;;  %v11949_v0 = vor.u32 4788187, %v2016_v16  ;;  %v2263_v54 = vshrl.u32 %v2262_v61, 5 }
 0x34d   : > { %v2265_v58 = vsub.s32 32, %v2264_v7  ;;  %v11953_v43 = vand.u32 8388607, %v16241_v27  ;;  %v2267_v12 = vshll.u32 %v16429_v2, %v2264_v7  ;;  %v2270_v10 = vshll.u32 %v16424_v38, %v2264_v7 }
 0x34e   : > { %v11955_v28 = vsub.s32 %v3662_v39, %v3665_v45  ;;  %v2273_v33 = vshll.u32 %v16425_v8, %v2264_v7  ;;  %v2276_v44 = vshll.u32 %v16426_v9, %v2264_v7  ;;  %v2279_v39 = vshll.u32 %v16439_v40, %v2264_v7 }
 0x34f   : > { %v2268_v3 = vshrl.u32 %v16424_v38, %v2265_v58  ;;  %v2271_v22 = vshrl.u32 %v16425_v8, %v2265_v58  ;;  %v2274_v51 = vshrl.u32 %v16426_v9, %v2265_v58  ;;  %v2277_v23 = vshrl.u32 %v16439_v40, %v2265_v58 }
 0x350   : > { %v3668_v47 = vsub.s32 0, %v11955_v28  ;;  %v2280_v49 = vshrl.u32 %v16440_v62, %v2265_v58  ;;  %vm16257_vm13 = vcmp.lt.s32.totalorder %v11530_v19, 0  ;;  %v11970_v61 = vmul.f32 %v639_v24, %v11837_v13 }
 0x351   : > { %v2269_v21 = vor.u32 %v2268_v3, %v2267_v12  ;;  %v2272_v55 = vor.u32 %v2271_v22, %v2270_v10  ;;  %v2275_v16 = vor.u32 %v2274_v51, %v2273_v33  ;;  %v2013_v45 = vor.u32 %v2012_v25, %v2011_v52 }
 0x352   : > { %v8345_v27 = vmin.u32 %v3668_v47, %v11955_v28  ;;  %v2278_v26 = vor.u32 %v2277_v23, %v2276_v44  ;;  %v2281_v18 = vor.u32 %v2280_v49, %v2279_v39  ;;  %vm16250_vm14 = vcmp.lt.s32.totalorder %v11585_v36, 0 }
 0x353   : > { %v2018_v1 = vand.u32 2147483647, %v11949_v0  ;;  %v2266_v7 = vshrl.u32 %v16429_v2, %v2265_v58  ;;  %vm2282_vm11 = vcmp.lt.s32.totalorder %v2263_v54, 1  ;;  %v3918_v6 = vshrl.u32 %v3917_v60, 23 }
 0x354   : > { %v3670_v14 = vclz %v8345_v27  ;;  %vm2284_vm2 = vcmp.lt.s32.totalorder %v2263_v54, 3  ;;  %vm2285_vm5 = vcmp.lt.s32.totalorder %v2263_v54, 4  ;;  %v2290_v12 = vsel %vm2282_vm11, %v2269_v21, %v2272_v55 }
 0x355   : > { %v2287_v10 = vsel %vm2285_vm5, %v2275_v16, 2102212464  ;;  %v2291_v13 = vsel %vm2285_vm5, %v2278_v26, 920167782  ;;  %v2294_v24 = vsel %vm2282_vm11, %v2272_v55, %v2275_v16  ;;  %v2295_v52 = vsel %vm2285_vm5, %v2281_v18, 1326507024 }
 0x356   : > { %v8346_v25 = vadd.s32 4294967294, %v3670_v14  ;;  %vm2283_vm15 = vcmp.lt.s32.totalorder %v2263_v54, 2  ;;  %v2292_v33 = vsel %vm2284_vm2, %v2275_v16, %v2291_v13  ;;  %v2296_v3 = vsel %vm2284_vm2, %v2278_v26, %v2295_v52 }
 0x357   : > { %v2286_v22 = vsel %vm2282_vm11, %v2266_v7, %v2269_v21  ;;  %v2293_v0 = vsel %vm2283_vm15, %v2290_v12, %v2292_v33  ;;  %v2297_v58 = vsel %vm2283_vm15, %v2294_v24, %v2296_v3  ;;  %v8356_v60 = vadd.s32 4294967169, %v3918_v6 }
 0x358   : > { %vm8347_vm6 = vcmp.lt.s32.totalorder %v8346_v25, 0  ;;  %v2288_v27 = vsel %vm2284_vm2, %v2272_v55, %v2287_v10  ;;  %v11982_v51 = vmul.u32.u64.low %v11946_v37, %v2297_v58  ;;  %v11983_v44 = vmul.u32.u64.high %v11946_v37, %v2297_v58, %v11982_v51 }
 0x359   : > { %v11985_v18 = vsel %vm8347_vm6, 0, %v8346_v25  ;;  %v11988_v14 = vmul.u32.u64.low %v11946_v37, %v2293_v0  ;;  %v11989_v47 = vmul.u32.u64.high %v11946_v37, %v2293_v0, %v11988_v14  ;;  %v3924_v26 = vadd.s32 1, %v8356_v60 }
 0x35a   : > { %v16531_v23 = vxor.u32 2147483648, %v11917_v50  ;;  %v3678_v39 = vsub.s32 4294967266, %v11985_v18  ;;  %v3922_v49 = vor.u32 8388608, %v11953_v43  ;;  %v623_v21 = vadd.f32 1.0, %v591_v29  ;;  %v16534_v43 = vld [vmem:[#allocation11_spill] sm:$0xff] }
 0x35b   : > { %v2020_v55 = vcvt.s32.f32 %v2013_v45  ;;  %v2289_v16 = vsel %vm2283_vm15, %v2286_v22, %v2288_v27  ;;  %vm3925_vm5 = vcmp.gt.s32.totalorder %v3924_v26, 0  ;;  %v16248_v7 = vand.u32 2147483647, %v11970_v61 }
 0x35c   : > { %v11997_v6 = vsel %vm16257_vm13, %v16531_v23, %v11917_v50  ;;  %v16532_v12 = vxor.u32 2147483648, %v11925_v31  ;;  %v3674_v50 = vsub.s32 32, %v11985_v18  ;;  %vm2307_vm6 = vc.u32 %v11983_v44, %v11988_v14 }
 0x35d   : > { %v12014_v45 = vmul.f32 %v2020_v55, %v2018_v1  ;;  %v3658_v54 = vadd.s32 %v11894_v30, %v11903_v15  ;;  %v2308_v13 = vadd.s32 1, %v11989_v47  ;;  %v3926_v24 = vsel %vm3925_vm5, %v3924_v26, 0 }
 0x35e   : > { %v12008_v10 = vsel %vm16250_vm14, %v16532_v12, %v11925_v31  ;;  %v3679_v52 = vadd.s32 127, %v3678_v39  ;;  %v2305_v25 = vmul.u32 %v11946_v37, %v2289_v16  ;;  %v3928_v31 = vand.u32 31, %v3926_v24 }
 0x35f   : > { %16533 = vst [vmem:[#allocation71_spill] sm:$0xff] %v12008_v10  ;;  %v2045_v33 = vand.u32 2139095040, %v11970_v61  ;;  %v2309_v3 = vsel %vm2307_vm6, %v2308_v13, %v11989_v47  ;;  %v12022_v22 = vshll.u32 %v3922_v49, 8  ;;  %v12026_v1 = vand.u32 8388607, %v16248_v7 }
 0x360   : > { %v655_v0 = vmul.f32 30.0, %v623_v21  ;;  %v3676_v58 = vshrl.u32 %v3658_v54, %v3674_v50  ;;  %v2310_v30 = vadd.s32 %v2309_v3, %v2305_v25  ;;  %v3927_v15 = vshrl.u32 %v3926_v24, 5 }
 0x361   : > { %v3929_v60 = vsub.s32 32, %v3928_v31  ;;  %v3931_v27 = vshll.u32 %v16429_v2, %v3928_v31  ;;  %v3934_v37 = vshll.u32 %v16424_v38, %v3928_v31  ;;  %v3937_v51 = vshll.u32 %v16425_v8, %v3928_v31 }
 0x362   : > { %v3940_v26 = vshll.u32 %v16426_v9, %v3928_v31  ;;  %v3680_v47 = vshll.u32 %v3679_v52, 23  ;;  %v2311_v23 = vadd.s32 536870912, %v2310_v30  ;;  %v2046_v49 = vshrl.u32 %v2045_v33, 23 }
 0x363   : > { %v3932_v39 = vshrl.u32 %v16424_v38, %v3929_v60  ;;  %v3935_v55 = vshrl.u32 %v16425_v8, %v3929_v60  ;;  %v3938_v21 = vshrl.u32 %v16426_v9, %v3929_v60  ;;  %v3941_v16 = vshrl.u32 %v16439_v40, %v3929_v60 }
 0x364   : > { %v3943_v12 = vshll.u32 %v16439_v40, %v3928_v31  ;;  %v12037_v50 = vshrl.u32 %v2311_v23, 30  ;;  %v3930_v54 = vshrl.u32 %v16429_v2, %v3929_v60  ;;  %v3944_v24 = vshrl.u32 %v16440_v62, %v3929_v60 }
 0x365   : > { %v3933_v13 = vor.u32 %v3932_v39, %v3931_v27  ;;  %v3936_v52 = vor.u32 %v3935_v55, %v3934_v37  ;;  %v3939_v25 = vor.u32 %v3938_v21, %v3937_v51  ;;  %v3942_v3 = vor.u32 %v3941_v16, %v3940_v26 }
 0x366   : > { %vm3946_vm15 = vcmp.lt.s32.totalorder %v3927_v15, 1  ;;  %v2313_v33 = vshll.u32 %v12037_v50, 30  ;;  %v3945_v7 = vor.u32 %v3944_v24, %v3943_v12  ;;  %v8284_v29 = vadd.s32 4294967169, %v2046_v49 }
 0x367   : > { %v12043_v10 = vmul.f32 %v655_v0, %v11934_v48  ;;  %vm3947_vm11 = vcmp.lt.s32.totalorder %v3927_v15, 2  ;;  %vm3948_vm2 = vcmp.lt.s32.totalorder %v3927_v15, 3  ;;  %vm3949_vm5 = vcmp.lt.s32.totalorder %v3927_v15, 4 }
 0x368   : > { %v3954_v31 = vsel %vm3946_vm15, %v3933_v13, %v3936_v52  ;;  %v12045_v23 = vsub.s32 %v2310_v30, %v2313_v33  ;;  %v3950_v27 = vsel %vm3946_vm15, %v3930_v54, %v3933_v13  ;;  %v3951_v39 = vsel %vm3949_vm5, %v3939_v25, 2102212464 }
 0x369   : > { %v3955_v60 = vsel %vm3949_vm5, %v3942_v3, 920167782  ;;  %v3952_v37 = vsel %vm3948_vm2, %v3936_v52, %v3951_v39  ;;  %v3958_v26 = vsel %vm3946_vm15, %v3936_v52, %v3939_v25  ;;  %v3959_v55 = vsel %vm3949_vm5, %v3945_v7, 1326507024 }
 0x36a   : > { %v3956_v51 = vsel %vm3948_vm2, %v3939_v25, %v3955_v60  ;;  %v3675_v21 = vshll.u32 %v11955_v28, %v11985_v18  ;;  %v2316_v49 = vsub.s32 0, %v12045_v23  ;;  %v3960_v0 = vsel %vm3948_vm2, %v3942_v3, %v3959_v55 }
 0x36b   : > { %v3957_v48 = vsel %vm3947_vm11, %v3954_v31, %v3956_v51  ;;  %v3953_v16 = vsel %vm3947_vm11, %v3950_v27, %v3952_v37  ;;  %v3961_v30 = vsel %vm3947_vm11, %v3958_v26, %v3960_v0  ;;  %v2052_v28 = vadd.s32 1, %v8284_v29 }
 0x36c   : > { %v12054_v12 = vmul.u32.u64.low %v12022_v22, %v3957_v48  ;;  %v12055_v54 = vmul.u32.u64.high %v12022_v22, %v3957_v48, %v12054_v12  ;;  %v8293_v13 = vmin.u32 %v2316_v49, %v12045_v23  ;;  %v12063_v18 = vor.u32 %v3676_v58, %v3675_v21 }
 0x36d   : > { %v12060_v7 = vmul.u32.u64.low %v12022_v22, %v3961_v30  ;;  %v12061_v24 = vmul.u32.u64.high %v12022_v22, %v3961_v30, %v12060_v7  ;;  %v12065_v52 = vor.u32 4788187, %v3680_v47  ;;  %v2050_v25 = vor.u32 8388608, %v12026_v1 }
 0x36e   : > { %v3709_v15 = vand.u32 2139095040, %v12043_v10  ;;  %v2318_v3 = vclz %v8293_v13  ;;  %v3969_v33 = vmul.u32 %v12022_v22, %v3953_v16  ;;  %vm2053_vm6 = vcmp.gt.s32.totalorder %v2052_v28, 0 }
 0x36f   : > { %v16249_v31 = vand.u32 2147483647, %v12043_v10  ;;  %v3972_v39 = vadd.s32 1, %v12055_v54  ;;  %v2054_v60 = vsel %vm2053_vm6, %v2052_v28, 0  ;;  %v2306_v58 = vadd.s32 %v11988_v14, %v11983_v44 }
 0x370   : > { %v3710_v29 = vshrl.u32 %v3709_v15, 23  ;;  %v8294_v47 = vadd.s32 4294967294, %v2318_v3  ;;  %vm3971_vm15 = vc.u32 %v12061_v24, %v12054_v12  ;;  %v12077_v1 = vshrl.u32 %v2054_v60, 5 }
 0x371   : > { %v3973_v37 = vsel %vm3971_vm15, %v3972_v39, %v12055_v54  ;;  %v2056_v51 = vand.u32 31, %v2054_v60  ;;  %v12081_v26 = vshll.u32 %v2050_v25, 8  ;;  %v12086_v44 = vand.u32 8388607, %v16249_v31 }
 0x372   : > { %vm8295_vm11 = vcmp.lt.s32.totalorder %v8294_v47, 0  ;;  %v3974_v21 = vadd.s32 %v3973_v37, %v3969_v33  ;;  %vm2074_vm2 = vcmp.lt.s32.totalorder %v12077_v1, 1  ;;  %v8348_v48 = vadd.s32 4294967169, %v3710_v29 }
 0x373   : > { %v2321_v14 = vsel %vm8295_vm11, 0, %v8294_v47  ;;  %v2057_v49 = vsub.s32 32, %v2056_v51  ;;  %v2059_v54 = vshll.u32 %v16429_v2, %v2056_v51  ;;  %v2062_v7 = vshll.u32 %v16424_v38, %v2056_v51 }
 0x374   : > { %v2322_v0 = vsub.s32 32, %v2321_v14  ;;  %v2326_v16 = vsub.s32 4294967266, %v2321_v14  ;;  %v3975_v30 = vadd.s32 536870912, %v3974_v21  ;;  %v2065_v25 = vshll.u32 %v16425_v8, %v2056_v51 }
 0x375   : > { %v2060_v13 = vshrl.u32 %v16424_v38, %v2057_v49  ;;  %v2063_v28 = vshrl.u32 %v16425_v8, %v2057_v49  ;;  %v2066_v39 = vshrl.u32 %v16426_v9, %v2057_v49  ;;  %v2068_v47 = vshll.u32 %v16426_v9, %v2056_v51 }
 0x376   : > { %v2324_v15 = vshrl.u32 %v2306_v58, %v2322_v0  ;;  %v2327_v3 = vadd.s32 127, %v2326_v16  ;;  %v12094_v33 = vshrl.u32 %v3975_v30, 30  ;;  %v2069_v37 = vshrl.u32 %v16439_v40, %v2057_v49 }
 0x377   : > { %v2061_v60 = vor.u32 %v2060_v13, %v2059_v54  ;;  %v2064_v29 = vor.u32 %v2063_v28, %v2062_v7  ;;  %vm16258_vm5 = vcmp.lt.s32.totalorder %v11609_v46, 0  ;;  %v2067_v55 = vor.u32 %v2066_v39, %v2065_v25  ;;  %v16536_v54 = vld [vmem:[#allocation7_spill] sm:$0xff] }
 0x378   : > { %16535 = vst [vmem:[#allocation11_spill] sm:$0xff] %v12094_v33  ;;  %v2328_v31 = vshll.u32 %v2327_v3, 23  ;;  %v3977_v22 = vshll.u32 %v12094_v33, 30  ;;  %vm2075_vm6 = vcmp.lt.s32.totalorder %v12077_v1, 2  ;;  %v2323_v58 = vshll.u32 %v12045_v23, %v2321_v14 }
 0x379   : > { %v2070_v0 = vor.u32 %v2069_v37, %v2068_v47  ;;  %v2071_v16 = vshll.u32 %v16439_v40, %v2056_v51  ;;  %v2072_v30 = vshrl.u32 %v16440_v62, %v2057_v49  ;;  %v16537_v13 = vand.u32 2147483647, %v16536_v54 }
 0x37a   : > { %v2329_v28 = vor.u32 4788187, %v2328_v31  ;;  %v12111_v3 = vsub.s32 %v3974_v21, %v3977_v22  ;;  %v2058_v25 = vshrl.u32 %v16429_v2, %v2057_v49  ;;  %vm2077_vm11 = vcmp.lt.s32.totalorder %v12077_v1, 4 }
 0x37b   : > { %vm12107_vm15 = vcmp.le.f32.partialorder %v16537_v13, 0.7853982  ;;  %v2325_v39 = vor.u32 %v2324_v15, %v2323_v58  ;;  %v2073_v23 = vor.u32 %v2072_v30, %v2071_v16  ;;  %v2079_v14 = vsel %vm2077_vm11, %v2067_v55, 2102212464 }
 0x37c   : > { %v2082_v51 = vsel %vm2074_vm2, %v2061_v60, %v2064_v29  ;;  %v3980_v47 = vsub.s32 0, %v12111_v3  ;;  %vm2076_vm14 = vcmp.lt.s32.totalorder %v12077_v1, 3  ;;  %v2078_v37 = vsel %vm2074_vm2, %v2058_v25, %v2061_v60 }
 0x37d   : > { %v2083_v31 = vsel %vm2077_vm11, %v2070_v0, 920167782  ;;  %v2330_v22 = vand.u32 2147483647, %v2329_v28  ;;  %v2086_v49 = vsel %vm2074_vm2, %v2064_v29, %v2067_v55  ;;  %v2087_v13 = vsel %vm2077_vm11, %v2073_v23, 1326507024 }
 0x37e   : > { %v2084_v21 = vsel %vm2076_vm14, %v2067_v55, %v2083_v31  ;;  %v8357_v15 = vmin.u32 %v3980_v47, %v12111_v3  ;;  %v2080_v58 = vsel %vm2076_vm14, %v2064_v29, %v2079_v14  ;;  %v2088_v30 = vsel %vm2076_vm14, %v2070_v0, %v2087_v13 }
 0x37f   : > { %v2085_v16 = vsel %vm2075_vm6, %v2082_v51, %v2084_v21  ;;  %v2332_v27 = vcvt.s32.f32 %v2325_v39  ;;  %v2089_v33 = vsel %vm2075_vm6, %v2086_v49, %v2088_v30  ;;  %v16540_v29 = vsub.s32 4, %v16534_v43 }
 0x380   : > { %v12129_v60 = vmul.u32.u64.low %v12081_v26, %v2085_v16  ;;  %v12130_v25 = vmul.u32.u64.high %v12081_v26, %v2085_v16, %v12129_v60  ;;  %v3982_v28 = vclz %v8357_v15  ;;  %v16541_v39 = vxor.u32 2147483648, %v12014_v45  ;;  %v16544_v15 = vld [vmem:[#allocation23_spill] sm:$0xff] }
 0x381   : > { %v12134_v55 = vmul.u32.u64.low %v12081_v26, %v2089_v33  ;;  %v12135_v23 = vmul.u32.u64.high %v12081_v26, %v2089_v33, %v12134_v55  ;;  %v777_v0 = vsel %vm692_vm7, %v16540_v29, %v16534_v43  ;;  %v12149_v51 = vmul.f32 %v2332_v27, %v2330_v22 }
 0x382   : > { %v12147_v14 = vsel %vm16258_vm5, %v16541_v39, %v12014_v45  ;;  %v2081_v47 = vsel %vm2075_vm6, %v2078_v37, %v2080_v58  ;;  %v3716_v33 = vadd.s32 1, %v8348_v48  ;;  %v16542_v31 = vand.u32 2147483647, %v12065_v52 }
 0x383   : > { %v16543_v21 = vcvt.s32.f32 %v12063_v18  ;;  %v8358_v43 = vadd.s32 4294967294, %v3982_v28  ;;  %v3714_v13 = vor.u32 8388608, %v12086_v44  ;;  %v778_v45 = vsel %vm12107_vm15, %v16536_v54, %v16544_v15 }
 0x384   : > { %v3970_v27 = vadd.s32 %v12054_v12, %v12061_v24  ;;  %v2100_v1 = vadd.s32 1, %v12130_v25  ;;  %vm3717_vm7 = vcmp.gt.s32.totalorder %v3716_v33, 0  ;;  %v779_v52 = vsel %vm12107_vm15, 0, %v777_v0 }
 0x385   : > { %v12157_v49 = vmul.f32 %v16543_v21, %v16542_v31  ;;  %vm8359_vm14 = vcmp.lt.s32.totalorder %v8358_v43, 0  ;;  %v2097_v18 = vmul.u32 %v12081_v26, %v2081_v47  ;;  %vm2099_vm2 = vc.u32 %v12135_v23, %v12129_v60 }
 0x386   : > { %v3718_v44 = vsel %vm3717_vm7, %v3716_v33, 0  ;;  %v12173_v37 = vsel %vm8359_vm14, 0, %v8358_v43  ;;  %v2101_v22 = vsel %vm2099_vm2, %v2100_v1, %v12130_v25  ;;  %v12177_v16 = vshll.u32 %v3714_v13, 8 }
 0x387   : > { %v3720_v12 = vand.u32 31, %v3718_v44  ;;  %v3990_v24 = vsub.s32 4294967266, %v12173_v37  ;;  %v2102_v58 = vadd.s32 %v2101_v22, %v2097_v18  ;;  %9202 = vcosq.f32 %v778_v45  ;;  %v16545_v18 = vld [vmem:[#allocation21_spill] sm:$0xff] }
 0x388   : > { %9204 = vsinq.f32 %v778_v45  ;;  %v3719_v55 = vshrl.u32 %v3718_v44, 5  ;;  %v783_v13 = vadd.s32 3, %v779_v52  ;;  %v880_v44 = vsub.s32 4, %v16545_v18 }
 0x389   : > { %v3721_v7 = vsub.s32 32, %v3720_v12  ;;  %v3723_v26 = vshll.u32 %v16429_v2, %v3720_v12  ;;  %v3726_v30 = vshll.u32 %v16424_v38, %v3720_v12  ;;  %v2103_v28 = vadd.s32 536870912, %v2102_v58 }
 0x38a   : > { %v3729_v29 = vshll.u32 %v16425_v8, %v3720_v12  ;;  %v3732_v0 = vshll.u32 %v16426_v9, %v3720_v12  ;;  %v3991_v25 = vadd.s32 127, %v3990_v24  ;;  %v3735_v1 = vshll.u32 %v16439_v40, %v3720_v12 }
 0x38b   : > { %v3724_v39 = vshrl.u32 %v16424_v38, %v3721_v7  ;;  %v3727_v47 = vshrl.u32 %v16425_v8, %v3721_v7  ;;  %v3730_v33 = vshrl.u32 %v16426_v9, %v3721_v7  ;;  %v12186_v31 = vshrl.u32 %v2103_v28, 30 }
 0x38c   : > { %v3722_v21 = vshrl.u32 %v16429_v2, %v3721_v7  ;;  %v3733_v43 = vshrl.u32 %v16439_v40, %v3721_v7  ;;  %v3986_v22 = vsub.s32 32, %v12173_v37  ;;  %v3992_v9 = vshll.u32 %v3991_v25, 23 }
 0x38d   : > { %v3725_v15 = vor.u32 %v3724_v39, %v3723_v26  ;;  %v3728_v45 = vor.u32 %v3727_v47, %v3726_v30  ;;  %v2105_v24 = vshll.u32 %v12186_v31, 30  ;;  %v3731_v48 = vor.u32 %v3730_v33, %v3729_v29 }
 0x38e   : > { %v3734_v8 = vor.u32 %v3733_v43, %v3732_v0  ;;  %v3736_v28 = vshrl.u32 %v16440_v62, %v3721_v7  ;;  %vm3738_vm6 = vcmp.lt.s32.totalorder %v3719_v55, 1  ;;  %vm3740_vm15 = vcmp.lt.s32.totalorder %v3719_v55, 3 }
 0x38f   : > { %v12195_v38 = vsub.s32 %v2102_v58, %v2105_v24  ;;  %vm3739_vm11 = vcmp.lt.s32.totalorder %v3719_v55, 2  ;;  %vm3741_vm7 = vcmp.lt.s32.totalorder %v3719_v55, 4  ;;  %v3742_v52 = vsel %vm3738_vm6, %v3722_v21, %v3725_v15 }
 0x390   : > { %v3737_v12 = vor.u32 %v3736_v28, %v3735_v1  ;;  %v3743_v26 = vsel %vm3741_vm7, %v3731_v48, 2102212464  ;;  %v3746_v30 = vsel %vm3738_vm6, %v3725_v15, %v3728_v45  ;;  %v3747_v39 = vsel %vm3741_vm7, %v3734_v8, 920167782 }
 0x391   : > { %v9203_v47 = vpop.eup %9202  ;;  %v3988_v40 = vshrl.u32 %v3970_v27, %v3986_v22  ;;  %v2108_v29 = vsub.s32 0, %v12195_v38  ;;  %v3744_v0 = vsel %vm3740_vm15, %v3728_v45, %v3743_v26  ;;  %v3748_v7 = vsel %vm3740_vm15, %v3731_v48, %v3747_v39 }
 0x392   : > { %v9205_v25 = vpop.eup %9204  ;;  %v3993_v58 = vor.u32 4788187, %v3992_v9  ;;  %v3749_v33 = vsel %vm3739_vm11, %v3746_v30, %v3748_v7  ;;  %v3750_v43 = vsel %vm3738_vm6, %v3728_v45, %v3731_v48  ;;  %v3751_v21 = vsel %vm3741_vm7, %v3737_v12, 1326507024  ;;  %v16550_v7 = vld [vmem:[#allocation35_spill] sm:$0xff] }
 0x393   : > { %v3987_v1 = vshll.u32 %v12111_v3, %v12173_v37  ;;  %v8285_v15 = vmin.u32 %v2108_v29, %v12195_v38  ;;  %v3745_v27 = vsel %vm3739_vm11, %v3742_v52, %v3744_v0  ;;  %v3752_v22 = vsel %vm3740_vm15, %v3734_v8, %v3751_v21  ;;  %v16546_v3 = vld [vmem:[#allocation14_spill] sm:$0xff] }
 0x394   : > { %v3753_v24 = vsel %vm3739_vm11, %v3750_v43, %v3752_v22  ;;  %v12211_v28 = vmul.u32.u64.low %v12177_v16, %v3749_v33  ;;  %v12212_v26 = vmul.u32.u64.high %v12177_v16, %v3749_v33, %v12211_v28  ;;  %v784_v9 = vand.u32 3, %v783_v13 }
 0x395   : > { %v2110_v30 = vclz %v8285_v15  ;;  %v12216_v48 = vmul.u32.u64.low %v12177_v16, %v3753_v24  ;;  %v12217_v45 = vmul.u32.u64.high %v12177_v16, %v3753_v24, %v12216_v48  ;;  %v16547_v37 = vand.u32 2147483647, %v16546_v3 }
 0x396   : > { %v3989_v8 = vor.u32 %v3988_v40, %v3987_v1  ;;  %v3994_v55 = vand.u32 2147483647, %v3993_v58  ;;  %v3761_v52 = vmul.u32 %v12177_v16, %v3745_v27  ;;  %v787_v39 = vxor.u32 2147483648, %v9205_v25 }
 0x397   : > { %vm12221_vm14 = vcmp.le.f32.partialorder %v16547_v37, 0.7853982  ;;  %v8286_v29 = vadd.s32 4294967294, %v2110_v30  ;;  %v790_v0 = vxor.u32 2147483648, %v9203_v47  ;;  %v881_v13 = vsel %vm796_vm1, %v880_v44, %v16545_v18 }
 0x398   : > { %v882_v33 = vsel %vm12221_vm14, %v16546_v3, %v16550_v7  ;;  %v3764_v43 = vadd.s32 1, %v12212_v26  ;;  %vm786_vm2 = vcmp.eq.s32.totalorder %v784_v9, 0  ;;  %vm789_vm6 = vcmp.eq.s32.totalorder %v784_v9, 2 }
 0x399   : > { %9206 = vcosq.f32 %v882_v33  ;;  %vm8287_vm15 = vcmp.lt.s32.totalorder %v8286_v29, 0  ;;  %vm3763_vm11 = vc.u32 %v12217_v45, %v12211_v28  ;;  %v788_v40 = vsel %vm786_vm2, %v9203_v47, %v787_v39  ;;  %v16551_v39 = vld [vmem:[#allocation19_spill] sm:$0xff] }
 0x39a   : > { %v883_v16 = vsel %vm12221_vm14, 0, %v881_v13  ;;  %v2113_v58 = vsel %vm8287_vm15, 0, %v8286_v29  ;;  %v3765_v18 = vsel %vm3763_vm11, %v3764_v43, %v12212_v26  ;;  %v791_v44 = vsel %vm789_vm6, %v790_v0, %v9205_v25 }
 0x39b   : > { %9208 = vsinq.f32 %v882_v33  ;;  %v2098_v21 = vadd.s32 %v12129_v60, %v12135_v23  ;;  %v2114_v1 = vsub.s32 32, %v2113_v58  ;;  %v2118_v15 = vsub.s32 4294967266, %v2113_v58 }
 0x39c   : > { %v3766_v27 = vadd.s32 %v3765_v18, %v3761_v52  ;;  %v3996_v22 = vcvt.s32.f32 %v3989_v8  ;;  %vm782_vm1 = vweird.f32 %v16536_v54  ;;  %vm785_vm7 = vcmp.lt.s32.totalorder %v784_v9, 2  ;;  %v16552_v52 = vld [vmem:[#allocation16_spill] sm:$0xff]  ;;  %v16553_v8 = vld [vmem:[#allocation18_spill] sm:$0xff] }
 0x39d   : > { %v887_v24 = vadd.s32 3, %v883_v16  ;;  %v2116_v47 = vshrl.u32 %v2098_v21, %v2114_v1  ;;  %v2119_v30 = vadd.s32 127, %v2118_v15  ;;  %v792_v37 = vsel %vm785_vm7, %v788_v40, %v791_v44  ;;  %v16555_v44 = vld [vmem:[#allocation37_spill] sm:$0xff]  ;;  %v16556_v1 = vld [vmem:[#allocation31_spill] sm:$0xff] }
 0x39e   : > { %v3767_v48 = vadd.s32 536870912, %v3766_v27  ;;  %v12242_v12 = vmul.f32 %v3996_v22, %v3994_v55  ;;  %v2115_v25 = vshll.u32 %v12195_v38, %v2113_v58  ;;  %v995_v29 = vxor.u32 2147483648, %v16551_v39  ;;  %v16554_v58 = vld [vmem:[#allocation27_spill] sm:$0xff] }
 0x39f   : > { %v888_v26 = vand.u32 3, %v887_v24  ;;  %v2120_v60 = vshll.u32 %v2119_v30, 23  ;;  %vm994_vm14 = vcmp.eq.s32.totalorder %v16552_v52, 0  ;;  %v998_v54 = vxor.u32 2147483648, %v16553_v8 }
 0x3a0   : > { %v12246_v23 = vshrl.u32 %v3767_v48, 30  ;;  %v793_v9 = vsel %vm782_vm1, nan, %v792_v37  ;;  %vm886_vm2 = vweird.f32 %v16546_v3  ;;  %v996_v0 = vsel %vm994_vm14, %v16553_v8, %v995_v29  ;;  %v16561_v8 = vld [vmem:[#allocation10_spill] sm:$0xff] }
 0x3a1   : > { %vm997_vm6 = vcmp.eq.s32.totalorder %v16552_v52, 2  ;;  %v2117_v55 = vor.u32 %v2116_v47, %v2115_v25  ;;  %vm993_vm15 = vcmp.lt.s32.totalorder %v16552_v52, 2  ;;  %v2121_v33 = vor.u32 4788187, %v2120_v60  ;;  %v16560_v25 = vld [vmem:[#allocation32_spill] sm:$0xff] }
 0x3a2   : > { %v3769_v38 = vshll.u32 %v12246_v23, 30  ;;  %v999_v13 = vsel %vm997_vm6, %v998_v54, %v16551_v39  ;;  %vm889_vm11 = vcmp.lt.s32.totalorder %v888_v26, 2  ;;  %vm890_vm7 = vcmp.eq.s32.totalorder %v888_v26, 0 }
 0x3a3   : > { %v9207_v7 = vpop.eup %9206  ;;  %vm893_vm13 = vcmp.eq.s32.totalorder %v888_v26, 2  ;;  %v1000_v16 = vsel %vm993_vm15, %v996_v0, %v999_v13  ;;  %vm1097_vm1 = vcmp.lt.s32.totalorder %v16554_v58, 2  ;;  %vm1098_vm14 = vcmp.eq.s32.totalorder %v16554_v58, 0 }
 0x3a4   : > { %v12256_v43 = vsub.s32 %v3766_v27, %v3769_v38  ;;  %v894_v40 = vxor.u32 2147483648, %v9207_v7  ;;  %v1099_v21 = vxor.u32 2147483648, %v16555_v44  ;;  %vm1101_vm5 = vcmp.eq.s32.totalorder %v16554_v58, 2 }
 0x3a5   : > { %v9209_v18 = vpop.eup %9208  ;;  %v1102_v15 = vxor.u32 2147483648, %v16556_v1  ;;  %v16557_v27 = vand.u32 2147483647, %v10393_v56  ;;  %v1192_v39 = vsub.s32 4, %v16560_v25  ;;  %vm2252_vm15 = vcmp.lt.s32.totalorder %v11899_v35, 0 }
 0x3a6   : > { %v3772_v22 = vsub.s32 0, %v12256_v43  ;;  %v891_v24 = vxor.u32 2147483648, %v9209_v18  ;;  %v895_v47 = vsel %vm893_vm13, %v894_v40, %v9209_v18  ;;  %v1100_v48 = vsel %vm1098_vm14, %v16556_v1, %v1099_v21  ;;  %v16562_v18 = vld [vmem:[#allocation5_spill] sm:$0xff] }
 0x3a7   : > { %vm12266_vm6 = vcmp.le.f32.partialorder %v16557_v27, 0.7853982  ;;  %v1103_v37 = vsel %vm1101_vm5, %v1102_v15, %v16555_v44  ;;  %vm1094_vm13 = vweird.f32 %v16561_v8  ;;  %v1193_v13 = vsel %vm1108_vm3, %v1192_v39, %v16560_v25 }
 0x3a8   : > { %v1194_v29 = vsel %vm12266_vm6, %v10393_v56, %v11017_v53  ;;  %v8349_v60 = vmin.u32 %v3772_v22, %v12256_v43  ;;  %v892_v52 = vsel %vm890_vm7, %v9207_v7, %v891_v24  ;;  %v1104_v54 = vsel %vm1097_vm1, %v1100_v48, %v1103_v37 }
 0x3a9   : > { %v896_v0 = vsel %vm889_vm11, %v892_v52, %v895_v47  ;;  %v1105_v38 = vsel %vm1094_vm13, nan, %v1104_v54  ;;  %9210 = vcosq.f32 %v1194_v29  ;;  %v2122_v53 = vand.u32 2147483647, %v2121_v33  ;;  %v16566_v33 = vld [vmem:[#allocation43_spill] sm:$0xff] }
 0x3aa   : > { %v3774_v40 = vclz %v8349_v60  ;;  %v897_v7 = vsel %vm886_vm2, nan, %v896_v0  ;;  %vm990_vm5 = vweird.f32 %v16562_v18  ;;  %v1195_v21 = vsel %vm12266_vm6, 0, %v1193_v13  ;;  %v16572_v0 = vld [vmem:[#allocation45_spill] sm:$0xff] }
 0x3ab   : > { %v4018_v44 = vpack.c.bf16 %v897_v7, %v793_v9  ;;  %v1001_v58 = vsel %vm990_vm5, nan, %v1000_v16  ;;  %9212 = vsinq.f32 %v1194_v29  ;;  %v16563_v15 = vand.u32 2147483647, %v10716_v11  ;;  %v16567_v16 = vld [vmem:[#allocation28_spill] sm:$0xff]  ;;  %v16568_v29 = vld [vmem:[#allocation22_spill] sm:$0xff] }
 0x3ac   : > { %v8350_v26 = vadd.s32 4294967294, %v3774_v40  ;;  %v4019_v1 = vpack.c.bf16 %v1105_v38, %v1001_v58  ;;  %v1296_v24 = vsub.s32 4, %v16566_v33  ;;  %v2124_v3 = vcvt.s32.f32 %v2117_v55 }
 0x3ad   : > { %vm12294_vm11 = vcmp.le.f32.partialorder %v16563_v15, 0.7853982  ;;  %8789 = vmatprep.mubr.bf16.mxu1 %v4018_v44  ;;  %v1199_v47 = vadd.s32 3, %v1195_v21  ;;  %v1400_v27 = vsub.s32 4, %v16567_v16  ;;  %v3762_v30 = vadd.s32 %v12211_v28, %v12217_v45 }
 0x3ae   : > { %v1298_v9 = vsel %vm12294_vm11, %v10716_v11, %v11264_v32  ;;  %vm8351_vm3 = vcmp.lt.s32.totalorder %v8350_v26, 0  ;;  %8790 = vmatmul.mubr.bf16.vlgmr.msra.gmra.mrb[16].mxu1 %v4019_v1  ;;  %v1297_v48 = vsel %vm1212_vm8, %v1296_v24, %v16566_v33  ;;  %v12309_v55 = vmul.f32 %v2124_v3, %v2122_v53 }
 0x3af   : > { %9214 = vcosq.f32 %v1298_v9  ;;  %v3777_v37 = vsel %vm8351_vm3, 0, %v8350_v26  ;;  %v1299_v25 = vsel %vm12294_vm11, 0, %v1297_v48  ;;  %v16569_v60 = vand.u32 2147483647, %v16568_v29 }
 0x3b0   : > { %9216 = vsinq.f32 %v1298_v9  ;;  %v3778_v32 = vsub.s32 32, %v3777_v37  ;;  %v3782_v39 = vsub.s32 4294967266, %v3777_v37  ;;  %v1401_v45 = vsel %vm1316_vm10, %v1400_v27, %v16567_v16  ;;  %v16577_v16 = vld [vmem:[#allocation38_spill] sm:$0xff] }
 0x3b1   : > { %vm12315_vm2 = vcmp.le.f32.partialorder %v16569_v60, 0.7853982  ;;  %v3686_v52 = vxor.u32 2147483648, %v12157_v49  ;;  %v1200_v8 = vand.u32 3, %v1199_v47  ;;  %v1303_v54 = vadd.s32 3, %v1299_v25 }
 0x3b2   : > { %v1402_v38 = vsel %vm12315_vm2, %v16568_v29, %v16572_v0  ;;  %v16573_v13 = vxor.u32 2147483648, %v12149_v51  ;;  %v3780_v40 = vshrl.u32 %v3762_v30, %v3778_v32  ;;  %v3783_v7 = vadd.s32 127, %v3782_v39 }
 0x3b3   : > { %9218 = vcosq.f32 %v1402_v38  ;;  %v9211_v18 = vpop.eup %9210  ;;  %v3998_v44 = vxor.u32 2147483648, %v12242_v12  ;;  %v1304_v58 = vand.u32 3, %v1303_v54  ;;  %v1403_v21 = vsel %vm12315_vm2, 0, %v1401_v45 }
 0x3b4   : > { %v12332_v53 = vsel %vm2252_vm15, %v16573_v13, %v12149_v51  ;;  %9220 = vsinq.f32 %v1402_v38  ;;  %v2126_v26 = vxor.u32 2147483648, %v12309_v55  ;;  %v3779_v1 = vshll.u32 %v12256_v43, %v3777_v37 }
 0x3b5   : > { %v3784_v15 = vshll.u32 %v3783_v7, 23  ;;  %v1206_v22 = vxor.u32 2147483648, %v9211_v18  ;;  %v9213_v33 = vpop.eup %9212  ;;  %vm1198_vm10 = vweird.f32 %v10393_v56  ;;  %vm1201_vm8 = vcmp.lt.s32.totalorder %v1200_v8, 2 }
 0x3b6   : > { %vm1202_vm7 = vcmp.eq.s32.totalorder %v1200_v8, 0  ;;  %vm1302_vm1 = vweird.f32 %v10716_v11  ;;  %vm2044_vm14 = vcmp.lt.s32.totalorder %v11970_v61, 0  ;;  %v3781_v51 = vor.u32 %v3780_v40, %v3779_v1  ;;  %v16578_v40 = vld [vmem:[#allocation50_spill] sm:$0xff] }
 0x3b7   : > { %v1203_v24 = vxor.u32 2147483648, %v9213_v33  ;;  %vm1205_vm6 = vcmp.eq.s32.totalorder %v1200_v8, 2  ;;  %v1407_v3 = vadd.s32 3, %v1403_v21  ;;  %vm1305_vm13 = vcmp.lt.s32.totalorder %v1304_v58, 2  ;;  %v16582_v8 = vld [vmem:[#allocation54_spill] sm:$0xff] }
 0x3b8   : > { %v1207_v47 = vsel %vm1205_vm6, %v1206_v22, %v9213_v33  ;;  %v16574_v9 = vand.u32 2147483647, %v10538_v17  ;;  %v1504_v27 = vsub.s32 4, %v16577_v16  ;;  %v3785_v48 = vor.u32 4788187, %v3784_v15  ;;  %v16583_v22 = vld [vmem:[#allocation60_spill] sm:$0xff] }
 0x3b9   : > { %v9215_v30 = vpop.eup %9214  ;;  %v1204_v37 = vsel %vm1202_vm7, %v9211_v18, %v1203_v24  ;;  %vm1306_vm11 = vcmp.eq.s32.totalorder %v1304_v58, 0  ;;  %vm1309_vm3 = vcmp.eq.s32.totalorder %v1304_v58, 2  ;;  %v1408_v54 = vand.u32 3, %v1407_v3 }
 0x3ba   : > { %vm12344_vm5 = vcmp.le.f32.partialorder %v16574_v9, 0.7853982  ;;  %v9217_v32 = vpop.eup %9216  ;;  %v1310_v39 = vxor.u32 2147483648, %v9215_v30  ;;  %v1505_v60 = vsel %vm1420_vm12, %v1504_v27, %v16577_v16  ;;  %v1208_v28 = vsel %vm1201_vm8, %v1204_v37, %v1207_v47 }
 0x3bb   : > { %v1506_v25 = vsel %vm12344_vm5, %v10538_v17, %v11031_v59  ;;  %v1307_v45 = vxor.u32 2147483648, %v9217_v32  ;;  %v1507_v0 = vsel %vm12344_vm5, 0, %v1505_v60  ;;  %v16579_v59 = vand.u32 2147483647, %v16578_v40 }
 0x3bc   : > { %9222 = vcosq.f32 %v1506_v25  ;;  %v1311_v38 = vsel %vm1309_vm3, %v1310_v39, %v9217_v32  ;;  %v1511_v13 = vadd.s32 3, %v1507_v0  ;;  %v3786_v21 = vand.u32 2147483647, %v3785_v48  ;;  %v16587_v32 = vld [vmem:[#allocation62_spill] sm:$0xff] }
 0x3bd   : > { %9224 = vsinq.f32 %v1506_v25  ;;  %vm12361_vm2 = vcmp.le.f32.partialorder %v16579_v59, 0.7853982  ;;  %v9219_v18 = vpop.eup %9218  ;;  %v1308_v1 = vsel %vm1306_vm11, %v9215_v30, %v1307_v45  ;;  %v1608_v15 = vsub.s32 4, %v16582_v8  ;;  %v16588_v0 = vld [vmem:[#allocation42_spill] sm:$0xff]  ;;  %v16592_v59 = vld [vmem:[#allocation51_spill] sm:$0xff] }
 0x3be   : > { %v1610_v33 = vsel %vm12361_vm2, %v16578_v40, %v16583_v22  ;;  %v9221_v24 = vpop.eup %9220  ;;  %v1209_v3 = vsel %vm1198_vm10, nan, %v1208_v28  ;;  %v1312_v47 = vsel %vm1305_vm13, %v1308_v1, %v1311_v38  ;;  %v1414_v9 = vxor.u32 2147483648, %v9219_v18  ;;  %v16593_v1 = vld [vmem:[#allocation58_spill] sm:$0xff] }
 0x3bf   : > { %9226 = vcosq.f32 %v1610_v33  ;;  %v1313_v43 = vsel %vm1302_vm1, nan, %v1312_v47  ;;  %v1411_v16 = vxor.u32 2147483648, %v9221_v24  ;;  %v1512_v27 = vand.u32 3, %v1511_v13 }
 0x3c0   : > { %v1609_v30 = vsel %vm1524_vm0, %v1608_v15, %v16582_v8  ;;  %v12382_v48 = vsel %vm2044_vm14, %v2126_v26, %v12309_v55  ;;  %v3788_v56 = vcvt.s32.f32 %v3781_v51  ;;  %v4020_v37 = vpack.c.bf16 %v1313_v43, %v1209_v3  ;;  %v16597_v26 = vld [vmem:[#allocation56_spill] sm:$0xff] }
 0x3c1   : > { %vm1409_vm12 = vcmp.lt.s32.totalorder %v1408_v54, 2  ;;  %vm1410_vm10 = vcmp.eq.s32.totalorder %v1408_v54, 0  ;;  %vm1413_vm8 = vcmp.eq.s32.totalorder %v1408_v54, 2  ;;  %v1611_v11 = vsel %vm12361_vm2, 0, %v1609_v30 }
 0x3c2   : > { %9228 = vsinq.f32 %v1610_v33  ;;  %v12386_v58 = vmul.f32 %v3788_v56, %v3786_v21  ;;  %8793 = vmatprep.mubr.bf16.mxu1 %v4020_v37  ;;  %vm1406_vm7 = vweird.f32 %v16568_v29  ;;  %v1415_v25 = vsel %vm1413_vm8, %v1414_v9, %v9221_v24 }
 0x3c3   : > { %vm1510_vm0 = vweird.f32 %v10538_v17  ;;  %v16584_v55 = vand.u32 2147483647, %v11380_v20  ;;  %v1412_v51 = vsel %vm1410_vm10, %v9219_v18, %v1411_v16  ;;  %vm1513_vm6 = vcmp.lt.s32.totalorder %v1512_v27, 2 }
 0x3c4   : > { %v1712_v39 = vsub.s32 4, %v16587_v32  ;;  %v1615_v45 = vadd.s32 3, %v1611_v11  ;;  %v16589_v38 = vand.u32 2147483647, %v16588_v0  ;;  %v1816_v7 = vsub.s32 4, %v16592_v59 }
 0x3c5   : > { %vm12392_vm1 = vcmp.le.f32.partialorder %v16584_v55, 0.7853982  ;;  %v1416_v15 = vsel %vm1409_vm12, %v1412_v51, %v1415_v25  ;;  %vm1514_vm5 = vcmp.eq.s32.totalorder %v1512_v27, 0  ;;  %vm1517_vm11 = vcmp.eq.s32.totalorder %v1512_v27, 2 }
 0x3c6   : > { %v1714_v60 = vsel %vm12392_vm1, %v11380_v20, %v11758_v41  ;;  %v9223_v28 = vpop.eup %9222  ;;  %vm12403_vm13 = vcmp.le.f32.partialorder %v16589_v38, 0.7853982  ;;  %v1713_v21 = vsel %vm1628_vm9, %v1712_v39, %v16587_v32  ;;  %v1817_v47 = vsel %vm1732_vm4, %v1816_v7, %v16592_v59 }
 0x3c7   : > { %9230 = vcosq.f32 %v1714_v60  ;;  %v1518_v18 = vxor.u32 2147483648, %v9223_v28  ;;  %v1818_v41 = vsel %vm12403_vm13, %v16588_v0, %v16593_v1  ;;  %v9225_v8 = vpop.eup %9224  ;;  %v1715_v22 = vsel %vm12392_vm1, 0, %v1713_v21 }
 0x3c8   : > { %9232 = vsinq.f32 %v1714_v60  ;;  %v1515_v33 = vxor.u32 2147483648, %v9225_v8  ;;  %v1719_v3 = vadd.s32 3, %v1715_v22  ;;  %v1616_v43 = vand.u32 3, %v1615_v45 }
 0x3c9   : > { %v1519_v24 = vsel %vm1517_vm11, %v1518_v18, %v9225_v8  ;;  %v9227_v9 = vpop.eup %9226  ;;  %v1819_v16 = vsel %vm12403_vm13, 0, %v1817_v47  ;;  %9234 = vcosq.f32 %v1818_v41  ;;  %v16594_v54 = vand.u32 2147483647, %v11192_v42 }
 0x3ca   : > { %v1516_v56 = vsel %vm1514_vm5, %v9223_v28, %v1515_v33  ;;  %v1622_v37 = vxor.u32 2147483648, %v9227_v9  ;;  %v1720_v11 = vand.u32 3, %v1719_v3  ;;  %9236 = vsinq.f32 %v1818_v41 }
 0x3cb   : > { %vm12425_vm9 = vcmp.le.f32.partialorder %v16594_v54, 0.7853982  ;;  %v1520_v25 = vsel %vm1513_vm6, %v1516_v56, %v1519_v24  ;;  %v1823_v55 = vadd.s32 3, %v1819_v16  ;;  %v1920_v51 = vsub.s32 4, %v16597_v26 }
 0x3cc   : > { %v1922_v32 = vsel %vm12425_vm9, %v11192_v42, %v11740_v63  ;;  %v9229_v39 = vpop.eup %9228  ;;  %v1417_v60 = vsel %vm1406_vm7, nan, %v1416_v15  ;;  %v1521_v28 = vsel %vm1510_vm0, nan, %v1520_v25  ;;  %vm1614_vm4 = vweird.f32 %v16578_v40 }
 0x3cd   : > { %vm1718_vm3 = vweird.f32 %v11380_v20  ;;  %v4021_v27 = vpack.c.bf16 %v1521_v28, %v1417_v60  ;;  %vm1617_vm2 = vcmp.lt.s32.totalorder %v1616_v43, 2  ;;  %v1619_v45 = vxor.u32 2147483648, %v9229_v39 }
 0x3ce   : > { %v1824_v38 = vand.u32 3, %v1823_v55  ;;  %vm1618_vm12 = vcmp.eq.s32.totalorder %v1616_v43, 0  ;;  %vm1621_vm10 = vcmp.eq.s32.totalorder %v1616_v43, 2  ;;  %vm16598_vm8 = vcmp.lt.s32.totalorder %v11192_v42, 0 }
 0x3cf   : > { %v1921_v63 = vsel %vm16598_vm8, %v1920_v51, %v16597_v26  ;;  %9238 = vcosq.f32 %v1922_v32  ;;  %8794 = vmatmul.mubr.bf16.gmra.mrb[20].mxu1 %v4021_v27  ;;  %v1620_v13 = vsel %vm1618_vm12, %v9227_v9, %v1619_v45  ;;  %v1623_v17 = vsel %vm1621_vm10, %v1622_v37, %v9229_v39 }
 0x3d0   : > { %vm1721_vm7 = vcmp.lt.s32.totalorder %v1720_v11, 2  ;;  %vm1722_vm0 = vcmp.eq.s32.totalorder %v1720_v11, 0  ;;  %vm1725_vm1 = vcmp.eq.s32.totalorder %v1720_v11, 2  ;;  %v1923_v18 = vsel %vm12425_vm9, 0, %v1921_v63 }
 0x3d1   : > { %v9231_v29 = vpop.eup %9230  ;;  %9240 = vsinq.f32 %v1922_v32  ;;  %vm1826_vm6 = vcmp.eq.s32.totalorder %v1824_v38, 0  ;;  %v16599_v1 = vand.u32 2147483647, %v11609_v46  ;;  %v2024_v8 = vsub.s32 4, %v11869_v4 }
 0x3d2   : > { %v9233_v59 = vpop.eup %9232  ;;  %v1726_v7 = vxor.u32 2147483648, %v9231_v29  ;;  %v1624_v15 = vsel %vm1617_vm2, %v1620_v13, %v1623_v17  ;;  %v1927_v33 = vadd.s32 3, %v1923_v18  ;;  %vm1829_vm5 = vcmp.eq.s32.totalorder %v1824_v38, 2 }
 0x3d3   : > { %v1723_v21 = vxor.u32 2147483648, %v9233_v59  ;;  %vm12448_vm13 = vcmp.le.f32.partialorder %v16599_v1, 0.7853982  ;;  %v9235_v3 = vpop.eup %9234  ;;  %vm16602_vm11 = vcmp.lt.s32.totalorder %v11609_v46, 0  ;;  %v1625_v56 = vsel %vm1614_vm4, nan, %v1624_v15 }
 0x3d4   : > { %v1727_v22 = vsel %vm1725_vm1, %v1726_v7, %v9233_v59  ;;  %v2026_v24 = vsel %vm12448_vm13, %v11609_v46, %v12147_v14  ;;  %v2025_v9 = vsel %vm16602_vm11, %v2024_v8, %v11869_v4  ;;  %v9237_v16 = vpop.eup %9236  ;;  %v1830_v43 = vxor.u32 2147483648, %v9235_v3  ;;  %v16609_v59 = vld [vmem:[#allocation64_spill] sm:$0xff] }
 0x3d5   : > { %v1724_v47 = vsel %vm1722_vm0, %v9231_v29, %v1723_v21  ;;  %9242 = vcosq.f32 %v2026_v24  ;;  %v2027_v30 = vsel %vm12448_vm13, 0, %v2025_v9  ;;  %v1827_v37 = vxor.u32 2147483648, %v9237_v16 }
 0x3d6   : > { %v1728_v54 = vsel %vm1721_vm7, %v1724_v47, %v1727_v22  ;;  %9244 = vsinq.f32 %v2026_v24  ;;  %v16603_v25 = vand.u32 2147483647, %v11970_v61  ;;  %v1831_v55 = vsel %vm1829_vm5, %v1830_v43, %v9237_v16 }
 0x3d7   : > { %v1729_v14 = vsel %vm1718_vm3, nan, %v1728_v54  ;;  %v1928_v26 = vand.u32 3, %v1927_v33  ;;  %v2031_v51 = vadd.s32 3, %v2027_v30  ;;  %vm1822_vm2 = vweird.f32 %v16588_v0 }
 0x3d8   : > { %vm12470_vm9 = vcmp.le.f32.partialorder %v16603_v25, 0.7853982  ;;  %v4022_v11 = vpack.c.bf16 %v1729_v14, %v1625_v56  ;;  %v1828_v32 = vsel %vm1826_vm6, %v9235_v3, %v1827_v37  ;;  %v2128_v40 = vsub.s32 4, %v12186_v31 }
 0x3d9   : > { %v2130_v20 = vsel %vm12470_vm9, %v11970_v61, %v12382_v48  ;;  %v9239_v39 = vpop.eup %9238  ;;  %vm1825_vm4 = vcmp.lt.s32.totalorder %v1824_v38, 2  ;;  %vm1926_vm3 = vweird.f32 %v11192_v42  ;;  %v2032_v60 = vand.u32 3, %v2031_v51 }
 0x3da   : > { %8797 = vmatprep.mubr.bf16.mxu1 %v4022_v11  ;;  %9246 = vcosq.f32 %v2130_v20  ;;  %v1832_v28 = vsel %vm1825_vm4, %v1828_v32, %v1831_v55  ;;  %v1934_v27 = vxor.u32 2147483648, %v9239_v39  ;;  %v2129_v45 = vsel %vm2044_vm14, %v2128_v40, %v12186_v31  ;;  %v16614_v40 = vld [vmem:[#allocation8_spill] sm:$0xff] }
 0x3db   : > { %9248 = vsinq.f32 %v2130_v20  ;;  %v9241_v63 = vpop.eup %9240  ;;  %vm1929_vm12 = vcmp.lt.s32.totalorder %v1928_v26, 2  ;;  %vm1930_vm10 = vcmp.eq.s32.totalorder %v1928_v26, 0  ;;  %vm1933_vm8 = vcmp.eq.s32.totalorder %v1928_v26, 2 }
 0x3dc   : > { %v2131_v48 = vsel %vm12470_vm9, 0, %v2129_v45  ;;  %v1931_v29 = vxor.u32 2147483648, %v9241_v63  ;;  %v1935_v38 = vsel %vm1933_vm8, %v1934_v27, %v9241_v63  ;;  %v16606_v13 = vand.u32 2147483647, %v11530_v19  ;;  %v16619_v63 = vld [vmem:[#allocation26_spill] sm:$0xff] }
 0x3dd   : > { %v2232_v7 = vsub.s32 4, %v16609_v59  ;;  %v1833_v31 = vsel %vm1822_vm2, nan, %v1832_v28  ;;  %vm2034_vm14 = vcmp.eq.s32.totalorder %v2032_v60, 0  ;;  %v2135_v18 = vadd.s32 3, %v2131_v48 }
 0x3de   : > { %vm12489_vm7 = vcmp.le.f32.partialorder %v16606_v13, 0.7853982  ;;  %v1932_v41 = vsel %vm1930_vm10, %v9239_v39, %v1931_v29  ;;  %vm16610_vm0 = vcmp.lt.s32.totalorder %v11530_v19, 0  ;;  %v2336_v15 = vsub.s32 4, %v12037_v50  ;;  %v16620_v13 = vld [vmem:[#allocation15_spill] sm:$0xff] }
 0x3df   : > { %v2234_v21 = vsel %vm12489_vm7, %v11530_v19, %v11997_v6  ;;  %v9243_v1 = vpop.eup %9242  ;;  %v2233_v8 = vsel %vm16610_vm0, %v2232_v7, %v16609_v59  ;;  %v1936_v0 = vsel %vm1929_vm12, %v1932_v41, %v1935_v38  ;;  %vm2037_vm1 = vcmp.eq.s32.totalorder %v2032_v60, 2  ;;  %v16634_v59 = vld [vmem:[#allocation12_spill] sm:$0xff] }
 0x3e0   : > { %9250 = vcosq.f32 %v2234_v21  ;;  %v9245_v22 = vpop.eup %9244  ;;  %v2038_v33 = vxor.u32 2147483648, %v9243_v1  ;;  %v2235_v24 = vsel %vm12489_vm7, 0, %v2233_v8  ;;  %v1937_v6 = vsel %vm1926_vm3, nan, %v1936_v0 }
 0x3e1   : > { %9252 = vsinq.f32 %v2234_v21  ;;  %v2035_v3 = vxor.u32 2147483648, %v9245_v22  ;;  %v16611_v47 = vand.u32 2147483647, %v11899_v35  ;;  %v4023_v16 = vpack.c.bf16 %v1937_v6, %v1833_v31 }
 0x3e2   : > { %v2039_v54 = vsel %vm2037_vm1, %v2038_v33, %v9245_v22  ;;  %v2136_v43 = vand.u32 3, %v2135_v18  ;;  %v2239_v30 = vadd.s32 3, %v2235_v24  ;;  %vm2033_vm13 = vcmp.lt.s32.totalorder %v2032_v60, 2  ;;  %v16618_v60 = vld [vmem:[#allocation13_spill] sm:$0xff] }
 0x3e3   : > { %vm12511_vm6 = vcmp.le.f32.partialorder %v16611_v47, 0.7853982  ;;  %v2036_v56 = vsel %vm2034_vm14, %v9243_v1, %v2035_v3  ;;  %v2337_v42 = vsel %vm2252_vm15, %v2336_v15, %v12037_v50  ;;  %v3790_v25 = vxor.u32 2147483648, %v12386_v58  ;;  %8798 = vmatmul.mubr.bf16.gmra.mrb[24].mxu1 %v4023_v16  ;;  %v16625_v22 = vld [vmem:[#allocation25_spill] sm:$0xff] }
 0x3e4   : > { %v2338_v14 = vsel %vm12511_vm6, %v11899_v35, %v12332_v53  ;;  %v9247_v37 = vpop.eup %9246  ;;  %v2040_v4 = vsel %vm2033_vm13, %v2036_v56, %v2039_v54  ;;  %v2339_v11 = vsel %vm12511_vm6, 0, %v2337_v42  ;;  %v2240_v51 = vand.u32 3, %v2239_v30 }
 0x3e5   : > { %9254 = vcosq.f32 %v2338_v14  ;;  %v9249_v55 = vpop.eup %9248  ;;  %v2142_v26 = vxor.u32 2147483648, %v9247_v37  ;;  %v2343_v32 = vadd.s32 3, %v2339_v11  ;;  %vm2030_vm15 = vweird.f32 %v11609_v46 }
 0x3e6   : > { %9256 = vsinq.f32 %v2338_v14  ;;  %vm2134_vm5 = vweird.f32 %v11970_v61  ;;  %v2139_v50 = vxor.u32 2147483648, %v9249_v55  ;;  %vm2141_vm11 = vcmp.eq.s32.totalorder %v2136_v43, 2  ;;  %v16626_v61 = vld [vmem:[#allocation44_spill] sm:$0xff] }
 0x3e7   : > { %vm2138_vm9 = vcmp.eq.s32.totalorder %v2136_v43, 0  ;;  %v2143_v53 = vsel %vm2141_vm11, %v2142_v26, %v9249_v55  ;;  %v16615_v20 = vand.u32 2147483647, %v16614_v40  ;;  %v2440_v28 = vsub.s32 4, %v16618_v60 }
 0x3e8   : > { %v2041_v27 = vsel %vm2030_vm15, nan, %v2040_v4  ;;  %vm2137_vm4 = vcmp.lt.s32.totalorder %v2136_v43, 2  ;;  %v2140_v45 = vsel %vm2138_vm9, %v9247_v37, %v2139_v50  ;;  %vm2242_vm3 = vcmp.eq.s32.totalorder %v2240_v51, 0  ;;  %v16628_v43 = vld [vmem:[#allocation9_spill] sm:$0xff]  ;;  %v16629_v37 = vld [vmem:[#allocation6_spill] sm:$0xff] }
 0x3e9   : > { %vm12530_vm2 = vcmp.le.f32.partialorder %v16615_v20, 0.7853982  ;;  %v2144_v29 = vsel %vm2137_vm4, %v2140_v45, %v2143_v53  ;;  %v2344_v38 = vand.u32 3, %v2343_v32  ;;  %v16621_v17 = vand.u32 2147483647, %v16620_v13 }
 0x3ea   : > { %v2442_v46 = vsel %vm12530_vm2, %v16614_v40, %v16619_v63  ;;  %v9251_v48 = vpop.eup %9250  ;;  %v2145_v31 = vsel %vm2134_vm5, nan, %v2144_v29  ;;  %vm16624_vm10 = vcmp.lt.s32.totalorder %v16614_v40, 0  ;;  %vm2238_vm8 = vweird.f32 %v11530_v19  ;;  %v16633_v63 = vld [vmem:[#allocation17_spill] sm:$0xff] }
 0x3eb   : > { %vm12541_vm12 = vcmp.le.f32.partialorder %v16621_v17, 0.7853982  ;;  %v9253_v7 = vpop.eup %9252  ;;  %v2246_v18 = vxor.u32 2147483648, %v9251_v48  ;;  %v2441_v21 = vsel %vm16624_vm10, %v2440_v28, %v16618_v60  ;;  %9258 = vcosq.f32 %v2442_v46 }
 0x3ec   : > { %v4024_v1 = vpack.c.bf16 %v2145_v31, %v2041_v27  ;;  %v2243_v41 = vxor.u32 2147483648, %v9253_v7  ;;  %v2443_v8 = vsel %vm12530_vm2, 0, %v2441_v21  ;;  %9260 = vsinq.f32 %v2442_v46  ;;  %v16654_v31 = vld [vmem:[#allocation24_spill] sm:$0xff] }
 0x3ed   : > { %vm2245_vm7 = vcmp.eq.s32.totalorder %v2240_v51, 2  ;;  %v2447_v15 = vadd.s32 3, %v2443_v8  ;;  %v2544_v0 = vsub.s32 4, %v16625_v22  ;;  %v2546_v33 = vsel %vm12541_vm12, %v16620_v13, %v16626_v61 }
 0x3ee   : > { %8801 = vmatprep.mubr.bf16.mxu1 %v4024_v1  ;;  %v2244_v24 = vsel %vm2242_vm3, %v9251_v48, %v2243_v41  ;;  %v2247_v6 = vsel %vm2245_vm7, %v2246_v18, %v9253_v7  ;;  %vm2342_vm14 = vweird.f32 %v11899_v35  ;;  %9262 = vcosq.f32 %v2546_v33  ;;  %v16639_v1 = vld [vmem:[#allocation34_spill] sm:$0xff] }
 0x3ef   : > { %v9255_v3 = vpop.eup %9254  ;;  %vm2241_vm0 = vcmp.lt.s32.totalorder %v2240_v51, 2  ;;  %vm2346_vm1 = vcmp.eq.s32.totalorder %v2344_v38, 0  ;;  %vm16627_vm6 = vcmp.lt.s32.totalorder %v16620_v13, 0  ;;  %9264 = vsinq.f32 %v2546_v33  ;;  %v16632_v51 = vld [vmem:[#allocation20_spill] sm:$0xff] }
 0x3f0   : > { %v2545_v47 = vsel %vm16627_vm6, %v2544_v0, %v16625_v22  ;;  %v9257_v9 = vpop.eup %9256  ;;  %vm2349_vm13 = vcmp.eq.s32.totalorder %v2344_v38, 2  ;;  %v2350_v16 = vxor.u32 2147483648, %v9255_v3  ;;  %v2648_v30 = vsub.s32 4, %v16628_v43 }
 0x3f1   : > { %v2547_v54 = vsel %vm12541_vm12, 0, %v2545_v47  ;;  %v2248_v56 = vsel %vm2241_vm0, %v2244_v24, %v2247_v6  ;;  %v2347_v42 = vxor.u32 2147483648, %v9257_v9  ;;  %v2448_v14 = vand.u32 3, %v2447_v15  ;;  %v16640_v6 = vld [vmem:[#allocation29_spill] sm:$0xff] }
 0x3f2   : > { %v16630_v4 = vand.u32 2147483647, %v16629_v37  ;;  %v2351_v11 = vsel %vm2349_vm13, %v2350_v16, %v9257_v9  ;;  %v2551_v55 = vadd.s32 3, %v2547_v54  ;;  %vm16631_vm5 = vcmp.lt.s32.totalorder %v16629_v37, 0  ;;  %v16644_v16 = vld [vmem:[#allocation36_spill] sm:$0xff] }
 0x3f3   : > { %v2649_v26 = vsel %vm16631_vm5, %v2648_v30, %v16628_v43  ;;  %vm2345_vm11 = vcmp.lt.s32.totalorder %v2344_v38, 2  ;;  %v2348_v50 = vsel %vm2346_vm1, %v9255_v3, %v2347_v42  ;;  %vm2446_vm9 = vweird.f32 %v16614_v40  ;;  %v16645_v43 = vld [vmem:[#allocation49_spill] sm:$0xff] }
 0x3f4   : > { %vm2563_vm15 = vcmp.le.f32.partialorder %v16630_v4, 0.7853982  ;;  %v2352_v20 = vsel %vm2345_vm11, %v2348_v50, %v2351_v11  ;;  %v2249_v28 = vsel %vm2238_vm8, nan, %v2248_v56  ;;  %v2552_v45 = vand.u32 3, %v2551_v55 }
 0x3f5   : > { %v2650_v32 = vsel %vm2563_vm15, %v16629_v37, %v16632_v51  ;;  %v2651_v53 = vsel %vm2563_vm15, 0, %v2649_v26  ;;  %v9259_v60 = vpop.eup %9258  ;;  %v2353_v27 = vsel %vm2342_vm14, nan, %v2352_v20  ;;  %v2752_v46 = vsub.s32 4, %v16633_v63  ;;  %v16647_v20 = vld [vmem:[#allocation39_spill] sm:$0xff] }
 0x3f6   : > { %9266 = vcosq.f32 %v2650_v32  ;;  %v2655_v39 = vadd.s32 3, %v2651_v53  ;;  %v9261_v48 = vpop.eup %9260  ;;  %v4025_v29 = vpack.c.bf16 %v2353_v27, %v2249_v28  ;;  %vm2449_vm2 = vcmp.lt.s32.totalorder %v2448_v14, 2 }
 0x3f7   : > { %9268 = vsinq.f32 %v2650_v32  ;;  %v2454_v38 = vxor.u32 2147483648, %v9259_v60  ;;  %vm2550_vm4 = vweird.f32 %v16620_v13  ;;  %v2451_v17 = vxor.u32 2147483648, %v9261_v48  ;;  %v16651_v13 = vld [vmem:[#allocation47_spill] sm:$0xff] }
 0x3f8   : > { %vm2453_vm3 = vcmp.eq.s32.totalorder %v2448_v14, 2  ;;  %v16635_v7 = vand.u32 2147483647, %v16634_v59  ;;  %vm16638_vm10 = vcmp.lt.s32.totalorder %v16634_v59, 0  ;;  %v9263_v35 = vpop.eup %9262  ;;  %8802 = vmatmul.mubr.bf16.gmra.mrb[28].mxu1 %v4025_v29  ;;  %vm2450_vm8 = vcmp.eq.s32.totalorder %v2448_v14, 0 }
 0x3f9   : > { %v2753_v19 = vsel %vm16638_vm10, %v2752_v46, %v16633_v63  ;;  %v2455_v18 = vsel %vm2453_vm3, %v2454_v38, %v9261_v48  ;;  %v2656_v21 = vand.u32 3, %v2655_v39  ;;  %v9265_v8 = vpop.eup %9264  ;;  %v2452_v15 = vsel %vm2450_vm8, %v9259_v60, %v2451_v17  ;;  %v16652_v46 = vld [vmem:[#allocation57_spill] sm:$0xff] }
 0x3fa   : > { %vm12583_vm12 = vcmp.le.f32.partialorder %v16635_v7, 0.7853982  ;;  %vm2553_vm7 = vcmp.lt.s32.totalorder %v2552_v45, 2  ;;  %vm2557_vm14 = vcmp.eq.s32.totalorder %v2552_v45, 2  ;;  %v2558_v22 = vxor.u32 2147483648, %v9263_v35 }
 0x3fb   : > { %v2754_v41 = vsel %vm12583_vm12, %v16634_v59, %v16639_v1  ;;  %v2456_v0 = vsel %vm2449_vm2, %v2452_v15, %v2455_v18  ;;  %v2555_v61 = vxor.u32 2147483648, %v9265_v8  ;;  %v2755_v33 = vsel %vm12583_vm12, 0, %v2753_v19  ;;  %v16658_v1 = vld [vmem:[#allocation30_spill] sm:$0xff] }
 0x3fc   : > { %9270 = vcosq.f32 %v2754_v41  ;;  %vm2554_vm0 = vcmp.eq.s32.totalorder %v2552_v45, 0  ;;  %v2559_v24 = vsel %vm2557_vm14, %v2558_v22, %v9265_v8  ;;  %v16641_v3 = vand.u32 2147483647, %v16640_v6  ;;  %v16659_v8 = vld [vmem:[#allocation48_spill] sm:$0xff] }
 0x3fd   : > { %9272 = vsinq.f32 %v2754_v41  ;;  %v2556_v9 = vsel %vm2554_vm0, %v9263_v35, %v2555_v61  ;;  %vm2657_vm6 = vcmp.lt.s32.totalorder %v2656_v21, 2  ;;  %v2856_v54 = vsub.s32 4, %v16644_v16  ;;  %v16672_v35 = vld [vmem:[#allocation66_spill] sm:$0xff] }
 0x3fe   : > { %vm12599_vm1 = vcmp.le.f32.partialorder %v16641_v3, 0.7853982  ;;  %v2457_v42 = vsel %vm2446_vm9, nan, %v2456_v0  ;;  %v2560_v14 = vsel %vm2553_vm7, %v2556_v9, %v2559_v24  ;;  %v2759_v4 = vadd.s32 3, %v2755_v33 }
 0x3ff   : > { %v2858_v30 = vsel %vm12599_vm1, %v16640_v6, %v16645_v43  ;;  %v2561_v55 = vsel %vm2550_vm4, nan, %v2560_v14  ;;  %vm16646_vm13 = vcmp.lt.s32.totalorder %v16640_v6, 0  ;;  %vm2658_vm15 = vcmp.eq.s32.totalorder %v2656_v21, 0  ;;  %v16661_v14 = vld [vmem:[#allocation33_spill] sm:$0xff] }
 0x400   : > { %v9267_v56 = vpop.eup %9266  ;;  %9274 = vcosq.f32 %v2858_v30  ;;  %v2857_v51 = vsel %vm16646_vm13, %v2856_v54, %v16644_v16  ;;  %v4026_v32 = vpack.c.bf16 %v2561_v55, %v2457_v42  ;;  %vm2661_vm5 = vcmp.eq.s32.totalorder %v2656_v21, 2 }
 0x401   : > { %v9269_v11 = vpop.eup %9268  ;;  %v2662_v26 = vxor.u32 2147483648, %v9267_v56  ;;  %9276 = vsinq.f32 %v2858_v30  ;;  %v2859_v53 = vsel %vm12599_vm1, 0, %v2857_v51  ;;  %v16648_v39 = vand.u32 2147483647, %v16647_v20  ;;  %v16665_v51 = vld [vmem:[#allocation41_spill] sm:$0xff] }
 0x402   : > { %v2659_v50 = vxor.u32 2147483648, %v9269_v11  ;;  %v2960_v28 = vsub.s32 4, %v16651_v13  ;;  %8805 = vmatprep.mubr.bf16.mxu1 %v4026_v32  ;;  %v2760_v45 = vand.u32 3, %v2759_v4  ;;  %v2863_v63 = vadd.s32 3, %v2859_v53 }
 0x403   : > { %v2663_v40 = vsel %vm2661_vm5, %v2662_v26, %v9269_v11  ;;  %vm12620_vm11 = vcmp.le.f32.partialorder %v16648_v39, 0.7853982  ;;  %vm2654_vm9 = vweird.f32 %v16629_v37  ;;  %vm16653_vm2 = vcmp.lt.s32.totalorder %v16647_v20, 0 }
 0x404   : > { %v2660_v27 = vsel %vm2658_vm15, %v9267_v56, %v2659_v50  ;;  %v2962_v48 = vsel %vm12620_vm11, %v16647_v20, %v16652_v46  ;;  %v2961_v38 = vsel %vm16653_vm2, %v2960_v28, %v16651_v13  ;;  %v2864_v17 = vand.u32 3, %v2863_v63  ;;  %v16666_v50 = vld [vmem:[#allocation53_spill] sm:$0xff] }
 0x405   : > { %v2664_v29 = vsel %vm2657_vm6, %v2660_v27, %v2663_v40  ;;  %9278 = vcosq.f32 %v2962_v48  ;;  %v2963_v7 = vsel %vm12620_vm11, 0, %v2961_v38  ;;  %v16655_v19 = vand.u32 2147483647, %v16654_v31 }
 0x406   : > { %9280 = vsinq.f32 %v2962_v48  ;;  %v9271_v18 = vpop.eup %9270  ;;  %vm2758_vm3 = vweird.f32 %v16634_v59  ;;  %v2967_v21 = vadd.s32 3, %v2963_v7  ;;  %v3064_v41 = vsub.s32 4, %v16658_v1  ;;  %v16671_v7 = vld [vmem:[#allocation40_spill] sm:$0xff] }
 0x407   : > { %vm12638_vm4 = vcmp.le.f32.partialorder %v16655_v19, 0.7853982  ;;  %v9273_v22 = vpop.eup %9272  ;;  %vm2761_vm12 = vcmp.lt.s32.totalorder %v2760_v45, 2  ;;  %vm2762_vm10 = vcmp.eq.s32.totalorder %v2760_v45, 0  ;;  %vm2765_vm8 = vcmp.eq.s32.totalorder %v2760_v45, 2 }
 0x408   : > { %v3066_v15 = vsel %vm12638_vm4, %v16654_v31, %v16659_v8  ;;  %v2766_v0 = vxor.u32 2147483648, %v9271_v18  ;;  %v2665_v61 = vsel %vm2654_vm9, nan, %v2664_v29  ;;  %v2763_v33 = vxor.u32 2147483648, %v9273_v22  ;;  %v16687_v29 = vld [vmem:[#allocation59_spill] sm:$0xff] }
 0x409   : > { %vm16660_vm7 = vcmp.lt.s32.totalorder %v16654_v31, 0  ;;  %9282 = vcosq.f32 %v3066_v15  ;;  %vm2866_vm14 = vcmp.eq.s32.totalorder %v2864_v17, 0  ;;  %vm2869_vm0 = vcmp.eq.s32.totalorder %v2864_v17, 2 }
 0x40a   : > { %v3065_v24 = vsel %vm16660_vm7, %v3064_v41, %v16658_v1  ;;  %v9275_v3 = vpop.eup %9274  ;;  %v2767_v47 = vsel %vm2765_vm8, %v2766_v0, %v9273_v22  ;;  %9284 = vsinq.f32 %v3066_v15  ;;  %v2764_v54 = vsel %vm2762_vm10, %v9271_v18, %v2763_v33 }
 0x40b   : > { %v3067_v9 = vsel %vm12638_vm4, 0, %v3065_v24  ;;  %v9277_v16 = vpop.eup %9276  ;;  %v2870_v43 = vxor.u32 2147483648, %v9275_v3  ;;  %v2968_v30 = vand.u32 3, %v2967_v21  ;;  %v2768_v37 = vsel %vm2761_vm12, %v2764_v54, %v2767_v47 }
 0x40c   : > { %v2867_v56 = vxor.u32 2147483648, %v9277_v16  ;;  %v3071_v42 = vadd.s32 3, %v3067_v9  ;;  %v16662_v4 = vand.u32 2147483647, %v16661_v14  ;;  %v2769_v55 = vsel %vm2758_vm3, nan, %v2768_v37  ;;  %v16674_v9 = vld [vmem:[#allocation65_spill] sm:$0xff] }
 0x40d   : > { %v2871_v26 = vsel %vm2869_vm0, %v2870_v43, %v9277_v16  ;;  %v3168_v32 = vsub.s32 4, %v16665_v51  ;;  %v4027_v53 = vpack.c.bf16 %v2769_v55, %v2665_v61  ;;  %vm2862_vm6 = vweird.f32 %v16640_v6  ;;  %v16678_v43 = vld [vmem:[#allocation63_spill] sm:$0xff] }
 0x40e   : > { %vm12658_vm1 = vcmp.le.f32.partialorder %v16662_v4, 0.7853982  ;;  %v2868_v39 = vsel %vm2866_vm14, %v9275_v3, %v2867_v56  ;;  %vm2865_vm13 = vcmp.lt.s32.totalorder %v2864_v17, 2  ;;  %vm2966_vm15 = vweird.f32 %v16647_v20  ;;  %v16679_v56 = vld [vmem:[#allocation69_spill] sm:$0xff] }
 0x40f   : > { %v3170_v40 = vsel %vm12658_vm1, %v16661_v14, %v16666_v50  ;;  %v9279_v60 = vpop.eup %9278  ;;  %vm16667_vm5 = vcmp.lt.s32.totalorder %v16661_v14, 0  ;;  %8806 = vmatmul.mubr.bf16.gmra.mrb[32].mxu1 %v4027_v53  ;;  %v2872_v28 = vsel %vm2865_vm13, %v2868_v39, %v2871_v26  ;;  %vm2970_vm11 = vcmp.eq.s32.totalorder %v2968_v30, 0 }
 0x410   : > { %9286 = vcosq.f32 %v3170_v40  ;;  %v3169_v59 = vsel %vm16667_vm5, %v3168_v32, %v16665_v51  ;;  %v9281_v13 = vpop.eup %9280  ;;  %vm2973_vm9 = vcmp.eq.s32.totalorder %v2968_v30, 2  ;;  %v2974_v27 = vxor.u32 2147483648, %v9279_v60 }
 0x411   : > { %9288 = vsinq.f32 %v3170_v40  ;;  %v2971_v45 = vxor.u32 2147483648, %v9281_v13  ;;  %v3072_v63 = vand.u32 3, %v3071_v42  ;;  %v3171_v46 = vsel %vm12658_vm1, 0, %v3169_v59  ;;  %v16681_v40 = vld [vmem:[#allocation52_spill] sm:$0xff] }
 0x412   : > { %v16668_v48 = vand.u32 2147483647, %v11124_v5  ;;  %v2975_v38 = vsel %vm2973_vm9, %v2974_v27, %v9281_v13  ;;  %v3175_v17 = vadd.s32 3, %v3171_v46  ;;  %v3272_v19 = vsub.s32 4, %v16671_v7 }
 0x413   : > { %v9283_v21 = vpop.eup %9282  ;;  %v2873_v1 = vsel %vm2862_vm6, nan, %v2872_v28  ;;  %vm2969_vm4 = vcmp.lt.s32.totalorder %v2968_v30, 2  ;;  %v2972_v41 = vsel %vm2970_vm11, %v9279_v60, %v2971_v45  ;;  %vm16673_vm3 = vcmp.lt.s32.totalorder %v11124_v5, 0  ;;  %v16682_v60 = vld [vmem:[#allocation46_spill] sm:$0xff] }
 0x414   : > { %vm12679_vm2 = vcmp.le.f32.partialorder %v16668_v48, 0.7853982  ;;  %v9285_v8 = vpop.eup %9284  ;;  %v2976_v15 = vsel %vm2969_vm4, %v2972_v41, %v2975_v38  ;;  %v3078_v22 = vxor.u32 2147483648, %v9283_v21  ;;  %v3176_v0 = vand.u32 3, %v3175_v17 }
 0x415   : > { %v3274_v18 = vsel %vm12679_vm2, %v11124_v5, %v16672_v35  ;;  %v3273_v61 = vsel %vm16673_vm3, %v3272_v19, %v16671_v7  ;;  %v2977_v33 = vsel %vm2966_vm15, nan, %v2976_v15  ;;  %v3075_v24 = vxor.u32 2147483648, %v9285_v8 }
 0x416   : > { %9290 = vcosq.f32 %v3274_v18  ;;  %vm3077_vm12 = vcmp.eq.s32.totalorder %v3072_v63, 2  ;;  %v4028_v3 = vpack.c.bf16 %v2977_v33, %v2873_v1  ;;  %vm3074_vm10 = vcmp.eq.s32.totalorder %v3072_v63, 0 }
 0x417   : > { %9292 = vsinq.f32 %v3274_v18  ;;  %v3079_v6 = vsel %vm3077_vm12, %v3078_v22, %v9285_v8  ;;  %v3275_v47 = vsel %vm12679_vm2, 0, %v3273_v61  ;;  %vm3604_vm8 = vcmp.lt.s32.totalorder %v16674_v9, 0  ;;  %v16688_v8 = vld [vmem:[#allocation55_spill] sm:$0xff] }
 0x418   : > { %vm3916_vm7 = vcmp.lt.s32.totalorder %v11928_v34, 0  ;;  %vm3070_vm14 = vweird.f32 %v16654_v31  ;;  %v3076_v16 = vsel %vm3074_vm10, %v9283_v21, %v3075_v24  ;;  %v16675_v54 = vand.u32 2147483647, %v11432_v57  ;;  %8809 = vmatprep.mubr.bf16.mxu1 %v4028_v3 }
 0x419   : > { %v3376_v30 = vsub.s32 4, %v16678_v43  ;;  %vm3073_vm1 = vcmp.lt.s32.totalorder %v3072_v63, 2  ;;  %vm3174_vm6 = vweird.f32 %v16661_v14  ;;  %vm3181_vm13 = vcmp.eq.s32.totalorder %v3176_v0, 2 }
 0x41a   : > { %vm12702_vm0 = vcmp.le.f32.partialorder %v16675_v54, 0.7853982  ;;  %v9287_v37 = vpop.eup %9286  ;;  %v3080_v11 = vsel %vm3073_vm1, %v3076_v16, %v3079_v6  ;;  %v3279_v26 = vadd.s32 3, %v3275_v47  ;;  %vm16680_vm15 = vcmp.lt.s32.totalorder %v11432_v57, 0  ;;  %v16698_v47 = vld [vmem:[#allocation70_spill] sm:$0xff] }
 0x41b   : > { %v3378_v42 = vsel %vm12702_vm0, %v11432_v57, %v16679_v56  ;;  %v9289_v4 = vpop.eup %9288  ;;  %v3182_v55 = vxor.u32 2147483648, %v9287_v37  ;;  %v3377_v51 = vsel %vm16680_vm15, %v3376_v30, %v16678_v43  ;;  %v3480_v53 = vsub.s32 4, %v16681_v40 }
 0x41c   : > { %v3179_v32 = vxor.u32 2147483648, %v9289_v4  ;;  %v3379_v50 = vsel %vm12702_vm0, 0, %v3377_v51  ;;  %9294 = vcosq.f32 %v3378_v42  ;;  %vm3177_vm5 = vcmp.lt.s32.totalorder %v3176_v0, 2 }
 0x41d   : > { %vm3178_vm11 = vcmp.eq.s32.totalorder %v3176_v0, 0  ;;  %v3183_v39 = vsel %vm3181_vm13, %v3182_v55, %v9289_v4  ;;  %v16683_v59 = vand.u32 2147483647, %v16682_v60  ;;  %9296 = vsinq.f32 %v3378_v42  ;;  %v16692_v0 = vld [vmem:[#allocation61_spill] sm:$0xff] }
 0x41e   : > { %v3180_v28 = vsel %vm3178_vm11, %v9287_v37, %v3179_v32  ;;  %v3383_v27 = vadd.s32 3, %v3379_v50  ;;  %vm16686_vm2 = vcmp.lt.s32.totalorder %v16682_v60, 0  ;;  %v3081_v46 = vsel %vm3070_vm14, nan, %v3080_v11 }
 0x41f   : > { %vm12720_vm9 = vcmp.le.f32.partialorder %v16683_v59, 0.7853982  ;;  %v3481_v45 = vsel %vm16686_vm2, %v3480_v53, %v16681_v40  ;;  %v3184_v48 = vsel %vm3177_vm5, %v3180_v28, %v3183_v39  ;;  %v3280_v19 = vand.u32 3, %v3279_v26 }
 0x420   : > { %v9291_v63 = vpop.eup %9290  ;;  %v3482_v38 = vsel %vm12720_vm9, %v16682_v60, %v16687_v29  ;;  %v3483_v17 = vsel %vm12720_vm9, 0, %v3481_v45  ;;  %v3185_v7 = vsel %vm3174_vm6, nan, %v3184_v48  ;;  %v3384_v1 = vand.u32 3, %v3383_v27 }
 0x421   : > { %v3286_v35 = vxor.u32 2147483648, %v9291_v63  ;;  %9298 = vcosq.f32 %v3482_v38  ;;  %v9293_v18 = vpop.eup %9292  ;;  %v4029_v21 = vpack.c.bf16 %v3185_v7, %v3081_v46  ;;  %v3487_v31 = vadd.s32 3, %v3483_v17 }
 0x422   : > { %9300 = vsinq.f32 %v3482_v38  ;;  %v3687_v41 = vsel %vm3604_vm8, %v3686_v52, %v12157_v49  ;;  %v12747_v14 = vsel %vm3916_vm7, %v3998_v44, %v12242_v12  ;;  %vm3708_vm4 = vcmp.lt.s32.totalorder %v12043_v10, 0  ;;  %v16693_v12 = vld [vmem:[#allocation67_spill] sm:$0xff] }
 0x423   : > { %v16689_v15 = vand.u32 2147483647, %v16688_v8  ;;  %v3791_v49 = vsel %vm3708_vm4, %v3790_v25, %v12386_v58  ;;  %8810 = vmatmul.mubr.bf16.gmra.mrb[36].mxu1 %v4029_v21  ;;  %v3283_v52 = vxor.u32 2147483648, %v9293_v18  ;;  %v3584_v61 = vsub.s32 4, %v16692_v0 }
 0x424   : > { %vm3278_vm12 = vweird.f32 %v11124_v5  ;;  %vm3281_vm10 = vcmp.lt.s32.totalorder %v3280_v19, 2  ;;  %vm3285_vm14 = vcmp.eq.s32.totalorder %v3280_v19, 2  ;;  %vm3382_vm0 = vweird.f32 %v11432_v57 }
 0x425   : > { %vm12752_vm3 = vcmp.le.f32.partialorder %v16689_v15, 0.7853982  ;;  %vm3282_vm1 = vcmp.eq.s32.totalorder %v3280_v19, 0  ;;  %v3287_v33 = vsel %vm3285_vm14, %v3286_v35, %v9293_v18  ;;  %vm3389_vm6 = vcmp.eq.s32.totalorder %v3384_v1, 2  ;;  %v16705_v15 = vld [vmem:[#allocation68_spill] sm:$0xff] }
 0x426   : > { %v3586_v44 = vsel %vm12752_vm3, %v16688_v8, %v16693_v12  ;;  %v3488_v58 = vand.u32 3, %v3487_v31  ;;  %v9295_v25 = vpop.eup %9294  ;;  %vm16694_vm13 = vcmp.lt.s32.totalorder %v16688_v8, 0  ;;  %v16695_v3 = vand.u32 2147483647, %v16674_v9 }
 0x427   : > { %9302 = vcosq.f32 %v3586_v44  ;;  %v3585_v24 = vsel %vm16694_vm13, %v3584_v61, %v16692_v0  ;;  %v3688_v16 = vsub.s32 4, %v16698_v47  ;;  %v3284_v54 = vsel %vm3282_vm1, %v9291_v63, %v3283_v52  ;;  %v9297_v37 = vpop.eup %9296  ;;  %v16706_v0 = vld [vmem:[#allocation71_spill] sm:$0xff] }
 0x428   : > { %9304 = vsinq.f32 %v3586_v44  ;;  %vm12773_vm15 = vcmp.le.f32.partialorder %v16695_v3, 0.7853982  ;;  %v3390_v20 = vxor.u32 2147483648, %v9295_v25  ;;  %v3587_v43 = vsel %vm12752_vm3, 0, %v3585_v24 }
 0x429   : > { %v3690_v30 = vsel %vm12773_vm15, %v16674_v9, %v3687_v41  ;;  %v3591_v56 = vadd.s32 3, %v3587_v43  ;;  %v3689_v42 = vsel %vm3604_vm8, %v3688_v16, %v16698_v47  ;;  %v16699_v4 = vand.u32 2147483647, %v12043_v10 }
 0x42a   : > { %9306 = vcosq.f32 %v3690_v30  ;;  %v3387_v55 = vxor.u32 2147483648, %v9297_v37  ;;  %v3391_v26 = vsel %vm3389_vm6, %v3390_v20, %v9297_v37  ;;  %v3691_v51 = vsel %vm12773_vm15, 0, %v3689_v42 }
 0x42b   : > { %vm12788_vm5 = vcmp.le.f32.partialorder %v16699_v4, 0.7853982  ;;  %9308 = vsinq.f32 %v3690_v30  ;;  %v9299_v32 = vpop.eup %9298  ;;  %v3288_v50 = vsel %vm3281_vm10, %v3284_v54, %v3287_v33  ;;  %vm3386_vm11 = vcmp.eq.s32.totalorder %v3384_v1, 0 }
 0x42c   : > { %v3792_v40 = vsub.s32 4, %v12246_v23  ;;  %v3794_v53 = vsel %vm12788_vm5, %v12043_v10, %v3791_v49  ;;  %v9301_v39 = vpop.eup %9300  ;;  %vm3385_vm8 = vcmp.lt.s32.totalorder %v3384_v1, 2  ;;  %v3388_v59 = vsel %vm3386_vm11, %v9295_v25, %v3387_v55  ;;  %v16708_v25 = vld [vmem:[#allocation11_spill] sm:$0xff] }
 0x42d   : > { %v3494_v13 = vxor.u32 2147483648, %v9299_v32  ;;  %9310 = vcosq.f32 %v3794_v53  ;;  %v3392_v28 = vsel %vm3385_vm8, %v3388_v59, %v3391_v26  ;;  %vm3486_vm9 = vweird.f32 %v16682_v60 }
 0x42e   : > { %v3491_v27 = vxor.u32 2147483648, %v9301_v39  ;;  %v3592_v45 = vand.u32 3, %v3591_v56  ;;  %v3695_v63 = vadd.s32 3, %v3691_v51  ;;  %v3289_v46 = vsel %vm3278_vm12, nan, %v3288_v50 }
 0x42f   : > { %v3393_v48 = vsel %vm3382_vm0, nan, %v3392_v28  ;;  %vm3490_vm2 = vcmp.eq.s32.totalorder %v3488_v58, 0  ;;  %vm3590_vm3 = vweird.f32 %v16688_v8  ;;  %vm3493_vm10 = vcmp.eq.s32.totalorder %v3488_v58, 2 }
 0x430   : > { %v4030_v38 = vpack.c.bf16 %v3393_v48, %v3289_v46  ;;  %v3793_v17 = vsel %vm3708_vm4, %v3792_v40, %v12246_v23  ;;  %9312 = vsinq.f32 %v3794_v53  ;;  %vm3489_vm14 = vcmp.lt.s32.totalorder %v3488_v58, 2 }
 0x431   : > { %v9303_v29 = vpop.eup %9302  ;;  %v3492_v7 = vsel %vm3490_vm2, %v9299_v32, %v3491_v27  ;;  %v3495_v19 = vsel %vm3493_vm10, %v3494_v13, %v9301_v39  ;;  %vm3597_vm12 = vcmp.eq.s32.totalorder %v3592_v45, 2  ;;  %v3696_v57 = vand.u32 3, %v3695_v63 }
 0x432   : > { %v3598_v35 = vxor.u32 2147483648, %v9303_v29  ;;  %v9305_v5 = vpop.eup %9304  ;;  %8813 = vmatprep.mubr.bf16.mxu1 %v4030_v38  ;;  %v3795_v18 = vsel %vm12788_vm5, 0, %v3793_v17  ;;  %v16702_v21 = vand.u32 2147483647, %v11585_v36  ;;  %v3896_v22 = vsub.s32 4, %v16705_v15 }
 0x433   : > { %v3595_v31 = vxor.u32 2147483648, %v9305_v5  ;;  %v3799_v41 = vadd.s32 3, %v3795_v18  ;;  %v3496_v52 = vsel %vm3489_vm14, %v3492_v7, %v3495_v19  ;;  %vm3593_vm4 = vcmp.lt.s32.totalorder %v3592_v45, 2 }
 0x434   : > { %vm12813_vm0 = vcmp.le.f32.partialorder %v16702_v21, 0.7853982  ;;  %v3599_v23 = vsel %vm3597_vm12, %v3598_v35, %v9305_v5  ;;  %v9307_v49 = vpop.eup %9306  ;;  %vm3594_vm1 = vcmp.eq.s32.totalorder %v3592_v45, 0  ;;  %vm16707_vm6 = vcmp.lt.s32.totalorder %v11585_v36, 0 }
 0x435   : > { %v3898_v61 = vsel %vm12813_vm0, %v11585_v36, %v16706_v0  ;;  %v9309_v12 = vpop.eup %9308  ;;  %v3596_v44 = vsel %vm3594_vm1, %v9303_v29, %v3595_v31  ;;  %v3702_v33 = vxor.u32 2147483648, %v9307_v49  ;;  %v3897_v58 = vsel %vm16707_vm6, %v3896_v22, %v16705_v15 }
 0x436   : > { %v4000_v24 = vsub.s32 4, %v16708_v25  ;;  %v3600_v3 = vsel %vm3593_vm4, %v3596_v44, %v3599_v23  ;;  %v3699_v6 = vxor.u32 2147483648, %v9309_v12  ;;  %v3800_v47 = vand.u32 3, %v3799_v41  ;;  %v12854_v23 = vld [vmem:[%s16106_s4] ss:$0 sm:$0xff] }
 0x437   : > { %9314 = vcosq.f32 %v3898_v61  ;;  %v9311_v16 = vpop.eup %9310  ;;  %v3497_v54 = vsel %vm3486_vm9, nan, %v3496_v52  ;;  %v3601_v20 = vsel %vm3590_vm3, nan, %v3600_v3  ;;  %vm3698_vm13 = vcmp.eq.s32.totalorder %v3696_v57, 0 }
 0x438   : > { %vm3701_vm15 = vcmp.eq.s32.totalorder %v3696_v57, 2  ;;  %v4031_v43 = vpack.c.bf16 %v3601_v20, %v3497_v54  ;;  %v3806_v30 = vxor.u32 2147483648, %v9311_v16  ;;  %v3899_v37 = vsel %vm12813_vm0, 0, %v3897_v58 }
 0x439   : > { %v16709_v56 = vand.u32 2147483647, %v11928_v34  ;;  %v3700_v4 = vsel %vm3698_vm13, %v9307_v49, %v3699_v6  ;;  %v3703_v11 = vsel %vm3701_vm15, %v3702_v33, %v9309_v12  ;;  %9316 = vsinq.f32 %v3898_v61 }
 0x43a   : > { %v4001_v60 = vsel %vm3916_vm7, %v4000_v24, %v16708_v25  ;;  %v9313_v8 = vpop.eup %9312  ;;  %8814 = vmatmul.mubr.bf16.gmra.mrb[40].mxu1 %v4031_v43  ;;  %vm3697_vm11 = vcmp.lt.s32.totalorder %v3696_v57, 2  ;;  %vm3805_vm8 = vcmp.eq.s32.totalorder %v3800_v47, 2  ;;  %vm3802_vm9 = vcmp.eq.s32.totalorder %v3800_v47, 0 }
 0x43b   : > { %vm12834_vm5 = vcmp.le.f32.partialorder %v16709_v56, 0.7853982  ;;  %v3803_v26 = vxor.u32 2147483648, %v9313_v8  ;;  %v3807_v51 = vsel %vm3805_vm8, %v3806_v30, %v9313_v8  ;;  %v3704_v32 = vsel %vm3697_vm11, %v3700_v4, %v3703_v11 }
 0x43c   : > { %v4002_v55 = vsel %vm12834_vm5, %v11928_v34, %v12747_v14  ;;  %v3903_v50 = vadd.s32 3, %v3899_v37  ;;  %v4003_v40 = vsel %vm12834_vm5, 0, %v4001_v60  ;;  %vm3801_vm7 = vcmp.lt.s32.totalorder %v3800_v47, 2 }
 0x43d   : > { %9318 = vcosq.f32 %v4002_v55  ;;  %v3804_v53 = vsel %vm3802_vm9, %v9311_v16, %v3803_v26  ;;  %vm3694_vm2 = vweird.f32 %v16674_v9  ;;  %vm3798_vm3 = vweird.f32 %v12043_v10 }
 0x43e   : > { %9320 = vsinq.f32 %v4002_v55  ;;  %v3808_v39 = vsel %vm3801_vm7, %v3804_v53, %v3807_v51  ;;  %v3705_v59 = vsel %vm3694_vm2, nan, %v3704_v32  ;;  %v4007_v14 = vadd.s32 3, %v4003_v40 }
 0x43f   : > { %v3809_v13 = vsel %vm3798_vm3, nan, %v3808_v39  ;;  %v3904_v45 = vand.u32 3, %v3903_v50  ;;  %vm3902_vm6 = vweird.f32 %v11585_v36  ;;  %vm4006_vm13 = vweird.f32 %v11928_v34 }
 0x440   : > { %v4032_v27 = vpack.c.bf16 %v3809_v13, %v3705_v59  ;;  %v4008_v48 = vand.u32 3, %v4007_v14 }
 0x441   : > { %v9315_v28 = vpop.eup %9314  ;;  %vm3909_vm10 = vcmp.eq.s32.totalorder %v3904_v45, 2  ;;  %vm3906_vm14 = vcmp.eq.s32.totalorder %v3904_v45, 0  ;;  %vm3905_vm12 = vcmp.lt.s32.totalorder %v3904_v45, 2 }
 0x442   : > { %v3910_v63 = vxor.u32 2147483648, %v9315_v28  ;;  %8817 = vmatprep.mubr.bf16.mxu1 %v4032_v27  ;;  %vm4013_vm0 = vcmp.eq.s32.totalorder %v4008_v48, 2  ;;  %vm4010_vm4 = vcmp.eq.s32.totalorder %v4008_v48, 0  ;;  %vm4009_vm1 = vcmp.lt.s32.totalorder %v4008_v48, 2 }
 0x443   : > { %v9317_v46 = vpop.eup %9316 }
 0x444   : > { %v3907_v29 = vxor.u32 2147483648, %v9317_v46  ;;  %v3911_v17 = vsel %vm3909_vm10, %v3910_v63, %v9317_v46 }
 0x446   : > { %v3908_v9 = vsel %vm3906_vm14, %v9315_v28, %v3907_v29 }
 0x447   : > { %v9319_v38 = vpop.eup %9318  ;;  %v3912_v35 = vsel %vm3905_vm12, %v3908_v9, %v3911_v17 }
 0x448   : > { %v9321_v7 = vpop.eup %9320  ;;  %v4014_v19 = vxor.u32 2147483648, %v9319_v38  ;;  %v3913_v21 = vsel %vm3902_vm6, nan, %v3912_v35 }
 0x449   : > { %v4011_v10 = vxor.u32 2147483648, %v9321_v7 }
 0x44a   : > { %v4015_v5 = vsel %vm4013_vm0, %v4014_v19, %v9321_v7 }
 0x44b   : > { %v4012_v57 = vsel %vm4010_vm4, %v9319_v38, %v4011_v10  ;;  %v16715_v10 = vmov 2475754826  }
 0x44c   : > { %v4016_v18 = vsel %vm4009_vm1, %v4012_v57, %v4015_v5  ;;  %v16716_v5 = vmov 2131351028  }
 0x44d   : > { %v4017_v1 = vsel %vm4006_vm13, nan, %v4016_v18  ;;  %v16717_v18 = vmov 2102212464  }
 0x44e   : > { %v4033_v31 = vpack.c.bf16 %v4017_v1, %v3913_v21  ;;  %v16718_v1 = vmov 920167782  }
 0x450   : > { %8818 = vmatmul.mubr.bf16.gmra.mrb[44].mxu1 %v4033_v31 }
 0x481   : > { %v8791_v41 = vpop.f32.mrb[16].mxu1 }
 0x482   : > { %v4148_v15 = vadd.f32 %v8791_v41, %v12854_v23  ;;  %v4139_v22 = vpop.f32.mrb[17].mxu1 }
 0x483   : > { %v4140_v49 = vadd.f32 %v12854_v23, %v4139_v22  ;;  %v8792_v52 = vpop.f32.mrb[18].mxu1 }
 0x484   : > { %v4268_v36 = vand.u32 2147483647, %v4148_v15  ;;  %v4151_v34 = vadd.f32 %v8792_v52, %v12854_v23  ;;  %v4142_v0 = vpop.f32.mrb[19].mxu1 }
 0x485   : > { %v4266_v61 = vand.u32 2147483647, %v4140_v49  ;;  %v4143_v12 = vadd.f32 %v12854_v23, %v4142_v0 }
 0x486   : > { %v4300_v44 = vadd.f32 1.0, %v4268_v36  ;;  %v4269_v33 = vand.u32 2147483647, %v4151_v34 }
 0x487   : > { %v4298_v58 = vadd.f32 1.0, %v4266_v61  ;;  %v4267_v25 = vand.u32 2147483647, %v4143_v12 }
 0x488   : > { %v4332_v24 = vmul.f32 30.0, %v4300_v44  ;;  %v4301_v3 = vadd.f32 1.0, %v4269_v33 }
 0x489   : > { %v4330_v6 = vmul.f32 30.0, %v4298_v58  ;;  %v4299_v54 = vadd.f32 1.0, %v4267_v25 }
 0x48a   : > { %v12860_v47 = vmul.f32 %v4332_v24, %v4148_v15  ;;  %v4333_v16 = vmul.f32 30.0, %v4301_v3 }
 0x48b   : > { %v12862_v20 = vmul.f32 %v4330_v6, %v4140_v49  ;;  %v4331_v11 = vmul.f32 30.0, %v4299_v54 }
 0x48c   : > { %16712 = vst [vmem:[#allocation7_spill] sm:$0xff] %v12860_v47  ;;  %v4602_v43 = vand.u32 2147483647, %v12860_v47  ;;  %v4605_v30 = vand.u32 2139095040, %v12860_v47  ;;  %v12866_v37 = vmul.f32 %v4333_v16, %v4151_v34 }
 0x48d   : > { %16713 = vst [vmem:[#allocation23_spill] sm:$0xff] %v12862_v20  ;;  %v16261_v56 = vand.u32 2147483647, %v12862_v20  ;;  %v4397_v42 = vand.u32 2139095040, %v12862_v20  ;;  %v12875_v53 = vmul.f32 %v4331_v11, %v4143_v12 }
 0x48e   : > { %16714 = vst [vmem:[#allocation21_spill] sm:$0xff] %v12866_v37  ;;  %v4606_v4 = vshrl.u32 %v4605_v30, 23  ;;  %v4609_v60 = vand.u32 8388607, %v4602_v43  ;;  %v4709_v26 = vand.u32 2139095040, %v12866_v37 }
 0x48f   : > { %v4398_v8 = vshrl.u32 %v4397_v42, 23  ;;  %v4401_v55 = vand.u32 8388607, %v16261_v56  ;;  %v4501_v38 = vand.u32 2139095040, %v12875_v53 }
 0x490   : > { %v8377_v51 = vadd.s32 4294967169, %v4606_v4  ;;  %v4710_v50 = vshrl.u32 %v4709_v26, 23  ;;  %v4610_v39 = vor.u32 8388608, %v4609_v60 }
 0x491   : > { %v8369_v32 = vadd.s32 4294967169, %v4398_v8  ;;  %v4402_v59 = vor.u32 8388608, %v4401_v55 }
 0x492   : > { %v4612_v40 = vadd.s32 1, %v8377_v51  ;;  %v8381_v14 = vadd.s32 4294967169, %v4710_v50  ;;  %v12877_v46 = vshll.u32 %v4610_v39, 8 }
 0x493   : > { %v4404_v13 = vadd.s32 1, %v8369_v32  ;;  %v12879_v48 = vshll.u32 %v4402_v59, 8 }
 0x494   : > { %vm4613_vm15 = vcmp.gt.s32.totalorder %v4612_v40, 0  ;;  %v12881_v29 = vadd.s32 1, %v8381_v14 }
 0x495   : > { %v4614_v28 = vsel %vm4613_vm15, %v4612_v40, 0  ;;  %vm4405_vm5 = vcmp.gt.s32.totalorder %v4404_v13, 0 }
 0x496   : > { %v4615_v27 = vshrl.u32 %v4614_v28, 5  ;;  %v4616_v45 = vand.u32 31, %v4614_v28  ;;  %v4406_v63 = vsel %vm4405_vm5, %v4404_v13, 0  ;;  %vm4717_vm2 = vcmp.gt.s32.totalorder %v12881_v29, 0 }
 0x497   : > { %v12885_v9 = vshrl.u32 %v4406_v63, 5  ;;  %v4408_v19 = vand.u32 31, %v4406_v63 }
 0x498   : > { %v4617_v17 = vsub.s32 32, %v4616_v45  ;;  %v4619_v7 = vshll.u32 %v16429_v2, %v4616_v45  ;;  %v4622_v35 = vshll.u32 %v16715_v10, %v4616_v45  ;;  %v4625_v57 = vshll.u32 %v16716_v5, %v4616_v45 }
 0x499   : > { %v4628_v21 = vshll.u32 %v16717_v18, %v4616_v45  ;;  %v4631_v31 = vshll.u32 %v16718_v1, %v4616_v45  ;;  %vm4634_vm11 = vcmp.lt.s32.totalorder %v4615_v27, 1  ;;  %vm4635_vm8 = vcmp.lt.s32.totalorder %v4615_v27, 2 }
 0x49a   : > { %v4620_v41 = vshrl.u32 %v16715_v10, %v4617_v17  ;;  %v4623_v15 = vshrl.u32 %v16716_v5, %v4617_v17  ;;  %v4626_v22 = vshrl.u32 %v16717_v18, %v4617_v17  ;;  %v4618_v49 = vshrl.u32 %v16429_v2, %v4617_v17 }
 0x49b   : > { %v4629_v52 = vshrl.u32 %v16718_v1, %v4617_v17  ;;  %v4632_v36 = vshrl.u32 %v16440_v62, %v4617_v17  ;;  %v4409_v12 = vsub.s32 32, %v4408_v19  ;;  %vm4636_vm9 = vcmp.lt.s32.totalorder %v4615_v27, 3 }
 0x49c   : > { %v4621_v34 = vor.u32 %v4620_v41, %v4619_v7  ;;  %v4624_v0 = vor.u32 %v4623_v15, %v4622_v35  ;;  %v4627_v61 = vor.u32 %v4626_v22, %v4625_v57  ;;  %vm4637_vm7 = vcmp.lt.s32.totalorder %v4615_v27, 4 }
 0x49d   : > { %v4630_v44 = vor.u32 %v4629_v52, %v4628_v21  ;;  %v4633_v33 = vor.u32 %v4632_v36, %v4631_v31  ;;  %v4411_v30 = vshll.u32 %v16429_v2, %v4408_v19  ;;  %v4412_v11 = vshrl.u32 %v16715_v10, %v4409_v12 }
 0x49e   : > { %v4638_v58 = vsel %vm4634_vm11, %v4618_v49, %v4621_v34  ;;  %v4639_v25 = vsel %vm4637_vm7, %v4627_v61, 2102212464  ;;  %v4642_v24 = vsel %vm4634_vm11, %v4621_v34, %v4624_v0  ;;  %v4646_v3 = vsel %vm4634_vm11, %v4624_v0, %v4627_v61 }
 0x49f   : > { %v4640_v6 = vsel %vm4636_vm9, %v4624_v0, %v4639_v25  ;;  %v4643_v16 = vsel %vm4637_vm7, %v4630_v44, 920167782  ;;  %v4647_v54 = vsel %vm4637_vm7, %v4633_v33, 1326507024  ;;  %v4414_v60 = vshll.u32 %v16715_v10, %v4408_v19 }
 0x4a0   : > { %v4644_v42 = vsel %vm4636_vm9, %v4627_v61, %v4643_v16  ;;  %v4648_v4 = vsel %vm4636_vm9, %v4630_v44, %v4647_v54  ;;  %v4641_v55 = vsel %vm4635_vm8, %v4638_v58, %v4640_v6  ;;  %v4415_v32 = vshrl.u32 %v16716_v5, %v4409_v12 }
 0x4a1   : > { %v4645_v26 = vsel %vm4635_vm8, %v4642_v24, %v4644_v42  ;;  %v4649_v51 = vsel %vm4635_vm8, %v4646_v3, %v4648_v4  ;;  %v4413_v14 = vor.u32 %v4412_v11, %v4411_v30  ;;  %v4417_v45 = vshll.u32 %v16716_v5, %v4408_v19 }
 0x4a2   : > { %v12904_v8 = vpop.f32.mrb[20].mxu1  ;;  %v12913_v40 = vmul.u32.u64.low %v12877_v46, %v4649_v51  ;;  %v12914_v39 = vmul.u32.u64.high %v12877_v46, %v4649_v51, %v12913_v40  ;;  %v12917_v59 = vmul.u32.u64.low %v12877_v46, %v4645_v26  ;;  %v12918_v13 = vmul.u32.u64.high %v12877_v46, %v4645_v26, %v12917_v59 }
 0x4a3   : > { %v12910_v50 = vpop.f32.mrb[21].mxu1  ;;  %v4416_v28 = vor.u32 %v4415_v32, %v4414_v60  ;;  %v4418_v27 = vshrl.u32 %v16717_v18, %v4409_v12  ;;  %v4410_v63 = vshrl.u32 %v16429_v2, %v4409_v12  ;;  %v4420_v17 = vshll.u32 %v16717_v18, %v4408_v19 }
 0x4a4   : > { %v4421_v7 = vshrl.u32 %v16718_v1, %v4409_v12  ;;  %v4424_v35 = vshrl.u32 %v16440_v62, %v4409_v12  ;;  %v4657_v57 = vmul.u32 %v12877_v46, %v4641_v55  ;;  %v4423_v31 = vshll.u32 %v16718_v1, %v4408_v19  ;;  %v12949_v54 = vpop.f32.mrb[22].mxu1 }
 0x4a5   : > { %v4419_v21 = vor.u32 %v4418_v27, %v4417_v45  ;;  %vm4426_vm3 = vcmp.lt.s32.totalorder %v12885_v9, 1  ;;  %vm4659_vm10 = vc.u32 %v12914_v39, %v12917_v59  ;;  %v4660_v41 = vadd.s32 1, %v12918_v13 }
 0x4a6   : > { %v4422_v15 = vor.u32 %v4421_v7, %v4420_v17  ;;  %vm4427_vm14 = vcmp.lt.s32.totalorder %v12885_v9, 2  ;;  %v4425_v22 = vor.u32 %v4424_v35, %v4423_v31  ;;  %vm4428_vm12 = vcmp.lt.s32.totalorder %v12885_v9, 3 }
 0x4a7   : > { %vm4429_vm0 = vcmp.lt.s32.totalorder %v12885_v9, 4  ;;  %v4434_v49 = vsel %vm4426_vm3, %v4413_v14, %v4416_v28  ;;  %v4661_v46 = vsel %vm4659_vm10, %v4660_v41, %v12918_v13  ;;  %v4438_v36 = vsel %vm4426_vm3, %v4416_v28, %v4419_v21 }
 0x4a8   : > { %v4431_v52 = vsel %vm4429_vm0, %v4419_v21, 2102212464  ;;  %v4435_v19 = vsel %vm4429_vm0, %v4422_v15, 920167782  ;;  %v4662_v34 = vadd.s32 %v4661_v46, %v4657_v57  ;;  %v4430_v0 = vsel %vm4426_vm3, %v4410_v63, %v4413_v14 }
 0x4a9   : > { %v4436_v61 = vsel %vm4428_vm12, %v4419_v21, %v4435_v19  ;;  %v4439_v12 = vsel %vm4429_vm0, %v4425_v22, 1326507024  ;;  %v4432_v44 = vsel %vm4428_vm12, %v4416_v28, %v4431_v52  ;;  %v4718_v25 = vsel %vm4717_vm2, %v12881_v29, 0 }
 0x4aa   : > { %v4437_v33 = vsel %vm4427_vm14, %v4434_v49, %v4436_v61  ;;  %v4440_v58 = vsel %vm4428_vm12, %v4422_v15, %v4439_v12  ;;  %v4663_v24 = vadd.s32 536870912, %v4662_v34  ;;  %v4502_v4 = vshrl.u32 %v4501_v38, 23  ;;  %v12967_v38 = vpop.f32.mrb[23].mxu1 }
 0x4ab   : > { %v4441_v3 = vsel %vm4427_vm14, %v4438_v36, %v4440_v58  ;;  %v12945_v6 = vmul.u32.u64.low %v12879_v48, %v4437_v33  ;;  %v12946_v16 = vmul.u32.u64.high %v12879_v48, %v4437_v33, %v12945_v6  ;;  %v4433_v29 = vsel %vm4427_vm14, %v4430_v0, %v4432_v44 }
 0x4ac   : > { %v12952_v30 = vmul.u32.u64.low %v12879_v48, %v4441_v3  ;;  %v12953_v42 = vmul.u32.u64.high %v12879_v48, %v4441_v3, %v12952_v30  ;;  %v12957_v11 = vshrl.u32 %v4663_v24, 30  ;;  %v16262_v60 = vand.u32 2147483647, %v12866_v37 }
 0x4ad   : > { %v4720_v55 = vand.u32 31, %v4718_v25  ;;  %v4452_v51 = vadd.s32 1, %v12946_v16  ;;  %v4449_v40 = vmul.u32 %v12879_v48, %v4433_v29  ;;  %v8373_v13 = vadd.s32 4294967169, %v4502_v4 }
 0x4ae   : > { %v4665_v26 = vshll.u32 %v12957_v11, 30  ;;  %vm4451_vm4 = vc.u32 %v12953_v42, %v12945_v6  ;;  %v4713_v28 = vand.u32 8388607, %v16262_v60  ;;  %v4719_v35 = vshrl.u32 %v4718_v25, 5 }
 0x4af   : > { %v4721_v32 = vsub.s32 32, %v4720_v55  ;;  %v4453_v9 = vsel %vm4451_vm4, %v4452_v51, %v12946_v16  ;;  %v4723_v45 = vshll.u32 %v16429_v2, %v4720_v55  ;;  %v4726_v48 = vshll.u32 %v16715_v10, %v4720_v55 }
 0x4b0   : > { %v12969_v14 = vsub.s32 %v4662_v34, %v4665_v26  ;;  %v4454_v27 = vadd.s32 %v4453_v9, %v4449_v40  ;;  %v4729_v57 = vshll.u32 %v16716_v5, %v4720_v55  ;;  %v4508_v22 = vadd.s32 1, %v8373_v13 }
 0x4b1   : > { %v4724_v63 = vshrl.u32 %v16715_v10, %v4721_v32  ;;  %v4727_v17 = vshrl.u32 %v16716_v5, %v4721_v32  ;;  %v4730_v21 = vshrl.u32 %v16717_v18, %v4721_v32  ;;  %v4732_v52 = vshll.u32 %v16717_v18, %v4720_v55 }
 0x4b2   : > { %v4668_v7 = vsub.s32 0, %v12969_v14  ;;  %v4455_v31 = vadd.s32 536870912, %v4454_v27  ;;  %v4733_v19 = vshrl.u32 %v16718_v1, %v4721_v32  ;;  %v4735_v0 = vshll.u32 %v16718_v1, %v4720_v55 }
 0x4b3   : > { %v4725_v41 = vor.u32 %v4724_v63, %v4723_v45  ;;  %v4728_v15 = vor.u32 %v4727_v17, %v4726_v48  ;;  %v4731_v46 = vor.u32 %v4730_v21, %v4729_v57  ;;  %v4736_v61 = vshrl.u32 %v16440_v62, %v4721_v32 }
 0x4b4   : > { %v8378_v49 = vmin.u32 %v4668_v7, %v12969_v14  ;;  %v12986_v34 = vshrl.u32 %v4455_v31, 30  ;;  %v4714_v33 = vor.u32 8388608, %v4713_v28  ;;  %v4734_v58 = vor.u32 %v4733_v19, %v4732_v52 }
 0x4b5   : > { %vm4738_vm1 = vcmp.lt.s32.totalorder %v4719_v35, 1  ;;  %v4737_v25 = vor.u32 %v4736_v61, %v4735_v0  ;;  %vm4740_vm6 = vcmp.lt.s32.totalorder %v4719_v35, 3  ;;  %vm4741_vm13 = vcmp.lt.s32.totalorder %v4719_v35, 4 }
 0x4b6   : > { %v12984_v36 = vpop.f32.mrb[24].mxu1  ;;  %16719 = vst [vmem:[#allocation14_spill] sm:$0xff] %v12986_v34  ;;  %v4670_v44 = vclz %v8378_v49  ;;  %v4746_v24 = vsel %vm4738_vm1, %v4725_v41, %v4728_v15  ;;  %v4457_v3 = vshll.u32 %v12986_v34, 30  ;;  %v4747_v16 = vsel %vm4741_vm13, %v4734_v58, 920167782 }
 0x4b7   : > { %v12990_v12 = vpop.f32.mrb[25].mxu1  ;;  %v4750_v30 = vsel %vm4738_vm1, %v4728_v15, %v4731_v46  ;;  %vm4509_vm15 = vcmp.gt.s32.totalorder %v4508_v22, 0  ;;  %v4743_v55 = vsel %vm4741_vm13, %v4731_v46, 2102212464  ;;  %v4748_v26 = vsel %vm4740_vm6, %v4731_v46, %v4747_v16 }
 0x4b8   : > { %v12995_v4 = vpop.f32.mrb[26].mxu1  ;;  %v8379_v29 = vadd.s32 4294967294, %v4670_v44  ;;  %v4751_v51 = vsel %vm4741_vm13, %v4737_v25, 1326507024  ;;  %v4722_v40 = vshrl.u32 %v16429_v2, %v4721_v32  ;;  %vm4739_vm5 = vcmp.lt.s32.totalorder %v4719_v35, 2 }
 0x4b9   : > { %v4752_v13 = vsel %vm4740_vm6, %v4734_v58, %v4751_v51  ;;  %v4510_v9 = vsel %vm4509_vm15, %v4508_v22, 0  ;;  %v4749_v28 = vsel %vm4739_vm5, %v4746_v24, %v4748_v26  ;;  %v4754_v63 = vshll.u32 %v4714_v33, 8 }
 0x4ba   : > { %v4753_v45 = vsel %vm4739_vm5, %v4750_v30, %v4752_v13  ;;  %v13002_v48 = vsub.s32 %v4454_v27, %v4457_v3  ;;  %v4742_v17 = vsel %vm4738_vm1, %v4722_v40, %v4725_v41  ;;  %v4744_v7 = vsel %vm4740_vm6, %v4728_v15, %v4743_v55 }
 0x4bb   : > { %v16260_v57 = vand.u32 2147483647, %v12875_v53  ;;  %vm8380_vm11 = vcmp.lt.s32.totalorder %v8379_v29, 0  ;;  %v13007_v21 = vmul.u32.u64.low %v4754_v63, %v4753_v45  ;;  %v13008_v32 = vmul.u32.u64.high %v4754_v63, %v4753_v45, %v13007_v21 }
 0x4bc   : > { %v4512_v31 = vand.u32 31, %v4510_v9  ;;  %v13010_v49 = vmul.u32.u64.low %v4754_v63, %v4749_v28  ;;  %v13011_v22 = vmul.u32.u64.high %v4754_v63, %v4749_v28, %v13010_v49  ;;  %v4673_v46 = vsel %vm8380_vm11, 0, %v8379_v29 }
 0x4bd   : > { %v4745_v52 = vsel %vm4739_vm5, %v4742_v17, %v4744_v7  ;;  %v4505_v27 = vand.u32 8388607, %v16260_v57  ;;  %v4460_v41 = vsub.s32 0, %v13002_v48  ;;  %v4678_v0 = vsub.s32 4294967266, %v4673_v46 }
 0x4be   : > { %vm4763_vm8 = vc.u32 %v13008_v32, %v13010_v49  ;;  %v4513_v15 = vsub.s32 32, %v4512_v31  ;;  %v4764_v19 = vadd.s32 1, %v13011_v22  ;;  %v4761_v61 = vmul.u32 %v4754_v63, %v4745_v52 }
 0x4bf   : > { %v4506_v33 = vor.u32 8388608, %v4505_v27  ;;  %v8370_v58 = vmin.u32 %v4460_v41, %v13002_v48  ;;  %v4674_v3 = vsub.s32 32, %v4673_v46  ;;  %v13025_v16 = vshrl.u32 %v4510_v9, 5 }
 0x4c0   : > { %v4765_v44 = vsel %vm4763_vm8, %v4764_v19, %v13011_v22  ;;  %v4516_v25 = vshrl.u32 %v16715_v10, %v4513_v15  ;;  %v4519_v24 = vshrl.u32 %v16716_v5, %v4513_v15  ;;  %v4522_v30 = vshrl.u32 %v16717_v18, %v4513_v15 }
 0x4c1   : > { %v4766_v35 = vadd.s32 %v4765_v44, %v4761_v61  ;;  %v4525_v29 = vshrl.u32 %v16718_v1, %v4513_v15  ;;  %v4679_v55 = vadd.s32 127, %v4678_v0  ;;  %v4515_v51 = vshll.u32 %v16429_v2, %v4512_v31 }
 0x4c2   : > { %v4518_v40 = vshll.u32 %v16715_v10, %v4512_v31  ;;  %v4521_v13 = vshll.u32 %v16716_v5, %v4512_v31  ;;  %v4524_v28 = vshll.u32 %v16717_v18, %v4512_v31  ;;  %v4527_v45 = vshll.u32 %v16718_v1, %v4512_v31 }
 0x4c3   : > { %v4767_v26 = vadd.s32 536870912, %v4766_v35  ;;  %v4528_v63 = vshrl.u32 %v16440_v62, %v4513_v15  ;;  %v4462_v9 = vclz %v8370_v58  ;;  %v4517_v7 = vor.u32 %v4516_v25, %v4515_v51 }
 0x4c4   : > { %v4520_v21 = vor.u32 %v4519_v24, %v4518_v40  ;;  %v4658_v22 = vadd.s32 %v12917_v59, %v12914_v39  ;;  %v4523_v52 = vor.u32 %v4522_v30, %v4521_v13  ;;  %v4526_v27 = vor.u32 %v4525_v29, %v4524_v28 }
 0x4c5   : > { %v13035_v17 = vshrl.u32 %v4767_v26, 30  ;;  %v4529_v41 = vor.u32 %v4528_v63, %v4527_v45  ;;  %v4680_v19 = vshll.u32 %v4679_v55, 23  ;;  %v4675_v61 = vshll.u32 %v12969_v14, %v4673_v46 }
 0x4c6   : > { %v4676_v44 = vshrl.u32 %v4658_v22, %v4674_v3  ;;  %vm4530_vm9 = vcmp.lt.s32.totalorder %v13025_v16, 1  ;;  %v13042_v31 = vshll.u32 %v4506_v33, 8  ;;  %v8371_v58 = vadd.s32 4294967294, %v4462_v9  ;;  %v13056_v33 = vpop.f32.mrb[27].mxu1 }
 0x4c7   : > { %v4769_v0 = vshll.u32 %v13035_v17, 30  ;;  %vm4533_vm7 = vcmp.lt.s32.totalorder %v13025_v16, 4  ;;  %v4538_v39 = vsel %vm4530_vm9, %v4517_v7, %v4520_v21  ;;  %vm4532_vm2 = vcmp.lt.s32.totalorder %v13025_v16, 3 }
 0x4c8   : > { %v4539_v59 = vsel %vm4533_vm7, %v4526_v27, 920167782  ;;  %v4542_v14 = vsel %vm4530_vm9, %v4520_v21, %v4523_v52  ;;  %v4543_v46 = vsel %vm4533_vm7, %v4529_v41, 1326507024  ;;  %vm4531_vm3 = vcmp.lt.s32.totalorder %v13025_v16, 2 }
 0x4c9   : > { %v13044_v26 = vsub.s32 %v4766_v35, %v4769_v0  ;;  %v4681_v35 = vor.u32 4788187, %v4680_v19  ;;  %v4540_v24 = vsel %vm4532_vm2, %v4523_v52, %v4539_v59  ;;  %v4677_v3 = vor.u32 %v4676_v44, %v4675_v61 }
 0x4ca   : > { %v4514_v30 = vshrl.u32 %v16429_v2, %v4513_v15  ;;  %v4541_v29 = vsel %vm4531_vm3, %v4538_v39, %v4540_v24  ;;  %v4544_v55 = vsel %vm4532_vm2, %v4526_v27, %v4543_v46  ;;  %vm8372_vm10 = vcmp.lt.s32.totalorder %v8371_v58, 0 }
 0x4cb   : > { %v4772_v25 = vsub.s32 0, %v13044_v26  ;;  %v4545_v40 = vsel %vm4531_vm3, %v4542_v14, %v4544_v55  ;;  %v4164_v13 = vadd.f32 %v12904_v8, %v12854_v23  ;;  %v4535_v28 = vsel %vm4533_vm7, %v4523_v52, 2102212464 }
 0x4cc   : > { %v13075_v15 = vmul.u32.u64.low %v13042_v31, %v4545_v40  ;;  %v13076_v45 = vmul.u32.u64.high %v13042_v31, %v4545_v40, %v13075_v15  ;;  %v4156_v63 = vadd.f32 %v12854_v23, %v12910_v50  ;;  %v4682_v9 = vand.u32 2147483647, %v4681_v35 }
 0x4cd   : > { %v8382_v51 = vmin.u32 %v4772_v25, %v13044_v26  ;;  %v13081_v27 = vmul.u32.u64.low %v13042_v31, %v4541_v29  ;;  %v13082_v41 = vmul.u32.u64.high %v13042_v31, %v4541_v29, %v13081_v27  ;;  %v4465_v19 = vsel %vm8372_vm10, 0, %v8371_v58 }
 0x4ce   : > { %v4272_v0 = vand.u32 2147483647, %v4164_v13  ;;  %v4270_v8 = vand.u32 2147483647, %v4156_v63  ;;  %v4688_v61 = vsub.s32 4, %v12957_v11  ;;  %v4534_v52 = vsel %vm4530_vm9, %v4514_v30, %v4517_v7 }
 0x4cf   : > { %v4774_v22 = vclz %v8382_v51  ;;  %v4536_v44 = vsel %vm4532_vm2, %v4520_v21, %v4535_v28  ;;  %v4684_v39 = vcvt.s32.f32 %v4677_v3  ;;  %vm4604_vm14 = vcmp.lt.s32.totalorder %v12860_v47, 0 }
 0x4d0   : > { %v4304_v59 = vadd.f32 1.0, %v4272_v0  ;;  %v4302_v14 = vadd.f32 1.0, %v4270_v8  ;;  %v4470_v46 = vsub.s32 4294967266, %v4465_v19  ;;  %vm4555_vm12 = vc.u32 %v13076_v45, %v13081_v27 }
 0x4d1   : > { %v8383_v50 = vadd.s32 4294967294, %v4774_v22  ;;  %v4556_v58 = vadd.s32 1, %v13082_v41  ;;  %v4685_v35 = vmul.f32 %v4684_v39, %v4682_v9  ;;  %v4537_v25 = vsel %vm4531_vm3, %v4534_v52, %v4536_v44 }
 0x4d2   : > { %v4336_v7 = vmul.f32 30.0, %v4304_v59  ;;  %v4334_v24 = vmul.f32 30.0, %v4302_v14  ;;  %v4689_v21 = vsel %vm4604_vm14, %v4688_v61, %v12957_v11  ;;  %v4466_v3 = vsub.s32 32, %v4465_v19 }
 0x4d3   : > { %vm8384_vm0 = vcmp.lt.s32.totalorder %v8383_v50, 0  ;;  %v4557_v30 = vsel %vm4555_vm12, %v4556_v58, %v13082_v41  ;;  %vm13106_vm4 = vcmp.le.f32.partialorder %v4602_v43, 0.7853982  ;;  %v4471_v16 = vadd.s32 127, %v4470_v46 }
 0x4d4   : > { %v13100_v29 = vmul.f32 %v4336_v7, %v4164_v13  ;;  %v13102_v55 = vmul.f32 %v4334_v24, %v4156_v63  ;;  %v4553_v40 = vmul.u32 %v13042_v31, %v4537_v25  ;;  %v4686_v28 = vxor.u32 2147483648, %v4685_v35 }
 0x4d5   : > { %v4691_v11 = vsel %vm13106_vm4, 0, %v4689_v21  ;;  %v4450_v15 = vadd.s32 %v12945_v6, %v12953_v42  ;;  %v13116_v63 = vsel %vm8384_vm0, 0, %v8383_v50  ;;  %v13120_v43 = vadd.f32 %v12949_v54, %v12854_v23 }
 0x4d6   : > { %16720 = vst [vmem:[#allocation35_spill] sm:$0xff] %v13100_v29  ;;  %16721 = vst [vmem:[#allocation19_spill] sm:$0xff] %v13102_v55  ;;  %v5021_v13 = vand.u32 2139095040, %v13100_v29  ;;  %v4558_v9 = vadd.s32 %v4557_v30, %v4553_v40  ;;  %v4813_v31 = vand.u32 2139095040, %v13102_v55  ;;  %v4695_v0 = vadd.s32 3, %v4691_v11 }
 0x4d7   : > { %v4468_v22 = vshrl.u32 %v4450_v15, %v4466_v3  ;;  %v4467_v8 = vshll.u32 %v13002_v48, %v4465_v19  ;;  %v4472_v61 = vshll.u32 %v4471_v16, 23  ;;  %v13126_v6 = vadd.f32 %v12854_v23, %v12967_v38 }
 0x4d8   : > { %v5022_v41 = vshrl.u32 %v5021_v13, 23  ;;  %v4687_v42 = vsel %vm4604_vm14, %v4686_v28, %v4685_v35  ;;  %v4782_v52 = vsub.s32 4294967266, %v13116_v63  ;;  %v4814_v54 = vshrl.u32 %v4813_v31, 23 }
 0x4d9   : > { %v4559_v39 = vadd.s32 536870912, %v4558_v9  ;;  %v4273_v50 = vand.u32 2147483647, %v13120_v43  ;;  %v13132_v59 = vor.u32 %v4468_v22, %v4467_v8  ;;  %v13137_v48 = vsel %vm13106_vm4, %v12860_v47, %v4687_v42 }
 0x4da   : > { %v8393_v44 = vadd.s32 4294967169, %v5022_v41  ;;  %v13139_v38 = vor.u32 4788187, %v4472_v61  ;;  %v4271_v19 = vand.u32 2147483647, %v13126_v6  ;;  %v13142_v46 = vand.u32 3, %v4695_v0 }
 0x4db   : > { %v13144_v58 = vadd.s32 127, %v4782_v52  ;;  %v8385_v35 = vadd.s32 4294967169, %v4814_v54  ;;  %v13146_v25 = vshrl.u32 %v4559_v39, 30  ;;  %v16259_v7 = vand.u32 2147483647, %v13100_v29 }
 0x4dc   : > { %v5028_v14 = vadd.s32 1, %v8393_v44  ;;  %16724 = vst [vmem:[#allocation16_spill] sm:$0xff] %v13142_v46  ;;  %v4305_v21 = vadd.f32 1.0, %v4273_v50  ;;  %9322 = vcosq.f32 %v13137_v48  ;;  %v13153_v30 = vadd.s32 %v13010_v49, %v13008_v32 }
 0x4dd   : > { %16725 = vst [vmem:[#allocation18_spill] sm:$0xff] %v13146_v25  ;;  %v4303_v11 = vadd.f32 1.0, %v4271_v19  ;;  %v16263_v22 = vand.u32 2147483647, %v13102_v55  ;;  %v4820_v41 = vadd.s32 1, %v8385_v35  ;;  %v4561_v31 = vshll.u32 %v13146_v25, 30 }
 0x4de   : > { %vm5029_vm1 = vcmp.gt.s32.totalorder %v5028_v14, 0  ;;  %v5025_v32 = vand.u32 8388607, %v16259_v7  ;;  %v4337_v0 = vmul.f32 30.0, %v4305_v21  ;;  %vm4708_vm2 = vcmp.lt.s32.totalorder %v12866_v37, 0 }
 0x4df   : > { %v5030_v24 = vsel %vm5029_vm1, %v5028_v14, 0  ;;  %v13171_v14 = vpop.f32.mrb[28].mxu1  ;;  %vm4821_vm6 = vcmp.gt.s32.totalorder %v4820_v41, 0  ;;  %v4817_v56 = vand.u32 8388607, %v16263_v22  ;;  %v13177_v28 = vsub.s32 %v4558_v9, %v4561_v31 }
 0x4e0   : > { %v5032_v51 = vand.u32 31, %v5030_v24  ;;  %v5031_v49 = vshrl.u32 %v5030_v24, 5  ;;  %v5026_v60 = vor.u32 8388608, %v5025_v32  ;;  %9324 = vsinq.f32 %v13137_v48 }
 0x4e1   : > { %v4564_v32 = vsub.s32 0, %v13177_v28 }
 0x4e2   : > { %v5033_v13 = vsub.s32 32, %v5032_v51  ;;  %v5035_v8 = vshll.u32 %v16429_v2, %v5032_v51  ;;  %v5038_v42 = vshll.u32 %v16715_v10, %v5032_v51  ;;  %v5041_v52 = vshll.u32 %v16716_v5, %v5032_v51 }
 0x4e3   : > { %v5044_v39 = vshll.u32 %v16717_v18, %v5032_v51  ;;  %v5047_v35 = vshll.u32 %v16718_v1, %v5032_v51  ;;  %vm5050_vm13 = vcmp.lt.s32.totalorder %v5031_v49, 1  ;;  %vm5053_vm15 = vcmp.lt.s32.totalorder %v5031_v49, 4 }
 0x4e4   : > { %v5036_v61 = vshrl.u32 %v16715_v10, %v5033_v13  ;;  %v5039_v44 = vshrl.u32 %v16716_v5, %v5033_v13  ;;  %v5042_v54 = vshrl.u32 %v16717_v18, %v5033_v13  ;;  %v5045_v50 = vshrl.u32 %v16718_v1, %v5033_v13 }
 0x4e5   : > { %v5048_v24 = vshrl.u32 %v16440_v62, %v5033_v13  ;;  %v5034_v3 = vshrl.u32 %v16429_v2, %v5033_v13  ;;  %v13181_v51 = vmul.f32 %v4337_v0, %v13120_v43  ;;  %vm5052_vm5 = vcmp.lt.s32.totalorder %v5031_v49, 3 }
 0x4e6   : > { %v5037_v19 = vor.u32 %v5036_v61, %v5035_v8  ;;  %v5040_v21 = vor.u32 %v5039_v44, %v5038_v42  ;;  %v5043_v7 = vor.u32 %v5042_v54, %v5041_v52  ;;  %v5046_v57 = vor.u32 %v5045_v50, %v5044_v39  ;;  %v13183_v61 = vpop.eup %9322 }
 0x4e7   : > { %v5049_v16 = vor.u32 %v5048_v24, %v5047_v35  ;;  %v4822_v8 = vsel %vm4821_vm6, %v4820_v41, 0  ;;  %16726 = vst [vmem:[#allocation27_spill] sm:$0xff] %v13181_v51  ;;  %16727 = vst [vmem:[#allocation37_spill] sm:$0xff] %v13183_v61  ;;  %vm5051_vm11 = vcmp.lt.s32.totalorder %v5031_v49, 2  ;;  %v4818_v50 = vor.u32 8388608, %v4817_v56 }
 0x4e8   : > { %v5054_v42 = vsel %vm5050_vm13, %v5034_v3, %v5037_v19  ;;  %v5055_v52 = vsel %vm5053_vm15, %v5043_v7, 2102212464  ;;  %v5058_v44 = vsel %vm5050_vm13, %v5037_v19, %v5040_v21  ;;  %v5059_v39 = vsel %vm5053_vm15, %v5046_v57, 920167782 }
 0x4e9   : > { %v5056_v54 = vsel %vm5052_vm5, %v5040_v21, %v5055_v52  ;;  %v5062_v9 = vsel %vm5050_vm13, %v5040_v21, %v5043_v7  ;;  %v5063_v31 = vsel %vm5053_vm15, %v5049_v16, 1326507024  ;;  %v5060_v13 = vsel %vm5052_vm5, %v5043_v7, %v5059_v39  ;;  %v13205_v39 = vpop.f32.mrb[29].mxu1 }
 0x4ea   : > { %v5061_v35 = vsel %vm5051_vm11, %v5058_v44, %v5060_v13  ;;  %v5064_v41 = vsel %vm5052_vm5, %v5046_v57, %v5063_v31  ;;  %v5066_v24 = vshll.u32 %v5026_v60, 8  ;;  %v5125_v43 = vand.u32 2139095040, %v13181_v51 }
 0x4eb   : > { %v5057_v0 = vsel %vm5051_vm11, %v5054_v42, %v5056_v54  ;;  %v5065_v22 = vsel %vm5051_vm11, %v5062_v9, %v5064_v41  ;;  %v4824_v15 = vand.u32 31, %v4822_v8  ;;  %v4335_v3 = vmul.f32 30.0, %v4303_v11 }
 0x4ec   : > { %v13187_v40 = vmul.u32.u64.low %v5066_v24, %v5065_v22  ;;  %v13188_v19 = vmul.u32.u64.high %v5066_v24, %v5065_v22, %v13187_v40  ;;  %v13190_v52 = vmul.u32.u64.low %v5066_v24, %v5061_v35  ;;  %v13191_v21 = vmul.u32.u64.high %v5066_v24, %v5061_v35, %v13190_v52 }
 0x4ed   : > { %v13195_v16 = vmin.u32 %v4564_v32, %v13177_v28  ;;  %v4825_v56 = vsub.s32 32, %v4824_v15  ;;  %v13197_v7 = vshll.u32 %v4818_v50, 8  ;;  %v5073_v57 = vmul.u32 %v5066_v24, %v5057_v0 }
 0x4ee   : > { %v4823_v49 = vshrl.u32 %v4822_v8, 5  ;;  %v4827_v42 = vshll.u32 %v16429_v2, %v4824_v15  ;;  %v5126_v11 = vshrl.u32 %v5125_v43, 23  ;;  %v4830_v40 = vshll.u32 %v16715_v10, %v4824_v15 }
 0x4ef   : > { %v4828_v22 = vshrl.u32 %v16715_v10, %v4825_v56  ;;  %v4831_v44 = vshrl.u32 %v16716_v5, %v4825_v56  ;;  %v4833_v54 = vshll.u32 %v16716_v5, %v4824_v15  ;;  %vm5075_vm8 = vc.u32 %v13188_v19, %v13190_v52 }
 0x4f0   : > { %v5076_v9 = vadd.s32 1, %v13191_v21  ;;  %v4834_v8 = vshrl.u32 %v16717_v18, %v4825_v56  ;;  %v4836_v31 = vshll.u32 %v16717_v18, %v4824_v15  ;;  %v4837_v50 = vshrl.u32 %v16718_v1, %v4825_v56 }
 0x4f1   : > { %v4829_v32 = vor.u32 %v4828_v22, %v4827_v42  ;;  %v4832_v13 = vor.u32 %v4831_v44, %v4830_v40  ;;  %v4839_v35 = vshll.u32 %v16718_v1, %v4824_v15  ;;  %v4840_v43 = vshrl.u32 %v16440_v62, %v4825_v56 }
 0x4f2   : > { %v5077_v41 = vsel %vm5075_vm8, %v5076_v9, %v13191_v21  ;;  %v4835_v24 = vor.u32 %v4834_v8, %v4833_v54  ;;  %vm4842_vm9 = vcmp.lt.s32.totalorder %v4823_v49, 1  ;;  %v4826_v60 = vshrl.u32 %v16429_v2, %v4825_v56 }
 0x4f3   : > { %v5078_v0 = vadd.s32 %v5077_v41, %v5073_v57  ;;  %v4838_v47 = vor.u32 %v4837_v50, %v4836_v31  ;;  %vm4843_vm7 = vcmp.lt.s32.totalorder %v4823_v49, 2  ;;  %v4841_v46 = vor.u32 %v4840_v43, %v4839_v35 }
 0x4f4   : > { %vm4844_vm3 = vcmp.lt.s32.totalorder %v4823_v49, 3  ;;  %vm4845_vm10 = vcmp.lt.s32.totalorder %v4823_v49, 4  ;;  %v4850_v42 = vsel %vm4842_vm9, %v4829_v32, %v4832_v13  ;;  %v4854_v44 = vsel %vm4842_vm9, %v4832_v13, %v4835_v24 }
 0x4f5   : > { %v5079_v22 = vadd.s32 536870912, %v5078_v0  ;;  %v4847_v40 = vsel %vm4845_vm10, %v4835_v24, 2102212464  ;;  %v4851_v15 = vsel %vm4845_vm10, %v4838_v47, 920167782  ;;  %v4846_v21 = vsel %vm4842_vm9, %v4826_v60, %v4829_v32 }
 0x4f6   : > { %v4852_v54 = vsel %vm4844_vm3, %v4835_v24, %v4851_v15  ;;  %v4855_v9 = vsel %vm4845_vm10, %v4841_v46, 1326507024  ;;  %v8397_v8 = vadd.s32 4294967169, %v5126_v11  ;;  %v4848_v57 = vsel %vm4844_vm3, %v4832_v13, %v4847_v40 }
 0x4f7   : > { %v13218_v61 = vshrl.u32 %v5079_v22, 30  ;;  %v4853_v56 = vsel %vm4843_vm7, %v4850_v42, %v4852_v54  ;;  %v4856_v31 = vsel %vm4844_vm3, %v4838_v47, %v4855_v9  ;;  %v13228_v43 = vmul.f32 %v4335_v3, %v13126_v6 }
 0x4f8   : > { %v4857_v50 = vsel %vm4843_vm7, %v4854_v44, %v4856_v31  ;;  %v13223_v35 = vmul.u32.u64.low %v13197_v7, %v4853_v56  ;;  %v13224_v41 = vmul.u32.u64.high %v13197_v7, %v4853_v56, %v13223_v35  ;;  %v5132_v32 = vadd.s32 1, %v8397_v8 }
 0x4f9   : > { %16728 = vst [vmem:[#allocation31_spill] sm:$0xff] %v13218_v61  ;;  %16729 = vst [vmem:[#allocation32_spill] sm:$0xff] %v13228_v43  ;;  %v5081_v60 = vshll.u32 %v13218_v61, 30  ;;  %v13232_v46 = vmul.u32.u64.low %v13197_v7, %v4857_v50  ;;  %v13233_v11 = vmul.u32.u64.high %v13197_v7, %v4857_v50, %v13232_v46  ;;  %v4779_v47 = vshll.u32 %v13044_v26, %v13116_v63 }
 0x4fa   : > { %v16730_v13 = vsub.s32 32, %v13116_v63  ;;  %v4849_v42 = vsel %vm4843_vm7, %v4846_v21, %v4848_v57  ;;  %v16731_v6 = vshll.u32 %v13144_v58, 23  ;;  %v4566_v22 = vclz %v13195_v16 }
 0x4fb   : > { %v16732_v40 = vand.u32 2147483647, %v13181_v51  ;;  %vm5133_vm14 = vcmp.gt.s32.totalorder %v5132_v32, 0  ;;  %v13247_v44 = vsub.s32 %v5078_v0, %v5081_v60  ;;  %v4868_v48 = vadd.s32 1, %v13224_v41 }
 0x4fc   : > { %v4780_v24 = vshrl.u32 %v13153_v30, %v16730_v13  ;;  %v4785_v3 = vor.u32 4788187, %v16731_v6  ;;  %v5134_v26 = vsel %vm5133_vm14, %v5132_v32, 0  ;;  %v4917_v63 = vand.u32 2139095040, %v13228_v43 }
 0x4fd   : > { %v5129_v15 = vand.u32 8388607, %v16732_v40  ;;  %v16733_v30 = vand.u32 2147483647, %v13139_v38  ;;  %v16734_v49 = vcvt.s32.f32 %v13132_v59  ;;  %v16735_v58 = vand.u32 2147483647, %v12866_v37 }
 0x4fe   : > { %v16738_v0 = vsub.s32 4, %v13035_v17  ;;  %v4865_v9 = vmul.u32 %v13197_v7, %v4849_v42  ;;  %vm4867_vm0 = vc.u32 %v13233_v11, %v13223_v35  ;;  %v4781_v59 = vor.u32 %v4780_v24, %v4779_v47 }
 0x4ff   : > { %v13255_v21 = vmul.f32 %v16734_v49, %v16733_v30  ;;  %vm13259_vm12 = vcmp.le.f32.partialorder %v16735_v58, 0.7853982  ;;  %v4869_v38 = vsel %vm4867_vm0, %v4868_v48, %v13224_v41  ;;  %v5136_v8 = vand.u32 31, %v5134_v26  ;;  %v13293_v48 = vpop.eup %9324  ;;  %v13296_v58 = vpop.f32.mrb[30].mxu1 }
 0x500   : > { %v13268_v54 = vsel %vm4708_vm2, %v16738_v0, %v13035_v17  ;;  %v13276_v57 = vadd.f32 %v12984_v36, %v12854_v23  ;;  %v4786_v56 = vand.u32 2147483647, %v4785_v3  ;;  %v8375_v31 = vadd.s32 4294967294, %v4566_v22  ;;  %16740 = vst [vmem:[#allocation5_spill] sm:$0xff] %v13293_v48  ;;  %16741 = vst [vmem:[#allocation43_spill] sm:$0xff] %v13296_v58 }
 0x501   : > { %v4870_v50 = vadd.s32 %v4869_v38, %v4865_v9  ;;  %v5130_v60 = vor.u32 8388608, %v5129_v15  ;;  %v5084_v17 = vsub.s32 0, %v13247_v44  ;;  %v13279_v46 = vshrl.u32 %v5134_v26, 5 }
 0x502   : > { %v5137_v7 = vsub.s32 32, %v5136_v8  ;;  %v4918_v32 = vshrl.u32 %v4917_v63, 23  ;;  %v5139_v47 = vshll.u32 %v16429_v2, %v5136_v8  ;;  %v5142_v41 = vshll.u32 %v16715_v10, %v5136_v8 }
 0x503   : > { %v4871_v13 = vadd.s32 536870912, %v4870_v50  ;;  %v5145_v24 = vshll.u32 %v16716_v5, %v5136_v8  ;;  %v5148_v6 = vshll.u32 %v16717_v18, %v5136_v8  ;;  %v5151_v40 = vshll.u32 %v16718_v1, %v5136_v8 }
 0x504   : > { %v5140_v23 = vshrl.u32 %v16715_v10, %v5137_v7  ;;  %v5143_v36 = vshrl.u32 %v16716_v5, %v5137_v7  ;;  %v5146_v42 = vshrl.u32 %v16717_v18, %v5137_v7  ;;  %v5149_v22 = vshrl.u32 %v16718_v1, %v5137_v7 }
 0x505   : > { %v13288_v3 = vshrl.u32 %v4871_v13, 30  ;;  %v5152_v15 = vshrl.u32 %v16440_v62, %v5137_v7  ;;  %v4788_v26 = vcvt.s32.f32 %v4781_v59  ;;  %v8394_v63 = vmin.u32 %v5084_v17, %v13247_v44 }
 0x506   : > { %v5141_v30 = vor.u32 %v5140_v23, %v5139_v47  ;;  %v5144_v49 = vor.u32 %v5143_v36, %v5142_v41  ;;  %v5147_v9 = vor.u32 %v5146_v42, %v5145_v24  ;;  %v5150_v38 = vor.u32 %v5149_v22, %v5148_v6 }
 0x507   : > { %16739 = vst [vmem:[#allocation10_spill] sm:$0xff] %v13288_v3  ;;  %v4873_v0 = vshll.u32 %v13288_v3, 30  ;;  %v5153_v13 = vor.u32 %v5152_v15, %v5151_v40  ;;  %v4789_v61 = vmul.f32 %v4788_v26, %v4786_v56  ;;  %v4795_v8 = vsel %vm13259_vm12, 0, %v13268_v54 }
 0x508   : > { %v8389_v25 = vadd.s32 4294967169, %v4918_v32  ;;  %v4276_v48 = vand.u32 2147483647, %v13276_v57  ;;  %vm8376_vm4 = vcmp.lt.s32.totalorder %v8375_v31, 0  ;;  %vm5154_vm1 = vcmp.lt.s32.totalorder %v13279_v46, 1 }
 0x509   : > { %vm5157_vm6 = vcmp.lt.s32.totalorder %v13279_v46, 4  ;;  %v5170_v59 = vshll.u32 %v5130_v60, 8  ;;  %vm5155_vm13 = vcmp.lt.s32.totalorder %v13279_v46, 2  ;;  %v5162_v17 = vsel %vm5154_vm1, %v5141_v30, %v5144_v49 }
 0x50a   : > { %v5163_v47 = vsel %vm5157_vm6, %v5150_v38, 920167782  ;;  %v5167_v56 = vsel %vm5157_vm6, %v5153_v13, 1326507024  ;;  %v5086_v41 = vclz %v8394_v63  ;;  %v13308_v24 = vsub.s32 %v4870_v50, %v4873_v0 }
 0x50b   : > { %vm5156_vm15 = vcmp.lt.s32.totalorder %v13279_v46, 3  ;;  %v5166_v54 = vsel %vm5154_vm1, %v5144_v49, %v5147_v9  ;;  %v5159_v32 = vsel %vm5157_vm6, %v5147_v9, 2102212464  ;;  %v4924_v42 = vadd.s32 1, %v8389_v25 }
 0x50c   : > { %v5164_v23 = vsel %vm5156_vm15, %v5147_v9, %v5163_v47  ;;  %v5168_v36 = vsel %vm5156_vm15, %v5150_v38, %v5167_v56  ;;  %v4790_v60 = vxor.u32 2147483648, %v4789_v61  ;;  %v13314_v6 = vsel %vm8376_vm4, 0, %v8375_v31 }
 0x50d   : > { %v5138_v22 = vshrl.u32 %v16429_v2, %v5137_v7  ;;  %v5165_v40 = vsel %vm5155_vm13, %v5162_v17, %v5164_v23  ;;  %v5169_v50 = vsel %vm5155_vm13, %v5166_v54, %v5168_v36  ;;  %v16273_v63 = vand.u32 2147483647, %v13228_v43 }
 0x50e   : > { %v13321_v15 = vmul.u32.u64.low %v5170_v59, %v5165_v40  ;;  %v13322_v26 = vmul.u32.u64.high %v5170_v59, %v5165_v40, %v13321_v15  ;;  %v8395_v0 = vadd.s32 4294967294, %v5086_v41  ;;  %v5160_v31 = vsel %vm5156_vm15, %v5144_v49, %v5159_v32  ;;  %v13344_v32 = vld [vmem:[%s16106_s4] ss:$0 sm:$0xff] }
 0x50f   : > { %v5158_v25 = vsel %vm5154_vm1, %v5138_v22, %v5141_v30  ;;  %vm4925_vm5 = vcmp.gt.s32.totalorder %v4924_v42, 0  ;;  %v4876_v7 = vsub.s32 0, %v13308_v24  ;;  %v13333_v47 = vadd.s32 3, %v4795_v8 }
 0x510   : > { %v13329_v9 = vmul.u32.u64.low %v5170_v59, %v5169_v50  ;;  %v13330_v38 = vmul.u32.u64.high %v5170_v59, %v5169_v50, %v13329_v9  ;;  %v4926_v13 = vsel %vm4925_vm5, %v4924_v42, 0  ;;  %v4574_v56 = vsub.s32 4294967266, %v13314_v6 }
 0x511   : > { %v4928_v54 = vand.u32 31, %v4926_v13  ;;  %v5161_v41 = vsel %vm5155_vm13, %v5158_v25, %v5160_v31  ;;  %v5180_v30 = vadd.s32 1, %v13322_v26  ;;  %v4921_v49 = vand.u32 8388607, %v16273_v63 }
 0x512   : > { %v13348_v8 = vadd.f32 %v13344_v32, %v12990_v12  ;;  %v4554_v23 = vadd.s32 %v13081_v27, %v13076_v45  ;;  %v4308_v46 = vadd.f32 1.0, %v4276_v48  ;;  %v13354_v42 = vadd.f32 %v13344_v32, %v12995_v4 }
 0x513   : > { %v4929_v36 = vsub.s32 32, %v4928_v54  ;;  %v13358_v22 = vsel %vm4708_vm2, %v4790_v60, %v4789_v61  ;;  %vm8396_vm11 = vcmp.lt.s32.totalorder %v8395_v0, 0  ;;  %v8386_v40 = vmin.u32 %v4876_v7, %v13308_v24 }
 0x514   : > { %vm5179_vm8 = vc.u32 %v13330_v38, %v13321_v15  ;;  %v4570_v12 = vsub.s32 32, %v13314_v6  ;;  %v13366_v27 = vadd.s32 127, %v4574_v56  ;;  %v5177_v48 = vmul.u32 %v5170_v59, %v5161_v41 }
 0x515   : > { %v5181_v4 = vsel %vm5179_vm8, %v5180_v30, %v13322_v26  ;;  %v4922_v50 = vor.u32 8388608, %v4921_v49  ;;  %v4932_v61 = vshrl.u32 %v16715_v10, %v4929_v36  ;;  %v4935_v60 = vshrl.u32 %v16716_v5, %v4929_v36 }
 0x516   : > { %v13371_v25 = vsel %vm8396_vm11, 0, %v8395_v0  ;;  %v5182_v31 = vadd.s32 %v5181_v4, %v5177_v48  ;;  %v4931_v7 = vshll.u32 %v16429_v2, %v4928_v54  ;;  %v4934_v9 = vshll.u32 %v16715_v10, %v4928_v54 }
 0x517   : > { %v4878_v63 = vclz %v8386_v40  ;;  %v4927_v17 = vshrl.u32 %v4926_v13, 5  ;;  %v4937_v56 = vshll.u32 %v16716_v5, %v4928_v54  ;;  %v4938_v59 = vshrl.u32 %v16717_v18, %v4929_v36 }
 0x518   : > { %v5183_v41 = vadd.s32 536870912, %v5182_v31  ;;  %v4933_v26 = vor.u32 %v4932_v61, %v4931_v7  ;;  %v4936_v30 = vor.u32 %v4935_v60, %v4934_v9  ;;  %v4940_v49 = vshll.u32 %v16717_v18, %v4928_v54  ;;  %v13386_v7 = vpop.f32.mrb[31].mxu1 }
 0x519   : > { %v4939_v45 = vor.u32 %v4938_v59, %v4937_v56  ;;  %v4941_v0 = vshrl.u32 %v16718_v1, %v4929_v36  ;;  %v4943_v48 = vshll.u32 %v16718_v1, %v4928_v54  ;;  %v4944_v4 = vshrl.u32 %v16440_v62, %v4929_v36  ;;  %16743 = vst [vmem:[#allocation22_spill] sm:$0xff] %v13386_v7 }
 0x51a   : > { %v4572_v3 = vshrl.u32 %v4554_v23, %v4570_v12  ;;  %v4576_v40 = vshll.u32 %v13366_v27, 23  ;;  %v4340_v13 = vmul.f32 30.0, %v4308_v46  ;;  %v4274_v34 = vand.u32 2147483647, %v13348_v8 }
 0x51b   : > { %v5094_v43 = vsub.s32 4294967266, %v13371_v25  ;;  %v13384_v58 = vshrl.u32 %v5183_v41, 30  ;;  %v4942_v61 = vor.u32 %v4941_v0, %v4940_v49  ;;  %v4945_v60 = vor.u32 %v4944_v4, %v4943_v48 }
 0x51c   : > { %v8387_v9 = vadd.s32 4294967294, %v4878_v63  ;;  %vm4946_vm9 = vcmp.lt.s32.totalorder %v4927_v17, 1  ;;  %vm4949_vm7 = vcmp.lt.s32.totalorder %v4927_v17, 4  ;;  %v4962_v54 = vshll.u32 %v4922_v50, 8 }
 0x51d   : > { %16742 = vst [vmem:[#allocation28_spill] sm:$0xff] %v13384_v58  ;;  %vm4948_vm2 = vcmp.lt.s32.totalorder %v4927_v17, 3  ;;  %v4951_v56 = vsel %vm4949_vm7, %v4939_v45, 2102212464  ;;  %v4954_v23 = vsel %vm4946_vm9, %v4933_v26, %v4936_v30  ;;  %v4955_v12 = vsel %vm4949_vm7, %v4942_v61, 920167782 }
 0x51e   : > { %v4930_v46 = vshrl.u32 %v16429_v2, %v4929_v36  ;;  %vm4947_vm3 = vcmp.lt.s32.totalorder %v4927_v17, 2  ;;  %v4956_v27 = vsel %vm4948_vm2, %v4939_v45, %v4955_v12  ;;  %v4958_v59 = vsel %vm4946_vm9, %v4936_v30, %v4939_v45 }
 0x51f   : > { %vm4396_vm10 = vcmp.lt.s32.totalorder %v12862_v20, 0  ;;  %v5185_v41 = vshll.u32 %v13384_v58, 30  ;;  %v4957_v63 = vsel %vm4947_vm3, %v4954_v23, %v4956_v27  ;;  %v4959_v49 = vsel %vm4949_vm7, %v4945_v60, 1326507024 }
 0x520   : > { %v13395_v50 = vmul.f32 %v4340_v13, %v13276_v57  ;;  %v4950_v0 = vsel %vm4946_vm9, %v4930_v46, %v4933_v26  ;;  %v4952_v48 = vsel %vm4948_vm2, %v4936_v30, %v4951_v56  ;;  %v4960_v4 = vsel %vm4948_vm2, %v4942_v61, %v4959_v49 }
 0x521   : > { %v4306_v7 = vadd.f32 1.0, %v4274_v34  ;;  %v5090_v36 = vsub.s32 32, %v13371_v25  ;;  %v4961_v12 = vsel %vm4947_vm3, %v4958_v59, %v4960_v4  ;;  %v5074_v23 = vadd.s32 %v13190_v52, %v13188_v19 }
 0x522   : > { %16744 = vst [vmem:[#allocation45_spill] sm:$0xff] %v13395_v50  ;;  %v13400_v45 = vmul.u32.u64.low %v4962_v54, %v4957_v63  ;;  %v13401_v51 = vmul.u32.u64.high %v4962_v54, %v4957_v63, %v13400_v45  ;;  %v5095_v60 = vadd.s32 127, %v5094_v43  ;;  %vm8388_vm14 = vcmp.lt.s32.totalorder %v8387_v9, 0 }
 0x523   : > { %v13406_v27 = vmul.u32.u64.low %v4962_v54, %v4961_v12  ;;  %v13407_v57 = vmul.u32.u64.high %v4962_v54, %v4961_v12, %v13406_v27  ;;  %v13409_v26 = vsub.s32 %v5182_v31, %v5185_v41  ;;  %v4953_v34 = vsel %vm4947_vm3, %v4950_v0, %v4952_v48 }
 0x524   : > { %v5437_v30 = vand.u32 2139095040, %v13395_v50  ;;  %v4794_v13 = vsel %vm13259_vm12, %v12866_v37, %v13358_v22  ;;  %v16745_v61 = vshll.u32 %v13177_v28, %v13314_v6  ;;  %v4577_v52 = vor.u32 4788187, %v4576_v40 }
 0x525   : > { %v4338_v43 = vmul.f32 30.0, %v4306_v7  ;;  %v5091_v56 = vshll.u32 %v13247_v44, %v13371_v25  ;;  %v5092_v31 = vshrl.u32 %v5074_v23, %v5090_v36  ;;  %v4972_v17 = vadd.s32 1, %v13401_v51 }
 0x526   : > { %v4573_v19 = vor.u32 %v4572_v3, %v16745_v61  ;;  %v5438_v46 = vshrl.u32 %v5437_v30, 23  ;;  %v5096_v59 = vshll.u32 %v5095_v60, 23  ;;  %v13423_v41 = vsel %vm8388_vm14, 0, %v8387_v9 }
 0x527   : > { %v4969_v63 = vmul.u32 %v4962_v54, %v4953_v34  ;;  %vm4971_vm12 = vc.u32 %v13407_v57, %v13400_v45  ;;  %v5188_v16 = vsub.s32 0, %v13409_v26  ;;  %v16282_v3 = vand.u32 2147483647, %v13395_v50  ;;  %v13481_v34 = vpop.f32.mrb[32].mxu1 }
 0x528   : > { %v4973_v28 = vsel %vm4971_vm12, %v4972_v17, %v13401_v51  ;;  %v8409_v6 = vadd.s32 4294967169, %v5438_v46  ;;  %v16746_v44 = vxor.u32 2147483648, %v13255_v21  ;;  %v13438_v25 = vand.u32 3, %v13333_v47 }
 0x529   : > { %v4974_v40 = vadd.s32 %v4973_v28, %v4969_v63  ;;  %v13441_v7 = vmul.f32 %v4338_v43, %v13348_v8  ;;  %9326 = vcosq.f32 %v4794_v13  ;;  %v4578_v9 = vand.u32 2147483647, %v4577_v52 }
 0x52a   : > { %v13435_v22 = vsel %vm4396_vm10, %v16746_v44, %v13255_v21  ;;  %16748 = vst [vmem:[#allocation50_spill] sm:$0xff] %v13438_v25  ;;  %v13443_v51 = vor.u32 %v5092_v31, %v5091_v56  ;;  %v5444_v54 = vadd.s32 1, %v8409_v6  ;;  %v4580_v49 = vcvt.s32.f32 %v4573_v19 }
 0x52b   : > { %16747 = vst [vmem:[#allocation38_spill] sm:$0xff] %v13435_v22  ;;  %16749 = vst [vmem:[#allocation54_spill] sm:$0xff] %v13441_v7  ;;  %v13445_v0 = vor.u32 4788187, %v5096_v59  ;;  %v4882_v48 = vsub.s32 32, %v13423_v41  ;;  %v4975_v4 = vadd.s32 536870912, %v4974_v40  ;;  %v8398_v21 = vmin.u32 %v5188_v16, %v13409_v26 }
 0x52c   : > { %v5441_v47 = vand.u32 8388607, %v16282_v3  ;;  %vm5445_vm0 = vcmp.gt.s32.totalorder %v5444_v54, 0  ;;  %v4277_v8 = vand.u32 2147483647, %v13354_v42  ;;  %v4866_v36 = vadd.s32 %v13223_v35, %v13233_v11 }
 0x52d   : > { %v13454_v12 = vshrl.u32 %v4975_v4, 30  ;;  %v5446_v23 = vsel %vm5445_vm0, %v5444_v54, 0  ;;  %v5229_v60 = vand.u32 2139095040, %v13441_v7  ;;  %9328 = vsinq.f32 %v4794_v13 }
 0x52e   : > { %v13457_v27 = vmul.f32 %v4580_v49, %v4578_v9  ;;  %v5448_v30 = vand.u32 31, %v5446_v23  ;;  %v13463_v52 = vshrl.u32 %v4866_v36, %v4882_v48  ;;  %v4886_v35 = vsub.s32 4294967266, %v13423_v41 }
 0x52f   : > { %16750 = vst [vmem:[#allocation60_spill] sm:$0xff] %v13454_v12  ;;  %v5190_v11 = vclz %v8398_v21  ;;  %v5442_v43 = vor.u32 8388608, %v5441_v47  ;;  %v4309_v31 = vadd.f32 1.0, %v4277_v8  ;;  %v4977_v13 = vshll.u32 %v13454_v12, 30 }
 0x530   : > { %v5449_v56 = vsub.s32 32, %v5448_v30  ;;  %v5451_v17 = vshll.u32 %v16429_v2, %v5448_v30  ;;  %v5454_v46 = vshll.u32 %v16715_v10, %v5448_v30  ;;  %v5230_v59 = vshrl.u32 %v5229_v60, 23 }
 0x531   : > { %v5457_v28 = vshll.u32 %v16716_v5, %v5448_v30  ;;  %v5447_v44 = vshrl.u32 %v5446_v23, 5  ;;  %v5460_v9 = vshll.u32 %v16717_v18, %v5448_v30  ;;  %v5463_v49 = vshll.u32 %v16718_v1, %v5448_v30 }
 0x532   : > { %v5452_v63 = vshrl.u32 %v16715_v10, %v5449_v56  ;;  %v5455_v16 = vshrl.u32 %v16716_v5, %v5449_v56  ;;  %v5458_v6 = vshrl.u32 %v16717_v18, %v5449_v56  ;;  %v5461_v54 = vshrl.u32 %v16718_v1, %v5449_v56 }
 0x533   : > { %v13476_v48 = vpop.eup %9326  ;;  %v5464_v8 = vshrl.u32 %v16440_v62, %v5449_v56  ;;  %v4887_v36 = vadd.s32 127, %v4886_v35  ;;  %v8399_v60 = vadd.s32 4294967294, %v5190_v11  ;;  %v13479_v3 = vsub.s32 %v4974_v40, %v4977_v13 }
 0x534   : > { %16751 = vst [vmem:[#allocation62_spill] sm:$0xff] %v13476_v48  ;;  %v5453_v4 = vor.u32 %v5452_v63, %v5451_v17  ;;  %v5456_v21 = vor.u32 %v5455_v16, %v5454_v46  ;;  %v5459_v47 = vor.u32 %v5458_v6, %v5457_v28  ;;  %v5462_v19 = vor.u32 %v5461_v54, %v5460_v9 }
 0x535   : > { %v5465_v23 = vor.u32 %v5464_v8, %v5463_v49  ;;  %v5482_v61 = vshll.u32 %v5442_v43, 8  ;;  %v8401_v58 = vadd.s32 4294967169, %v5230_v59  ;;  %v4341_v12 = vmul.f32 30.0, %v4309_v31 }
 0x536   : > { %v5450_v30 = vshrl.u32 %v16429_v2, %v5449_v56  ;;  %vm5466_vm4 = vcmp.lt.s32.totalorder %v5447_v44, 1  ;;  %vm5469_vm1 = vcmp.lt.s32.totalorder %v5447_v44, 4  ;;  %v16288_v17 = vand.u32 2147483647, %v13441_v7 }
 0x537   : > { %v13485_v46 = vpop.eup %9328  ;;  %vm5468_vm6 = vcmp.lt.s32.totalorder %v5447_v44, 3  ;;  %v5471_v35 = vsel %vm5469_vm1, %v5459_v47, 2102212464  ;;  %v5474_v11 = vsel %vm5466_vm4, %v5453_v4, %v5456_v21  ;;  %v5475_v40 = vsel %vm5469_vm1, %v5462_v19, 920167782 }
 0x538   : > { %16752 = vst [vmem:[#allocation42_spill] sm:$0xff] %v13485_v46  ;;  %v4980_v13 = vsub.s32 0, %v13479_v3  ;;  %vm5467_vm13 = vcmp.lt.s32.totalorder %v5447_v44, 2  ;;  %v5476_v63 = vsel %vm5468_vm6, %v5459_v47, %v5475_v40  ;;  %v5478_v16 = vsel %vm5466_vm4, %v5456_v21, %v5459_v47 }
 0x539   : > { %v5470_v43 = vsel %vm5466_vm4, %v5450_v30, %v5453_v4  ;;  %v5477_v31 = vsel %vm5467_vm13, %v5474_v11, %v5476_v63  ;;  %v5479_v59 = vsel %vm5469_vm1, %v5465_v23, 1326507024  ;;  %v5236_v56 = vadd.s32 1, %v8401_v58 }
 0x53a   : > { %v5472_v28 = vsel %vm5468_vm6, %v5456_v21, %v5471_v35  ;;  %v5480_v6 = vsel %vm5468_vm6, %v5462_v19, %v5479_v59  ;;  %v13489_v9 = vmul.u32.u64.low %v5482_v61, %v5477_v31  ;;  %v13490_v54 = vmul.u32.u64.high %v5482_v61, %v5477_v31, %v13489_v9 }
 0x53b   : > { %v4888_v49 = vshll.u32 %v4887_v36, 23  ;;  %v5481_v8 = vsel %vm5467_vm13, %v5478_v16, %v5480_v6  ;;  %v5233_v48 = vand.u32 8388607, %v16288_v17  ;;  %vm5237_vm15 = vcmp.gt.s32.totalorder %v5236_v56, 0  ;;  %v13539_v36 = vpop.f32.mrb[33].mxu1 }
 0x53c   : > { %vm8400_vm5 = vcmp.lt.s32.totalorder %v8399_v60, 0  ;;  %v8390_v4 = vmin.u32 %v4980_v13, %v13479_v3  ;;  %v5238_v47 = vsel %vm5237_vm15, %v5236_v56, 0  ;;  %v13498_v23 = vmul.f32 %v4341_v12, %v13354_v42  ;;  %v13611_v20 = vpop.f32.mrb[34].mxu1 }
 0x53d   : > { %v5473_v58 = vsel %vm5467_vm13, %v5470_v43, %v5472_v28  ;;  %v13501_v19 = vmul.u32.u64.low %v5482_v61, %v5481_v8  ;;  %v13502_v21 = vmul.u32.u64.high %v5482_v61, %v5481_v8, %v13501_v19  ;;  %v5240_v30 = vand.u32 31, %v5238_v47 }
 0x53e   : > { %16753 = vst [vmem:[#allocation51_spill] sm:$0xff] %v13498_v23  ;;  %v16754_v35 = vand.u32 2147483647, %v13445_v0  ;;  %v16755_v11 = vcvt.s32.f32 %v13443_v51  ;;  %v16756_v13 = vshll.u32 %v13308_v24, %v13423_v41  ;;  %v5492_v12 = vadd.s32 1, %v13490_v54 }
 0x53f   : > { %v13518_v44 = vor.u32 4788187, %v4888_v49  ;;  %v13520_v63 = vsel %vm8400_vm5, 0, %v8399_v60  ;;  %v5234_v16 = vor.u32 8388608, %v5233_v48  ;;  %v5241_v43 = vsub.s32 32, %v5240_v30 }
 0x540   : > { %v13509_v40 = vmul.f32 %v16755_v11, %v16754_v35  ;;  %v13515_v42 = vor.u32 %v13463_v52, %v16756_v13  ;;  %v4982_v31 = vclz %v8390_v4  ;;  %v5489_v0 = vmul.u32 %v5482_v61, %v5473_v58 }
 0x541   : > { %v5239_v59 = vshrl.u32 %v5238_v47, 5  ;;  %v5541_v51 = vand.u32 2139095040, %v13498_v23  ;;  %vm5491_vm11 = vc.u32 %v13502_v21, %v13489_v9  ;;  %v5243_v24 = vshll.u32 %v16429_v2, %v5240_v30 }
 0x542   : > { %v5244_v41 = vshrl.u32 %v16715_v10, %v5241_v43  ;;  %v5246_v52 = vshll.u32 %v16715_v10, %v5240_v30  ;;  %v5493_v56 = vsel %vm5491_vm11, %v5492_v12, %v13490_v54  ;;  %v5247_v60 = vshrl.u32 %v16716_v5, %v5241_v43 }
 0x543   : > { %v5249_v48 = vshll.u32 %v16716_v5, %v5240_v30  ;;  %v5252_v61 = vshll.u32 %v16717_v18, %v5240_v30  ;;  %v5494_v28 = vadd.s32 %v5493_v56, %v5489_v0  ;;  %v5250_v49 = vshrl.u32 %v16717_v18, %v5241_v43 }
 0x544   : > { %v5245_v6 = vor.u32 %v5244_v41, %v5243_v24  ;;  %v5253_v8 = vshrl.u32 %v16718_v1, %v5241_v43  ;;  %v5198_v4 = vsub.s32 4294967266, %v13520_v63  ;;  %v5248_v47 = vor.u32 %v5247_v60, %v5246_v52 }
 0x545   : > { %v5255_v58 = vshll.u32 %v16718_v1, %v5240_v30  ;;  %v5256_v19 = vshrl.u32 %v16440_v62, %v5241_v43  ;;  %v5495_v54 = vadd.s32 536870912, %v5494_v28  ;;  %v5251_v35 = vor.u32 %v5250_v49, %v5249_v48 }
 0x546   : > { %v5254_v11 = vor.u32 %v5253_v8, %v5252_v61  ;;  %v5274_v13 = vshll.u32 %v5234_v16, 8  ;;  %v8391_v12 = vadd.s32 4294967294, %v4982_v31  ;;  %vm5258_vm8 = vcmp.lt.s32.totalorder %v5239_v59, 1 }
 0x547   : > { %v5257_v17 = vor.u32 %v5256_v19, %v5255_v58  ;;  %vm5261_vm9 = vcmp.lt.s32.totalorder %v5239_v59, 4  ;;  %v13537_v0 = vshrl.u32 %v5495_v54, 30  ;;  %v5266_v41 = vsel %vm5258_vm8, %v5245_v6, %v5248_v47 }
 0x548   : > { %v5263_v24 = vsel %vm5261_vm9, %v5251_v35, 2102212464  ;;  %v5542_v56 = vshrl.u32 %v5541_v51, 23  ;;  %v5242_v52 = vshrl.u32 %v16429_v2, %v5241_v43  ;;  %vm5260_vm7 = vcmp.lt.s32.totalorder %v5239_v59, 3 }
 0x549   : > { %16757 = vst [vmem:[#allocation58_spill] sm:$0xff] %v13537_v0  ;;  %v5267_v30 = vsel %vm5261_vm9, %v5254_v11, 920167782  ;;  %v5270_v60 = vsel %vm5258_vm8, %v5248_v47, %v5251_v35  ;;  %v5497_v48 = vshll.u32 %v13537_v0, 30  ;;  %vm5259_vm2 = vcmp.lt.s32.totalorder %v5239_v59, 2 }
 0x54a   : > { %v5268_v16 = vsel %vm5260_vm7, %v5251_v35, %v5267_v30  ;;  %v5271_v31 = vsel %vm5261_vm9, %v5257_v17, 1326507024  ;;  %v5262_v61 = vsel %vm5258_vm8, %v5242_v52, %v5245_v6  ;;  %v5264_v49 = vsel %vm5260_vm7, %v5248_v47, %v5263_v24 }
 0x54b   : > { %v5269_v8 = vsel %vm5259_vm2, %v5266_v41, %v5268_v16  ;;  %v5272_v58 = vsel %vm5260_vm7, %v5254_v11, %v5271_v31  ;;  %v13543_v19 = vsub.s32 %v5494_v28, %v5497_v48  ;;  %v5199_v43 = vadd.s32 127, %v5198_v4 }
 0x54c   : > { %v5273_v54 = vsel %vm5259_vm2, %v5270_v60, %v5272_v58  ;;  %v13545_v51 = vmul.u32.u64.low %v5274_v13, %v5269_v8  ;;  %v13546_v46 = vmul.u32.u64.high %v5274_v13, %v5269_v8, %v13545_v51  ;;  %v8413_v22 = vadd.s32 4294967169, %v5542_v56 }
 0x54d   : > { %v13549_v25 = vmul.u32.u64.low %v5274_v13, %v5273_v54  ;;  %v13550_v37 = vmul.u32.u64.high %v5274_v13, %v5273_v54, %v13549_v25  ;;  %v5178_v59 = vadd.s32 %v13321_v15, %v13330_v38  ;;  %v5265_v17 = vsel %vm5259_vm2, %v5262_v61, %v5264_v49 }
 0x54e   : > { %v16293_v6 = vand.u32 2147483647, %v13498_v23  ;;  %v13557_v28 = vadd.f32 %v13344_v32, %v13056_v33  ;;  %v4890_v47 = vand.u32 2147483647, %v13518_v44  ;;  %v4892_v35 = vcvt.s32.f32 %v13515_v42 }
 0x54f   : > { %v5500_v4 = vsub.s32 0, %v13543_v19  ;;  %v5548_v11 = vadd.s32 1, %v8413_v22  ;;  %v5194_v25 = vsub.s32 32, %v13520_v63  ;;  %vm8392_vm3 = vcmp.lt.s32.totalorder %v8391_v12, 0 }
 0x550   : > { %v5284_v24 = vadd.s32 1, %v13546_v46  ;;  %v13566_v15 = vadd.f32 %v13344_v32, %v13171_v14  ;;  %v5200_v38 = vshll.u32 %v5199_v43, 23  ;;  %v5281_v41 = vmul.u32 %v5274_v13, %v5265_v17 }
 0x551   : > { %vm5283_vm14 = vc.u32 %v13550_v37, %v13545_v51  ;;  %vm5549_vm12 = vcmp.gt.s32.totalorder %v5548_v11, 0  ;;  %v5545_v22 = vand.u32 8388607, %v16293_v6  ;;  %v4275_v44 = vand.u32 2147483647, %v13557_v28 }
 0x552   : > { %v5285_v33 = vsel %vm5283_vm14, %v5284_v24, %v13546_v46  ;;  %v5550_v42 = vsel %vm5549_vm12, %v5548_v11, 0  ;;  %v13574_v56 = vsel %vm8392_vm3, 0, %v8391_v12  ;;  %v8410_v52 = vmin.u32 %v5500_v4, %v13543_v19 }
 0x553   : > { %v5286_v14 = vadd.s32 %v5285_v33, %v5281_v41  ;;  %v5552_v30 = vand.u32 31, %v5550_v42  ;;  %v13577_v60 = vmul.f32 %v4892_v35, %v4890_v47  ;;  %v5195_v13 = vshll.u32 %v13409_v26, %v13520_v63 }
 0x554   : > { %v13583_v46 = vadd.s32 %v13400_v45, %v13407_v57  ;;  %v13587_v48 = vadd.f32 %v13344_v32, %v13205_v39  ;;  %v5196_v16 = vshrl.u32 %v5178_v59, %v5194_v25  ;;  %v13589_v12 = vor.u32 4788187, %v5200_v38 }
 0x555   : > { %v5287_v31 = vadd.s32 536870912, %v5286_v14  ;;  %v5553_v61 = vsub.s32 32, %v5552_v30  ;;  %v4990_v49 = vsub.s32 4294967266, %v13574_v56  ;;  %v5546_v8 = vor.u32 8388608, %v5545_v22 }
 0x556   : > { %v4307_v58 = vadd.f32 1.0, %v4275_v44  ;;  %v4280_v54 = vand.u32 2147483647, %v13566_v15  ;;  %v5502_v26 = vclz %v8410_v52  ;;  %v13595_v45 = vshrl.u32 %v5550_v42, 5 }
 0x557   : > { %v13593_v63 = vshrl.u32 %v5287_v31, 30  ;;  %v5556_v57 = vshrl.u32 %v16715_v10, %v5553_v61  ;;  %v5555_v39 = vshll.u32 %v16429_v2, %v5552_v30  ;;  %v5558_v43 = vshll.u32 %v16715_v10, %v5552_v30 }
 0x558   : > { %v5559_v59 = vshrl.u32 %v16716_v5, %v5553_v61  ;;  %v5561_v17 = vshll.u32 %v16716_v5, %v5552_v30  ;;  %v5562_v47 = vshrl.u32 %v16717_v18, %v5553_v61  ;;  %v5564_v35 = vshll.u32 %v16717_v18, %v5552_v30 }
 0x559   : > { %16758 = vst [vmem:[#allocation56_spill] sm:$0xff] %v13593_v63  ;;  %v5565_v4 = vshrl.u32 %v16718_v1, %v5553_v61  ;;  %v5567_v11 = vshll.u32 %v16718_v1, %v5552_v30  ;;  %v5289_v25 = vshll.u32 %v13593_v63, 30  ;;  %v5557_v24 = vor.u32 %v5556_v57, %v5555_v39 }
 0x55a   : > { %v5560_v38 = vor.u32 %v5559_v59, %v5558_v43  ;;  %v5568_v41 = vshrl.u32 %v16440_v62, %v5553_v61  ;;  %vm4500_vm0 = vcmp.lt.s32.totalorder %v12875_v53, 0  ;;  %v5197_v33 = vor.u32 %v5196_v16, %v5195_v13 }
 0x55b   : > { %v5202_v22 = vand.u32 2147483647, %v13589_v12  ;;  %v5563_v42 = vor.u32 %v5562_v47, %v5561_v17  ;;  %v5566_v44 = vor.u32 %v5565_v4, %v5564_v35  ;;  %v4986_v52 = vsub.s32 32, %v13574_v56 }
 0x55c   : > { %v4991_v31 = vadd.s32 127, %v4990_v49  ;;  %v5569_v6 = vor.u32 %v5568_v41, %v5567_v11  ;;  %v4339_v0 = vmul.f32 30.0, %v4307_v58  ;;  %v8411_v30 = vadd.s32 4294967294, %v5502_v26 }
 0x55d   : > { %vm5570_vm4 = vcmp.lt.s32.totalorder %v13595_v45, 1  ;;  %v5586_v57 = vshll.u32 %v5546_v8, 8  ;;  %v4312_v39 = vadd.f32 1.0, %v4280_v54  ;;  %v13614_v43 = vsub.s32 %v5286_v14, %v5289_v25 }
 0x55e   : > { %v5554_v13 = vshrl.u32 %v16429_v2, %v5553_v61  ;;  %vm5573_vm1 = vcmp.lt.s32.totalorder %v13595_v45, 4  ;;  %v5578_v16 = vsel %vm5570_vm4, %v5557_v24, %v5560_v38  ;;  %vm5572_vm6 = vcmp.lt.s32.totalorder %v13595_v45, 3 }
 0x55f   : > { %v5575_v12 = vsel %vm5573_vm1, %v5563_v42, 2102212464  ;;  %v5579_v49 = vsel %vm5573_vm1, %v5566_v44, 920167782  ;;  %v5582_v58 = vsel %vm5570_vm4, %v5560_v38, %v5563_v42  ;;  %vm5020_vm13 = vcmp.lt.s32.totalorder %v13100_v29, 0 }
 0x560   : > { %vm5571_vm15 = vcmp.lt.s32.totalorder %v13595_v45, 2  ;;  %v5580_v14 = vsel %vm5572_vm6, %v5563_v42, %v5579_v49  ;;  %v5583_v8 = vsel %vm5573_vm1, %v5569_v6, 1326507024  ;;  %v13626_v61 = vmul.f32 %v4339_v0, %v13557_v28 }
 0x561   : > { %vm4812_vm5 = vcmp.lt.s32.totalorder %v13102_v55, 0  ;;  %vm8412_vm11 = vcmp.lt.s32.totalorder %v8411_v30, 0  ;;  %v5574_v54 = vsel %vm5570_vm4, %v5554_v13, %v5557_v24  ;;  %v5581_v26 = vsel %vm5571_vm15, %v5578_v16, %v5580_v14 }
 0x562   : > { %16759 = vst [vmem:[#allocation64_spill] sm:$0xff] %v13626_v61  ;;  %v5584_v59 = vsel %vm5572_vm6, %v5566_v44, %v5583_v8  ;;  %v5576_v17 = vsel %vm5572_vm6, %v5560_v38, %v5575_v12  ;;  %v13635_v35 = vmul.u32.u64.low %v5586_v57, %v5581_v26  ;;  %v13636_v4 = vmul.u32.u64.high %v5586_v57, %v5581_v26, %v13635_v35  ;;  %v16762_v38 = vld [vmem:[#allocation27_spill] sm:$0xff] }
 0x563   : > { %v5585_v47 = vsel %vm5571_vm15, %v5582_v58, %v5584_v59  ;;  %v5204_v0 = vcvt.s32.f32 %v5197_v33  ;;  %v5292_v6 = vsub.s32 0, %v13614_v43  ;;  %v16760_v25 = vxor.u32 2147483648, %v13457_v27 }
 0x564   : > { %v13640_v28 = vmul.u32.u64.low %v5586_v57, %v5585_v47  ;;  %v13641_v11 = vmul.u32.u64.high %v5586_v57, %v5585_v47, %v13640_v28  ;;  %vm5124_vm8 = vcmp.lt.s32.totalorder %v16762_v38, 0  ;;  %v13651_v41 = vsel %vm8412_vm11, 0, %v8411_v30 }
 0x565   : > { %v13648_v24 = vsel %vm4500_vm0, %v16760_v25, %v13457_v27  ;;  %v5333_v42 = vand.u32 2139095040, %v13626_v61  ;;  %v4344_v44 = vmul.f32 30.0, %v4312_v39  ;;  %v5102_v33 = vxor.u32 2147483648, %v13509_v40 }
 0x566   : > { %16761 = vst [vmem:[#allocation8_spill] sm:$0xff] %v13648_v24  ;;  %v5205_v13 = vmul.f32 %v5204_v0, %v5202_v22  ;;  %v4988_v16 = vshrl.u32 %v13583_v46, %v4986_v52  ;;  %v5577_v12 = vsel %vm5571_vm15, %v5574_v54, %v5576_v17  ;;  %v4894_v49 = vxor.u32 2147483648, %v13577_v60 }
 0x567   : > { %v4992_v58 = vshll.u32 %v4991_v31, 23  ;;  %v5596_v27 = vadd.s32 1, %v13636_v4  ;;  %v5334_v14 = vshrl.u32 %v5333_v42, 23  ;;  %v4987_v30 = vshll.u32 %v13479_v3, %v13574_v56 }
 0x568   : > { %v5510_v8 = vsub.s32 4294967266, %v13651_v41  ;;  %v8402_v39 = vmin.u32 %v5292_v6, %v13614_v43  ;;  %v4278_v22 = vand.u32 2147483647, %v13587_v48  ;;  %v5593_v26 = vmul.u32 %v5586_v57, %v5577_v12 }
 0x569   : > { %vm5595_vm9 = vc.u32 %v13641_v11, %v13635_v35  ;;  %v8405_v46 = vadd.s32 4294967169, %v5334_v14  ;;  %v13668_v45 = vmul.f32 %v4344_v44, %v13566_v15  ;;  %v13673_v52 = vsel %vm5020_vm13, %v5102_v33, %v13509_v40 }
 0x56a   : > { %16764 = vst [vmem:[#allocation26_spill] sm:$0xff] %v13673_v52  ;;  %v5206_v3 = vxor.u32 2147483648, %v5205_v13  ;;  %v13675_v56 = vor.u32 %v4988_v16, %v4987_v30  ;;  %v5597_v31 = vsel %vm5595_vm9, %v5596_v27, %v13636_v4  ;;  %v13681_v57 = vsel %vm4812_vm5, %v4894_v49, %v13577_v60  ;;  %v16768_v49 = vld [vmem:[#allocation43_spill] sm:$0xff] }
 0x56b   : > { %16763 = vst [vmem:[#allocation13_spill] sm:$0xff] %v13668_v45  ;;  %16765 = vst [vmem:[#allocation15_spill] sm:$0xff] %v13681_v57  ;;  %v13683_v54 = vor.u32 4788187, %v4992_v58  ;;  %v5598_v59 = vadd.s32 %v5597_v31, %v5593_v26  ;;  %v5340_v15 = vadd.s32 1, %v8405_v46  ;;  %v5506_v17 = vsub.s32 32, %v13651_v41 }
 0x56c   : > { %v13686_v47 = vadd.s32 127, %v5510_v8  ;;  %v5294_v40 = vclz %v8402_v39  ;;  %v4310_v0 = vadd.f32 1.0, %v4278_v22  ;;  %v16298_v28 = vand.u32 2147483647, %v13626_v61  ;;  %v13711_v22 = vpop.f32.mrb[35].mxu1 }
 0x56d   : > { %v5599_v6 = vadd.s32 536870912, %v5598_v59  ;;  %vm5341_vm7 = vcmp.gt.s32.totalorder %v5340_v15, 0  ;;  %v5853_v4 = vand.u32 2139095040, %v13668_v45  ;;  %v13692_v60 = vsel %vm5124_vm8, %v5206_v3, %v5205_v13 }
 0x56e   : > { %16766 = vst [vmem:[#allocation25_spill] sm:$0xff] %v13692_v60  ;;  %v5490_v42 = vadd.s32 %v13489_v9, %v13502_v21  ;;  %v5342_v44 = vsel %vm5341_vm7, %v5340_v15, 0  ;;  %v4994_v33 = vand.u32 2147483647, %v13683_v54  ;;  %v13702_v58 = vadd.f32 %v13344_v32, %v16768_v49 }
 0x56f   : > { %v13698_v16 = vshrl.u32 %v5599_v6, 30  ;;  %v5344_v12 = vand.u32 31, %v5342_v44  ;;  %v5507_v27 = vshll.u32 %v13543_v19, %v13651_v41  ;;  %v5512_v14 = vshll.u32 %v13686_v47, 23 }
 0x570   : > { %v5508_v13 = vshrl.u32 %v5490_v42, %v5506_v17  ;;  %v13707_v30 = vadd.s32 4294967294, %v5294_v40  ;;  %v5337_v9 = vand.u32 8388607, %v16298_v28  ;;  %v5854_v8 = vshrl.u32 %v5853_v4, 23 }
 0x571   : > { %16767 = vst [vmem:[#allocation44_spill] sm:$0xff] %v13698_v16  ;;  %v5345_v21 = vsub.s32 32, %v5344_v12  ;;  %v4342_v39 = vmul.f32 30.0, %v4310_v0  ;;  %v5601_v26 = vshll.u32 %v13698_v16, 30  ;;  %v5343_v46 = vshrl.u32 %v5342_v44, 5 }
 0x572   : > { %v5347_v3 = vshll.u32 %v16429_v2, %v5344_v12  ;;  %v5350_v19 = vshll.u32 %v16715_v10, %v5344_v12  ;;  %v5353_v54 = vshll.u32 %v16716_v5, %v5344_v12  ;;  %v5356_v15 = vshll.u32 %v16717_v18, %v5344_v12 }
 0x573   : > { %v5348_v41 = vshrl.u32 %v16715_v10, %v5345_v21  ;;  %v5351_v31 = vshrl.u32 %v16716_v5, %v5345_v21  ;;  %v5354_v17 = vshrl.u32 %v16717_v18, %v5345_v21  ;;  %v5357_v47 = vshrl.u32 %v16718_v1, %v5345_v21 }
 0x574   : > { %v5359_v40 = vshll.u32 %v16718_v1, %v5344_v12  ;;  %v5360_v0 = vshrl.u32 %v16440_v62, %v5345_v21  ;;  %v5338_v6 = vor.u32 8388608, %v5337_v9  ;;  %v16304_v44 = vand.u32 2147483647, %v13668_v45 }
 0x575   : > { %v5349_v4 = vor.u32 %v5348_v41, %v5347_v3  ;;  %v5352_v42 = vor.u32 %v5351_v31, %v5350_v19  ;;  %v5355_v49 = vor.u32 %v5354_v17, %v5353_v54  ;;  %v5358_v28 = vor.u32 %v5357_v47, %v5356_v15 }
 0x576   : > { %v5361_v25 = vor.u32 %v5360_v0, %v5359_v40  ;;  %v8425_v16 = vadd.s32 4294967169, %v5854_v8  ;;  %v13725_v63 = vsub.s32 %v5598_v59, %v5601_v26  ;;  %v5346_v60 = vshrl.u32 %v16429_v2, %v5345_v21 }
 0x577   : > { %vm5362_vm2 = vcmp.lt.s32.totalorder %v5343_v46, 1  ;;  %vm5365_vm3 = vcmp.lt.s32.totalorder %v5343_v46, 4  ;;  %vm5364_vm14 = vcmp.lt.s32.totalorder %v5343_v46, 3  ;;  %vm5363_vm12 = vcmp.lt.s32.totalorder %v5343_v46, 2 }
 0x578   : > { %v5367_v38 = vsel %vm5365_vm3, %v5355_v49, 2102212464  ;;  %v5370_v12 = vsel %vm5362_vm2, %v5349_v4, %v5352_v42  ;;  %v5371_v52 = vsel %vm5365_vm3, %v5358_v28, 920167782  ;;  %v5374_v3 = vsel %vm5362_vm2, %v5352_v42, %v5355_v49 }
 0x579   : > { %v5372_v9 = vsel %vm5364_vm14, %v5355_v49, %v5371_v52  ;;  %v5378_v19 = vshll.u32 %v5338_v6, 8  ;;  %v5366_v41 = vsel %vm5362_vm2, %v5346_v60, %v5349_v4  ;;  %v5375_v54 = vsel %vm5365_vm3, %v5361_v25, 1326507024  ;;  %v16771_v4 = vld [vmem:[#allocation22_spill] sm:$0xff] }
 0x57a   : > { %v5373_v31 = vsel %vm5363_vm12, %v5370_v12, %v5372_v9  ;;  %v5860_v15 = vadd.s32 1, %v8425_v16  ;;  %v5368_v8 = vsel %vm5364_vm14, %v5352_v42, %v5367_v38  ;;  %v5376_v59 = vsel %vm5364_vm14, %v5358_v28, %v5375_v54 }
 0x57b   : > { %v13729_v26 = vmul.u32.u64.low %v5378_v19, %v5373_v31  ;;  %v13730_v17 = vmul.u32.u64.high %v5378_v19, %v5373_v31, %v13729_v26  ;;  %v5604_v21 = vsub.s32 0, %v13725_v63  ;;  %v5377_v47 = vsel %vm5363_vm12, %v5374_v3, %v5376_v59 }
 0x57c   : > { %v5857_v52 = vand.u32 8388607, %v16304_v44  ;;  %vm5861_vm4 = vcmp.gt.s32.totalorder %v5860_v15, 0  ;;  %v13737_v40 = vmul.u32.u64.low %v5378_v19, %v5377_v47  ;;  %v13738_v60 = vmul.u32.u64.high %v5378_v19, %v5377_v47, %v13737_v40 }
 0x57d   : > { %v5862_v0 = vsel %vm5861_vm4, %v5860_v15, 0  ;;  %v13741_v25 = vmul.f32 %v4342_v39, %v13587_v48  ;;  %v16770_v38 = vcvt.s32.f32 %v13675_v56  ;;  %v5369_v16 = vsel %vm5363_vm12, %v5366_v41, %v5368_v8 }
 0x57e   : > { %v5864_v6 = vand.u32 31, %v5862_v0  ;;  %v13750_v42 = vadd.f32 %v13344_v32, %v16771_v4  ;;  %v13752_v49 = vor.u32 %v5508_v13, %v5507_v27  ;;  %v13754_v12 = vor.u32 4788187, %v5512_v14 }
 0x57f   : > { %16769 = vst [vmem:[#allocation9_spill] sm:$0xff] %v13741_v25  ;;  %v13745_v28 = vmul.f32 %v16770_v38, %v4994_v33  ;;  %v5388_v9 = vadd.s32 1, %v13730_v17  ;;  %v4281_v48 = vand.u32 2147483647, %v13702_v58  ;;  %vm8404_vm1 = vcmp.lt.s32.totalorder %v13707_v30, 0 }
 0x580   : > { %v8414_v56 = vmin.u32 %v5604_v21, %v13725_v63  ;;  %v5858_v33 = vor.u32 8388608, %v5857_v52  ;;  %v5865_v39 = vsub.s32 32, %v5864_v6  ;;  %v5385_v46 = vmul.u32 %v5378_v19, %v5369_v16 }
 0x581   : > { %vm5387_vm6 = vc.u32 %v13738_v60, %v13729_v26  ;;  %v5867_v32 = vshll.u32 %v16429_v2, %v5864_v6  ;;  %v5645_v27 = vand.u32 2139095040, %v13741_v25  ;;  %v5870_v3 = vshll.u32 %v16715_v10, %v5864_v6 }
 0x582   : > { %v5389_v13 = vsel %vm5387_vm6, %v5388_v9, %v13730_v17  ;;  %v5868_v14 = vshrl.u32 %v16715_v10, %v5865_v39  ;;  %v5871_v41 = vshrl.u32 %v16716_v5, %v5865_v39  ;;  %v5863_v54 = vshrl.u32 %v5862_v0, 5 }
 0x583   : > { %v5390_v31 = vadd.s32 %v5389_v13, %v5385_v46  ;;  %v5873_v15 = vshll.u32 %v16716_v5, %v5864_v6  ;;  %v5874_v19 = vshrl.u32 %v16717_v18, %v5865_v39  ;;  %v5876_v21 = vshll.u32 %v16717_v18, %v5864_v6 }
 0x584   : > { %v5869_v8 = vor.u32 %v5868_v14, %v5867_v32  ;;  %v5872_v59 = vor.u32 %v5871_v41, %v5870_v3  ;;  %v5877_v47 = vshrl.u32 %v16718_v1, %v5865_v39  ;;  %v13775_v17 = vsel %vm8404_vm1, 0, %v13707_v30 }
 0x585   : > { %v5391_v52 = vadd.s32 536870912, %v5390_v31  ;;  %v5875_v40 = vor.u32 %v5874_v19, %v5873_v15  ;;  %v4313_v38 = vadd.f32 1.0, %v4281_v48  ;;  %v5879_v0 = vshll.u32 %v16718_v1, %v5864_v6  ;;  %v13784_v6 = vpop.f32.mrb[36].mxu1 }
 0x586   : > { %v5878_v16 = vor.u32 %v5877_v47, %v5876_v21  ;;  %v5880_v4 = vshrl.u32 %v16440_v62, %v5865_v39  ;;  %v5898_v9 = vshll.u32 %v5858_v33, 8  ;;  %v5606_v46 = vclz %v8414_v56 }
 0x587   : > { %v13779_v32 = vshrl.u32 %v5391_v52, 30  ;;  %vm5882_vm15 = vcmp.lt.s32.totalorder %v5863_v54, 1  ;;  %v5646_v13 = vshrl.u32 %v5645_v27, 23  ;;  %vm5884_vm11 = vcmp.lt.s32.totalorder %v5863_v54, 3 }
 0x588   : > { %v5881_v14 = vor.u32 %v5880_v4, %v5879_v0  ;;  %vm5885_vm9 = vcmp.lt.s32.totalorder %v5863_v54, 4  ;;  %v5890_v30 = vsel %vm5882_vm15, %v5869_v8, %v5872_v59  ;;  %v5866_v48 = vshrl.u32 %v16429_v2, %v5865_v39 }
 0x589   : > { %16772 = vst [vmem:[#allocation6_spill] sm:$0xff] %v13779_v32  ;;  %v5393_v3 = vshll.u32 %v13779_v32, 30  ;;  %v5887_v41 = vsel %vm5885_vm9, %v5875_v40, 2102212464  ;;  %v5891_v15 = vsel %vm5885_vm9, %v5878_v16, 920167782  ;;  %v5894_v33 = vsel %vm5882_vm15, %v5872_v59, %v5875_v40 }
 0x58a   : > { %vm5883_vm7 = vcmp.lt.s32.totalorder %v5863_v54, 2  ;;  %v5892_v56 = vsel %vm5884_vm11, %v5875_v40, %v5891_v15  ;;  %v5895_v19 = vsel %vm5885_vm9, %v5881_v14, 1326507024  ;;  %v5298_v27 = vsub.s32 32, %v13775_v17 }
 0x58b   : > { %v8415_v21 = vadd.s32 4294967294, %v5606_v46  ;;  %v5886_v47 = vsel %vm5882_vm15, %v5866_v48, %v5869_v8  ;;  %v5893_v52 = vsel %vm5883_vm7, %v5890_v30, %v5892_v56  ;;  %v5888_v0 = vsel %vm5884_vm11, %v5872_v59, %v5887_v41 }
 0x58c   : > { %v5896_v39 = vsel %vm5884_vm11, %v5878_v16, %v5895_v19  ;;  %v13793_v4 = vmul.u32.u64.low %v5898_v9, %v5893_v52  ;;  %v13794_v44 = vmul.u32.u64.high %v5898_v9, %v5893_v52, %v13793_v4  ;;  %v5302_v15 = vsub.s32 4294967266, %v13775_v17 }
 0x58d   : > { %v13798_v32 = vsub.s32 %v5390_v31, %v5393_v3  ;;  %v5897_v40 = vsel %vm5883_vm7, %v5894_v33, %v5896_v39  ;;  %v8417_v14 = vadd.s32 4294967169, %v5646_v13  ;;  %v5516_v46 = vcvt.s32.f32 %v13752_v49 }
 0x58e   : > { %v5282_v8 = vadd.s32 %v13545_v51, %v13550_v37  ;;  %v13804_v30 = vmul.u32.u64.low %v5898_v9, %v5897_v40  ;;  %v13805_v59 = vmul.u32.u64.high %v5898_v9, %v5897_v40, %v13804_v30  ;;  %vm8416_vm2 = vcmp.lt.s32.totalorder %v8415_v21, 0 }
 0x58f   : > { %v5889_v16 = vsel %vm5883_vm7, %v5886_v47, %v5888_v0  ;;  %v16307_v48 = vand.u32 2147483647, %v13741_v25  ;;  %v5652_v41 = vadd.s32 1, %v8417_v14  ;;  %v5514_v31 = vand.u32 2147483647, %v13754_v12 }
 0x590   : > { %v5299_v3 = vshll.u32 %v13614_v43, %v13775_v17  ;;  %v5300_v13 = vshrl.u32 %v5282_v8, %v5298_v27  ;;  %v5908_v49 = vadd.s32 1, %v13794_v44  ;;  %v5303_v56 = vadd.s32 127, %v5302_v15 }
 0x591   : > { %v5396_v37 = vsub.s32 0, %v13798_v32  ;;  %vm5653_vm3 = vcmp.gt.s32.totalorder %v5652_v41, 0  ;;  %v4345_v51 = vmul.f32 30.0, %v4313_v38  ;;  %v13814_v33 = vsel %vm8416_vm2, 0, %v8415_v21 }
 0x592   : > { %v5905_v54 = vmul.u32 %v5898_v9, %v5889_v16  ;;  %vm5907_vm14 = vc.u32 %v13805_v59, %v13793_v4  ;;  %v5654_v19 = vsel %vm5653_vm3, %v5652_v41, 0  ;;  %v5649_v43 = vand.u32 8388607, %v16307_v48 }
 0x593   : > { %v5909_v47 = vsel %vm5907_vm14, %v5908_v49, %v13794_v44  ;;  %v5656_v17 = vand.u32 31, %v5654_v19  ;;  %v13822_v27 = vmul.f32 %v5516_v46, %v5514_v31  ;;  %v13824_v52 = vor.u32 %v5300_v13, %v5299_v3 }
 0x594   : > { %v5594_v38 = vadd.s32 %v13635_v35, %v13641_v11  ;;  %v5910_v9 = vadd.s32 %v5909_v47, %v5905_v54  ;;  %v5304_v21 = vshll.u32 %v5303_v56, 23  ;;  %v5610_v0 = vsub.s32 32, %v13814_v33 }
 0x595   : > { %v8406_v39 = vmin.u32 %v5396_v37, %v13798_v32  ;;  %v5657_v15 = vsub.s32 32, %v5656_v17  ;;  %v5614_v44 = vsub.s32 4294967266, %v13814_v33  ;;  %v13832_v14 = vmul.f32 %v4345_v51, %v13702_v58 }
 0x596   : > { %v5911_v40 = vadd.s32 536870912, %v5910_v9  ;;  %v4279_v46 = vand.u32 2147483647, %v13750_v42  ;;  %v5650_v8 = vor.u32 8388608, %v5649_v43  ;;  %v5659_v30 = vshll.u32 %v16429_v2, %v5656_v17 }
 0x597   : > { %16773 = vst [vmem:[#allocation20_spill] sm:$0xff] %v13832_v14  ;;  %v5662_v35 = vshll.u32 %v16715_v10, %v5656_v17  ;;  %v5665_v11 = vshll.u32 %v16716_v5, %v5656_v17  ;;  %v5660_v41 = vshrl.u32 %v16715_v10, %v5657_v15  ;;  %v5663_v31 = vshrl.u32 %v16716_v5, %v5657_v15 }
 0x598   : > { %v13838_v16 = vshrl.u32 %v5911_v40, 30  ;;  %v5666_v3 = vshrl.u32 %v16717_v18, %v5657_v15  ;;  %v5398_v13 = vclz %v8406_v39  ;;  %v5655_v58 = vshrl.u32 %v5654_v19, 5 }
 0x599   : > { %v5668_v49 = vshll.u32 %v16717_v18, %v5656_v17  ;;  %v5669_v56 = vshrl.u32 %v16718_v1, %v5657_v15  ;;  %v5661_v37 = vor.u32 %v5660_v41, %v5659_v30  ;;  %v5664_v51 = vor.u32 %v5663_v31, %v5662_v35  ;;  %v13852_v31 = vpop.f32.mrb[37].mxu1 }
 0x59a   : > { %16774 = vst [vmem:[#allocation17_spill] sm:$0xff] %v13838_v16  ;;  %v5667_v54 = vor.u32 %v5666_v3, %v5665_v11  ;;  %v5957_v47 = vand.u32 2139095040, %v13832_v14  ;;  %v13846_v43 = vor.u32 4788187, %v5304_v21  ;;  %v5671_v48 = vshll.u32 %v16718_v1, %v5656_v17 }
 0x59b   : > { %v5670_v40 = vor.u32 %v5669_v56, %v5668_v49  ;;  %v5672_v12 = vshrl.u32 %v16440_v62, %v5657_v15  ;;  %v5612_v29 = vshrl.u32 %v5594_v38, %v5610_v0  ;;  %v5615_v57 = vadd.s32 127, %v5614_v44  ;;  %v16775_v0 = vld [vmem:[#allocation32_spill] sm:$0xff] }
 0x59c   : > { %v5913_v19 = vshll.u32 %v13838_v16, 30  ;;  %v4311_v39 = vadd.f32 1.0, %v4279_v46  ;;  %vm5674_vm12 = vcmp.lt.s32.totalorder %v5655_v58, 1  ;;  %vm5677_vm4 = vcmp.lt.s32.totalorder %v5655_v58, 4 }
 0x59d   : > { %v5673_v55 = vor.u32 %v5672_v12, %v5671_v48  ;;  %v5690_v30 = vshll.u32 %v5650_v8, 8  ;;  %v8407_v35 = vadd.s32 4294967294, %v5398_v13  ;;  %v5679_v11 = vsel %vm5677_vm4, %v5667_v54, 2102212464 }
 0x59e   : > { %v5682_v41 = vsel %vm5674_vm12, %v5661_v37, %v5664_v51  ;;  %v5958_v21 = vshrl.u32 %v5957_v47, 23  ;;  %v5658_v17 = vshrl.u32 %v16429_v2, %v5657_v15  ;;  %vm5676_vm1 = vcmp.lt.s32.totalorder %v5655_v58, 3 }
 0x59f   : > { %v5683_v3 = vsel %vm5677_vm4, %v5670_v40, 920167782  ;;  %v5686_v38 = vsel %vm5674_vm12, %v5664_v51, %v5667_v54  ;;  %vm4916_vm6 = vcmp.lt.s32.totalorder %v16775_v0, 0  ;;  %v13857_v44 = vsub.s32 %v5910_v9, %v5913_v19 }
 0x5a0   : > { %vm5675_vm15 = vcmp.lt.s32.totalorder %v5655_v58, 2  ;;  %v5684_v48 = vsel %vm5676_vm1, %v5667_v54, %v5683_v3  ;;  %v5687_v12 = vsel %vm5677_vm4, %v5673_v55, 1326507024  ;;  %vm16403_vm11 = vcmp.lt.s32.totalorder %v13395_v50, 0 }
 0x5a1   : > { %v5678_v46 = vsel %vm5674_vm12, %v5658_v17, %v5661_v37  ;;  %v5680_v8 = vsel %vm5676_vm1, %v5664_v51, %v5679_v11  ;;  %v5685_v13 = vsel %vm5675_vm15, %v5682_v41, %v5684_v48  ;;  %v5688_v49 = vsel %vm5676_vm1, %v5670_v40, %v5687_v12 }
 0x5a2   : > { %vm8408_vm9 = vcmp.lt.s32.totalorder %v8407_v35, 0  ;;  %v5689_v15 = vsel %vm5675_vm15, %v5686_v38, %v5688_v49  ;;  %v13863_v56 = vmul.u32.u64.low %v5690_v30, %v5685_v13  ;;  %v13864_v47 = vmul.u32.u64.high %v5690_v30, %v5685_v13, %v13863_v56 }
 0x5a3   : > { %v5616_v9 = vshll.u32 %v5615_v57, 23  ;;  %v13867_v19 = vmul.u32.u64.low %v5690_v30, %v5689_v15  ;;  %v13868_v16 = vmul.u32.u64.high %v5690_v30, %v5689_v15, %v13867_v19  ;;  %v8429_v55 = vadd.s32 4294967169, %v5958_v21 }
 0x5a4   : > { %v5611_v54 = vshll.u32 %v13725_v63, %v13814_v33  ;;  %v5916_v37 = vsub.s32 0, %v13857_v44  ;;  %v5681_v51 = vsel %vm5675_vm15, %v5678_v46, %v5680_v8  ;;  %v16314_v40 = vand.u32 2147483647, %v13832_v14 }
 0x5a5   : > { %v5518_v11 = vxor.u32 2147483648, %v13822_v27  ;;  %v13876_v41 = vsel %vm8408_vm9, 0, %v8407_v35  ;;  %v5964_v17 = vadd.s32 1, %v8429_v55  ;;  %v4343_v3 = vmul.f32 30.0, %v4311_v39 }
 0x5a6   : > { %v5306_v57 = vand.u32 2147483647, %v13846_v43  ;;  %v5308_v38 = vcvt.s32.f32 %v13824_v52  ;;  %v13880_v21 = vor.u32 %v5612_v29, %v5611_v54  ;;  %v5700_v63 = vadd.s32 1, %v13864_v47 }
 0x5a7   : > { %v13883_v33 = vor.u32 4788187, %v5616_v9  ;;  %v5697_v58 = vmul.u32 %v5690_v30, %v5681_v51  ;;  %vm5699_vm7 = vc.u32 %v13868_v16, %v13863_v56  ;;  %vm5965_vm2 = vcmp.gt.s32.totalorder %v5964_v17, 0 }
 0x5a8   : > { %v5406_v35 = vsub.s32 4294967266, %v13876_v41  ;;  %v8426_v48 = vmin.u32 %v5916_v37, %v13857_v44  ;;  %v5701_v39 = vsel %vm5699_vm7, %v5700_v63, %v13864_v47  ;;  %v5961_v52 = vand.u32 8388607, %v16314_v40 }
 0x5a9   : > { %v16776_v29 = vxor.u32 2147483648, %v13745_v28  ;;  %v5702_v30 = vadd.s32 %v5701_v39, %v5697_v58  ;;  %v5966_v12 = vsel %vm5965_vm2, %v5964_v17, 0  ;;  %v13900_v46 = vmul.f32 %v4343_v3, %v13750_v42  ;;  %v13915_v42 = vld [vmem:[%s16106_s4] ss:$0 sm:$0xff] }
 0x5aa   : > { %v13905_v8 = vsel %vm16403_vm11, %v5518_v11, %v13822_v27  ;;  %v13907_v13 = vmul.f32 %v5308_v38, %v5306_v57  ;;  %v5968_v15 = vand.u32 31, %v5966_v12  ;;  %v13919_v19 = vadd.f32 %v13915_v42, %v13481_v34  ;;  %v13927_v57 = vpop.f32.mrb[38].mxu1 }
 0x5ab   : > { %v13897_v43 = vsel %vm4916_vm6, %v16776_v29, %v13745_v28  ;;  %16778 = vst [vmem:[#allocation34_spill] sm:$0xff] %v13905_v8  ;;  %v5703_v9 = vadd.s32 536870912, %v5702_v30  ;;  %v13921_v27 = vadd.s32 127, %v5406_v35  ;;  %v5918_v55 = vclz %v8426_v48 }
 0x5ac   : > { %16777 = vst [vmem:[#allocation12_spill] sm:$0xff] %v13897_v43  ;;  %v5962_v54 = vor.u32 8388608, %v5961_v52  ;;  %v5969_v37 = vsub.s32 32, %v5968_v15  ;;  %v5967_v11 = vshrl.u32 %v5966_v12, 5  ;;  %v5971_v17 = vshll.u32 %v16429_v2, %v5968_v15 }
 0x5ad   : > { %v13923_v51 = vshrl.u32 %v5703_v9, 30  ;;  %v5749_v3 = vand.u32 2139095040, %v13900_v46  ;;  %v5974_v63 = vshll.u32 %v16715_v10, %v5968_v15  ;;  %v5977_v34 = vshll.u32 %v16716_v5, %v5968_v15 }
 0x5ae   : > { %v5972_v38 = vshrl.u32 %v16715_v10, %v5969_v37  ;;  %v5980_v58 = vshll.u32 %v16717_v18, %v5968_v15  ;;  %v5975_v48 = vshrl.u32 %v16716_v5, %v5969_v37  ;;  %v5978_v39 = vshrl.u32 %v16717_v18, %v5969_v37 }
 0x5af   : > { %16779 = vst [vmem:[#allocation29_spill] sm:$0xff] %v13923_v51  ;;  %v5705_v35 = vshll.u32 %v13923_v51, 30  ;;  %v5981_v52 = vshrl.u32 %v16718_v1, %v5969_v37  ;;  %v8427_v29 = vadd.s32 4294967294, %v5918_v55  ;;  %v5983_v9 = vshll.u32 %v16718_v1, %v5968_v15 }
 0x5b0   : > { %v5973_v12 = vor.u32 %v5972_v38, %v5971_v17  ;;  %v5984_v40 = vshrl.u32 %v16440_v62, %v5969_v37  ;;  %v5976_v49 = vor.u32 %v5975_v48, %v5974_v63  ;;  %v5979_v47 = vor.u32 %v5978_v39, %v5977_v34 }
 0x5b1   : > { %v13939_v28 = vsub.s32 %v5702_v30, %v5705_v35  ;;  %v5982_v8 = vor.u32 %v5981_v52, %v5980_v58  ;;  %v6002_v43 = vshll.u32 %v5962_v54, 8  ;;  %v4284_v0 = vand.u32 2147483647, %v13919_v19 }
 0x5b2   : > { %v5985_v50 = vor.u32 %v5984_v40, %v5983_v9  ;;  %vm5986_vm3 = vcmp.lt.s32.totalorder %v5967_v11, 1  ;;  %vm5989_vm14 = vcmp.lt.s32.totalorder %v5967_v11, 4  ;;  %v5750_v55 = vshrl.u32 %v5749_v3, 23 }
 0x5b3   : > { %v5708_v24 = vsub.s32 0, %v13939_v28  ;;  %vm5987_vm12 = vcmp.lt.s32.totalorder %v5967_v11, 2  ;;  %vm5988_vm4 = vcmp.lt.s32.totalorder %v5967_v11, 3  ;;  %v5994_v15 = vsel %vm5986_vm3, %v5973_v12, %v5976_v49 }
 0x5b4   : > { %v5995_v30 = vsel %vm5989_vm14, %v5982_v8, 920167782  ;;  %v5991_v38 = vsel %vm5989_vm14, %v5979_v47, 2102212464  ;;  %v5998_v54 = vsel %vm5986_vm3, %v5976_v49, %v5979_v47  ;;  %vm16405_vm1 = vcmp.lt.s32.totalorder %v13441_v7, 0 }
 0x5b5   : > { %v8418_v17 = vmin.u32 %v5708_v24, %v13939_v28  ;;  %v5996_v40 = vsel %vm5988_vm4, %v5979_v47, %v5995_v30  ;;  %vm8428_vm15 = vcmp.lt.s32.totalorder %v8427_v29, 0  ;;  %v5970_v63 = vshrl.u32 %v16429_v2, %v5969_v37 }
 0x5b6   : > { %v5997_v34 = vsel %vm5987_vm12, %v5994_v15, %v5996_v40  ;;  %v5999_v3 = vsel %vm5989_vm14, %v5985_v50, 1326507024  ;;  %v5992_v52 = vsel %vm5988_vm4, %v5976_v49, %v5991_v38  ;;  %v8421_v9 = vadd.s32 4294967169, %v5750_v55 }
 0x5b7   : > { %v5710_v58 = vclz %v8418_v17  ;;  %v6000_v35 = vsel %vm5988_vm4, %v5982_v8, %v5999_v3  ;;  %v13952_v48 = vmul.u32.u64.low %v6002_v43, %v5997_v34  ;;  %v13953_v39 = vmul.u32.u64.high %v6002_v43, %v5997_v34, %v13952_v48 }
 0x5b8   : > { %v5990_v24 = vsel %vm5986_vm3, %v5970_v63, %v5973_v12  ;;  %v6001_v47 = vsel %vm5987_vm12, %v5998_v54, %v6000_v35  ;;  %v16780_v50 = vand.u32 2147483647, %v13900_v46  ;;  %v5386_v8 = vadd.s32 %v13729_v26, %v13738_v60 }
 0x5b9   : > { %v8419_v30 = vadd.s32 4294967294, %v5710_v58  ;;  %v13959_v51 = vmul.u32.u64.low %v6002_v43, %v6001_v47  ;;  %v13960_v37 = vmul.u32.u64.high %v6002_v43, %v6001_v47, %v13959_v51  ;;  %v13967_v17 = vsel %vm8428_vm15, 0, %v8427_v29 }
 0x5ba   : > { %v5753_v15 = vand.u32 8388607, %v16780_v50  ;;  %v5756_v40 = vadd.s32 1, %v8421_v9  ;;  %v4316_v12 = vadd.f32 1.0, %v4284_v0  ;;  %v5310_v49 = vxor.u32 2147483648, %v13907_v13 }
 0x5bb   : > { %v16781_v38 = vand.u32 2147483647, %v13883_v33  ;;  %v16782_v55 = vcvt.s32.f32 %v13880_v21  ;;  %v5993_v51 = vsel %vm5987_vm12, %v5990_v24, %v5992_v52  ;;  %v6012_v63 = vadd.s32 1, %v13953_v39 }
 0x5bc   : > { %v5403_v26 = vshll.u32 %v13798_v32, %v13876_v41  ;;  %v16783_v60 = vsub.s32 32, %v13876_v41  ;;  %v5408_v0 = vshll.u32 %v13921_v27, 23  ;;  %vm5757_vm9 = vcmp.gt.s32.totalorder %v5756_v40, 0 }
 0x5bd   : > { %v13974_v54 = vmul.f32 %v16782_v55, %v16781_v38  ;;  %v5926_v34 = vsub.s32 4294967266, %v13967_v17  ;;  %vm8420_vm7 = vcmp.lt.s32.totalorder %v8419_v30, 0  ;;  %v5754_v33 = vor.u32 8388608, %v5753_v15 }
 0x5be   : > { %v5404_v29 = vshrl.u32 %v5386_v8, %v16783_v60  ;;  %v13986_v21 = vadd.f32 %v13915_v42, %v13539_v36  ;;  %v6009_v11 = vmul.u32 %v6002_v43, %v5993_v51  ;;  %vm6011_vm2 = vc.u32 %v13960_v37, %v13952_v48 }
 0x5bf   : > { %v5758_v3 = vsel %vm5757_vm9, %v5756_v40, 0  ;;  %v4348_v32 = vmul.f32 30.0, %v4316_v12  ;;  %v13993_v41 = vsel %vm16405_vm1, %v5310_v49, %v13907_v13  ;;  %v13998_v58 = vadd.s32 %v13793_v4, %v13805_v59 }
 0x5c0   : > { %16784 = vst [vmem:[#allocation36_spill] sm:$0xff] %v13993_v41  ;;  %v6013_v36 = vsel %vm6011_vm2, %v6012_v63, %v13953_v39  ;;  %v14001_v35 = vor.u32 %v5404_v29, %v5403_v26  ;;  %v14003_v43 = vsel %vm8420_vm7, 0, %v8419_v30  ;;  %v5760_v52 = vand.u32 31, %v5758_v3 }
 0x5c1   : > { %v6014_v24 = vadd.s32 %v6013_v36, %v6009_v11  ;;  %v14005_v47 = vor.u32 4788187, %v5408_v0  ;;  %v5922_v9 = vsub.s32 32, %v13967_v17  ;;  %v14008_v13 = vadd.s32 127, %v5926_v34  ;;  %v14031_v36 = vpop.f32.mrb[39].mxu1 }
 0x5c2   : > { %v14010_v50 = vshll.u32 %v5754_v33, 8  ;;  %v5761_v8 = vsub.s32 32, %v5760_v52  ;;  %v14013_v4 = vmul.f32 %v4348_v32, %v13919_v19  ;;  %v4282_v59 = vand.u32 2147483647, %v13986_v21 }
 0x5c3   : > { %v6015_v15 = vadd.s32 536870912, %v6014_v24  ;;  %v5718_v39 = vsub.s32 4294967266, %v14003_v43  ;;  %v5759_v30 = vshrl.u32 %v5758_v3, 5  ;;  %v5763_v40 = vshll.u32 %v16429_v2, %v5760_v52 }
 0x5c4   : > { %16785 = vst [vmem:[#allocation49_spill] sm:$0xff] %v14013_v4  ;;  %v5766_v12 = vshll.u32 %v16715_v10, %v5760_v52  ;;  %v5764_v38 = vshrl.u32 %v16715_v10, %v5761_v8  ;;  %v5767_v55 = vshrl.u32 %v16716_v5, %v5761_v8  ;;  %v5769_v51 = vshll.u32 %v16716_v5, %v5760_v52 }
 0x5c5   : > { %v14019_v49 = vshrl.u32 %v6015_v15, 30  ;;  %v5770_v19 = vshrl.u32 %v16717_v18, %v5761_v8  ;;  %v5772_v63 = vshll.u32 %v16717_v18, %v5760_v52  ;;  %v5773_v26 = vshrl.u32 %v16718_v1, %v5761_v8 }
 0x5c6   : > { %v5775_v60 = vshll.u32 %v16718_v1, %v5760_v52  ;;  %v5765_v0 = vor.u32 %v5764_v38, %v5763_v40  ;;  %v5768_v34 = vor.u32 %v5767_v55, %v5766_v12  ;;  %v5776_v33 = vshrl.u32 %v16440_v62, %v5761_v8 }
 0x5c7   : > { %16786 = vst [vmem:[#allocation39_spill] sm:$0xff] %v14019_v49  ;;  %v6017_v29 = vshll.u32 %v14019_v49, 30  ;;  %v5771_v11 = vor.u32 %v5770_v19, %v5769_v51  ;;  %v5774_v3 = vor.u32 %v5773_v26, %v5772_v63  ;;  %vm5778_vm3 = vcmp.lt.s32.totalorder %v5759_v30, 1 }
 0x5c8   : > { %v6269_v32 = vand.u32 2139095040, %v14013_v4  ;;  %v5762_v27 = vshrl.u32 %v16429_v2, %v5761_v8  ;;  %v5777_v41 = vor.u32 %v5776_v33, %v5775_v60  ;;  %vm5781_vm14 = vcmp.lt.s32.totalorder %v5759_v30, 4 }
 0x5c9   : > { %v14033_v15 = vsub.s32 %v6014_v24, %v6017_v29  ;;  %vm5780_vm12 = vcmp.lt.s32.totalorder %v5759_v30, 3  ;;  %v5783_v52 = vsel %vm5781_vm14, %v5771_v11, 2102212464  ;;  %v5786_v40 = vsel %vm5778_vm3, %v5765_v0, %v5768_v34 }
 0x5ca   : > { %v5787_v12 = vsel %vm5781_vm14, %v5774_v3, 920167782  ;;  %vm5779_vm4 = vcmp.lt.s32.totalorder %v5759_v30, 2  ;;  %v5790_v51 = vsel %vm5778_vm3, %v5768_v34, %v5771_v11  ;;  %vm16402_vm15 = vcmp.lt.s32.totalorder %v13498_v23, 0 }
 0x5cb   : > { %v6020_v38 = vsub.s32 0, %v14033_v15  ;;  %v5788_v55 = vsel %vm5780_vm12, %v5771_v11, %v5787_v12  ;;  %v5782_v24 = vsel %vm5778_vm3, %v5762_v27, %v5765_v0  ;;  %v5784_v19 = vsel %vm5780_vm12, %v5768_v34, %v5783_v52 }
 0x5cc   : > { %v5789_v8 = vsel %vm5779_vm4, %v5786_v40, %v5788_v55  ;;  %v5791_v63 = vsel %vm5781_vm14, %v5777_v41, 1326507024  ;;  %v16322_v11 = vand.u32 2147483647, %v14013_v4  ;;  %v6270_v49 = vshrl.u32 %v6269_v32, 23 }
 0x5cd   : > { %v8430_v26 = vmin.u32 %v6020_v38, %v14033_v15  ;;  %v5792_v60 = vsel %vm5780_vm12, %v5774_v3, %v5791_v63  ;;  %v14044_v29 = vmul.u32.u64.low %v14010_v50, %v5789_v8  ;;  %v14045_v33 = vmul.u32.u64.high %v14010_v50, %v5789_v8, %v14044_v29 }
 0x5ce   : > { %v5793_v12 = vsel %vm5779_vm4, %v5790_v51, %v5792_v60  ;;  %v14052_v27 = vadd.f32 %v13915_v42, %v13611_v20  ;;  %v4314_v3 = vadd.f32 1.0, %v4282_v59  ;;  %v5924_v52 = vshrl.u32 %v13998_v58, %v5922_v9 }
 0x5cf   : > { %v6022_v0 = vclz %v8430_v26  ;;  %v14055_v41 = vmul.u32.u64.low %v14010_v50, %v5793_v12  ;;  %v14056_v34 = vmul.u32.u64.high %v14010_v50, %v5793_v12, %v14055_v41  ;;  %v5928_v40 = vshll.u32 %v14008_v13, 23 }
 0x5d0   : > { %v5785_v38 = vsel %vm5779_vm4, %v5782_v24, %v5784_v19  ;;  %v8441_v55 = vadd.s32 4294967169, %v6270_v49  ;;  %v5410_v51 = vand.u32 2147483647, %v14005_v47  ;;  %v5412_v32 = vcvt.s32.f32 %v14001_v35 }
 0x5d1   : > { %v5719_v8 = vadd.s32 127, %v5718_v39  ;;  %v5804_v20 = vadd.s32 1, %v14045_v33  ;;  %v5923_v63 = vshll.u32 %v13857_v44, %v13967_v17  ;;  %v6273_v59 = vand.u32 8388607, %v16322_v11 }
 0x5d2   : > { %v6276_v26 = vadd.s32 1, %v8441_v55  ;;  %v4285_v58 = vand.u32 2147483647, %v14052_v27  ;;  %v8431_v9 = vadd.s32 4294967294, %v6022_v0  ;;  %v5801_v13 = vmul.u32 %v14010_v50, %v5785_v38 }
 0x5d3   : > { %vm5803_vm9 = vc.u32 %v14056_v34, %v14044_v29  ;;  %v4346_v47 = vmul.f32 30.0, %v4314_v3  ;;  %v14072_v35 = vor.u32 %v5924_v52, %v5923_v63  ;;  %v14074_v39 = vor.u32 4788187, %v5928_v40  ;;  %v14123_v52 = vpop.f32.mrb[40].mxu1 }
 0x5d4   : > { %v5805_v30 = vsel %vm5803_vm9, %v5804_v20, %v14045_v33  ;;  %vm6277_vm7 = vcmp.gt.s32.totalorder %v6276_v26, 0  ;;  %v16787_v44 = vxor.u32 2147483648, %v13974_v54  ;;  %v5714_v50 = vsub.s32 32, %v14003_v43 }
 0x5d5   : > { %v5720_v49 = vshll.u32 %v5719_v8, 23  ;;  %v5806_v24 = vadd.s32 %v5805_v30, %v5801_v13  ;;  %v14085_v19 = vmul.f32 %v5412_v32, %v5410_v51  ;;  %v6274_v60 = vor.u32 8388608, %v6273_v59 }
 0x5d6   : > { %v14082_v17 = vsel %vm16402_vm15, %v16787_v44, %v13974_v54  ;;  %v6278_v12 = vsel %vm6277_vm7, %v6276_v26, 0  ;;  %v4317_v0 = vadd.f32 1.0, %v4285_v58  ;;  %v5698_v33 = vadd.s32 %v13863_v56, %v13868_v16 }
 0x5d7   : > { %16788 = vst [vmem:[#allocation47_spill] sm:$0xff] %v14082_v17  ;;  %vm8432_vm2 = vcmp.lt.s32.totalorder %v8431_v9, 0  ;;  %v5807_v41 = vadd.s32 536870912, %v5806_v24  ;;  %v14090_v3 = vmul.f32 %v4346_v47, %v13986_v21  ;;  %v6280_v40 = vand.u32 31, %v6278_v12 }
 0x5d8   : > { %v14096_v38 = vadd.f32 %v13915_v42, %v13711_v22  ;;  %v5715_v55 = vshll.u32 %v13939_v28, %v14003_v43  ;;  %v5716_v51 = vshrl.u32 %v5698_v33, %v5714_v50  ;;  %v14100_v32 = vor.u32 4788187, %v5720_v49 }
 0x5d9   : > { %v14102_v16 = vshrl.u32 %v5807_v41, 30  ;;  %v14104_v56 = vsel %vm8432_vm2, 0, %v8431_v9  ;;  %v6281_v21 = vsub.s32 32, %v6280_v40  ;;  %v14106_v8 = vshll.u32 %v6274_v60, 8 }
 0x5da   : > { %v4349_v20 = vmul.f32 30.0, %v4317_v0  ;;  %v6279_v63 = vshrl.u32 %v6278_v12, 5  ;;  %v6283_v59 = vshll.u32 %v16429_v2, %v6280_v40  ;;  %v6286_v22 = vshll.u32 %v16715_v10, %v6280_v40 }
 0x5db   : > { %16789 = vst [vmem:[#allocation57_spill] sm:$0xff] %v14102_v16  ;;  %v6061_v26 = vand.u32 2139095040, %v14090_v3  ;;  %v6284_v28 = vshrl.u32 %v16715_v10, %v6281_v21  ;;  %v6287_v43 = vshrl.u32 %v16716_v5, %v6281_v21  ;;  %v6289_v58 = vshll.u32 %v16716_v5, %v6280_v40 }
 0x5dc   : > { %v6290_v9 = vshrl.u32 %v16717_v18, %v6281_v21  ;;  %v5809_v13 = vshll.u32 %v14102_v16, 30  ;;  %v6292_v47 = vshll.u32 %v16717_v18, %v6280_v40  ;;  %v6293_v30 = vshrl.u32 %v16718_v1, %v6281_v21 }
 0x5dd   : > { %v6295_v44 = vshll.u32 %v16718_v1, %v6280_v40  ;;  %v6285_v50 = vor.u32 %v6284_v28, %v6283_v59  ;;  %v6288_v49 = vor.u32 %v6287_v43, %v6286_v22  ;;  %v6296_v12 = vshrl.u32 %v16440_v62, %v6281_v21 }
 0x5de   : > { %v6291_v60 = vor.u32 %v6290_v9, %v6289_v58  ;;  %v6026_v0 = vsub.s32 32, %v14104_v56  ;;  %v6030_v33 = vsub.s32 4294967266, %v14104_v56  ;;  %v6294_v41 = vor.u32 %v6293_v30, %v6292_v47 }
 0x5df   : > { %v16329_v11 = vand.u32 2147483647, %v14090_v3  ;;  %v6297_v54 = vor.u32 %v6296_v12, %v6295_v44  ;;  %vm6298_vm3 = vcmp.lt.s32.totalorder %v6279_v63, 1  ;;  %vm6301_vm14 = vcmp.lt.s32.totalorder %v6279_v63, 4 }
 0x5e0   : > { %v6062_v16 = vshrl.u32 %v6061_v26, 23  ;;  %v14125_v17 = vsub.s32 %v5806_v24, %v5809_v13  ;;  %v6282_v40 = vshrl.u32 %v16429_v2, %v6281_v21  ;;  %v6303_v59 = vsel %vm6301_vm14, %v6291_v60, 2102212464 }
 0x5e1   : > { %v6306_v22 = vsel %vm6298_vm3, %v6285_v50, %v6288_v49  ;;  %vm6300_vm12 = vcmp.lt.s32.totalorder %v6279_v63, 3  ;;  %v6307_v28 = vsel %vm6301_vm14, %v6294_v41, 920167782  ;;  %v6310_v43 = vsel %vm6298_vm3, %v6288_v49, %v6291_v60 }
 0x5e2   : > { %v6311_v58 = vsel %vm6301_vm14, %v6297_v54, 1326507024  ;;  %vm6299_vm4 = vcmp.lt.s32.totalorder %v6279_v63, 2  ;;  %v6302_v9 = vsel %vm6298_vm3, %v6282_v40, %v6285_v50  ;;  %v6308_v47 = vsel %vm6300_vm12, %v6291_v60, %v6307_v28 }
 0x5e3   : > { %v6065_v30 = vand.u32 8388607, %v16329_v11  ;;  %v6304_v44 = vsel %vm6300_vm12, %v6288_v49, %v6303_v59  ;;  %v6309_v12 = vsel %vm6299_vm4, %v6306_v22, %v6308_v47  ;;  %v6312_v26 = vsel %vm6300_vm12, %v6294_v41, %v6311_v58 }
 0x5e4   : > { %v8433_v24 = vadd.s32 4294967169, %v6062_v16  ;;  %v6031_v13 = vadd.s32 127, %v6030_v33  ;;  %v6313_v21 = vsel %vm6299_vm4, %v6310_v43, %v6312_v26  ;;  %v5812_v54 = vsub.s32 0, %v14125_v17 }
 0x5e5   : > { %v14133_v23 = vmul.u32.u64.low %v14106_v8, %v6309_v12  ;;  %v14134_v7 = vmul.u32.u64.high %v14106_v8, %v6309_v12, %v14133_v23  ;;  %v14139_v50 = vmul.u32.u64.low %v14106_v8, %v6313_v21  ;;  %v14140_v60 = vmul.u32.u64.high %v14106_v8, %v6313_v21, %v14139_v50  ;;  %v14180_v21 = vpop.f32.mrb[41].mxu1 }
 0x5e6   : > { %v6068_v40 = vadd.s32 1, %v8433_v24  ;;  %v5717_v49 = vor.u32 %v5716_v51, %v5715_v55  ;;  %v6010_v41 = vadd.s32 %v13952_v48, %v13960_v37  ;;  %v6305_v16 = vsel %vm6299_vm4, %v6302_v9, %v6304_v44 }
 0x5e7   : > { %v14146_v33 = vmul.f32 %v4349_v20, %v14052_v27  ;;  %v16791_v59 = vand.u32 2147483647, %v14074_v39  ;;  %v16792_v22 = vcvt.s32.f32 %v14072_v35  ;;  %v5722_v43 = vand.u32 2147483647, %v14100_v32 }
 0x5e8   : > { %vm6069_vm9 = vcmp.gt.s32.totalorder %v6068_v40, 0  ;;  %v4283_v58 = vand.u32 2147483647, %v14096_v38  ;;  %v6028_v55 = vshrl.u32 %v6010_v41, %v6026_v0  ;;  %v6032_v51 = vshll.u32 %v6031_v13, 23 }
 0x5e9   : > { %16790 = vst [vmem:[#allocation24_spill] sm:$0xff] %v14146_v33  ;;  %v14152_v28 = vmul.f32 %v16792_v22, %v16791_v59  ;;  %v6324_v48 = vadd.s32 1, %v14134_v7  ;;  %v6066_v37 = vor.u32 8388608, %v6065_v30  ;;  %v14158_v63 = vmin.u32 %v5812_v54, %v14125_v17 }
 0x5ea   : > { %v6321_v27 = vmul.u32 %v14106_v8, %v6305_v16  ;;  %vm6323_vm7 = vc.u32 %v14140_v60, %v14133_v23  ;;  %v6070_v35 = vsel %vm6069_vm9, %v6068_v40, 0  ;;  %v5724_v39 = vcvt.s32.f32 %v5717_v49 }
 0x5eb   : > { %v6027_v32 = vshll.u32 %v14033_v15, %v14104_v56  ;;  %v6325_v20 = vsel %vm6323_vm7, %v6324_v48, %v14134_v7  ;;  %v6373_v0 = vand.u32 2139095040, %v14146_v33  ;;  %v5414_v9 = vxor.u32 2147483648, %v14085_v19 }
 0x5ec   : > { %v5934_v47 = vxor.u32 2147483648, %v14152_v28  ;;  %v6326_v30 = vadd.s32 %v6325_v20, %v6321_v27  ;;  %v6072_v44 = vand.u32 31, %v6070_v35  ;;  %v14169_v12 = vmul.f32 %v5724_v39, %v5722_v43 }
 0x5ed   : > { %v14171_v8 = vor.u32 %v6028_v55, %v6027_v32  ;;  %v14173_v26 = vor.u32 4788187, %v6032_v51  ;;  %v14175_v24 = vadd.f32 1.0, %v4283_v58  ;;  %v5814_v15 = vclz %v14158_v63 }
 0x5ee   : > { %v6327_v56 = vadd.s32 536870912, %v6326_v30  ;;  %v6073_v7 = vsub.s32 32, %v6072_v44  ;;  %v14178_v13 = vshll.u32 %v6066_v37, 8  ;;  %v6071_v54 = vshrl.u32 %v6070_v35, 5 }
 0x5ef   : > { %v6075_v50 = vshll.u32 %v16429_v2, %v6072_v44  ;;  %v6078_v40 = vshll.u32 %v16715_v10, %v6072_v44  ;;  %v6374_v49 = vshrl.u32 %v6373_v0, 23  ;;  %v6081_v22 = vshll.u32 %v16716_v5, %v6072_v44 }
 0x5f0   : > { %v14184_v41 = vshrl.u32 %v6327_v56, 30  ;;  %v6076_v16 = vshrl.u32 %v16715_v10, %v6073_v7  ;;  %v6079_v59 = vshrl.u32 %v16716_v5, %v6073_v7  ;;  %v6082_v43 = vshrl.u32 %v16717_v18, %v6073_v7 }
 0x5f1   : > { %v6084_v58 = vshll.u32 %v16717_v18, %v6072_v44  ;;  %v6085_v55 = vshrl.u32 %v16718_v1, %v6073_v7  ;;  %v6087_v51 = vshll.u32 %v16718_v1, %v6072_v44  ;;  %vm16404_vm2 = vcmp.lt.s32.totalorder %v13626_v61, 0 }
 0x5f2   : > { %16793 = vst [vmem:[#allocation30_spill] sm:$0xff] %v14184_v41  ;;  %v6329_v48 = vshll.u32 %v14184_v41, 30  ;;  %v6077_v37 = vor.u32 %v6076_v16, %v6075_v50  ;;  %v6080_v63 = vor.u32 %v6079_v59, %v6078_v40  ;;  %v6088_v27 = vshrl.u32 %v16440_v62, %v6073_v7 }
 0x5f3   : > { %vm16331_vm3 = vcmp.lt.s32.totalorder %v13668_v45, 0  ;;  %v6083_v35 = vor.u32 %v6082_v43, %v6081_v22  ;;  %v6086_v39 = vor.u32 %v6085_v55, %v6084_v58  ;;  %vm6090_vm14 = vcmp.lt.s32.totalorder %v6071_v54, 1 }
 0x5f4   : > { %v8445_v32 = vadd.s32 4294967169, %v6374_v49  ;;  %v14197_v20 = vsub.s32 %v6326_v30, %v6329_v48  ;;  %v6074_v0 = vshrl.u32 %v16429_v2, %v6073_v7  ;;  %v6089_v56 = vor.u32 %v6088_v27, %v6087_v51 }
 0x5f5   : > { %vm6093_vm12 = vcmp.lt.s32.totalorder %v6071_v54, 4  ;;  %vm6092_vm4 = vcmp.lt.s32.totalorder %v6071_v54, 3  ;;  %v6098_v11 = vsel %vm6090_vm14, %v6077_v37, %v6080_v63  ;;  %vm16332_vm9 = vcmp.lt.s32.totalorder %v13741_v25, 0 }
 0x5f6   : > { %v6095_v44 = vsel %vm6093_vm12, %v6083_v35, 2102212464  ;;  %v6099_v50 = vsel %vm6093_vm12, %v6086_v39, 920167782  ;;  %v6332_v40 = vsub.s32 0, %v14197_v20  ;;  %vm6091_vm7 = vcmp.lt.s32.totalorder %v6071_v54, 2 }
 0x5f7   : > { %v6100_v16 = vsel %vm6092_vm4, %v6083_v35, %v6099_v50  ;;  %v6102_v59 = vsel %vm6090_vm14, %v6080_v63, %v6083_v35  ;;  %v6034_v30 = vand.u32 2147483647, %v14173_v26  ;;  %v6094_v49 = vsel %vm6090_vm14, %v6074_v0, %v6077_v37 }
 0x5f8   : > { %v6101_v7 = vsel %vm6091_vm7, %v6098_v11, %v6100_v16  ;;  %v6103_v22 = vsel %vm6093_vm12, %v6089_v56, 1326507024  ;;  %v6096_v43 = vsel %vm6092_vm4, %v6080_v63, %v6095_v44  ;;  %v8423_v48 = vadd.s32 4294967294, %v5814_v15 }
 0x5f9   : > { %v6104_v58 = vsel %vm6092_vm4, %v6086_v39, %v6103_v22  ;;  %v14208_v55 = vmul.u32.u64.low %v14178_v13, %v6101_v7  ;;  %v14209_v51 = vmul.u32.u64.high %v14178_v13, %v6101_v7, %v14208_v55  ;;  %v16330_v50 = vand.u32 2147483647, %v14146_v33 }
 0x5fa   : > { %v6105_v27 = vsel %vm6091_vm7, %v6102_v59, %v6104_v58  ;;  %v6380_v35 = vadd.s32 1, %v8445_v32  ;;  %v6036_v26 = vcvt.s32.f32 %v14171_v8  ;;  %v8442_v37 = vmin.u32 %v6332_v40, %v14197_v20 }
 0x5fb   : > { %v14217_v11 = vmul.u32.u64.low %v14178_v13, %v6105_v27  ;;  %v14218_v0 = vmul.u32.u64.high %v14178_v13, %v6105_v27, %v14217_v11  ;;  %v14225_v63 = vsel %vm16404_vm2, %v5414_v9, %v14085_v19  ;;  %v5726_v15 = vxor.u32 2147483648, %v14169_v12 }
 0x5fc   : > { %16794 = vst [vmem:[#allocation48_spill] sm:$0xff] %v14225_v63  ;;  %v6097_v39 = vsel %vm6091_vm7, %v6094_v49, %v6096_v43  ;;  %vm6381_vm14 = vcmp.gt.s32.totalorder %v6380_v35, 0  ;;  %v14234_v8 = vsel %vm16331_vm3, %v5934_v47, %v14152_v28  ;;  %v14236_v32 = vmul.f32 %v6036_v26, %v6034_v30 }
 0x5fd   : > { %16795 = vst [vmem:[#allocation33_spill] sm:$0xff] %v14234_v8  ;;  %v6116_v56 = vadd.s32 1, %v14209_v51  ;;  %v6382_v44 = vsel %vm6381_vm14, %v6380_v35, 0  ;;  %vm8424_vm12 = vcmp.lt.s32.totalorder %v8423_v48, 0  ;;  %v6377_v19 = vand.u32 8388607, %v16330_v50 }
 0x5fe   : > { %v6384_v9 = vand.u32 31, %v6382_v44  ;;  %v14243_v54 = vadd.f32 %v13915_v42, %v13784_v6  ;;  %v6334_v40 = vclz %v8442_v37  ;;  %v6113_v16 = vmul.u32 %v14178_v13, %v6097_v39 }
 0x5ff   : > { %vm6115_vm4 = vc.u32 %v14218_v0, %v14208_v55  ;;  %v4347_v28 = vmul.f32 30.0, %v14175_v24  ;;  %v14252_v47 = vsel %vm16332_vm9, %v5726_v15, %v14169_v12  ;;  %v14257_v6 = vadd.f32 %v13915_v42, %v13852_v31 }
 0x600   : > { %16796 = vst [vmem:[#allocation41_spill] sm:$0xff] %v14252_v47  ;;  %v6117_v59 = vsel %vm6115_vm4, %v6116_v56, %v14209_v51  ;;  %v6385_v30 = vsub.s32 32, %v6384_v9  ;;  %v5802_v13 = vadd.s32 %v14044_v29, %v14056_v34  ;;  %v14262_v7 = vsel %vm8424_vm12, 0, %v8423_v48 }
 0x601   : > { %v6118_v24 = vadd.s32 %v6117_v59, %v6113_v16  ;;  %v6378_v22 = vor.u32 8388608, %v6377_v19  ;;  %v8443_v51 = vadd.s32 4294967294, %v6334_v40  ;;  %v6387_v31 = vshll.u32 %v16429_v2, %v6384_v9 }
 0x602   : > { %v6388_v43 = vshrl.u32 %v16715_v10, %v6385_v30  ;;  %v6391_v12 = vshrl.u32 %v16716_v5, %v6385_v30  ;;  %v14269_v35 = vmul.f32 %v4347_v28, %v14096_v38  ;;  %v6383_v26 = vshrl.u32 %v6382_v44, 5 }
 0x603   : > { %v6119_v27 = vadd.s32 536870912, %v6118_v24  ;;  %v6390_v29 = vshll.u32 %v16715_v10, %v6384_v9  ;;  %v6393_v34 = vshll.u32 %v16716_v5, %v6384_v9  ;;  %v6394_v48 = vshrl.u32 %v16717_v18, %v6385_v30 }
 0x604   : > { %v6389_v11 = vor.u32 %v6388_v43, %v6387_v31  ;;  %v6396_v15 = vshll.u32 %v16717_v18, %v6384_v9  ;;  %v6397_v39 = vshrl.u32 %v16718_v1, %v6385_v30  ;;  %v6399_v40 = vshll.u32 %v16718_v1, %v6384_v9 }
 0x605   : > { %v14274_v37 = vshrl.u32 %v6119_v27, 30  ;;  %v6392_v56 = vor.u32 %v6391_v12, %v6390_v29  ;;  %v6395_v19 = vor.u32 %v6394_v48, %v6393_v34  ;;  %v6400_v38 = vshrl.u32 %v16440_v62, %v6385_v30  ;;  %v14283_v27 = vpop.f32.mrb[42].mxu1 }
 0x606   : > { %v5818_v44 = vsub.s32 32, %v14262_v7  ;;  %v5822_v16 = vsub.s32 4294967266, %v14262_v7  ;;  %v6398_v59 = vor.u32 %v6397_v39, %v6396_v15  ;;  %vm8444_vm7 = vcmp.lt.s32.totalorder %v8443_v51, 0 }
 0x607   : > { %16797 = vst [vmem:[#allocation53_spill] sm:$0xff] %v14274_v37  ;;  %v6121_v28 = vshll.u32 %v14274_v37, 30  ;;  %v6401_v43 = vor.u32 %v6400_v38, %v6399_v40  ;;  %v6418_v31 = vshll.u32 %v6378_v22, 8  ;;  %v6165_v50 = vand.u32 2139095040, %v14269_v35 }
 0x608   : > { %v6386_v9 = vshrl.u32 %v16429_v2, %v6385_v30  ;;  %vm6402_vm14 = vcmp.lt.s32.totalorder %v6383_v26, 1  ;;  %vm6405_vm12 = vcmp.lt.s32.totalorder %v6383_v26, 4  ;;  %vm6404_vm4 = vcmp.lt.s32.totalorder %v6383_v26, 3 }
 0x609   : > { %v14286_v12 = vsub.s32 %v6118_v24, %v6121_v28  ;;  %v6407_v29 = vsel %vm6405_vm12, %v6395_v19, 2102212464  ;;  %v6410_v34 = vsel %vm6402_vm14, %v6389_v11, %v6392_v56  ;;  %v6411_v48 = vsel %vm6405_vm12, %v6398_v59, 920167782 }
 0x60a   : > { %vm16359_vm3 = vcmp.lt.s32.totalorder %v13832_v14, 0  ;;  %vm6403_vm9 = vcmp.lt.s32.totalorder %v6383_v26, 2  ;;  %v6412_v22 = vsel %vm6404_vm4, %v6395_v19, %v6411_v48  ;;  %v6414_v39 = vsel %vm6402_vm14, %v6392_v56, %v6395_v19  ;;  %v14352_v14 = vpop.f32.mrb[43].mxu1 }
 0x60b   : > { %v6124_v15 = vsub.s32 0, %v14286_v12  ;;  %v6413_v24 = vsel %vm6403_vm9, %v6410_v34, %v6412_v22  ;;  %v6415_v40 = vsel %vm6405_vm12, %v6401_v43, 1326507024  ;;  %v16337_v30 = vand.u32 2147483647, %v14269_v35 }
 0x60c   : > { %v6166_v38 = vshrl.u32 %v6165_v50, 23  ;;  %v14297_v28 = vsel %vm8444_vm7, 0, %v8443_v51  ;;  %v6406_v49 = vsel %vm6402_vm14, %v6386_v9, %v6389_v11  ;;  %v6408_v58 = vsel %vm6404_vm4, %v6392_v56, %v6407_v29 }
 0x60d   : > { %v6416_v41 = vsel %vm6404_vm4, %v6398_v59, %v6415_v40  ;;  %v14303_v48 = vmul.u32.u64.low %v6418_v31, %v6413_v24  ;;  %v14304_v8 = vmul.u32.u64.high %v6418_v31, %v6413_v24, %v14303_v48  ;;  %v8434_v43 = vmin.u32 %v6124_v15, %v14286_v12 }
 0x60e   : > { %v6417_v37 = vsel %vm6403_vm9, %v6414_v39, %v6416_v41  ;;  %v8437_v19 = vadd.s32 4294967169, %v6166_v38  ;;  %v4286_v51 = vand.u32 2147483647, %v14257_v6  ;;  %v5819_v11 = vshll.u32 %v14125_v17, %v14262_v7 }
 0x60f   : > { %v14308_v34 = vmul.u32.u64.low %v6418_v31, %v6417_v37  ;;  %v14309_v50 = vmul.u32.u64.high %v6418_v31, %v6417_v37, %v14308_v34  ;;  %v5820_v56 = vshrl.u32 %v5802_v13, %v5818_v44  ;;  %v6409_v59 = vsel %vm6403_vm9, %v6406_v49, %v6408_v58 }
 0x610   : > { %v6172_v9 = vadd.s32 1, %v8437_v19  ;;  %v14315_v41 = vadd.s32 127, %v5822_v16  ;;  %v6322_v29 = vadd.s32 %v14133_v23, %v14140_v60  ;;  %v6338_v22 = vsub.s32 32, %v14297_v28 }
 0x611   : > { %v16798_v15 = vand.u32 2147483647, %v14243_v54  ;;  %v6342_v39 = vsub.s32 4294967266, %v14297_v28  ;;  %v6428_v24 = vadd.s32 1, %v14304_v8  ;;  %v6169_v17 = vand.u32 8388607, %v16337_v30 }
 0x612   : > { %vm6173_vm7 = vcmp.gt.s32.totalorder %v6172_v9, 0  ;;  %v6126_v49 = vclz %v8434_v43  ;;  %v6425_v13 = vmul.u32 %v6418_v31, %v6409_v59  ;;  %vm6427_vm9 = vc.u32 %v14309_v50, %v14303_v48 }
 0x613   : > { %v4320_v37 = vadd.f32 1.0, %v16798_v15  ;;  %v6174_v7 = vsel %vm6173_vm7, %v6172_v9, 0  ;;  %v16799_v23 = vxor.u32 2147483648, %v14236_v32  ;;  %v14335_v58 = vor.u32 %v5820_v56, %v5819_v11 }
 0x614   : > { %v6429_v26 = vsel %vm6427_vm9, %v6428_v24, %v14304_v8  ;;  %v6176_v44 = vand.u32 31, %v6174_v7  ;;  %v5824_v16 = vshll.u32 %v14315_v41, 23  ;;  %v14339_v40 = vshrl.u32 %v6322_v29, %v6338_v22 }
 0x615   : > { %v14333_v60 = vsel %vm16359_vm3, %v16799_v23, %v14236_v32  ;;  %v6430_v31 = vadd.s32 %v6429_v26, %v6425_v13  ;;  %v4318_v38 = vadd.f32 1.0, %v4286_v51  ;;  %v6343_v19 = vadd.s32 127, %v6342_v39 }
 0x616   : > { %16800 = vst [vmem:[#allocation40_spill] sm:$0xff] %v14333_v60  ;;  %v6170_v43 = vor.u32 8388608, %v6169_v17  ;;  %v6177_v34 = vsub.s32 32, %v6176_v44  ;;  %v4352_v59 = vmul.f32 30.0, %v4320_v37  ;;  %v8435_v9 = vadd.s32 4294967294, %v6126_v49 }
 0x617   : > { %v6431_v15 = vadd.s32 536870912, %v6430_v31  ;;  %v6179_v32 = vshll.u32 %v16429_v2, %v6176_v44  ;;  %v6182_v11 = vshll.u32 %v16715_v10, %v6176_v44  ;;  %v6185_v41 = vshll.u32 %v16716_v5, %v6176_v44 }
 0x618   : > { %v6180_v56 = vshrl.u32 %v16715_v10, %v6177_v34  ;;  %v6183_v8 = vshrl.u32 %v16716_v5, %v6177_v34  ;;  %v6186_v29 = vshrl.u32 %v16717_v18, %v6177_v34  ;;  %v6175_v51 = vshrl.u32 %v6174_v7, 5 }
 0x619   : > { %v14347_v22 = vshrl.u32 %v6431_v15, 30  ;;  %v6188_v39 = vshll.u32 %v16717_v18, %v6176_v44  ;;  %v6189_v37 = vshrl.u32 %v16718_v1, %v6177_v34  ;;  %v6344_v24 = vshll.u32 %v6343_v19, 23 }
 0x61a   : > { %v6181_v17 = vor.u32 %v6180_v56, %v6179_v32  ;;  %v6184_v49 = vor.u32 %v6183_v8, %v6182_v11  ;;  %v6187_v13 = vor.u32 %v6186_v29, %v6185_v41  ;;  %v6210_v30 = vshll.u32 %v6170_v43, 8 }
 0x61b   : > { %16801 = vst [vmem:[#allocation66_spill] sm:$0xff] %v14347_v22  ;;  %v6433_v23 = vshll.u32 %v14347_v22, 30  ;;  %v6190_v26 = vor.u32 %v6189_v37, %v6188_v39  ;;  %v4350_v60 = vmul.f32 30.0, %v4318_v38  ;;  %vm8436_vm14 = vcmp.lt.s32.totalorder %v8435_v9, 0 }
 0x61c   : > { %v6191_v15 = vshll.u32 %v16718_v1, %v6176_v44  ;;  %v6192_v7 = vshrl.u32 %v16440_v62, %v6177_v34  ;;  %v14357_v45 = vmul.f32 %v4352_v59, %v14243_v54  ;;  %vm6194_vm12 = vcmp.lt.s32.totalorder %v6175_v51, 1 }
 0x61d   : > { %v14359_v47 = vsub.s32 %v6430_v31, %v6433_v23  ;;  %vm6196_vm4 = vcmp.lt.s32.totalorder %v6175_v51, 3  ;;  %vm6197_vm7 = vcmp.lt.s32.totalorder %v6175_v51, 4  ;;  %v6202_v11 = vsel %vm6194_vm12, %v6181_v17, %v6184_v49 }
 0x61e   : > { %16802 = vst [vmem:[#allocation65_spill] sm:$0xff] %v14357_v45  ;;  %v6193_v19 = vor.u32 %v6192_v7, %v6191_v15  ;;  %v6199_v32 = vsel %vm6197_vm7, %v6187_v13, 2102212464  ;;  %v6203_v43 = vsel %vm6197_vm7, %v6190_v26, 920167782  ;;  %v6129_v38 = vsel %vm8436_vm14, 0, %v8435_v9 }
 0x61f   : > { %v6178_v56 = vshrl.u32 %v16429_v2, %v6177_v34  ;;  %vm6195_vm9 = vcmp.lt.s32.totalorder %v6175_v51, 2  ;;  %v6204_v44 = vsel %vm6196_vm4, %v6187_v13, %v6203_v43  ;;  %v6436_v8 = vsub.s32 0, %v14359_v47 }
 0x620   : > { %v6205_v54 = vsel %vm6195_vm9, %v6202_v11, %v6204_v44  ;;  %v6206_v59 = vsel %vm6194_vm12, %v6184_v49, %v6187_v13  ;;  %v6207_v31 = vsel %vm6197_vm7, %v6193_v19, 1326507024  ;;  %v6200_v29 = vsel %vm6196_vm4, %v6184_v49, %v6199_v32 }
 0x621   : > { %v6198_v41 = vsel %vm6194_vm12, %v6178_v56, %v6181_v17  ;;  %v6208_v39 = vsel %vm6196_vm4, %v6190_v26, %v6207_v31  ;;  %v14368_v37 = vmul.f32 %v4350_v60, %v14257_v6  ;;  %v6134_v9 = vsub.s32 4294967266, %v6129_v38 }
 0x622   : > { %v6209_v34 = vsel %vm6195_vm9, %v6206_v59, %v6208_v39  ;;  %v14371_v23 = vmul.u32.u64.low %v6210_v30, %v6205_v54  ;;  %v14372_v15 = vmul.u32.u64.high %v6210_v30, %v6205_v54, %v14371_v23  ;;  %v5825_v7 = vor.u32 4788187, %v5824_v16 }
 0x623   : > { %v6339_v13 = vshll.u32 %v14197_v20, %v14297_v28  ;;  %v14377_v19 = vmul.u32.u64.low %v6210_v30, %v6209_v34  ;;  %v14378_v17 = vmul.u32.u64.high %v6210_v30, %v6209_v34, %v14377_v19  ;;  %v5828_v49 = vcvt.s32.f32 %v14335_v58 }
 0x624   : > { %v8446_v26 = vmin.u32 %v6436_v8, %v14359_v47  ;;  %v6201_v6 = vsel %vm6195_vm9, %v6198_v41, %v6200_v29  ;;  %v6685_v60 = vand.u32 2139095040, %v14357_v45  ;;  %v6345_v11 = vor.u32 4788187, %v6344_v24 }
 0x625   : > { %v6341_v32 = vor.u32 %v14339_v40, %v6339_v13  ;;  %v6477_v43 = vand.u32 2139095040, %v14368_v37  ;;  %v14388_v16 = vadd.f32 %v13915_v42, %v13927_v57  ;;  %v6130_v20 = vsub.s32 32, %v6129_v38 }
 0x626   : > { %v6135_v28 = vadd.s32 127, %v6134_v9  ;;  %v6220_v56 = vadd.s32 1, %v14372_v15  ;;  %v6686_v58 = vshrl.u32 %v6685_v60, 23  ;;  %v6217_v44 = vmul.u32 %v6210_v30, %v6201_v6 }
 0x627   : > { %vm6219_vm14 = vc.u32 %v14378_v17, %v14371_v23  ;;  %v16342_v51 = vand.u32 2147483647, %v14357_v45  ;;  %v6478_v8 = vshrl.u32 %v6477_v43, 23  ;;  %v6114_v40 = vadd.s32 %v14208_v55, %v14218_v0 }
 0x628   : > { %v6438_v24 = vclz %v8446_v26  ;;  %v6221_v54 = vsel %vm6219_vm14, %v6220_v56, %v14372_v15  ;;  %v8457_v42 = vadd.s32 4294967169, %v6686_v58  ;;  %v5826_v57 = vand.u32 2147483647, %v5825_v7 }
 0x629   : > { %v6346_v59 = vand.u32 2147483647, %v6345_v11  ;;  %v6222_v31 = vadd.s32 %v6221_v54, %v6217_v44  ;;  %v4289_v41 = vand.u32 2147483647, %v14388_v16  ;;  %v6132_v29 = vshrl.u32 %v6114_v40, %v6130_v20 }
 0x62a   : > { %v6136_v30 = vshll.u32 %v6135_v28, 23  ;;  %v6692_v39 = vadd.s32 1, %v8457_v42  ;;  %v8449_v9 = vadd.s32 4294967169, %v6478_v8  ;;  %v6348_v34 = vcvt.s32.f32 %v6341_v32  ;;  %v14415_v28 = vld [vmem:[%s16106_s4] ss:$0 sm:$0xff]  ;;  %v14431_v42 = vpop.f32.mrb[44].mxu1 }
 0x62b   : > { %v6223_v13 = vadd.s32 536870912, %v6222_v31  ;;  %v6689_v19 = vand.u32 8388607, %v16342_v51  ;;  %v16343_v55 = vand.u32 2147483647, %v14368_v37  ;;  %v6131_v0 = vshll.u32 %v14286_v12, %v6129_v38 }
 0x62c   : > { %v8447_v15 = vadd.s32 4294967294, %v6438_v24  ;;  %vm6693_vm12 = vcmp.gt.s32.totalorder %v6692_v39, 0  ;;  %v6484_v7 = vadd.s32 1, %v8449_v9  ;;  %v14402_v26 = vmul.f32 %v5828_v49, %v5826_v57 }
 0x62d   : > { %v14404_v6 = vmul.f32 %v6348_v34, %v6346_v59  ;;  %v14406_v60 = vshrl.u32 %v6223_v13, 30  ;;  %v6694_v11 = vsel %vm6693_vm12, %v6692_v39, 0  ;;  %v14408_v43 = vor.u32 %v6132_v29, %v6131_v0 }
 0x62e   : > { %v14410_v32 = vor.u32 4788187, %v6136_v30  ;;  %v6696_v20 = vand.u32 31, %v6694_v11  ;;  %v14419_v12 = vadd.f32 %v14415_v28, %v14031_v36  ;;  %v6690_v49 = vor.u32 8388608, %v6689_v19 }
 0x62f   : > { %16803 = vst [vmem:[#allocation63_spill] sm:$0xff] %v14406_v60  ;;  %v6225_v38 = vshll.u32 %v14406_v60, 30  ;;  %v14424_v56 = vand.u32 8388607, %v16343_v55  ;;  %v4321_v58 = vadd.f32 1.0, %v4289_v41  ;;  %vm8448_vm4 = vcmp.lt.s32.totalorder %v8447_v15, 0 }
 0x630   : > { %v6695_v44 = vshrl.u32 %v6694_v11, 5  ;;  %v6697_v8 = vsub.s32 32, %v6696_v20  ;;  %vm6485_vm7 = vcmp.gt.s32.totalorder %v6484_v7, 0  ;;  %v6699_v24 = vshll.u32 %v16429_v2, %v6696_v20 }
 0x631   : > { %v14426_v40 = vsub.s32 %v6222_v31, %v6225_v38  ;;  %v6702_v54 = vshll.u32 %v16715_v10, %v6696_v20  ;;  %v6705_v36 = vshll.u32 %v16716_v5, %v6696_v20  ;;  %v6708_v29 = vshll.u32 %v16717_v18, %v6696_v20 }
 0x632   : > { %v6700_v57 = vshrl.u32 %v16715_v10, %v6697_v8  ;;  %v6703_v59 = vshrl.u32 %v16716_v5, %v6697_v8  ;;  %v6706_v41 = vshrl.u32 %v16717_v18, %v6697_v8  ;;  %v6709_v31 = vshrl.u32 %v16718_v1, %v6697_v8 }
 0x633   : > { %v6228_v30 = vsub.s32 0, %v14426_v40  ;;  %v6711_v39 = vshll.u32 %v16718_v1, %v6696_v20  ;;  %v6712_v9 = vshrl.u32 %v16440_v62, %v6697_v8  ;;  %v14442_v34 = vsel %vm8448_vm4, 0, %v8447_v15 }
 0x634   : > { %v6701_v13 = vor.u32 %v6700_v57, %v6699_v24  ;;  %v6704_v19 = vor.u32 %v6703_v59, %v6702_v54  ;;  %v6707_v0 = vor.u32 %v6706_v41, %v6705_v36  ;;  %v6710_v38 = vor.u32 %v6709_v31, %v6708_v29 }
 0x635   : > { %v8438_v11 = vmin.u32 %v6228_v30, %v14426_v40  ;;  %v6713_v51 = vor.u32 %v6712_v9, %v6711_v39  ;;  %v6730_v55 = vshll.u32 %v6690_v49, 8  ;;  %v6698_v22 = vshrl.u32 %v16429_v2, %v6697_v8 }
 0x636   : > { %vm6714_vm9 = vcmp.lt.s32.totalorder %v6695_v44, 1  ;;  %vm6717_vm14 = vcmp.lt.s32.totalorder %v6695_v44, 4  ;;  %v6486_v60 = vsel %vm6485_vm7, %v6484_v7, 0  ;;  %vm6715_vm12 = vcmp.lt.s32.totalorder %v6695_v44, 2 }
 0x637   : > { %v6230_v20 = vclz %v8438_v11  ;;  %v6719_v25 = vsel %vm6717_vm14, %v6707_v0, 2102212464  ;;  %v6722_v63 = vsel %vm6714_vm9, %v6701_v13, %v6704_v19  ;;  %vm6716_vm4 = vcmp.lt.s32.totalorder %v6695_v44, 3 }
 0x638   : > { %v6723_v15 = vsel %vm6717_vm14, %v6710_v38, 920167782  ;;  %v6726_v24 = vsel %vm6714_vm9, %v6704_v19, %v6707_v0  ;;  %v6727_v54 = vsel %vm6717_vm14, %v6713_v51, 1326507024  ;;  %v6718_v36 = vsel %vm6714_vm9, %v6698_v22, %v6701_v13 }
 0x639   : > { %v6720_v57 = vsel %vm6716_vm4, %v6704_v19, %v6719_v25  ;;  %v6724_v59 = vsel %vm6716_vm4, %v6707_v0, %v6723_v15  ;;  %v6728_v41 = vsel %vm6716_vm4, %v6710_v38, %v6727_v54  ;;  %v6446_v49 = vsub.s32 4294967266, %v14442_v34 }
 0x63a   : > { %v8439_v29 = vadd.s32 4294967294, %v6230_v20  ;;  %v6725_v8 = vsel %vm6715_vm12, %v6722_v63, %v6724_v59  ;;  %v6729_v30 = vsel %vm6715_vm12, %v6726_v24, %v6728_v41  ;;  %v6488_v39 = vand.u32 31, %v6486_v60 }
 0x63b   : > { %v14450_v7 = vmul.u32.u64.low %v6730_v55, %v6729_v30  ;;  %v14451_v31 = vmul.u32.u64.high %v6730_v55, %v6729_v30, %v14450_v7  ;;  %v14455_v9 = vadd.f32 %v14415_v28, %v14123_v52  ;;  %v14459_v25 = vadd.s32 %v14303_v48, %v14309_v50 }
 0x63c   : > { %v6721_v22 = vsel %vm6715_vm12, %v6718_v36, %v6720_v57  ;;  %v14462_v51 = vmul.u32.u64.low %v6730_v55, %v6725_v8  ;;  %v14463_v13 = vmul.u32.u64.high %v6730_v55, %v6725_v8, %v14462_v51  ;;  %v6138_v63 = vand.u32 2147483647, %v14410_v32 }
 0x63d   : > { %v6140_v19 = vcvt.s32.f32 %v14408_v43  ;;  %v6489_v11 = vsub.s32 32, %v6488_v39  ;;  %v14469_v38 = vadd.s32 127, %v6446_v49  ;;  %vm8440_vm7 = vcmp.lt.s32.totalorder %v8439_v29, 0 }
 0x63e   : > { %v6482_v52 = vor.u32 8388608, %v14424_v56  ;;  %v4353_v48 = vmul.f32 30.0, %v4321_v58  ;;  %v6737_v50 = vmul.u32 %v6730_v55, %v6721_v22  ;;  %vm6739_vm9 = vc.u32 %v14451_v31, %v14462_v51 }
 0x63f   : > { %v6487_v44 = vshrl.u32 %v6486_v60, 5  ;;  %v6491_v20 = vshll.u32 %v16429_v2, %v6488_v39  ;;  %v6740_v32 = vadd.s32 1, %v14463_v13  ;;  %v6492_v43 = vshrl.u32 %v16715_v10, %v6489_v11 }
 0x640   : > { %v6494_v15 = vshll.u32 %v16715_v10, %v6488_v39  ;;  %v6495_v24 = vshrl.u32 %v16716_v5, %v6489_v11  ;;  %v14479_v54 = vsel %vm8440_vm7, 0, %v8439_v29  ;;  %v6497_v56 = vshll.u32 %v16716_v5, %v6488_v39 }
 0x641   : > { %v6498_v55 = vshrl.u32 %v16717_v18, %v6489_v11  ;;  %v6501_v58 = vshrl.u32 %v16718_v1, %v6489_v11  ;;  %v6741_v60 = vsel %vm6739_vm9, %v6740_v32, %v14463_v13  ;;  %v6493_v36 = vor.u32 %v6492_v43, %v6491_v20 }
 0x642   : > { %v6496_v57 = vor.u32 %v6495_v24, %v6494_v15  ;;  %v6500_v59 = vshll.u32 %v16717_v18, %v6488_v39  ;;  %v6742_v41 = vadd.s32 %v6741_v60, %v6737_v50  ;;  %v6522_v8 = vshll.u32 %v6482_v52, 8  ;;  %v14495_v15 = vpop.f32.mrb[45].mxu1 }
 0x643   : > { %v6499_v49 = vor.u32 %v6498_v55, %v6497_v56  ;;  %v4287_v30 = vand.u32 2147483647, %v14419_v12  ;;  %v6503_v29 = vshll.u32 %v16718_v1, %v6488_v39  ;;  %v6504_v22 = vshrl.u32 %v16440_v62, %v6489_v11 }
 0x644   : > { %v6502_v7 = vor.u32 %v6501_v58, %v6500_v59  ;;  %vm6506_vm14 = vcmp.lt.s32.totalorder %v6487_v44, 1  ;;  %v6238_v0 = vsub.s32 4294967266, %v14479_v54  ;;  %v6743_v61 = vadd.s32 536870912, %v6742_v41 }
 0x645   : > { %vm6508_vm12 = vcmp.lt.s32.totalorder %v6487_v44, 3  ;;  %vm6509_vm4 = vcmp.lt.s32.totalorder %v6487_v44, 4  ;;  %v6505_v13 = vor.u32 %v6504_v22, %v6503_v29  ;;  %v6514_v32 = vsel %vm6506_vm14, %v6493_v36, %v6496_v57 }
 0x646   : > { %v6511_v20 = vsel %vm6509_vm4, %v6499_v49, 2102212464  ;;  %v6515_v50 = vsel %vm6509_vm4, %v6502_v7, 920167782  ;;  %v14491_v43 = vshrl.u32 %v6743_v61, 30  ;;  %v6490_v52 = vshrl.u32 %v16429_v2, %v6489_v11 }
 0x647   : > { %vm6507_vm7 = vcmp.lt.s32.totalorder %v6487_v44, 2  ;;  %v6516_v39 = vsel %vm6508_vm12, %v6499_v49, %v6515_v50  ;;  %v6518_v56 = vsel %vm6506_vm14, %v6496_v57, %v6499_v49  ;;  %v6519_v55 = vsel %vm6509_vm4, %v6505_v13, 1326507024 }
 0x648   : > { %16804 = vst [vmem:[#allocation69_spill] sm:$0xff] %v14491_v43  ;;  %v6517_v24 = vsel %vm6507_vm7, %v6514_v32, %v6516_v39  ;;  %v14500_v58 = vmul.f32 %v4353_v48, %v14388_v16  ;;  %v6745_v60 = vshll.u32 %v14491_v43, 30  ;;  %v6510_v61 = vsel %vm6506_vm14, %v6490_v52, %v6493_v36 }
 0x649   : > { %v6512_v59 = vsel %vm6508_vm12, %v6496_v57, %v6511_v20  ;;  %v6520_v11 = vsel %vm6508_vm12, %v6502_v7, %v6519_v55  ;;  %v6448_v29 = vshll.u32 %v14469_v38, 23  ;;  %v6234_v49 = vsub.s32 32, %v14479_v54 }
 0x64a   : > { %16805 = vst [vmem:[#allocation52_spill] sm:$0xff] %v14500_v58  ;;  %v6521_v22 = vsel %vm6507_vm7, %v6518_v56, %v6520_v11  ;;  %v14508_v50 = vmul.u32.u64.low %v6522_v8, %v6517_v24  ;;  %v14509_v32 = vmul.u32.u64.high %v6522_v8, %v6517_v24, %v14508_v50  ;;  %v6239_v16 = vadd.s32 127, %v6238_v0 }
 0x64b   : > { %v14513_v48 = vmul.u32.u64.low %v6522_v8, %v6521_v22  ;;  %v14514_v13 = vmul.u32.u64.high %v6522_v8, %v6521_v22, %v14513_v48  ;;  %v6141_v39 = vmul.f32 %v6140_v19, %v6138_v63  ;;  %v14516_v36 = vsub.s32 %v6742_v41, %v6745_v60 }
 0x64c   : > { %v6513_v57 = vsel %vm6507_vm7, %v6510_v61, %v6512_v59  ;;  %v6789_v7 = vand.u32 2139095040, %v14500_v58  ;;  %vm16360_vm9 = vcmp.lt.s32.totalorder %v13900_v46, 0  ;;  %vm16357_vm14 = vcmp.lt.s32.totalorder %v14013_v4, 0 }
 0x64d   : > { %vm16358_vm12 = vcmp.lt.s32.totalorder %v14090_v3, 0  ;;  %v6443_v38 = vshll.u32 %v14359_v47, %v14442_v34  ;;  %v16806_v0 = vsub.s32 32, %v14442_v34  ;;  %v6218_v63 = vadd.s32 %v14371_v23, %v14378_v17 }
 0x64e   : > { %v4319_v19 = vadd.f32 1.0, %v4287_v30  ;;  %v6449_v44 = vor.u32 4788187, %v6448_v29  ;;  %v6532_v41 = vadd.s32 1, %v14509_v32  ;;  %v16352_v52 = vand.u32 2147483647, %v14500_v58 }
 0x64f   : > { %v6444_v20 = vshrl.u32 %v14459_v25, %v16806_v0  ;;  %v6790_v24 = vshrl.u32 %v6789_v7, 23  ;;  %v6236_v56 = vshrl.u32 %v6218_v63, %v6234_v49  ;;  %v6240_v55 = vshll.u32 %v6239_v16, 23 }
 0x650   : > { %v6529_v60 = vmul.u32 %v6522_v8, %v6513_v57  ;;  %vm6531_vm4 = vc.u32 %v14514_v13, %v14508_v50  ;;  %v6748_v47 = vsub.s32 0, %v14516_v36  ;;  %v4292_v23 = vand.u32 2147483647, %v14455_v9 }
 0x651   : > { %v6533_v34 = vsel %vm6531_vm4, %v6532_v41, %v14509_v32  ;;  %v8461_v25 = vadd.s32 4294967169, %v6790_v24  ;;  %v6445_v17 = vor.u32 %v6444_v20, %v6443_v38  ;;  %v6235_v30 = vshll.u32 %v14426_v40, %v14479_v54 }
 0x652   : > { %v6534_v61 = vadd.s32 %v6533_v34, %v6529_v60  ;;  %v4351_v59 = vmul.f32 30.0, %v4319_v19  ;;  %v5830_v11 = vxor.u32 2147483648, %v14402_v26  ;;  %v6350_v8 = vxor.u32 2147483648, %v14404_v6 }
 0x653   : > { %v6142_v29 = vxor.u32 2147483648, %v6141_v39  ;;  %v6796_v22 = vadd.s32 1, %v8461_v25  ;;  %v6450_v49 = vand.u32 2147483647, %v6449_v44  ;;  %v6237_v16 = vor.u32 %v6236_v56, %v6235_v30  ;;  %v14564_v25 = vpop.f32.mrb[46].mxu1 }
 0x654   : > { %v6241_v48 = vor.u32 4788187, %v6240_v55  ;;  %v6535_v57 = vadd.s32 536870912, %v6534_v61  ;;  %v8458_v32 = vmin.u32 %v6748_v47, %v14516_v36  ;;  %v6793_v7 = vand.u32 8388607, %v16352_v52 }
 0x655   : > { %vm6797_vm7 = vcmp.gt.s32.totalorder %v6796_v22, 0  ;;  %v4324_v38 = vadd.f32 1.0, %v4292_v23  ;;  %v6452_v40 = vcvt.s32.f32 %v6445_v17  ;;  %v14547_v20 = vmul.f32 %v4351_v59, %v14419_v12 }
 0x656   : > { %v14544_v54 = vshrl.u32 %v6535_v57, 30  ;;  %v6798_v0 = vsel %vm6797_vm7, %v6796_v22, 0  ;;  %v14552_v63 = vsel %vm16360_vm9, %v5830_v11, %v14402_v26  ;;  %v14557_v19 = vsel %vm16357_vm14, %v6350_v8, %v14404_v6 }
 0x657   : > { %16808 = vst [vmem:[#allocation59_spill] sm:$0xff] %v14557_v19  ;;  %v14561_v44 = vsel %vm16358_vm12, %v6142_v29, %v6141_v39  ;;  %v6800_v41 = vand.u32 31, %v6798_v0  ;;  %v6453_v24 = vmul.f32 %v6452_v40, %v6450_v49  ;;  %v6242_v56 = vand.u32 2147483647, %v6241_v48 }
 0x658   : > { %16807 = vst [vmem:[#allocation46_spill] sm:$0xff] %v14544_v54  ;;  %16809 = vst [vmem:[#allocation55_spill] sm:$0xff] %v14561_v44  ;;  %v6244_v55 = vcvt.s32.f32 %v6237_v16  ;;  %v6537_v12 = vshll.u32 %v14544_v54, 30  ;;  %v6750_v60 = vclz %v8458_v32  ;;  %v6794_v47 = vor.u32 8388608, %v6793_v7 }
 0x659   : > { %v6801_v34 = vsub.s32 32, %v6800_v41  ;;  %v4356_v26 = vmul.f32 30.0, %v4324_v38  ;;  %v6799_v6 = vshrl.u32 %v6798_v0, 5  ;;  %v6803_v17 = vshll.u32 %v16429_v2, %v6800_v41 }
 0x65a   : > { %v14566_v23 = vsub.s32 %v6534_v61, %v6537_v12  ;;  %v6581_v39 = vand.u32 2139095040, %v14547_v20  ;;  %v6806_v59 = vshll.u32 %v16715_v10, %v6800_v41  ;;  %v6809_v22 = vshll.u32 %v16716_v5, %v6800_v41 }
 0x65b   : > { %v6804_v30 = vshrl.u32 %v16715_v10, %v6801_v34  ;;  %v6807_v11 = vshrl.u32 %v16716_v5, %v6801_v34  ;;  %v6810_v8 = vshrl.u32 %v16717_v18, %v6801_v34  ;;  %v6812_v61 = vshll.u32 %v16717_v18, %v6800_v41 }
 0x65c   : > { %v6540_v29 = vsub.s32 0, %v14566_v23  ;;  %v6813_v49 = vshrl.u32 %v16718_v1, %v6801_v34  ;;  %vm16371_vm4 = vcmp.lt.s32.totalorder %v14146_v33, 0  ;;  %v6454_v16 = vxor.u32 2147483648, %v6453_v24 }
 0x65d   : > { %v14579_v48 = vmul.f32 %v6244_v55, %v6242_v56  ;;  %v6805_v57 = vor.u32 %v6804_v30, %v6803_v17  ;;  %v6808_v32 = vor.u32 %v6807_v11, %v6806_v59  ;;  %v6811_v7 = vor.u32 %v6810_v8, %v6809_v22 }
 0x65e   : > { %v6814_v38 = vor.u32 %v6813_v49, %v6812_v61  ;;  %v6834_v40 = vshll.u32 %v6794_v47, 8  ;;  %v16361_v0 = vand.u32 2147483647, %v14547_v20  ;;  %v8459_v12 = vadd.s32 4294967294, %v6750_v60 }
 0x65f   : > { %v6815_v52 = vshll.u32 %v16718_v1, %v6800_v41  ;;  %v6816_v43 = vshrl.u32 %v16440_v62, %v6801_v34  ;;  %v6582_v54 = vshrl.u32 %v6581_v39, 23  ;;  %v8450_v19 = vmin.u32 %v6540_v29, %v14566_v23 }
 0x660   : > { %vm6818_vm7 = vcmp.lt.s32.totalorder %v6799_v6, 1  ;;  %vm6821_vm14 = vcmp.lt.s32.totalorder %v6799_v6, 4  ;;  %v14586_v56 = vmul.f32 %v4356_v26, %v14455_v9  ;;  %vm6820_vm12 = vcmp.lt.s32.totalorder %v6799_v6, 3 }
 0x661   : > { %v6817_v55 = vor.u32 %v6816_v43, %v6815_v52  ;;  %v6826_v17 = vsel %vm6818_vm7, %v6805_v57, %v6808_v32  ;;  %v6827_v47 = vsel %vm6821_vm14, %v6814_v38, 920167782  ;;  %v6802_v30 = vshrl.u32 %v16429_v2, %v6801_v34 }
 0x662   : > { %16810 = vst [vmem:[#allocation61_spill] sm:$0xff] %v14586_v56  ;;  %vm6819_vm3 = vcmp.lt.s32.totalorder %v6799_v6, 2  ;;  %v6823_v60 = vsel %vm6821_vm14, %v6811_v7, 2102212464  ;;  %v6828_v41 = vsel %vm6820_vm12, %v6811_v7, %v6827_v47  ;;  %v6830_v39 = vsel %vm6818_vm7, %v6808_v32, %v6811_v7  ;;  %v14657_v47 = vpop.f32.mrb[47].mxu1 }
 0x663   : > { %v6829_v59 = vsel %vm6819_vm3, %v6826_v17, %v6828_v41  ;;  %v6831_v11 = vsel %vm6821_vm14, %v6817_v55, 1326507024  ;;  %v8453_v8 = vadd.s32 4294967169, %v6582_v54  ;;  %vm8460_vm9 = vcmp.lt.s32.totalorder %v8459_v12, 0 }
 0x664   : > { %v6542_v29 = vclz %v8450_v19  ;;  %v6822_v9 = vsel %vm6818_vm7, %v6802_v30, %v6805_v57  ;;  %v6832_v43 = vsel %vm6820_vm12, %v6814_v38, %v6831_v11  ;;  %v6824_v52 = vsel %vm6820_vm12, %v6808_v32, %v6823_v60 }
 0x665   : > { %v6833_v26 = vsel %vm6819_vm3, %v6830_v39, %v6832_v43  ;;  %v14594_v22 = vmul.u32.u64.low %v6834_v40, %v6829_v59  ;;  %v14595_v61 = vmul.u32.u64.high %v6834_v40, %v6829_v59, %v14594_v22  ;;  %v14600_v34 = vsel %vm16371_vm4, %v6454_v16, %v6453_v24 }
 0x666   : > { %16811 = vst [vmem:[#allocation67_spill] sm:$0xff] %v14600_v34  ;;  %v14605_v54 = vadd.s32 %v14462_v51, %v14451_v31  ;;  %v14609_v19 = vadd.f32 %v14415_v28, %v14180_v21  ;;  %v14611_v57 = vmul.u32.u64.low %v6834_v40, %v6833_v26  ;;  %v14612_v32 = vmul.u32.u64.high %v6834_v40, %v6833_v26, %v14611_v57 }
 0x667   : > { %v6588_v7 = vadd.s32 1, %v8453_v8  ;;  %v14616_v38 = vadd.f32 %v14415_v28, %v14283_v27  ;;  %v14618_v24 = vsel %vm8460_vm9, 0, %v8459_v12  ;;  %v8451_v16 = vadd.s32 4294967294, %v6542_v29 }
 0x668   : > { %v6825_v55 = vsel %vm6819_vm3, %v6822_v9, %v6824_v52  ;;  %v14623_v31 = vadd.f32 %v14415_v28, %v14352_v14  ;;  %v6844_v21 = vadd.s32 1, %v14595_v61  ;;  %v6585_v51 = vand.u32 8388607, %v16361_v0 }
 0x669   : > { %vm6589_vm14 = vcmp.gt.s32.totalorder %v6588_v7, 0  ;;  %v7101_v17 = vand.u32 2139095040, %v14586_v56  ;;  %v14631_v27 = vadd.s32 %v14508_v50, %v14514_v13  ;;  %v6754_v14 = vsub.s32 32, %v14618_v24 }
 0x66a   : > { %v6590_v12 = vsel %vm6589_vm14, %v6588_v7, 0  ;;  %v6841_v28 = vmul.u32 %v6834_v40, %v6825_v55  ;;  %vm6843_vm3 = vc.u32 %v14612_v32, %v14594_v22  ;;  %v6758_v41 = vsub.s32 4294967266, %v14618_v24 }
 0x66b   : > { %v6592_v30 = vand.u32 31, %v6590_v12  ;;  %vm8452_vm9 = vcmp.lt.s32.totalorder %v8451_v16, 0  ;;  %v6845_v50 = vsel %vm6843_vm3, %v6844_v21, %v14595_v61  ;;  %v6586_v59 = vor.u32 8388608, %v6585_v51 }
 0x66c   : > { %v6846_v13 = vadd.s32 %v6845_v50, %v6841_v28  ;;  %v7102_v11 = vshrl.u32 %v7101_v17, 23  ;;  %v6591_v8 = vshrl.u32 %v6590_v12, 5  ;;  %v6759_v51 = vadd.s32 127, %v6758_v41 }
 0x66d   : > { %v6593_v39 = vsub.s32 32, %v6592_v30  ;;  %v6595_v29 = vshll.u32 %v16429_v2, %v6592_v30  ;;  %v6598_v40 = vshll.u32 %v16715_v10, %v6592_v30  ;;  %v6601_v9 = vshll.u32 %v16716_v5, %v6592_v30 }
 0x66e   : > { %v6847_v43 = vadd.s32 536870912, %v6846_v13  ;;  %v6604_v57 = vshll.u32 %v16717_v18, %v6592_v30  ;;  %v6607_v55 = vshll.u32 %v16718_v1, %v6592_v30  ;;  %v14655_v50 = vsel %vm8452_vm9, 0, %v8451_v16 }
 0x66f   : > { %v6596_v52 = vshrl.u32 %v16715_v10, %v6593_v39  ;;  %v6599_v26 = vshrl.u32 %v16716_v5, %v6593_v39  ;;  %v6602_v61 = vshrl.u32 %v16717_v18, %v6593_v39  ;;  %v6605_v7 = vshrl.u32 %v16718_v1, %v6593_v39 }
 0x670   : > { %v6608_v21 = vshrl.u32 %v16440_v62, %v6593_v39  ;;  %v14652_v17 = vshrl.u32 %v6847_v43, 30  ;;  %vm6610_vm12 = vcmp.lt.s32.totalorder %v6591_v8, 1  ;;  %vm6613_vm7 = vcmp.lt.s32.totalorder %v6591_v8, 4 }
 0x671   : > { %v6597_v12 = vor.u32 %v6596_v52, %v6595_v29  ;;  %v6600_v28 = vor.u32 %v6599_v26, %v6598_v40  ;;  %v6603_v0 = vor.u32 %v6602_v61, %v6601_v9  ;;  %v6606_v49 = vor.u32 %v6605_v7, %v6604_v57 }
 0x672   : > { %16812 = vst [vmem:[#allocation70_spill] sm:$0xff] %v14652_v17  ;;  %v6609_v60 = vor.u32 %v6608_v21, %v6607_v55  ;;  %v6849_v6 = vshll.u32 %v14652_v17, 30  ;;  %v6626_v30 = vshll.u32 %v6586_v59, 8  ;;  %v6594_v34 = vshrl.u32 %v16429_v2, %v6593_v39 }
 0x673   : > { %v6615_v41 = vsel %vm6613_vm7, %v6603_v0, 2102212464  ;;  %v6618_v43 = vsel %vm6610_vm12, %v6597_v12, %v6600_v28  ;;  %v8473_v33 = vadd.s32 4294967169, %v7102_v11  ;;  %vm6612_vm14 = vcmp.lt.s32.totalorder %v6591_v8, 3 }
 0x674   : > { %v14661_v29 = vsub.s32 %v6846_v13, %v6849_v6  ;;  %v6619_v16 = vsel %vm6613_vm7, %v6606_v49, 920167782  ;;  %v6622_v40 = vsel %vm6610_vm12, %v6600_v28, %v6603_v0  ;;  %vm6611_vm3 = vcmp.lt.s32.totalorder %v6591_v8, 2 }
 0x675   : > { %v6614_v9 = vsel %vm6610_vm12, %v6594_v34, %v6597_v12  ;;  %v6620_v52 = vsel %vm6612_vm14, %v6603_v0, %v6619_v16  ;;  %v6623_v26 = vsel %vm6613_vm7, %v6609_v60, 1326507024  ;;  %v6616_v61 = vsel %vm6612_vm14, %v6600_v28, %v6615_v41 }
 0x676   : > { %v6852_v57 = vsub.s32 0, %v14661_v29  ;;  %v6621_v7 = vsel %vm6611_vm3, %v6618_v43, %v6620_v52  ;;  %v6624_v59 = vsel %vm6612_vm14, %v6606_v49, %v6623_v26  ;;  %v7108_v6 = vadd.s32 1, %v8473_v33 }
 0x677   : > { %v6625_v39 = vsel %vm6611_vm3, %v6622_v40, %v6624_v59  ;;  %v14666_v55 = vmul.u32.u64.low %v6626_v30, %v6621_v7  ;;  %v14667_v21 = vmul.u32.u64.high %v6626_v30, %v6621_v7, %v14666_v55  ;;  %v6756_v13 = vshrl.u32 %v14605_v54, %v6754_v14 }
 0x678   : > { %v8462_v11 = vmin.u32 %v6852_v57, %v14661_v29  ;;  %v14672_v34 = vmul.u32.u64.low %v6626_v30, %v6625_v39  ;;  %v14673_v0 = vmul.u32.u64.high %v6626_v30, %v6625_v39, %v14672_v34  ;;  %v6760_v60 = vshll.u32 %v6759_v51, 23 }
 0x679   : > { %v6546_v12 = vsub.s32 32, %v14655_v50  ;;  %v6617_v28 = vsel %vm6611_vm3, %v6614_v9, %v6616_v61  ;;  %vm7109_vm9 = vcmp.gt.s32.totalorder %v7108_v6, 0  ;;  %v6550_v49 = vsub.s32 4294967266, %v14655_v50 }
 0x67a   : > { %v6854_v41 = vclz %v8462_v11  ;;  %v16813_v43 = vand.u32 2147483647, %v14586_v56  ;;  %v7110_v33 = vsel %vm7109_vm9, %v7108_v6, 0  ;;  %v6636_v54 = vadd.s32 1, %v14667_v21 }
 0x67b   : > { %v7112_v14 = vand.u32 31, %v7110_v33  ;;  %v16814_v40 = vand.u32 2147483647, %v14609_v19  ;;  %v4293_v51 = vand.u32 2147483647, %v14616_v38  ;;  %v16815_v8 = vshll.u32 %v14516_v36, %v14618_v24 }
 0x67c   : > { %v7105_v16 = vand.u32 8388607, %v16813_v43  ;;  %v8463_v26 = vadd.s32 4294967294, %v6854_v41  ;;  %v6633_v57 = vmul.u32 %v6626_v30, %v6617_v28  ;;  %vm6635_vm12 = vc.u32 %v14673_v0, %v14666_v55 }
 0x67d   : > { %v4322_v52 = vadd.f32 1.0, %v16814_v40  ;;  %v14687_v9 = vor.u32 %v6756_v13, %v16815_v8  ;;  %v14691_v61 = vor.u32 4788187, %v6760_v60  ;;  %v6637_v59 = vsel %vm6635_vm12, %v6636_v54, %v14667_v21 }
 0x67e   : > { %v7113_v39 = vsub.s32 32, %v7112_v14  ;;  %v14697_v6 = vshrl.u32 %v14631_v27, %v6546_v12  ;;  %v6551_v11 = vadd.s32 127, %v6550_v49  ;;  %v6638_v36 = vadd.s32 %v6637_v59, %v6633_v57 }
 0x67f   : > { %v7106_v24 = vor.u32 8388608, %v7105_v16  ;;  %vm8464_vm7 = vcmp.lt.s32.totalorder %v8463_v26, 0  ;;  %v4354_v34 = vmul.f32 30.0, %v4322_v52  ;;  %v7111_v28 = vshrl.u32 %v7110_v33, 5 }
 0x680   : > { %v7116_v30 = vshrl.u32 %v16715_v10, %v7113_v39  ;;  %v7119_v13 = vshrl.u32 %v16716_v5, %v7113_v39  ;;  %v6639_v60 = vadd.s32 536870912, %v6638_v36  ;;  %v7115_v41 = vshll.u32 %v16429_v2, %v7112_v14 }
 0x681   : > { %v7118_v43 = vshll.u32 %v16715_v10, %v7112_v14  ;;  %v7121_v21 = vshll.u32 %v16716_v5, %v7112_v14  ;;  %v7122_v27 = vshrl.u32 %v16717_v18, %v7113_v39  ;;  %v7124_v12 = vshll.u32 %v16717_v18, %v7112_v14 }
 0x682   : > { %v7125_v49 = vshrl.u32 %v16718_v1, %v7113_v39  ;;  %v14707_v16 = vsel %vm8464_vm7, 0, %v8463_v26  ;;  %v14709_v54 = vshrl.u32 %v6639_v60, 30  ;;  %v7117_v40 = vor.u32 %v7116_v30, %v7115_v41 }
 0x683   : > { %v7120_v52 = vor.u32 %v7119_v13, %v7118_v43  ;;  %v7123_v8 = vor.u32 %v7122_v27, %v7121_v21  ;;  %v7127_v57 = vshll.u32 %v16718_v1, %v7112_v14  ;;  %v7128_v59 = vshrl.u32 %v16440_v62, %v7113_v39 }
 0x684   : > { %16816 = vst [vmem:[#allocation68_spill] sm:$0xff] %v14709_v54  ;;  %v7126_v33 = vor.u32 %v7125_v49, %v7124_v12  ;;  %v6552_v7 = vshll.u32 %v6551_v11, 23  ;;  %v6842_v17 = vadd.s32 %v14594_v22, %v14612_v32  ;;  %v6641_v4 = vshll.u32 %v14709_v54, 30  ;;  %v9186_v22 = vld [vmem:[%s16107_s5] sm:$0xff]  }
 0x685   : > { %v14716_v44 = vshll.u32 %v7106_v24, 8  ;;  %v6862_v26 = vsub.s32 4294967266, %v14707_v16  ;;  %v7129_v60 = vor.u32 %v7128_v59, %v7127_v57  ;;  %v14720_v30 = vmul.f32 %v4354_v34, %v14609_v19  ;;  %8821 = vmatprep.subr.bf16.mxu0 %v9186_v22 }
 0x686   : > { %v4325_v13 = vadd.f32 1.0, %v4293_v51  ;;  %v14722_v41 = vsub.s32 %v6638_v36, %v6641_v4  ;;  %v7114_v14 = vshrl.u32 %v16429_v2, %v7113_v39  ;;  %vm7130_vm14 = vcmp.lt.s32.totalorder %v7111_v28, 1  ;;  %8822 = vmatpush3.bf16.msra.mxu0 %v9186_v22 }
 0x687   : > { %vm7133_vm3 = vcmp.lt.s32.totalorder %v7111_v28, 4  ;;  %vm7132_vm9 = vcmp.lt.s32.totalorder %v7111_v28, 3  ;;  %v7138_v11 = vsel %vm7130_vm14, %v7117_v40, %v7120_v52  ;;  %vm7131_vm12 = vcmp.lt.s32.totalorder %v7111_v28, 2 }
 0x688   : > { %v7135_v32 = vsel %vm7133_vm3, %v7123_v8, 2102212464  ;;  %v7139_v24 = vsel %vm7133_vm3, %v7126_v33, 920167782  ;;  %v6644_v43 = vsub.s32 0, %v14722_v41  ;;  %v7142_v4 = vsel %vm7130_vm14, %v7120_v52, %v7123_v8 }
 0x689   : > { %v7140_v19 = vsel %vm7132_vm9, %v7123_v8, %v7139_v24  ;;  %v6858_v51 = vsub.s32 32, %v14707_v16  ;;  %v6863_v39 = vadd.s32 127, %v6862_v26  ;;  %v7143_v34 = vsel %vm7133_vm3, %v7129_v60, 1326507024  ;;  %v9187_v8 = vld [vmem:[%s16107_s5 + $0x8] sm:$0xff]  }
 0x68a   : > { %v7141_v36 = vsel %vm7131_vm12, %v7138_v11, %v7140_v19  ;;  %vm16372_vm7 = vcmp.lt.s32.totalorder %v14269_v35, 0  ;;  %v8454_v21 = vmin.u32 %v6644_v43, %v14722_v41  ;;  %v7134_v27 = vsel %vm7130_vm14, %v7114_v14, %v7117_v40  ;;  %8823 = vmatprep.subr.bf16.mxu0 %v9187_v8 }
 0x68b   : > { %v7136_v12 = vsel %vm7132_vm9, %v7120_v52, %v7135_v32  ;;  %v7144_v49 = vsel %vm7132_vm9, %v7126_v33, %v7143_v34  ;;  %v14744_v59 = vmul.u32.u64.low %v14716_v44, %v7141_v36  ;;  %v14745_v26 = vmul.u32.u64.high %v14716_v44, %v7141_v36, %v14744_v59  ;;  %8824 = vmatpush3.bf16.msra.mxu0 %v9187_v8  ;;  %v9188_v34 = vld [vmem:[%s16107_s5 + $0x10] sm:$0xff]  }
 0x68c   : > { %v7145_v57 = vsel %vm7131_vm12, %v7142_v4, %v7144_v49  ;;  %v6893_v60 = vand.u32 2139095040, %v14720_v30  ;;  %v6553_v22 = vor.u32 4788187, %v6552_v7  ;;  %v6646_v11 = vclz %v8454_v21  ;;  %8825 = vmatprep.subr.bf16.mxu0 %v9188_v34 }
 0x68d   : > { %v14750_v40 = vmul.u32.u64.low %v14716_v44, %v7145_v57  ;;  %v14751_v52 = vmul.u32.u64.high %v14716_v44, %v7145_v57, %v14750_v40  ;;  %v6762_v33 = vand.u32 2147483647, %v14691_v61  ;;  %v6860_v14 = vshrl.u32 %v6842_v17, %v6858_v51 }
 0x68e   : > { %v7137_v32 = vsel %vm7131_vm12, %v7134_v27, %v7136_v12  ;;  %v6894_v24 = vshrl.u32 %v6893_v60, 23  ;;  %v16817_v43 = vshll.u32 %v14566_v23, %v14655_v50  ;;  %v6864_v4 = vshll.u32 %v6863_v39, 23  ;;  %v9189_v12 = vld [vmem:[%s16107_s5 + $0x18] sm:$0xff]  }
 0x68f   : > { %v8455_v7 = vadd.s32 4294967294, %v6646_v11  ;;  %v16368_v36 = vand.u32 2147483647, %v14720_v30  ;;  %v6859_v17 = vshll.u32 %v14661_v29, %v14707_v16  ;;  %v7156_v61 = vadd.s32 1, %v14745_v26  ;;  %8826 = vmatpush3.bf16.msra.mxu0 %v9188_v34 }
 0x690   : > { %v6549_v19 = vor.u32 %v14697_v6, %v16817_v43  ;;  %v8465_v28 = vadd.s32 4294967169, %v6894_v24  ;;  %v4357_v51 = vmul.f32 30.0, %v4325_v13  ;;  %v6554_v21 = vand.u32 2147483647, %v6553_v22  ;;  %8827 = vmatprep.subr.bf16.mxu0 %v9189_v12 }
 0x691   : > { %v7153_v23 = vmul.u32 %v14716_v44, %v7137_v32  ;;  %vm7155_vm14 = vc.u32 %v14751_v52, %v14744_v59  ;;  %v4291_v50 = vand.u32 2147483647, %v14623_v31  ;;  %v14770_v6 = vor.u32 %v6860_v14, %v6859_v17 }
 0x692   : > { %vm8456_vm3 = vcmp.lt.s32.totalorder %v8455_v7, 0  ;;  %v7157_v39 = vsel %vm7155_vm14, %v7156_v61, %v14745_v26  ;;  %v6900_v27 = vadd.s32 1, %v8465_v28  ;;  %v6764_v29 = vcvt.s32.f32 %v14687_v9 }
 0x693   : > { %v14774_v16 = vor.u32 4788187, %v6864_v4  ;;  %v7158_v13 = vadd.s32 %v7157_v39, %v7153_v23  ;;  %v6897_v44 = vand.u32 8388607, %v16368_v36  ;;  %v16818_v49 = vxor.u32 2147483648, %v14579_v48  ;;  %8828 = vmatpush3.bf16.msra.mxu0 %v9189_v12  ;;  %v9191_v12 = vld [vmem:[%s16107_s5 + $0x28] sm:$0xff]  }
 0x694   : > { %v6556_v57 = vcvt.s32.f32 %v6549_v19  ;;  %vm6901_vm9 = vcmp.gt.s32.totalorder %v6900_v27, 0  ;;  %v14789_v9 = vmul.f32 %v4357_v51, %v14616_v38  ;;  %v14791_v26 = vmul.f32 %v6764_v29, %v6762_v33  ;;  %v9190_v19 = vld [vmem:[%s16107_s5 + $0x20] sm:$0xff]  }
 0x695   : > { %v14786_v8 = vsel %vm16372_vm7, %v16818_v49, %v14579_v48  ;;  %v14793_v60 = vsel %vm8456_vm3, 0, %v8455_v7  ;;  %v7159_v22 = vadd.s32 536870912, %v7158_v13  ;;  %v6902_v11 = vsel %vm6901_vm9, %v6900_v27, 0  ;;  %8829 = vmatprep.subr.bf16.mxu0 %v9190_v19 }
 0x696   : > { %v14795_v40 = vmul.f32 %v6556_v57, %v6554_v21  ;;  %v6634_v48 = vadd.s32 %v14666_v55, %v14673_v0  ;;  %v6904_v32 = vand.u32 31, %v6902_v11  ;;  %v6898_v33 = vor.u32 8388608, %v6897_v44 }
 0x697   : > { %v14801_v38 = vshrl.u32 %v7159_v22, 30  ;;  %v4323_v43 = vadd.f32 1.0, %v4291_v50  ;;  %v6650_v4 = vsub.s32 32, %v14793_v60  ;;  %v7205_v17 = vand.u32 2139095040, %v14789_v9  ;;  %8830 = vmatpush3.bf16.msra.mxu0 %v9190_v19 }
 0x698   : > { %v6905_v7 = vsub.s32 32, %v6904_v32  ;;  %v14810_v0 = vshrl.u32 %v6902_v11, 5  ;;  %v6907_v61 = vshll.u32 %v16429_v2, %v6904_v32  ;;  %v6910_v28 = vshll.u32 %v16715_v10, %v6904_v32  ;;  %8831 = vmatprep.subr.bf16.mxu0 %v9191_v12 }
 0x699   : > { %16819 = vst [vmem:[#allocation71_spill] sm:$0xff] %v14801_v38  ;;  %v7161_v55 = vshll.u32 %v14801_v38, 30  ;;  %v6913_v23 = vshll.u32 %v16716_v5, %v6904_v32  ;;  %v6916_v27 = vshll.u32 %v16717_v18, %v6904_v32  ;;  %v6919_v44 = vshll.u32 %v16718_v1, %v6904_v32 }
 0x69a   : > { %v6908_v51 = vshrl.u32 %v16715_v10, %v6905_v7  ;;  %v6911_v21 = vshrl.u32 %v16716_v5, %v6905_v7  ;;  %v6914_v50 = vshrl.u32 %v16717_v18, %v6905_v7  ;;  %v6917_v29 = vshrl.u32 %v16718_v1, %v6905_v7 }
 0x69b   : > { %v14818_v39 = vsub.s32 %v7158_v13, %v7161_v55  ;;  %v6920_v11 = vshrl.u32 %v16440_v62, %v6905_v7  ;;  %v6654_v36 = vsub.s32 4294967266, %v14793_v60  ;;  %v14829_v55 = vshll.u32 %v6898_v33, 8  ;;  %8832 = vmatpush3.bf16.msra.mxu0 %v9191_v12 }
 0x69c   : > { %v6909_v49 = vor.u32 %v6908_v51, %v6907_v61  ;;  %v6912_v57 = vor.u32 %v6911_v21, %v6910_v28  ;;  %v6915_v22 = vor.u32 %v6914_v50, %v6913_v23  ;;  %v6918_v19 = vor.u32 %v6917_v29, %v6916_v27  ;;  %v9192_v61 = vld [vmem:[%s16107_s5 + $0x30] sm:$0xff]  }
 0x69d   : > { %v7164_v13 = vsub.s32 0, %v14818_v39  ;;  %v6652_v34 = vshrl.u32 %v6634_v48, %v6650_v4  ;;  %v6921_v14 = vor.u32 %v6920_v11, %v6919_v44  ;;  %v7206_v32 = vshrl.u32 %v7205_v17, 23  ;;  %8833 = vmatprep.subr.bf16.mxu0 %v9192_v61 }
 0x69e   : > { %v4355_v24 = vmul.f32 30.0, %v4323_v43  ;;  %v6906_v38 = vshrl.u32 %v16429_v2, %v6905_v7  ;;  %vm6922_vm12 = vcmp.lt.s32.totalorder %v14810_v0, 1  ;;  %vm6924_vm14 = vcmp.lt.s32.totalorder %v14810_v0, 3 }
 0x69f   : > { %vm6925_vm3 = vcmp.lt.s32.totalorder %v14810_v0, 4  ;;  %vm16373_vm9 = vcmp.lt.s32.totalorder %v14357_v45, 0  ;;  %vm16374_vm4 = vcmp.lt.s32.totalorder %v14368_v37, 0  ;;  %v8474_v48 = vmin.u32 %v7164_v13, %v14818_v39  ;;  %8834 = vmatpush3.bf16.msra.mxu0 %v9192_v61 }
 0x6a0   : > { %v6927_v33 = vsel %vm6925_vm3, %v6915_v22, 2102212464  ;;  %v6930_v43 = vsel %vm6922_vm12, %v6909_v49, %v6912_v57  ;;  %v6931_v4 = vsel %vm6925_vm3, %v6918_v19, 920167782  ;;  %v6655_v7 = vadd.s32 127, %v6654_v36 }
 0x6a1   : > { %vm6923_vm7 = vcmp.lt.s32.totalorder %v14810_v0, 2  ;;  %v6932_v17 = vsel %vm6924_vm14, %v6915_v22, %v6931_v4  ;;  %v6934_v28 = vsel %vm6922_vm12, %v6912_v57, %v6915_v22  ;;  %v6926_v51 = vsel %vm6922_vm12, %v6906_v38, %v6909_v49  ;;  %v9193_v38 = vld [vmem:[%s16107_s5 + $0x38] sm:$0xff]  }
 0x6a2   : > { %v6933_v21 = vsel %vm6923_vm7, %v6930_v43, %v6932_v17  ;;  %v6935_v23 = vsel %vm6925_vm3, %v6921_v14, 1326507024  ;;  %v8477_v50 = vadd.s32 4294967169, %v7206_v32  ;;  %v6928_v27 = vsel %vm6924_vm14, %v6912_v57, %v6927_v33  ;;  %8835 = vmatprep.subr.bf16.mxu0 %v9193_v38 }
 0x6a3   : > { %v6936_v36 = vsel %vm6924_vm14, %v6918_v19, %v6935_v23  ;;  %v14851_v29 = vmul.u32.u64.low %v14829_v55, %v6933_v21  ;;  %v14852_v44 = vmul.u32.u64.high %v14829_v55, %v6933_v21, %v14851_v29  ;;  %v7166_v12 = vclz %v8474_v48  ;;  %8836 = vmatpush3.bf16.msra.mxu0 %v9193_v38 }
 0x6a4   : > { %v6937_v14 = vsel %vm6923_vm7, %v6934_v28, %v6936_v36  ;;  %v7212_v49 = vadd.s32 1, %v8477_v50  ;;  %v14861_v22 = vmul.f32 %v4355_v24, %v14623_v31  ;;  %v6766_v57 = vxor.u32 2147483648, %v14791_v26 }
 0x6a5   : > { %v6558_v11 = vxor.u32 2147483648, %v14795_v40  ;;  %v14866_v13 = vmul.u32.u64.low %v14829_v55, %v6937_v14  ;;  %v14867_v19 = vmul.u32.u64.high %v14829_v55, %v6937_v14, %v14866_v13  ;;  %v16820_v32 = vand.u32 2147483647, %v14774_v16 }
 0x6a6   : > { %v16821_v61 = vcvt.s32.f32 %v14770_v6  ;;  %v6651_v33 = vshll.u32 %v14722_v41, %v14793_v60  ;;  %v6929_v31 = vsel %vm6923_vm7, %v6926_v51, %v6928_v27  ;;  %vm7213_vm12 = vcmp.gt.s32.totalorder %v7212_v49, 0  ;;  %v14885_v6 = vld [vmem:[%s16106_s4] ss:$0 sm:$0xff] }
 0x6a7   : > { %v6656_v24 = vshll.u32 %v6655_v7, 23  ;;  %v6948_v43 = vadd.s32 1, %v14852_v44  ;;  %v16822_v4 = vand.u32 2147483647, %v14789_v9  ;;  %v14889_v16 = vadd.f32 %v14885_v6, %v14431_v42 }
 0x6a8   : > { %v14873_v48 = vmul.f32 %v16821_v61, %v16820_v32  ;;  %v14891_v41 = vor.u32 %v6652_v34, %v6651_v33  ;;  %v8475_v60 = vadd.s32 4294967294, %v7166_v12  ;;  %v7214_v0 = vsel %vm7213_vm12, %v7212_v49, 0 }
 0x6a9   : > { %v7209_v17 = vand.u32 8388607, %v16822_v4  ;;  %v6997_v7 = vand.u32 2139095040, %v14861_v22  ;;  %v14897_v28 = vsel %vm16373_vm9, %v6766_v57, %v14791_v26  ;;  %v14902_v51 = vsel %vm16374_vm4, %v6558_v11, %v14795_v40 }
 0x6aa   : > { %16823 = vst [vmem:[#allocation11_spill] sm:$0xff] %v14897_v28  ;;  %16824 = vst [vmem:[#allocation43_spill] sm:$0xff] %v14902_v51  ;;  %v6945_v21 = vmul.u32 %v14829_v55, %v6929_v31  ;;  %vm6947_vm7 = vc.u32 %v14867_v19, %v14851_v29  ;;  %v7216_v23 = vand.u32 31, %v7214_v0  ;;  %v14911_v50 = vadd.f32 %v14885_v6, %v14495_v15 }
 0x6ab   : > { %v6949_v34 = vsel %vm6947_vm7, %v6948_v43, %v14852_v44  ;;  %v14913_v26 = vor.u32 4788187, %v6656_v24  ;;  %v7210_v36 = vor.u32 8388608, %v7209_v17  ;;  %v4296_v40 = vand.u32 2147483647, %v14889_v16 }
 0x6ac   : > { %v6950_v27 = vadd.s32 %v6949_v34, %v6945_v21  ;;  %v6660_v55 = vcvt.s32.f32 %v14891_v41  ;;  %vm8476_vm14 = vcmp.lt.s32.totalorder %v8475_v60, 0  ;;  %v7217_v38 = vsub.s32 32, %v7216_v23 }
 0x6ad   : > { %v6998_v12 = vshrl.u32 %v6997_v7, 23  ;;  %v7215_v49 = vshrl.u32 %v7214_v0, 5  ;;  %v7219_v44 = vshll.u32 %v16429_v2, %v7216_v23  ;;  %v7222_v57 = vshll.u32 %v16715_v10, %v7216_v23 }
 0x6ae   : > { %v6951_v14 = vadd.s32 536870912, %v6950_v27  ;;  %v7220_v15 = vshrl.u32 %v16715_v10, %v7217_v38  ;;  %v7223_v11 = vshrl.u32 %v16716_v5, %v7217_v38  ;;  %v7225_v13 = vshll.u32 %v16716_v5, %v7216_v23 }
 0x6af   : > { %v7226_v32 = vshrl.u32 %v16717_v18, %v7217_v38  ;;  %v7228_v33 = vshll.u32 %v16717_v18, %v7216_v23  ;;  %v7229_v31 = vshrl.u32 %v16718_v1, %v7217_v38  ;;  %v7231_v24 = vshll.u32 %v16718_v1, %v7216_v23 }
 0x6b0   : > { %v14923_v61 = vshrl.u32 %v6951_v14, 30  ;;  %v7221_v43 = vor.u32 %v7220_v15, %v7219_v44  ;;  %v7224_v4 = vor.u32 %v7223_v11, %v7222_v57  ;;  %v7232_v41 = vshrl.u32 %v16440_v62, %v7217_v38 }
 0x6b1   : > { %v7227_v17 = vor.u32 %v7226_v32, %v7225_v13  ;;  %vm16390_vm3 = vcmp.lt.s32.totalorder %v14500_v58, 0  ;;  %v6658_v0 = vand.u32 2147483647, %v14913_v26  ;;  %v7230_v21 = vor.u32 %v7229_v31, %v7228_v33 }
 0x6b2   : > { %16825 = vst [vmem:[#allocation22_spill] sm:$0xff] %v14923_v61  ;;  %v6953_v7 = vshll.u32 %v14923_v61, 30  ;;  %v7250_v34 = vshll.u32 %v7210_v36, 8  ;;  %v14933_v14 = vsel %vm8476_vm14, 0, %v8475_v60  ;;  %v7233_v42 = vor.u32 %v7232_v41, %v7231_v24 }
 0x6b3   : > { %vm7237_vm12 = vcmp.lt.s32.totalorder %v7215_v49, 4  ;;  %v8469_v28 = vadd.s32 4294967169, %v6998_v12  ;;  %v7218_v44 = vshrl.u32 %v16429_v2, %v7217_v38  ;;  %vm7234_vm7 = vcmp.lt.s32.totalorder %v7215_v49, 1 }
 0x6b4   : > { %v14935_v23 = vsub.s32 %v6950_v27, %v6953_v7  ;;  %v7239_v57 = vsel %vm7237_vm12, %v7227_v17, 2102212464  ;;  %vm7235_vm9 = vcmp.lt.s32.totalorder %v7215_v49, 2  ;;  %vm7236_vm4 = vcmp.lt.s32.totalorder %v7215_v49, 3 }
 0x6b5   : > { %v7242_v26 = vsel %vm7234_vm7, %v7221_v43, %v7224_v4  ;;  %v7243_v15 = vsel %vm7237_vm12, %v7230_v21, 920167782  ;;  %v7238_v11 = vsel %vm7234_vm7, %v7218_v44, %v7221_v43  ;;  %v7246_v13 = vsel %vm7234_vm7, %v7224_v4, %v7227_v17 }
 0x6b6   : > { %v6956_v36 = vsub.s32 0, %v14935_v23  ;;  %v7244_v60 = vsel %vm7236_vm4, %v7227_v17, %v7243_v15  ;;  %v7240_v32 = vsel %vm7236_vm4, %v7224_v4, %v7239_v57  ;;  %v7247_v27 = vsel %vm7237_vm12, %v7233_v42, 1326507024 }
 0x6b7   : > { %v7245_v12 = vsel %vm7235_vm9, %v7242_v26, %v7244_v60  ;;  %v7004_v33 = vadd.s32 1, %v8469_v28  ;;  %v7248_v31 = vsel %vm7236_vm4, %v7230_v21, %v7247_v27  ;;  %v7174_v7 = vsub.s32 4294967266, %v14933_v14 }
 0x6b8   : > { %v8466_v38 = vmin.u32 %v6956_v36, %v14935_v23  ;;  %v14944_v24 = vmul.u32.u64.low %v7250_v34, %v7245_v12  ;;  %v14945_v41 = vmul.u32.u64.high %v7250_v34, %v7245_v12, %v14944_v24  ;;  %v7249_v61 = vsel %vm7235_vm9, %v7246_v13, %v7248_v31 }
 0x6b9   : > { %v16377_v43 = vand.u32 2147483647, %v14861_v22  ;;  %vm7005_vm14 = vcmp.gt.s32.totalorder %v7004_v33, 0  ;;  %v14951_v17 = vmul.u32.u64.low %v7250_v34, %v7249_v61  ;;  %v14952_v44 = vmul.u32.u64.high %v7250_v34, %v7249_v61, %v14951_v17 }
 0x6ba   : > { %v6958_v4 = vclz %v8466_v38  ;;  %v7006_v42 = vsel %vm7005_vm14, %v7004_v33, 0  ;;  %v16826_v28 = vxor.u32 2147483648, %v14873_v48  ;;  %v7241_v57 = vsel %vm7235_vm9, %v7238_v11, %v7240_v32 }
 0x6bb   : > { %v7008_v26 = vand.u32 31, %v7006_v42  ;;  %v4328_v15 = vadd.f32 1.0, %v4296_v40  ;;  %v14962_v36 = vmul.f32 %v6660_v55, %v6658_v0  ;;  %v7154_v60 = vadd.s32 %v14744_v59, %v14751_v52 }
 0x6bc   : > { %v14959_v21 = vsel %vm16390_vm3, %v16826_v28, %v14873_v48  ;;  %v7260_v61 = vadd.s32 1, %v14945_v41  ;;  %v4294_v13 = vand.u32 2147483647, %v14911_v50  ;;  %v7170_v12 = vsub.s32 32, %v14933_v14 }
 0x6bd   : > { %16827 = vst [vmem:[#allocation72_spill] sm:$0xff] %v14959_v21  ;;  %v7001_v48 = vand.u32 8388607, %v16377_v43  ;;  %v7009_v49 = vsub.s32 32, %v7008_v26  ;;  %v14973_v11 = vadd.s32 127, %v7174_v7  ;;  %v8467_v40 = vadd.s32 4294967294, %v6958_v4 }
 0x6be   : > { %v7257_v55 = vmul.u32 %v7250_v34, %v7241_v57  ;;  %vm7259_vm4 = vc.u32 %v14952_v44, %v14944_v24  ;;  %v7007_v52 = vshrl.u32 %v7006_v42, 5  ;;  %v4360_v32 = vmul.f32 30.0, %v4328_v15 }
 0x6bf   : > { %v7261_v59 = vsel %vm7259_vm4, %v7260_v61, %v14945_v41  ;;  %v7012_v0 = vshrl.u32 %v16715_v10, %v7009_v49  ;;  %v7011_v38 = vshll.u32 %v16429_v2, %v7008_v26  ;;  %v7014_v31 = vshll.u32 %v16715_v10, %v7008_v26 }
 0x6c0   : > { %v7262_v33 = vadd.s32 %v7261_v59, %v7257_v55  ;;  %v7017_v17 = vshll.u32 %v16716_v5, %v7008_v26  ;;  %v7015_v7 = vshrl.u32 %v16716_v5, %v7009_v49  ;;  %v7018_v34 = vshrl.u32 %v16717_v18, %v7009_v49 }
 0x6c1   : > { %v7020_v4 = vshll.u32 %v16717_v18, %v7008_v26  ;;  %v7021_v28 = vshrl.u32 %v16718_v1, %v7009_v49  ;;  %vm8468_vm9 = vcmp.lt.s32.totalorder %v8467_v40, 0  ;;  %v7013_v42 = vor.u32 %v7012_v0, %v7011_v38 }
 0x6c2   : > { %v7263_v41 = vadd.s32 536870912, %v7262_v33  ;;  %v7023_v57 = vshll.u32 %v16718_v1, %v7008_v26  ;;  %v7016_v15 = vor.u32 %v7015_v7, %v7014_v31  ;;  %v7019_v61 = vor.u32 %v7018_v34, %v7017_v17 }
 0x6c3   : > { %v7022_v55 = vor.u32 %v7021_v28, %v7020_v4  ;;  %v7024_v59 = vshrl.u32 %v16440_v62, %v7009_v49  ;;  %v7172_v43 = vshrl.u32 %v7154_v60, %v7170_v12  ;;  %v7176_v27 = vshll.u32 %v14973_v11, 23 }
 0x6c4   : > { %v14989_v21 = vshrl.u32 %v7263_v41, 30  ;;  %v7002_v58 = vor.u32 8388608, %v7001_v48  ;;  %v14991_v45 = vsel %vm8468_vm9, 0, %v8467_v40  ;;  %v14994_v51 = vmul.f32 %v4360_v32, %v14889_v16 }
 0x6c5   : > { %v7025_v54 = vor.u32 %v7024_v59, %v7023_v57  ;;  %v4326_v0 = vadd.f32 1.0, %v4294_v13  ;;  %v7010_v38 = vshrl.u32 %v16429_v2, %v7009_v49  ;;  %vm7026_vm12 = vcmp.lt.s32.totalorder %v7007_v52, 1 }
 0x6c6   : > { %16828 = vst [vmem:[#allocation73_spill] sm:$0xff] %v14989_v21  ;;  %v7265_v26 = vshll.u32 %v14989_v21, 30  ;;  %vm7029_vm7 = vcmp.lt.s32.totalorder %v7007_v52, 4  ;;  %vm7028_vm14 = vcmp.lt.s32.totalorder %v7007_v52, 3  ;;  %v7034_v12 = vsel %vm7026_vm12, %v7013_v42, %v7016_v15 }
 0x6c7   : > { %v7031_v60 = vsel %vm7029_vm7, %v7019_v61, 2102212464  ;;  %v7035_v11 = vsel %vm7029_vm7, %v7022_v55, 920167782  ;;  %vm7027_vm4 = vcmp.lt.s32.totalorder %v7007_v52, 2  ;;  %v7038_v16 = vsel %vm7026_vm12, %v7016_v15, %v7019_v61 }
 0x6c8   : > { %v14999_v31 = vsub.s32 %v7262_v33, %v7265_v26  ;;  %v7036_v48 = vsel %vm7028_vm14, %v7019_v61, %v7035_v11  ;;  %vm16391_vm9 = vcmp.lt.s32.totalorder %v14547_v20, 0  ;;  %v7039_v40 = vsel %vm7029_vm7, %v7025_v54, 1326507024 }
 0x6c9   : > { %v7037_v13 = vsel %vm7027_vm4, %v7034_v12, %v7036_v48  ;;  %v7042_v49 = vshll.u32 %v7002_v58, 8  ;;  %v4358_v32 = vmul.f32 30.0, %v4326_v0  ;;  %v7030_v7 = vsel %vm7026_vm12, %v7010_v38, %v7013_v42 }
 0x6ca   : > { %v7268_v17 = vsub.s32 0, %v14999_v31  ;;  %v7032_v34 = vsel %vm7028_vm14, %v7016_v15, %v7031_v60  ;;  %v7040_v33 = vsel %vm7028_vm14, %v7022_v55, %v7039_v40  ;;  %v6966_v4 = vsub.s32 4294967266, %v14991_v45 }
 0x6cb   : > { %v7041_v28 = vsel %vm7027_vm4, %v7038_v16, %v7040_v33  ;;  %v15011_v41 = vmul.u32.u64.low %v7042_v49, %v7037_v13  ;;  %v15012_v57 = vmul.u32.u64.high %v7042_v49, %v7037_v13, %v15011_v41  ;;  %v16384_v59 = vand.u32 2147483647, %v14994_v51 }
 0x6cc   : > { %v8478_v54 = vmin.u32 %v7268_v17, %v14999_v31  ;;  %v15016_v58 = vmul.u32.u64.low %v7042_v49, %v7041_v28  ;;  %v15017_v61 = vmul.u32.u64.high %v7042_v49, %v7041_v28, %v15016_v58  ;;  %v6662_v42 = vxor.u32 2147483648, %v14962_v36 }
 0x6cd   : > { %v7033_v15 = vsel %vm7027_vm4, %v7030_v7, %v7032_v34  ;;  %v7517_v55 = vand.u32 2139095040, %v14994_v51  ;;  %v15024_v0 = vmul.f32 %v4358_v32, %v14911_v50  ;;  %v16829_v26 = vshll.u32 %v14818_v39, %v14933_v14 }
 0x6ce   : > { %v7177_v60 = vor.u32 4788187, %v7176_v27  ;;  %v6946_v12 = vadd.s32 %v14851_v29, %v14867_v19  ;;  %v7270_v11 = vclz %v8478_v54  ;;  %v6962_v48 = vsub.s32 32, %v14991_v45 }
 0x6cf   : > { %v7173_v38 = vor.u32 %v7172_v43, %v16829_v26  ;;  %v6967_v16 = vadd.s32 127, %v6966_v4  ;;  %v7052_v52 = vadd.s32 1, %v15012_v57  ;;  %v7518_v13 = vshrl.u32 %v7517_v55, 23 }
 0x6d0   : > { %v8479_v40 = vadd.s32 4294967294, %v7270_v11  ;;  %v7049_v17 = vmul.u32 %v7042_v49, %v7033_v15  ;;  %vm7051_vm12 = vc.u32 %v15017_v61, %v15011_v41  ;;  %v7521_v39 = vand.u32 8388607, %v16384_v59 }
 0x6d1   : > { %v7053_v50 = vsel %vm7051_vm12, %v7052_v52, %v15012_v57  ;;  %v8489_v14 = vadd.s32 4294967169, %v7518_v13  ;;  %v7309_v29 = vand.u32 2139095040, %v15024_v0  ;;  %v15041_v19 = vadd.f32 %v14885_v6, %v14564_v25 }
 0x6d2   : > { %v15046_v43 = vsel %vm16391_vm9, %v6662_v42, %v14962_v36  ;;  %v7178_v27 = vand.u32 2147483647, %v7177_v60  ;;  %v7180_v49 = vcvt.s32.f32 %v7173_v38  ;;  %v7054_v32 = vadd.s32 %v7053_v50, %v7049_v17 }
 0x6d3   : > { %v6964_v7 = vshrl.u32 %v6946_v12, %v6962_v48  ;;  %v6968_v34 = vshll.u32 %v6967_v16, 23  ;;  %vm8480_vm7 = vcmp.lt.s32.totalorder %v8479_v40, 0  ;;  %v7524_v33 = vadd.s32 1, %v8489_v14 }
 0x6d4   : > { %v7055_v4 = vadd.s32 536870912, %v7054_v32  ;;  %v7522_v28 = vor.u32 8388608, %v7521_v39  ;;  %v16385_v57 = vand.u32 2147483647, %v15024_v0  ;;  %v15051_v25 = vadd.f32 %v14885_v6, %v14657_v47 }
 0x6d5   : > { %v6963_v54 = vshll.u32 %v14935_v23, %v14991_v45  ;;  %vm7525_vm14 = vcmp.gt.s32.totalorder %v7524_v33, 0  ;;  %v7310_v36 = vshrl.u32 %v7309_v29, 23  ;;  %v4297_v58 = vand.u32 2147483647, %v15041_v19 }
 0x6d6   : > { %v15056_v42 = vmul.f32 %v7180_v49, %v7178_v27  ;;  %v15058_v15 = vsel %vm8480_vm7, 0, %v8479_v40  ;;  %v15060_v55 = vshrl.u32 %v7055_v4, 30  ;;  %v7526_v26 = vsel %vm7525_vm14, %v7524_v33, 0 }
 0x6d7   : > { %v15062_v38 = vor.u32 %v6964_v7, %v6963_v54  ;;  %v15064_v60 = vor.u32 4788187, %v6968_v34  ;;  %v7258_v47 = vadd.s32 %v14944_v24, %v14952_v44  ;;  %v7528_v6 = vand.u32 31, %v7526_v26 }
 0x6d8   : > { %16830 = vst [vmem:[#allocation74_spill] sm:$0xff] %v15060_v55  ;;  %v7057_v45 = vshll.u32 %v15060_v55, 30  ;;  %v15069_v23 = vshll.u32 %v7522_v28, 8  ;;  %v15073_v12 = vand.u32 8388607, %v16385_v57  ;;  %v7278_v48 = vsub.s32 4294967266, %v15058_v15 }
 0x6d9   : > { %v4295_v11 = vand.u32 2147483647, %v15051_v25  ;;  %v7529_v16 = vsub.s32 32, %v7528_v6  ;;  %v8481_v52 = vadd.s32 4294967169, %v7310_v36  ;;  %v4329_v13 = vadd.f32 1.0, %v4297_v58 }
 0x6da   : > { %v15077_v40 = vsub.s32 %v7054_v32, %v7057_v45  ;;  %v7527_v17 = vshrl.u32 %v7526_v26, 5  ;;  %v7531_v24 = vshll.u32 %v16429_v2, %v7528_v6  ;;  %v7534_v44 = vshll.u32 %v16715_v10, %v7528_v6 }
 0x6db   : > { %v7532_v39 = vshrl.u32 %v16715_v10, %v7529_v16  ;;  %v7535_v50 = vshrl.u32 %v16716_v5, %v7529_v16  ;;  %v7537_v14 = vshll.u32 %v16716_v5, %v7528_v6  ;;  %v7538_v29 = vshrl.u32 %v16717_v18, %v7529_v16 }
 0x6dc   : > { %v7060_v27 = vsub.s32 0, %v15077_v40  ;;  %v7540_v49 = vshll.u32 %v16717_v18, %v7528_v6  ;;  %v7541_v32 = vshrl.u32 %v16718_v1, %v7529_v16  ;;  %v7543_v7 = vshll.u32 %v16718_v1, %v7528_v6 }
 0x6dd   : > { %v7533_v34 = vor.u32 %v7532_v39, %v7531_v24  ;;  %v7536_v33 = vor.u32 %v7535_v50, %v7534_v44  ;;  %v7539_v4 = vor.u32 %v7538_v29, %v7537_v14  ;;  %v7544_v28 = vshrl.u32 %v16440_v62, %v7529_v16 }
 0x6de   : > { %v7274_v54 = vsub.s32 32, %v15058_v15  ;;  %v8470_v36 = vmin.u32 %v7060_v27, %v15077_v40  ;;  %v7542_v58 = vor.u32 %v7541_v32, %v7540_v49  ;;  %v7314_v26 = vor.u32 8388608, %v15073_v12 }
 0x6df   : > { %v7279_v45 = vadd.s32 127, %v7278_v48  ;;  %v7545_v59 = vor.u32 %v7544_v28, %v7543_v7  ;;  %vm7549_vm4 = vcmp.lt.s32.totalorder %v7527_v17, 4  ;;  %v7316_v57 = vadd.s32 1, %v8481_v52 }
 0x6e0   : > { %v7062_v21 = vclz %v8470_v36  ;;  %v7530_v55 = vshrl.u32 %v16429_v2, %v7529_v16  ;;  %vm7546_vm12 = vcmp.lt.s32.totalorder %v7527_v17, 1  ;;  %v7551_v6 = vsel %vm7549_vm4, %v7539_v4, 2102212464 }
 0x6e1   : > { %vm7547_vm7 = vcmp.lt.s32.totalorder %v7527_v17, 2  ;;  %vm7548_vm14 = vcmp.lt.s32.totalorder %v7527_v17, 3  ;;  %v7554_v24 = vsel %vm7546_vm12, %v7533_v34, %v7536_v33  ;;  %v7555_v44 = vsel %vm7549_vm4, %v7542_v58, 920167782 }
 0x6e2   : > { %v8471_v39 = vadd.s32 4294967294, %v7062_v21  ;;  %v7550_v50 = vsel %vm7546_vm12, %v7530_v55, %v7533_v34  ;;  %v7556_v14 = vsel %vm7548_vm14, %v7539_v4, %v7555_v44  ;;  %v7558_v29 = vsel %vm7546_vm12, %v7536_v33, %v7539_v4 }
 0x6e3   : > { %v7552_v12 = vsel %vm7548_vm14, %v7536_v33, %v7551_v6  ;;  %v7557_v48 = vsel %vm7547_vm7, %v7554_v24, %v7556_v14  ;;  %v7559_v52 = vsel %vm7549_vm4, %v7545_v59, 1326507024  ;;  %vm7317_vm3 = vcmp.gt.s32.totalorder %v7316_v57, 0 }
 0x6e4   : > { %vm8472_vm9 = vcmp.lt.s32.totalorder %v8471_v39, 0  ;;  %v7560_v16 = vsel %vm7548_vm14, %v7542_v58, %v7559_v52  ;;  %v15099_v27 = vmul.u32.u64.low %v15069_v23, %v7557_v48  ;;  %v15100_v49 = vmul.u32.u64.high %v15069_v23, %v7557_v48, %v15099_v27 }
 0x6e5   : > { %v7276_v32 = vshrl.u32 %v7258_v47, %v7274_v54  ;;  %v7561_v7 = vsel %vm7547_vm7, %v7558_v29, %v7560_v16  ;;  %v7318_v21 = vsel %vm7317_vm3, %v7316_v57, 0  ;;  %v4361_v55 = vmul.f32 30.0, %v4329_v13 }
 0x6e6   : > { %v7182_v34 = vxor.u32 2147483648, %v15056_v42  ;;  %v7275_v33 = vshll.u32 %v14999_v31, %v15058_v15  ;;  %v7280_v4 = vshll.u32 %v7279_v45, 23  ;;  %v7553_v59 = vsel %vm7547_vm7, %v7550_v50, %v7552_v12 }
 0x6e7   : > { %v15108_v28 = vsel %vm8472_vm9, 0, %v8471_v39  ;;  %v15111_v36 = vmul.u32.u64.low %v15069_v23, %v7561_v7  ;;  %v15112_v58 = vmul.u32.u64.high %v15069_v23, %v7561_v7, %v15111_v36  ;;  %v7320_v6 = vand.u32 31, %v7318_v21 }
 0x6e8   : > { %v6970_v47 = vand.u32 2147483647, %v15064_v60  ;;  %v6972_v57 = vcvt.s32.f32 %v15062_v38  ;;  %v7572_v13 = vadd.s32 1, %v15100_v49  ;;  %v4327_v54 = vadd.f32 1.0, %v4295_v11 }
 0x6e9   : > { %v15117_v24 = vor.u32 %v7276_v32, %v7275_v33  ;;  %v7321_v31 = vsub.s32 32, %v7320_v6  ;;  %v15119_v15 = vshll.u32 %v7314_v26, 8  ;;  %v15122_v17 = vmul.f32 %v4361_v55, %v15041_v19 }
 0x6ea   : > { %v15124_v45 = vor.u32 4788187, %v7280_v4  ;;  %v7066_v44 = vsub.s32 32, %v15108_v28  ;;  %v7569_v39 = vmul.u32 %v15069_v23, %v7553_v59  ;;  %v7319_v60 = vshrl.u32 %v7318_v21, 5 }
 0x6eb   : > { %vm7571_vm3 = vc.u32 %v15112_v58, %v15099_v27  ;;  %v7323_v38 = vshll.u32 %v16429_v2, %v7320_v6  ;;  %v7324_v11 = vshrl.u32 %v16715_v10, %v7321_v31  ;;  %v7326_v26 = vshll.u32 %v16715_v10, %v7320_v6 }
 0x6ec   : > { %v7573_v50 = vsel %vm7571_vm3, %v7572_v13, %v15100_v49  ;;  %v7327_v19 = vshrl.u32 %v16716_v5, %v7321_v31  ;;  %v7329_v14 = vshll.u32 %v16716_v5, %v7320_v6  ;;  %v7332_v29 = vshll.u32 %v16717_v18, %v7320_v6 }
 0x6ed   : > { %v7574_v12 = vadd.s32 %v7573_v50, %v7569_v39  ;;  %v7325_v23 = vor.u32 %v7324_v11, %v7323_v38  ;;  %v7330_v48 = vshrl.u32 %v16717_v18, %v7321_v31  ;;  %v7333_v52 = vshrl.u32 %v16718_v1, %v7321_v31 }
 0x6ee   : > { %v7070_v16 = vsub.s32 4294967266, %v15108_v28  ;;  %v7328_v32 = vor.u32 %v7327_v19, %v7326_v26  ;;  %v7335_v7 = vshll.u32 %v16718_v1, %v7320_v6  ;;  %v7336_v21 = vshrl.u32 %v16440_v62, %v7321_v31 }
 0x6ef   : > { %v7575_v49 = vadd.s32 536870912, %v7574_v12  ;;  %v7331_v55 = vor.u32 %v7330_v48, %v7329_v14  ;;  %v7334_v33 = vor.u32 %v7333_v52, %v7332_v29  ;;  %vm7338_vm9 = vcmp.lt.s32.totalorder %v7319_v60, 1 }
 0x6f0   : > { %v7322_v4 = vshrl.u32 %v16429_v2, %v7321_v31  ;;  %v7337_v59 = vor.u32 %v7336_v21, %v7335_v7  ;;  %vm7340_vm4 = vcmp.lt.s32.totalorder %v7319_v60, 3  ;;  %vm7341_vm12 = vcmp.lt.s32.totalorder %v7319_v60, 4 }
 0x6f1   : > { %v15143_v36 = vshrl.u32 %v7575_v49, 30  ;;  %v7343_v13 = vsel %vm7341_vm12, %v7331_v55, 2102212464  ;;  %v7346_v39 = vsel %vm7338_vm9, %v7325_v23, %v7328_v32  ;;  %v7347_v38 = vsel %vm7341_vm12, %v7334_v33, 920167782 }
 0x6f2   : > { %v7071_v11 = vadd.s32 127, %v7070_v16  ;;  %vm7339_vm7 = vcmp.lt.s32.totalorder %v7319_v60, 2  ;;  %v7348_v26 = vsel %vm7340_vm4, %v7331_v55, %v7347_v38  ;;  %v7350_v6 = vsel %vm7338_vm9, %v7328_v32, %v7331_v55 }
 0x6f3   : > { %16831 = vst [vmem:[#allocation75_spill] sm:$0xff] %v15143_v36  ;;  %v7577_v50 = vshll.u32 %v15143_v36, 30  ;;  %v7342_v19 = vsel %vm7338_vm9, %v7322_v4, %v7325_v23  ;;  %v7349_v14 = vsel %vm7339_vm7, %v7346_v39, %v7348_v26  ;;  %v7351_v29 = vsel %vm7341_vm12, %v7337_v59, 1326507024 }
 0x6f4   : > { %v7344_v48 = vsel %vm7340_vm4, %v7328_v32, %v7343_v13  ;;  %v7352_v31 = vsel %vm7340_vm4, %v7334_v33, %v7351_v29  ;;  %v15148_v52 = vmul.u32.u64.low %v15119_v15, %v7349_v14  ;;  %v15149_v7 = vmul.u32.u64.high %v15119_v15, %v7349_v14, %v15148_v52 }
 0x6f5   : > { %v15152_v21 = vsub.s32 %v7574_v12, %v7577_v50  ;;  %v7353_v16 = vsel %vm7339_vm7, %v7350_v6, %v7352_v31  ;;  %v16392_v49 = vand.u32 2147483647, %v15122_v17  ;;  %v7621_v55 = vand.u32 2139095040, %v15122_v17  ;;  %v16832_v31 = vld [vmem:[#allocation14_spill] sm:$0xff] }
 0x6f6   : > { %vm16400_vm14 = vcmp.lt.s32.totalorder %v14586_v56, 0  ;;  %vm16401_vm3 = vcmp.lt.s32.totalorder %v14720_v30, 0  ;;  %v7050_v23 = vadd.s32 %v15011_v41, %v15017_v61  ;;  %v4359_v4 = vmul.f32 30.0, %v4327_v54 }
 0x6f7   : > { %v15162_v32 = vmul.u32.u64.low %v15119_v15, %v7353_v16  ;;  %v15163_v33 = vmul.u32.u64.high %v15119_v15, %v7353_v16, %v15162_v32  ;;  %v6973_v12 = vmul.f32 %v6972_v57, %v6970_v47  ;;  %v7580_v59 = vsub.s32 0, %v15152_v21 }
 0x6f8   : > { %v7345_v13 = vsel %vm7339_vm7, %v7342_v19, %v7344_v48  ;;  %v7622_v39 = vshrl.u32 %v7621_v55, 23  ;;  %v7282_v38 = vand.u32 2147483647, %v15124_v45  ;;  %v7068_v26 = vshrl.u32 %v7050_v23, %v7066_v44 }
 0x6f9   : > { %v7072_v6 = vshll.u32 %v7071_v11, 23  ;;  %v7364_v50 = vadd.s32 1, %v15149_v7  ;;  %v7284_v14 = vcvt.s32.f32 %v15117_v24  ;;  %v8490_v41 = vmin.u32 %v7580_v59, %v15152_v21 }
 0x6fa   : > { %v8493_v61 = vadd.s32 4294967169, %v7622_v39  ;;  %v7625_v54 = vand.u32 8388607, %v16392_v49  ;;  %v7067_v47 = vshll.u32 %v15077_v40, %v15108_v28  ;;  %v7361_v57 = vmul.u32 %v15119_v15, %v7345_v13  ;;  %v16834_v13 = vld [vmem:[#allocation23_spill] sm:$0xff] }
 0x6fb   : > { %vm7363_vm9 = vc.u32 %v15163_v33, %v15148_v52  ;;  %v15179_v45 = vmul.f32 %v4359_v4, %v15051_v25  ;;  %v6974_v44 = vxor.u32 2147483648, %v6973_v12  ;;  %v7582_v60 = vclz %v8490_v41 }
 0x6fc   : > { %v7365_v24 = vsel %vm7363_vm9, %v7364_v50, %v15149_v7  ;;  %v7628_v11 = vadd.s32 1, %v8493_v61  ;;  %v15182_v19 = vmul.f32 %v7284_v14, %v7282_v38  ;;  %v15184_v29 = vor.u32 %v7068_v26, %v7067_v47 }
 0x6fd   : > { %v15186_v48 = vor.u32 4788187, %v7072_v6  ;;  %v7366_v40 = vadd.s32 %v7365_v24, %v7361_v57  ;;  %v8491_v28 = vadd.s32 4294967294, %v7582_v60  ;;  %v7626_v15 = vor.u32 8388608, %v7625_v54 }
 0x6fe   : > { %vm7629_vm4 = vcmp.gt.s32.totalorder %v7628_v11, 0  ;;  %v4480_v16 = vsub.s32 4, %v16832_v31  ;;  %v16393_v23 = vand.u32 2147483647, %v15179_v45  ;;  %v7413_v32 = vand.u32 2139095040, %v15179_v45 }
 0x6ff   : > { %v7367_v55 = vadd.s32 536870912, %v7366_v40  ;;  %v7630_v25 = vsel %vm7629_vm4, %v7628_v11, 0  ;;  %v15196_v7 = vsel %vm16400_vm14, %v7182_v34, %v15056_v42  ;;  %v15200_v4 = vsel %vm16401_vm3, %v6974_v44, %v6973_v12 }
 0x700   : > { %16833 = vst [vmem:[#allocation14_spill] sm:$0xff] %v15196_v7  ;;  %v7632_v59 = vand.u32 31, %v7630_v25  ;;  %v16835_v39 = vand.u32 2147483647, %v16834_v13  ;;  %v7570_v6 = vadd.s32 %v15099_v27, %v15112_v58  ;;  %vm8492_vm7 = vcmp.lt.s32.totalorder %v8491_v28, 0 }
 0x701   : > { %v15211_v50 = vshrl.u32 %v7367_v55, 30  ;;  %v7074_v42 = vand.u32 2147483647, %v15186_v48  ;;  %v7076_v34 = vcvt.s32.f32 %v15184_v29  ;;  %v4481_v14 = vsel %vm4396_vm10, %v4480_v16, %v16832_v31 }
 0x702   : > { %vm15204_vm12 = vcmp.le.f32.partialorder %v16835_v39, 0.7853982  ;;  %v7633_v12 = vsub.s32 32, %v7632_v59  ;;  %v15219_v61 = vshll.u32 %v7626_v15, 8  ;;  %v7414_v54 = vshrl.u32 %v7413_v32, 23 }
 0x703   : > { %16838 = vst [vmem:[#allocation23_spill] sm:$0xff] %v15211_v50  ;;  %v7369_v41 = vshll.u32 %v15211_v50, 30  ;;  %v15223_v27 = vand.u32 8388607, %v16393_v23  ;;  %v7585_v58 = vsel %vm8492_vm7, 0, %v8491_v28  ;;  %v7635_v47 = vshll.u32 %v16429_v2, %v7632_v59 }
 0x704   : > { %v7636_v57 = vshrl.u32 %v16715_v10, %v7633_v12  ;;  %v7638_v44 = vshll.u32 %v16715_v10, %v7632_v59  ;;  %v7639_v24 = vshrl.u32 %v16716_v5, %v7633_v12  ;;  %v7641_v11 = vshll.u32 %v16716_v5, %v7632_v59 }
 0x705   : > { %v15228_v60 = vsub.s32 %v7366_v40, %v7369_v41  ;;  %v7642_v29 = vshrl.u32 %v16717_v18, %v7633_v12  ;;  %v7631_v48 = vshrl.u32 %v7630_v25, 5  ;;  %v7644_v15 = vshll.u32 %v16717_v18, %v7632_v59 }
 0x706   : > { %v7645_v31 = vshrl.u32 %v16718_v1, %v7633_v12  ;;  %v4483_v28 = vsel %vm15204_vm12, 0, %v4481_v14  ;;  %v7637_v55 = vor.u32 %v7636_v57, %v7635_v47  ;;  %v7640_v32 = vor.u32 %v7639_v24, %v7638_v44 }
 0x707   : > { %v7372_v16 = vsub.s32 0, %v15228_v60  ;;  %v7643_v40 = vor.u32 %v7642_v29, %v7641_v11  ;;  %v7586_v39 = vsub.s32 32, %v7585_v58  ;;  %v7647_v49 = vshll.u32 %v16718_v1, %v7632_v59 }
 0x708   : > { %v7646_v41 = vor.u32 %v7645_v31, %v7644_v15  ;;  %v7648_v23 = vshrl.u32 %v16440_v62, %v7633_v12  ;;  %v7590_v26 = vsub.s32 4294967266, %v7585_v58  ;;  %v7634_v36 = vshrl.u32 %v16429_v2, %v7633_v12 }
 0x709   : > { %v8482_v25 = vmin.u32 %v7372_v16, %v15228_v60  ;;  %v8485_v50 = vadd.s32 4294967169, %v7414_v54  ;;  %vm7650_vm10 = vcmp.lt.s32.totalorder %v7631_v48, 1  ;;  %vm7652_vm9 = vcmp.lt.s32.totalorder %v7631_v48, 3 }
 0x70a   : > { %v7649_v7 = vor.u32 %v7648_v23, %v7647_v49  ;;  %vm7653_vm4 = vcmp.lt.s32.totalorder %v7631_v48, 4  ;;  %v7658_v57 = vsel %vm7650_vm10, %v7637_v55, %v7640_v32  ;;  %v7588_v24 = vshrl.u32 %v7570_v6, %v7586_v39 }
 0x70b   : > { %v7374_v14 = vclz %v8482_v25  ;;  %v7655_v47 = vsel %vm7653_vm4, %v7643_v40, 2102212464  ;;  %v7659_v44 = vsel %vm7653_vm4, %v7646_v41, 920167782  ;;  %vm7651_vm7 = vcmp.lt.s32.totalorder %v7631_v48, 2 }
 0x70c   : > { %v7660_v11 = vsel %vm7652_vm9, %v7643_v40, %v7659_v44  ;;  %v7662_v59 = vsel %vm7650_vm10, %v7640_v32, %v7643_v40  ;;  %v7591_v29 = vadd.s32 127, %v7590_v26  ;;  %v7654_v15 = vsel %vm7650_vm10, %v7634_v36, %v7637_v55 }
 0x70d   : > { %v7661_v31 = vsel %vm7651_vm7, %v7658_v57, %v7660_v11  ;;  %v7663_v16 = vsel %vm7653_vm4, %v7649_v7, 1326507024  ;;  %v7656_v56 = vsel %vm7652_vm9, %v7640_v32, %v7655_v47  ;;  %v15248_v54 = vmul.f32 %v7076_v34, %v7074_v42  ;;  %v16839_v7 = vld [vmem:[#allocation38_spill] sm:$0xff] }
 0x70e   : > { %v7664_v12 = vsel %vm7652_vm9, %v7646_v41, %v7663_v16  ;;  %v15244_v49 = vmul.u32.u64.low %v15219_v61, %v7661_v31  ;;  %v15245_v23 = vmul.u32.u64.high %v15219_v61, %v7661_v31, %v15244_v49  ;;  %v8483_v25 = vadd.s32 4294967294, %v7374_v14 }
 0x70f   : > { %v7665_v6 = vsel %vm7651_vm7, %v7662_v59, %v7664_v12  ;;  %v7420_v39 = vadd.s32 1, %v8485_v50  ;;  %v7587_v40 = vshll.u32 %v15152_v21, %v7585_v58  ;;  %v4482_v55 = vsel %vm15204_vm12, %v16834_v13, %v16839_v7 }
 0x710   : > { %v15253_v36 = vmul.u32.u64.low %v15219_v61, %v7665_v6  ;;  %v15254_v26 = vmul.u32.u64.high %v15219_v61, %v7665_v6, %v15253_v36  ;;  %v7657_v32 = vsel %vm7651_vm7, %v7654_v15, %v7656_v56  ;;  %v7418_v42 = vor.u32 8388608, %v15223_v27 }
 0x711   : > { %vm7421_vm10 = vcmp.gt.s32.totalorder %v7420_v39, 0  ;;  %v4487_v34 = vadd.s32 3, %v4483_v28  ;;  %v15262_v41 = vor.u32 %v7588_v24, %v7587_v40  ;;  %v7592_v50 = vshll.u32 %v7591_v29, 23 }
 0x712   : > { %v7676_v21 = vadd.s32 1, %v15245_v23  ;;  %v7422_v58 = vsel %vm7421_vm10, %v7420_v39, 0  ;;  %v7078_v14 = vxor.u32 2147483648, %v15248_v54  ;;  %vm8484_vm9 = vcmp.lt.s32.totalorder %v8483_v25, 0 }
 0x713   : > { %v7424_v47 = vand.u32 31, %v7422_v58  ;;  %9330 = vsinq.f32 %v4482_v55  ;;  %v15268_v38 = vadd.s32 %v15148_v52, %v15163_v33  ;;  %v7673_v56 = vmul.u32 %v15219_v61, %v7657_v32 }
 0x714   : > { %vm7675_vm12 = vc.u32 %v15254_v26, %v15244_v49  ;;  %9332 = vcosq.f32 %v4482_v55  ;;  %v15274_v28 = vshll.u32 %v7418_v42, 8  ;;  %v15276_v57 = vand.u32 3, %v4487_v34 }
 0x715   : > { %v7677_v27 = vsel %vm7675_vm12, %v7676_v21, %v15245_v23  ;;  %v7425_v48 = vsub.s32 32, %v7424_v47  ;;  %v15278_v44 = vor.u32 4788187, %v7592_v50  ;;  %v7596_v24 = vcvt.s32.f32 %v15262_v41 }
 0x716   : > { %v15281_v11 = vsel %vm8484_vm9, 0, %v8483_v25  ;;  %v7678_v52 = vadd.s32 %v7677_v27, %v7673_v56  ;;  %v7423_v33 = vshrl.u32 %v7422_v58, 5  ;;  %v7427_v61 = vshll.u32 %v16429_v2, %v7424_v47 }
 0x717   : > { %v7428_v59 = vshrl.u32 %v16715_v10, %v7425_v48  ;;  %v7430_v29 = vshll.u32 %v16715_v10, %v7424_v47  ;;  %v7431_v31 = vshrl.u32 %v16716_v5, %v7425_v48  ;;  %v7433_v16 = vshll.u32 %v16716_v5, %v7424_v47 }
 0x718   : > { %v7679_v15 = vadd.s32 536870912, %v7678_v52  ;;  %v7434_v12 = vshrl.u32 %v16717_v18, %v7425_v48  ;;  %v7436_v6 = vshll.u32 %v16717_v18, %v7424_v47  ;;  %v7437_v25 = vshrl.u32 %v16718_v1, %v7425_v48 }
 0x719   : > { %v7429_v23 = vor.u32 %v7428_v59, %v7427_v61  ;;  %v7439_v39 = vshll.u32 %v16718_v1, %v7424_v47  ;;  %v7432_v36 = vor.u32 %v7431_v31, %v7430_v29  ;;  %v7440_v10 = vshrl.u32 %v16440_v62, %v7425_v48 }
 0x71a   : > { %v15292_v40 = vshrl.u32 %v7679_v15, 30  ;;  %v7435_v7 = vor.u32 %v7434_v12, %v7433_v16  ;;  %v7594_v55 = vand.u32 2147483647, %v15278_v44  ;;  %v7378_v32 = vsub.s32 32, %v15281_v11  ;;  %v16847_v44 = vld [vmem:[#allocation16_spill] sm:$0xff] }
 0x71b   : > { %v7426_v5 = vshrl.u32 %v16429_v2, %v7425_v48  ;;  %v7438_v42 = vor.u32 %v7437_v25, %v7436_v6  ;;  %v7441_v18 = vor.u32 %v7440_v10, %v7439_v39  ;;  %vm7442_vm4 = vcmp.lt.s32.totalorder %v7423_v33, 1 }
 0x71c   : > { %v7681_v34 = vshll.u32 %v15292_v40, 30  ;;  %vm7445_vm7 = vcmp.lt.s32.totalorder %v7423_v33, 4  ;;  %vm7444_vm10 = vcmp.lt.s32.totalorder %v7423_v33, 3  ;;  %v7450_v58 = vsel %vm7442_vm4, %v7429_v23, %v7432_v36 }
 0x71d   : > { %v9331_v50 = vpop.eup %9330  ;;  %v7446_v1 = vsel %vm7442_vm4, %v7426_v5, %v7429_v23  ;;  %v7447_v21 = vsel %vm7445_vm7, %v7435_v7, 2102212464  ;;  %v7451_v27 = vsel %vm7445_vm7, %v7438_v42, 920167782  ;;  %v7454_v61 = vsel %vm7442_vm4, %v7432_v36, %v7435_v7 }
 0x71e   : > { %v9333_v47 = vpop.eup %9332  ;;  %v15299_v56 = vsub.s32 %v7678_v52, %v7681_v34  ;;  %v7448_v62 = vsel %vm7444_vm10, %v7432_v36, %v7447_v21  ;;  %v7382_v59 = vsub.s32 4294967266, %v15281_v11  ;;  %vm7443_vm9 = vcmp.lt.s32.totalorder %v7423_v33, 2  ;;  %v16844_v21 = vld [vmem:[#allocation8_spill] sm:$0xff] }
 0x71f   : > { %v7452_v2 = vsel %vm7444_vm10, %v7435_v7, %v7451_v27  ;;  %v7455_v48 = vsel %vm7445_vm7, %v7441_v18, 1326507024  ;;  %v4491_v16 = vxor.u32 2147483648, %v9331_v50  ;;  %v7449_v12 = vsel %vm7443_vm9, %v7446_v1, %v7448_v62 }
 0x720   : > { %v7684_v29 = vsub.s32 0, %v15299_v56  ;;  %v7453_v15 = vsel %vm7443_vm9, %v7450_v58, %v7452_v2  ;;  %v7456_v31 = vsel %vm7444_vm10, %v7438_v42, %v7455_v48  ;;  %v4494_v33 = vxor.u32 2147483648, %v9333_v47  ;;  %v16843_v42 = vld [vmem:[#allocation18_spill] sm:$0xff] }
 0x721   : > { %v7457_v6 = vsel %vm7443_vm9, %v7454_v61, %v7456_v31  ;;  %v15304_v23 = vmul.u32.u64.low %v15274_v28, %v7453_v15  ;;  %v15305_v25 = vmul.u32.u64.high %v15274_v28, %v7453_v15, %v15304_v23  ;;  %v7383_v7 = vadd.s32 127, %v7382_v59 }
 0x722   : > { %v8494_v52 = vmin.u32 %v7684_v29, %v15299_v56  ;;  %v15310_v39 = vmul.u32.u64.low %v15274_v28, %v7457_v6  ;;  %v15311_v36 = vmul.u32.u64.high %v15274_v28, %v7457_v6, %v15310_v39  ;;  %vm4486_vm12 = vweird.f32 %v16834_v13 }
 0x723   : > { %vm4490_vm4 = vcmp.eq.s32.totalorder %v15276_v57, 0  ;;  %v16840_v10 = vand.u32 2147483647, %v12875_v53  ;;  %v4584_v34 = vsub.s32 4, %v16843_v42  ;;  %v7380_v18 = vshrl.u32 %v15268_v38, %v7378_v32  ;;  %v16846_v39 = vld [vmem:[#allocation37_spill] sm:$0xff] }
 0x724   : > { %v7686_v1 = vclz %v8494_v52  ;;  %vm4493_vm10 = vcmp.eq.s32.totalorder %v15276_v57, 2  ;;  %v7465_v62 = vmul.u32 %v15274_v28, %v7449_v12  ;;  %v7468_v27 = vadd.s32 1, %v15305_v25 }
 0x725   : > { %vm15317_vm7 = vcmp.le.f32.partialorder %v16840_v10, 0.7853982  ;;  %v4585_v61 = vsel %vm4500_vm0, %v4584_v34, %v16843_v42  ;;  %vm7467_vm9 = vc.u32 %v15311_v36, %v15304_v23  ;;  %v4492_v38 = vsel %vm4490_vm4, %v9333_v47, %v4491_v16  ;;  %v16845_v47 = vld [vmem:[#allocation5_spill] sm:$0xff]  ;;  %v16850_v34 = vld [vmem:[#allocation50_spill] sm:$0xff] }
 0x726   : > { %v4586_v58 = vsel %vm15317_vm7, %v12875_v53, %v16844_v21  ;;  %v8495_v59 = vadd.s32 4294967294, %v7686_v1  ;;  %v4495_v32 = vsel %vm4493_vm10, %v4494_v33, %v9331_v50  ;;  %v7384_v2 = vshll.u32 %v7383_v7, 23  ;;  %v16851_v1 = vld [vmem:[#allocation42_spill] sm:$0xff] }
 0x727   : > { %9334 = vcosq.f32 %v4586_v58  ;;  %v7469_v48 = vsel %vm7467_vm9, %v7468_v27, %v15305_v25  ;;  %v4587_v29 = vsel %vm15317_vm7, 0, %v4585_v61  ;;  %vm4489_vm3 = vcmp.lt.s32.totalorder %v15276_v57, 2 }
 0x728   : > { %9336 = vsinq.f32 %v4586_v58  ;;  %vm8496_vm14 = vcmp.lt.s32.totalorder %v8495_v59, 0  ;;  %v7470_v28 = vadd.s32 %v7469_v48, %v7465_v62  ;;  %v4591_v15 = vadd.s32 3, %v4587_v29  ;;  %v16852_v58 = vld [vmem:[#allocation62_spill] sm:$0xff] }
 0x729   : > { %v7379_v31 = vshll.u32 %v15228_v60, %v15281_v11  ;;  %v15341_v12 = vsel %vm8496_vm14, 0, %v8495_v59  ;;  %v4496_v6 = vsel %vm4489_vm3, %v4492_v38, %v4495_v32  ;;  %v4699_v50 = vxor.u32 2147483648, %v16845_v47  ;;  %v16853_v59 = vld [vmem:[#allocation19_spill] sm:$0xff] }
 0x72a   : > { %v15348_v16 = vmul.f32 %v7596_v24, %v7594_v55  ;;  %v7694_v25 = vsub.s32 4294967266, %v15341_v12  ;;  %v7471_v52 = vadd.s32 536870912, %v7470_v28  ;;  %v4702_v57 = vxor.u32 2147483648, %v16846_v39  ;;  %v16848_v55 = vld [vmem:[#allocation7_spill] sm:$0xff] }
 0x72b   : > { %v15352_v33 = vor.u32 %v7380_v18, %v7379_v31  ;;  %v15354_v7 = vor.u32 4788187, %v7384_v2  ;;  %v7674_v60 = vadd.s32 %v15244_v49, %v15254_v26  ;;  %v4592_v11 = vand.u32 3, %v4591_v15  ;;  %v16849_v49 = vld [vmem:[#allocation21_spill] sm:$0xff]  ;;  %v16857_v15 = vld [vmem:[#allocation10_spill] sm:$0xff] }
 0x72c   : > { %v15358_v10 = vshrl.u32 %v7471_v52, 30  ;;  %v4497_v41 = vsel %vm4486_vm12, nan, %v4496_v6  ;;  %vm4697_vm0 = vcmp.lt.s32.totalorder %v16847_v44, 2  ;;  %vm4698_vm14 = vcmp.eq.s32.totalorder %v16847_v44, 0  ;;  %v16858_v6 = vld [vmem:[#allocation15_spill] sm:$0xff] }
 0x72d   : > { %v7690_v24 = vsub.s32 32, %v15341_v12  ;;  %vm4590_vm3 = vweird.f32 %v12875_v53  ;;  %vm4694_vm4 = vweird.f32 %v16848_v55  ;;  %v4700_v5 = vsel %vm4698_vm14, %v16846_v39, %v4699_v50  ;;  %v16864_v53 = vld [vmem:[#allocation12_spill] sm:$0xff] }
 0x72e   : > { %vm4701_vm7 = vcmp.eq.s32.totalorder %v16847_v44, 2  ;;  %vm4798_vm10 = vweird.f32 %v16849_v49  ;;  %v7695_v26 = vadd.s32 127, %v7694_v25  ;;  %v7473_v13 = vshll.u32 %v15358_v10, 30 }
 0x72f   : > { %v4703_v42 = vsel %vm4701_vm7, %v4702_v57, %v16845_v47  ;;  %vm4801_vm12 = vcmp.lt.s32.totalorder %v16850_v34, 2  ;;  %vm4597_vm9 = vcmp.eq.s32.totalorder %v4592_v11, 2  ;;  %vm4802_vm15 = vcmp.eq.s32.totalorder %v16850_v34, 0 }
 0x730   : > { %v4803_v21 = vxor.u32 2147483648, %v16851_v1  ;;  %v4806_v62 = vxor.u32 2147483648, %v16852_v58  ;;  %vm7204_vm14 = vcmp.lt.s32.totalorder %v14789_v9, 0  ;;  %v15377_v27 = vsub.s32 %v7470_v28, %v7473_v13 }
 0x731   : > { %v9335_v18 = vpop.eup %9334  ;;  %vm4805_vm11 = vcmp.eq.s32.totalorder %v16850_v34, 2  ;;  %v16854_v38 = vand.u32 2147483647, %v16853_v59  ;;  %v4896_v31 = vsub.s32 4, %v16857_v15  ;;  %v4704_v52 = vsel %vm4697_vm0, %v4700_v5, %v4703_v42 }
 0x732   : > { %v4598_v61 = vxor.u32 2147483648, %v9335_v18  ;;  %v9337_v2 = vpop.eup %9336  ;;  %v4804_v48 = vsel %vm4802_vm15, %v16852_v58, %v4803_v21  ;;  %v4807_v29 = vsel %vm4805_vm11, %v4806_v62, %v16851_v1  ;;  %v7476_v47 = vsub.s32 0, %v15377_v27 }
 0x733   : > { %vm15382_vm7 = vcmp.le.f32.partialorder %v16854_v38, 0.7853982  ;;  %v4595_v50 = vxor.u32 2147483648, %v9337_v2  ;;  %vm6996_vm2 = vcmp.lt.s32.totalorder %v14861_v22, 0  ;;  %vm4593_vm15 = vcmp.lt.s32.totalorder %v4592_v11, 2 }
 0x734   : > { %v4898_v28 = vsel %vm15382_vm7, %v16853_v59, %v16858_v6  ;;  %v4599_v25 = vsel %vm4597_vm9, %v4598_v61, %v9337_v2  ;;  %vm4594_vm1 = vcmp.eq.s32.totalorder %v4592_v11, 0  ;;  %v4808_v39 = vsel %vm4801_vm12, %v4804_v48, %v4807_v29  ;;  %v16859_v61 = vld [vmem:[#allocation32_spill] sm:$0xff]  ;;  %v16866_v6 = vld [vmem:[#allocation31_spill] sm:$0xff] }
 0x735   : > { %9338 = vcosq.f32 %v4898_v28  ;;  %v7696_v57 = vshll.u32 %v7695_v26, 23  ;;  %v8486_v13 = vmin.u32 %v7476_v47, %v15377_v27  ;;  %v4596_v1 = vsel %vm4594_vm1, %v9335_v18, %v4595_v50 }
 0x736   : > { %v4897_v21 = vsel %vm4812_vm5, %v4896_v31, %v16857_v15  ;;  %v7691_v44 = vshll.u32 %v15299_v56, %v15341_v12  ;;  %v4600_v5 = vsel %vm4593_vm15, %v4596_v1, %v4599_v25  ;;  %v4809_v42 = vsel %vm4798_vm10, nan, %v4808_v39  ;;  %v16863_v12 = vld [vmem:[#allocation60_spill] sm:$0xff]  ;;  %v16867_v39 = vld [vmem:[#allocation35_spill] sm:$0xff] }
 0x737   : > { %9340 = vsinq.f32 %v4898_v28  ;;  %v7692_v11 = vshrl.u32 %v7674_v60, %v7690_v24  ;;  %v7478_v34 = vclz %v8486_v13  ;;  %v4601_v26 = vsel %vm4590_vm3, nan, %v4600_v5  ;;  %v16871_v5 = vld [vmem:[#allocation26_spill] sm:$0xff]  ;;  %v16876_v56 = vld [vmem:[#allocation28_spill] sm:$0xff] }
 0x738   : > { %v4705_v18 = vsel %vm4694_vm4, nan, %v4704_v52  ;;  %v7722_v58 = vpack.c.bf16 %v4601_v26, %v4497_v41  ;;  %v4899_v62 = vsel %vm15382_vm7, 0, %v4897_v21  ;;  %v16860_v38 = vand.u32 2147483647, %v16859_v61 }
 0x739   : > { %v5000_v49 = vsub.s32 4, %v16863_v12  ;;  %v7697_v60 = vor.u32 4788187, %v7696_v57  ;;  %v8487_v24 = vadd.s32 4294967294, %v7478_v34  ;;  %v7723_v2 = vpack.c.bf16 %v4809_v42, %v4705_v18 }
 0x73a   : > { %vm15416_vm5 = vcmp.le.f32.partialorder %v16860_v38, 0.7853982  ;;  %v16865_v41 = vxor.u32 2147483648, %v15182_v19  ;;  %v7386_v48 = vand.u32 2147483647, %v15354_v7  ;;  %8837 = vmatprep.mubr.bf16.mxu0 %v7722_v58  ;;  %v7693_v15 = vor.u32 %v7692_v11, %v7691_v44  ;;  %v16872_v58 = vld [vmem:[#allocation27_spill] sm:$0xff] }
 0x73b   : > { %v5002_v55 = vsel %vm15416_vm5, %v16859_v61, %v16864_v53  ;;  %v5001_v29 = vsel %vm4916_vm6, %v5000_v49, %v16863_v12  ;;  %vm8488_vm11 = vcmp.lt.s32.totalorder %v8487_v24, 0  ;;  %8838 = vmatmul.mubr.bf16.vlgmr.msra.gmra.mrb[16].mxu0 %v7723_v2  ;;  %v4903_v31 = vadd.s32 3, %v4899_v62  ;;  %v16877_v2 = vld [vmem:[#allocation25_spill] sm:$0xff] }
 0x73c   : > { %v15430_v32 = vsel %vm7204_vm14, %v16865_v41, %v15182_v19  ;;  %9342 = vcosq.f32 %v5002_v55  ;;  %v5104_v28 = vsub.s32 4, %v16866_v6  ;;  %v7388_v47 = vcvt.s32.f32 %v15352_v33 }
 0x73d   : > { %v7481_v50 = vsel %vm8488_vm11, 0, %v8487_v24  ;;  %v5003_v19 = vsel %vm15416_vm5, 0, %v5001_v29  ;;  %9344 = vsinq.f32 %v5002_v55  ;;  %v15445_v7 = vsel %vm6996_vm2, %v7078_v14, %v15248_v54 }
 0x73e   : > { %v7598_v25 = vxor.u32 2147483648, %v15348_v16  ;;  %v7698_v52 = vand.u32 2147483647, %v7697_v60  ;;  %v16868_v57 = vand.u32 2147483647, %v16867_v39  ;;  %v15454_v1 = vmul.f32 %v7388_v47, %v7386_v48 }
 0x73f   : > { %v9339_v33 = vpop.eup %9338  ;;  %v7482_v21 = vsub.s32 32, %v7481_v50  ;;  %v5007_v44 = vadd.s32 3, %v5003_v19  ;;  %v7700_v14 = vcvt.s32.f32 %v7693_v15  ;;  %v7486_v42 = vsub.s32 4294967266, %v7481_v50 }
 0x740   : > { %vm15450_vm6 = vcmp.le.f32.partialorder %v16868_v57, 0.7853982  ;;  %v4904_v11 = vand.u32 3, %v4903_v31  ;;  %v5105_v34 = vsel %vm5020_vm13, %v5104_v28, %v16866_v6  ;;  %v7466_v18 = vadd.s32 %v15304_v23, %v15311_v36 }
 0x741   : > { %v5106_v54 = vsel %vm15450_vm6, %v16867_v39, %v16871_v5  ;;  %v9341_v26 = vpop.eup %9340  ;;  %v16873_v62 = vand.u32 2147483647, %v16872_v58  ;;  %v5208_v12 = vsub.s32 4, %v16876_v56  ;;  %v15472_v49 = vmul.f32 %v7700_v14, %v7698_v52  ;;  %v16878_v5 = vld [vmem:[#allocation54_spill] sm:$0xff]  ;;  %v16882_v14 = vld [vmem:[#allocation56_spill] sm:$0xff] }
 0x742   : > { %9346 = vcosq.f32 %v5106_v54  ;;  %v4907_v60 = vxor.u32 2147483648, %v9341_v26  ;;  %v4910_v24 = vxor.u32 2147483648, %v9339_v33  ;;  %v7484_v55 = vshrl.u32 %v7466_v18, %v7482_v21  ;;  %v16883_v18 = vld [vmem:[#allocation36_spill] sm:$0xff] }
 0x743   : > { %vm15467_vm1 = vcmp.le.f32.partialorder %v16873_v62, 0.7853982  ;;  %vm4902_vm13 = vweird.f32 %v16853_v59  ;;  %v5008_v23 = vand.u32 3, %v5007_v44  ;;  %v5107_v36 = vsel %vm15450_vm6, 0, %v5105_v34 }
 0x744   : > { %v5210_v53 = vsel %vm15467_vm1, %v16872_v58, %v16877_v2  ;;  %9348 = vsinq.f32 %v5106_v54  ;;  %v7487_v41 = vadd.s32 127, %v7486_v42  ;;  %vm4905_vm0 = vcmp.lt.s32.totalorder %v4904_v11, 2 }
 0x745   : > { %vm4906_vm3 = vcmp.eq.s32.totalorder %v4904_v11, 0  ;;  %vm5006_vm4 = vweird.f32 %v16859_v61  ;;  %v7483_v29 = vshll.u32 %v15377_v27, %v7481_v50  ;;  %vm4909_vm10 = vcmp.eq.s32.totalorder %v4904_v11, 2 }
 0x746   : > { %v9343_v48 = vpop.eup %9342  ;;  %v5209_v15 = vsel %vm5124_vm8, %v5208_v12, %v16876_v56  ;;  %9350 = vcosq.f32 %v5210_v53  ;;  %v4908_v31 = vsel %vm4906_vm3, %v9339_v33, %v4907_v60  ;;  %v4911_v6 = vsel %vm4909_vm10, %v4910_v24, %v9341_v26  ;;  %v16885_v12 = vld [vmem:[#allocation6_spill] sm:$0xff] }
 0x747   : > { %v5014_v28 = vxor.u32 2147483648, %v9343_v48  ;;  %v5111_v47 = vadd.s32 3, %v5107_v36  ;;  %v9345_v19 = vpop.eup %9344  ;;  %v15486_v52 = vor.u32 %v7484_v55, %v7483_v29  ;;  %vm5013_vm12 = vcmp.eq.s32.totalorder %v5008_v23, 2 }
 0x748   : > { %v5211_v57 = vsel %vm15467_vm1, 0, %v5209_v15  ;;  %9352 = vsinq.f32 %v5210_v53  ;;  %v7488_v13 = vshll.u32 %v7487_v41, 23  ;;  %vm5010_vm9 = vcmp.eq.s32.totalorder %v5008_v23, 0 }
 0x749   : > { %v5011_v27 = vxor.u32 2147483648, %v9345_v19  ;;  %v5015_v50 = vsel %vm5013_vm12, %v5014_v28, %v9345_v19  ;;  %v4912_v21 = vsel %vm4905_vm0, %v4908_v31, %v4911_v6  ;;  %v5215_v44 = vadd.s32 3, %v5211_v57  ;;  %v16886_v31 = vld [vmem:[#allocation64_spill] sm:$0xff] }
 0x74a   : > { %v16879_v33 = vand.u32 2147483647, %v16878_v5  ;;  %v5312_v42 = vsub.s32 4, %v16882_v14  ;;  %vm5009_vm7 = vcmp.lt.s32.totalorder %v5008_v23, 2  ;;  %v5112_v26 = vand.u32 3, %v5111_v47  ;;  %v16891_v19 = vld [vmem:[#allocation48_spill] sm:$0xff] }
 0x74b   : > { %v5012_v34 = vsel %vm5010_vm9, %v9343_v48, %v5011_v27  ;;  %vm16884_vm15 = vcmp.lt.s32.totalorder %v16878_v5, 0  ;;  %v5416_v60 = vsub.s32 4, %v16885_v12  ;;  %v7489_v24 = vor.u32 4788187, %v7488_v13 }
 0x74c   : > { %vm15493_vm8 = vcmp.le.f32.partialorder %v16879_v33, 0.7853982  ;;  %v9347_v38 = vpop.eup %9346  ;;  %v5016_v11 = vsel %vm5009_vm7, %v5012_v34, %v5015_v50  ;;  %v5313_v56 = vsel %vm16884_vm15, %v5312_v42, %v16882_v14  ;;  %v4913_v2 = vsel %vm4902_vm13, nan, %v4912_v21 }
 0x74d   : > { %v5314_v62 = vsel %vm15493_vm8, %v16878_v5, %v16883_v18  ;;  %v5017_v53 = vsel %vm5006_vm4, nan, %v5016_v11  ;;  %vm5110_vm5 = vweird.f32 %v16867_v39  ;;  %v5118_v55 = vxor.u32 2147483648, %v9347_v38  ;;  %v16893_v18 = vld [vmem:[#allocation45_spill] sm:$0xff] }
 0x74e   : > { %9354 = vcosq.f32 %v5314_v62  ;;  %v9349_v23 = vpop.eup %9348  ;;  %v7492_v36 = vcvt.s32.f32 %v15486_v52  ;;  %v7724_v41 = vpack.c.bf16 %v5017_v53, %v4913_v2  ;;  %v5216_v48 = vand.u32 3, %v5215_v44  ;;  %v16892_v44 = vld [vmem:[#allocation58_spill] sm:$0xff] }
 0x74f   : > { %v5315_v29 = vsel %vm15493_vm8, 0, %v5313_v56  ;;  %v5115_v15 = vxor.u32 2147483648, %v9349_v23  ;;  %vm5117_vm11 = vcmp.eq.s32.totalorder %v5112_v26, 2  ;;  %9356 = vsinq.f32 %v5314_v62 }
 0x750   : > { %v16887_v59 = vand.u32 2147483647, %v16886_v31  ;;  %v9351_v61 = vpop.eup %9350  ;;  %8841 = vmatprep.mubr.bf16.mxu0 %v7724_v41  ;;  %vm5114_vm1 = vcmp.eq.s32.totalorder %v5112_v26, 0  ;;  %v5119_v28 = vsel %vm5117_vm11, %v5118_v55, %v9349_v23  ;;  %vm16890_vm13 = vcmp.lt.s32.totalorder %v16886_v31, 0 }
 0x751   : > { %v5417_v47 = vsel %vm16890_vm13, %v5416_v60, %v16885_v12  ;;  %v7490_v57 = vand.u32 2147483647, %v7489_v24  ;;  %v5116_v13 = vsel %vm5114_vm1, %v9347_v38, %v5115_v15  ;;  %v5222_v27 = vxor.u32 2147483648, %v9351_v61  ;;  %v16898_v12 = vld [vmem:[#allocation34_spill] sm:$0xff] }
 0x752   : > { %vm15516_vm6 = vcmp.le.f32.partialorder %v16887_v59, 0.7853982  ;;  %v5319_v50 = vadd.s32 3, %v5315_v29  ;;  %v9353_v21 = vpop.eup %9352  ;;  %vm5113_vm0 = vcmp.lt.s32.totalorder %v5112_v26, 2  ;;  %vm5221_vm3 = vcmp.eq.s32.totalorder %v5216_v48, 2  ;;  %v16899_v59 = vld [vmem:[#allocation51_spill] sm:$0xff] }
 0x753   : > { %v5418_v52 = vsel %vm15516_vm6, %v16886_v31, %v16891_v19  ;;  %v5520_v33 = vsub.s32 4, %v16892_v44  ;;  %v5120_v54 = vsel %vm5113_vm0, %v5116_v13, %v5119_v28  ;;  %v5219_v14 = vxor.u32 2147483648, %v9353_v21  ;;  %v16904_v19 = vld [vmem:[#allocation47_spill] sm:$0xff] }
 0x754   : > { %9358 = vcosq.f32 %v5418_v52  ;;  %v5223_v42 = vsel %vm5221_vm3, %v5222_v27, %v9353_v21  ;;  %v5419_v34 = vsel %vm15516_vm6, 0, %v5417_v47  ;;  %vm5217_vm4 = vcmp.lt.s32.totalorder %v5216_v48, 2 }
 0x755   : > { %vm5218_vm10 = vcmp.eq.s32.totalorder %v5216_v48, 0  ;;  %9360 = vsinq.f32 %v5418_v52  ;;  %v16894_v62 = vand.u32 2147483647, %v16893_v18  ;;  %v5320_v11 = vand.u32 3, %v5319_v50  ;;  %v16905_v50 = vld [vmem:[#allocation9_spill] sm:$0xff] }
 0x756   : > { %v5220_v26 = vsel %vm5218_vm10, %v9351_v61, %v5219_v14  ;;  %vm16897_vm9 = vcmp.lt.s32.totalorder %v16893_v18, 0  ;;  %v5121_v2 = vsel %vm5110_vm5, nan, %v5120_v54  ;;  %vm5214_vm8 = vweird.f32 %v16872_v58  ;;  %v16903_v58 = vld [vmem:[#allocation44_spill] sm:$0xff]  ;;  %v16911_v54 = vld [vmem:[#allocation41_spill] sm:$0xff] }
 0x757   : > { %vm15532_vm12 = vcmp.le.f32.partialorder %v16894_v62, 0.7853982  ;;  %v5521_v56 = vsel %vm16897_vm9, %v5520_v33, %v16892_v44  ;;  %v5224_v53 = vsel %vm5217_vm4, %v5220_v26, %v5223_v42  ;;  %v5423_v55 = vadd.s32 3, %v5419_v34  ;;  %v16910_v44 = vld [vmem:[#allocation29_spill] sm:$0xff] }
 0x758   : > { %v5522_v60 = vsel %vm15532_vm12, %v16893_v18, %v16898_v12  ;;  %v9355_v24 = vpop.eup %9354  ;;  %v5225_v23 = vsel %vm5214_vm8, nan, %v5224_v53  ;;  %v5523_v48 = vsel %vm15532_vm12, 0, %v5521_v56  ;;  %v16900_v6 = vand.u32 2147483647, %v16899_v59 }
 0x759   : > { %v5326_v41 = vxor.u32 2147483648, %v9355_v24  ;;  %9362 = vcosq.f32 %v5522_v60  ;;  %v7725_v29 = vpack.c.bf16 %v5225_v23, %v5121_v2  ;;  %v5527_v15 = vadd.s32 3, %v5523_v48  ;;  %v9357_v39 = vpop.eup %9356 }
 0x75a   : > { %9364 = vsinq.f32 %v5522_v60  ;;  %vm15550_vm7 = vcmp.le.f32.partialorder %v16900_v6, 0.7853982  ;;  %v15554_v28 = vmul.f32 %v7492_v36, %v7490_v57  ;;  %vm5325_vm15 = vcmp.eq.s32.totalorder %v5320_v11, 2 }
 0x75b   : > { %v5624_v47 = vsub.s32 4, %v16903_v58  ;;  %v5626_v52 = vsel %vm15550_vm7, %v16899_v59, %v16904_v19  ;;  %8842 = vmatmul.mubr.bf16.gmra.mrb[20].mxu0 %v7725_v29  ;;  %vm5318_vm5 = vweird.f32 %v16878_v5  ;;  %v5323_v13 = vxor.u32 2147483648, %v9357_v39  ;;  %v16916_v29 = vld [vmem:[#allocation57_spill] sm:$0xff] }
 0x75c   : > { %vm5422_vm11 = vweird.f32 %v16886_v31  ;;  %v5424_v27 = vand.u32 3, %v5423_v55  ;;  %9366 = vcosq.f32 %v5626_v52  ;;  %v16906_v21 = vand.u32 2147483647, %v16905_v50 }
 0x75d   : > { %vm16909_vm1 = vcmp.lt.s32.totalorder %v16899_v59, 0  ;;  %9368 = vsinq.f32 %v5626_v52  ;;  %v5728_v33 = vsub.s32 4, %v16910_v44  ;;  %vm5321_vm13 = vcmp.lt.s32.totalorder %v5320_v11, 2 }
 0x75e   : > { %vm15565_vm6 = vcmp.le.f32.partialorder %v16906_v21, 0.7853982  ;;  %v5625_v57 = vsel %vm16909_vm1, %v5624_v47, %v16903_v58  ;;  %v9359_v42 = vpop.eup %9358  ;;  %vm5322_vm0 = vcmp.eq.s32.totalorder %v5320_v11, 0  ;;  %v5327_v34 = vsel %vm5325_vm15, %v5326_v41, %v9357_v39 }
 0x75f   : > { %v5730_v14 = vsel %vm15565_vm6, %v16905_v50, %v16911_v54  ;;  %v5528_v62 = vand.u32 3, %v5527_v15  ;;  %v5324_v38 = vsel %vm5322_vm0, %v9355_v24, %v5323_v13  ;;  %v5430_v26 = vxor.u32 2147483648, %v9359_v42  ;;  %v9361_v60 = vpop.eup %9360 }
 0x760   : > { %v5627_v56 = vsel %vm15550_vm7, 0, %v5625_v57  ;;  %vm16912_vm3 = vcmp.lt.s32.totalorder %v16905_v50, 0  ;;  %vm5425_vm4 = vcmp.lt.s32.totalorder %v5424_v27, 2  ;;  %vm5429_vm10 = vcmp.eq.s32.totalorder %v5424_v27, 2 }
 0x761   : > { %v5729_v12 = vsel %vm16912_vm3, %v5728_v33, %v16910_v44  ;;  %v5631_v2 = vadd.s32 3, %v5627_v56  ;;  %9370 = vcosq.f32 %v5730_v14  ;;  %vm5426_vm12 = vcmp.eq.s32.totalorder %v5424_v27, 0 }
 0x762   : > { %v5427_v53 = vxor.u32 2147483648, %v9361_v60  ;;  %v5431_v55 = vsel %vm5429_vm10, %v5430_v26, %v9361_v60  ;;  %vm5526_vm9 = vweird.f32 %v16893_v18  ;;  %9372 = vsinq.f32 %v5730_v14 }
 0x763   : > { %v5328_v24 = vsel %vm5321_vm13, %v5324_v38, %v5327_v34  ;;  %v5731_v23 = vsel %vm15565_vm6, 0, %v5729_v12  ;;  %v16913_v41 = vand.u32 2147483647, %v13900_v46  ;;  %v5832_v15 = vsub.s32 4, %v16916_v29  ;;  %v9363_v6 = vpop.eup %9362 }
 0x764   : > { %v5428_v61 = vsel %vm5426_vm12, %v9359_v42, %v5427_v53  ;;  %vm5529_vm7 = vcmp.lt.s32.totalorder %v5528_v62, 2  ;;  %vm5630_vm15 = vweird.f32 %v16899_v59  ;;  %v5632_v39 = vand.u32 3, %v5631_v2  ;;  %v9365_v58 = vpop.eup %9364  ;;  %v16918_v42 = vld [vmem:[#allocation13_spill] sm:$0xff] }
 0x765   : > { %vm15589_vm8 = vcmp.le.f32.partialorder %v16913_v41, 0.7853982  ;;  %v5432_v47 = vsel %vm5425_vm4, %v5428_v61, %v5431_v55  ;;  %vm5530_vm6 = vcmp.eq.s32.totalorder %v5528_v62, 0  ;;  %vm5533_vm1 = vcmp.eq.s32.totalorder %v5528_v62, 2  ;;  %v16922_v55 = vld [vmem:[#allocation17_spill] sm:$0xff] }
 0x766   : > { %v5834_v11 = vsel %vm15589_vm8, %v13900_v46, %v14552_v63  ;;  %v5534_v19 = vxor.u32 2147483648, %v9363_v6  ;;  %v5329_v52 = vsel %vm5318_vm5, nan, %v5328_v24  ;;  %v5433_v13 = vsel %vm5422_vm11, nan, %v5432_v47  ;;  %v9367_v57 = vpop.eup %9366 }
 0x767   : > { %v5531_v21 = vxor.u32 2147483648, %v9365_v58  ;;  %v5735_v36 = vadd.s32 3, %v5731_v23  ;;  %v7726_v44 = vpack.c.bf16 %v5433_v13, %v5329_v52  ;;  %vm16917_vm13 = vcmp.lt.s32.totalorder %v13900_v46, 0  ;;  %v9369_v27 = vpop.eup %9368  ;;  %v16923_v23 = vld [vmem:[#allocation33_spill] sm:$0xff] }
 0x768   : > { %v5535_v33 = vsel %vm5533_vm1, %v5534_v19, %v9365_v58  ;;  %v5833_v63 = vsel %vm16917_vm13, %v5832_v15, %v16916_v29  ;;  %9374 = vcosq.f32 %v5834_v11  ;;  %vm5633_vm0 = vcmp.lt.s32.totalorder %v5632_v39, 2  ;;  %v16925_v19 = vld [vmem:[#allocation20_spill] sm:$0xff] }
 0x769   : > { %v5532_v54 = vsel %vm5530_vm6, %v9363_v6, %v5531_v21  ;;  %v5638_v14 = vxor.u32 2147483648, %v9367_v57  ;;  %v16919_v5 = vand.u32 2147483647, %v16918_v42  ;;  %8845 = vmatprep.mubr.bf16.mxu0 %v7726_v44  ;;  %v5635_v38 = vxor.u32 2147483648, %v9369_v27 }
 0x76a   : > { %v5536_v31 = vsel %vm5529_vm7, %v5532_v54, %v5535_v33  ;;  %vm5637_vm11 = vcmp.eq.s32.totalorder %v5632_v39, 2  ;;  %v5835_v26 = vsel %vm15589_vm8, 0, %v5833_v63  ;;  %vm5634_vm3 = vcmp.eq.s32.totalorder %v5632_v39, 0  ;;  %v16930_v33 = vld [vmem:[#allocation40_spill] sm:$0xff] }
 0x76b   : > { %vm15609_vm5 = vcmp.le.f32.partialorder %v16919_v5, 0.7853982  ;;  %v5639_v56 = vsel %vm5637_vm11, %v5638_v14, %v9369_v27  ;;  %v5736_v12 = vand.u32 3, %v5735_v36  ;;  %9376 = vsinq.f32 %v5834_v11  ;;  %v9371_v60 = vpop.eup %9370 }
 0x76c   : > { %v5537_v2 = vsel %vm5526_vm9, nan, %v5536_v31  ;;  %v5636_v53 = vsel %vm5634_vm3, %v9367_v57, %v5635_v38  ;;  %v5936_v24 = vsub.s32 4, %v16922_v55  ;;  %v5938_v62 = vsel %vm15609_vm5, %v16918_v42, %v16923_v23  ;;  %v9373_v41 = vpop.eup %9372  ;;  %v16929_v57 = vld [vmem:[#allocation39_spill] sm:$0xff] }
 0x76d   : > { %v5640_v48 = vsel %vm5633_vm0, %v5636_v53, %v5639_v56  ;;  %v5742_v29 = vxor.u32 2147483648, %v9371_v60  ;;  %v5839_v15 = vadd.s32 3, %v5835_v26  ;;  %9378 = vcosq.f32 %v5938_v62  ;;  %v16935_v56 = vld [vmem:[#allocation53_spill] sm:$0xff] }
 0x76e   : > { %v5641_v6 = vsel %vm5630_vm15, nan, %v5640_v48  ;;  %v5739_v61 = vxor.u32 2147483648, %v9373_v41  ;;  %vm16924_vm4 = vcmp.lt.s32.totalorder %v16918_v42, 0  ;;  %9380 = vsinq.f32 %v5938_v62 }
 0x76f   : > { %v5937_v18 = vsel %vm16924_vm4, %v5936_v24, %v16922_v55  ;;  %v7390_v11 = vxor.u32 2147483648, %v15454_v1  ;;  %v7702_v58 = vxor.u32 2147483648, %v15472_v49  ;;  %v7494_v47 = vxor.u32 2147483648, %v15554_v28 }
 0x770   : > { %v7727_v39 = vpack.c.bf16 %v5641_v6, %v5537_v2  ;;  %vm5734_vm10 = vweird.f32 %v16905_v50  ;;  %vm5738_vm12 = vcmp.eq.s32.totalorder %v5736_v12, 0  ;;  %vm5741_vm9 = vcmp.eq.s32.totalorder %v5736_v12, 2  ;;  %v16936_v2 = vld [vmem:[#allocation55_spill] sm:$0xff] }
 0x771   : > { %v5939_v59 = vsel %vm15609_vm5, 0, %v5937_v18  ;;  %v16926_v52 = vand.u32 2147483647, %v16925_v19  ;;  %v5840_v21 = vand.u32 3, %v5839_v15  ;;  %v6040_v44 = vsub.s32 4, %v16929_v57 }
 0x772   : > { %8846 = vmatmul.mubr.bf16.gmra.mrb[24].mxu0 %v7727_v39  ;;  %v5943_v36 = vadd.s32 3, %v5939_v59  ;;  %v9375_v27 = vpop.eup %9374  ;;  %v5740_v54 = vsel %vm5738_vm12, %v9371_v60, %v5739_v61  ;;  %v5743_v14 = vsel %vm5741_vm9, %v5742_v29, %v9373_v41  ;;  %vm5838_vm7 = vweird.f32 %v13900_v46  ;;  %v16938_v59 = vld [vmem:[#allocation63_spill] sm:$0xff] }
 0x773   : > { %vm15637_vm8 = vcmp.le.f32.partialorder %v16926_v52, 0.7853982  ;;  %v5846_v5 = vxor.u32 2147483648, %v9375_v27  ;;  %vm16931_vm15 = vcmp.lt.s32.totalorder %v16925_v19, 0  ;;  %v16932_v31 = vand.u32 2147483647, %v14090_v3 }
 0x774   : > { %v6042_v63 = vsel %vm15637_vm8, %v16925_v19, %v16930_v33  ;;  %v6041_v34 = vsel %vm16931_vm15, %v6040_v44, %v16929_v57  ;;  %vm5737_vm1 = vcmp.lt.s32.totalorder %v5736_v12, 2  ;;  %v6144_v60 = vsub.s32 4, %v16935_v56 }
 0x775   : > { %9382 = vcosq.f32 %v6042_v63  ;;  %vm15652_vm6 = vcmp.le.f32.partialorder %v16932_v31, 0.7853982  ;;  %v6043_v26 = vsel %vm15637_vm8, 0, %v6041_v34  ;;  %v9377_v55 = vpop.eup %9376  ;;  %v5744_v24 = vsel %vm5737_vm1, %v5740_v54, %v5743_v14 }
 0x776   : > { %9384 = vsinq.f32 %v6042_v63  ;;  %v6146_v53 = vsel %vm15652_vm6, %v14090_v3, %v16936_v2  ;;  %vm5845_vm13 = vcmp.eq.s32.totalorder %v5840_v21, 2  ;;  %v5944_v23 = vand.u32 3, %v5943_v36 }
 0x777   : > { %v6047_v62 = vadd.s32 3, %v6043_v26  ;;  %v5843_v41 = vxor.u32 2147483648, %v9377_v55  ;;  %v5847_v48 = vsel %vm5845_vm13, %v5846_v5, %v9377_v55  ;;  %vm16937_vm0 = vcmp.lt.s32.totalorder %v14090_v3, 0  ;;  %v9379_v29 = vpop.eup %9378 }
 0x778   : > { %v6145_v12 = vsel %vm16937_vm0, %v6144_v60, %v16935_v56  ;;  %9386 = vcosq.f32 %v6146_v53  ;;  %vm5841_vm5 = vcmp.lt.s32.totalorder %v5840_v21, 2  ;;  %vm5842_vm11 = vcmp.eq.s32.totalorder %v5840_v21, 0  ;;  %v9381_v6 = vpop.eup %9380 }
 0x779   : > { %v6147_v15 = vsel %vm15652_vm6, 0, %v6145_v12  ;;  %9388 = vsinq.f32 %v6146_v53  ;;  %v5844_v61 = vsel %vm5842_vm11, %v9375_v27, %v5843_v41  ;;  %v5950_v18 = vxor.u32 2147483648, %v9379_v29 }
 0x77a   : > { %v6048_v39 = vand.u32 3, %v6047_v62  ;;  %v6248_v52 = vsub.s32 4, %v16938_v59  ;;  %v5745_v13 = vsel %vm5734_vm10, nan, %v5744_v24  ;;  %v5848_v36 = vsel %vm5841_vm5, %v5844_v61, %v5847_v48 }
 0x77b   : > { %vm5942_vm3 = vweird.f32 %v16918_v42  ;;  %v5947_v57 = vxor.u32 2147483648, %v9381_v6  ;;  %vm6046_vm4 = vweird.f32 %v16925_v19  ;;  %v5849_v21 = vsel %vm5838_vm7, nan, %v5848_v36  ;;  %v16954_v19 = vld [vmem:[#allocation66_spill] sm:$0xff] }
 0x77c   : > { %vm5946_vm12 = vcmp.eq.s32.totalorder %v5944_v23, 0  ;;  %v6151_v44 = vadd.s32 3, %v6147_v15  ;;  %v16939_v33 = vand.u32 2147483647, %v14269_v35  ;;  %v7728_v27 = vpack.c.bf16 %v5849_v21, %v5745_v13  ;;  %v16950_v21 = vld [vmem:[#allocation24_spill] sm:$0xff] }
 0x77d   : > { %vm5949_vm8 = vcmp.eq.s32.totalorder %v5944_v23, 2  ;;  %vm16942_vm10 = vcmp.lt.s32.totalorder %v14269_v35, 0  ;;  %vm5945_vm7 = vcmp.lt.s32.totalorder %v5944_v23, 2  ;;  %v5948_v14 = vsel %vm5946_vm12, %v9379_v29, %v5947_v57  ;;  %v16947_v23 = vld [vmem:[#allocation30_spill] sm:$0xff]  ;;  %v16948_v29 = vld [vmem:[#allocation59_spill] sm:$0xff] }
 0x77e   : > { %vm15677_vm9 = vcmp.le.f32.partialorder %v16939_v33, 0.7853982  ;;  %v6249_v50 = vsel %vm16942_vm10, %v6248_v52, %v16938_v59  ;;  %v5951_v5 = vsel %vm5949_vm8, %v5950_v18, %v9381_v6  ;;  %vm6050_vm15 = vcmp.eq.s32.totalorder %v6048_v39, 0  ;;  %8849 = vmatprep.mubr.bf16.mxu0 %v7728_v27 }
 0x77f   : > { %v6250_v46 = vsel %vm15677_vm9, %v14269_v35, %v14786_v8  ;;  %v9383_v54 = vpop.eup %9382  ;;  %vm6053_vm6 = vcmp.eq.s32.totalorder %v6048_v39, 2  ;;  %v6251_v38 = vsel %vm15677_vm9, 0, %v6249_v50  ;;  %v6152_v56 = vand.u32 3, %v6151_v44  ;;  %v16943_v8 = vld [vmem:[#allocation49_spill] sm:$0xff]  ;;  %v16955_v50 = vld [vmem:[#allocation67_spill] sm:$0xff] }
 0x780   : > { %v9385_v34 = vpop.eup %9384  ;;  %v6054_v31 = vxor.u32 2147483648, %v9383_v54  ;;  %9390 = vcosq.f32 %v6250_v46  ;;  %v6255_v60 = vadd.s32 3, %v6251_v38  ;;  %v5952_v2 = vsel %vm5945_vm7, %v5948_v14, %v5951_v5 }
 0x781   : > { %v6051_v26 = vxor.u32 2147483648, %v9385_v34  ;;  %9392 = vsinq.f32 %v6250_v46  ;;  %v16944_v55 = vand.u32 2147483647, %v16943_v8  ;;  %v6352_v62 = vsub.s32 4, %v16947_v23 }
 0x782   : > { %v6055_v53 = vsel %vm6053_vm6, %v6054_v31, %v9385_v34  ;;  %v9387_v41 = vpop.eup %9386  ;;  %vm6049_vm13 = vcmp.lt.s32.totalorder %v6048_v39, 2  ;;  %v6256_v12 = vand.u32 3, %v6255_v60  ;;  %vm16949_vm0 = vcmp.lt.s32.totalorder %v16943_v8, 0 }
 0x783   : > { %vm15692_vm1 = vcmp.le.f32.partialorder %v16944_v55, 0.7853982  ;;  %v6052_v48 = vsel %vm6050_vm15, %v9383_v54, %v6051_v26  ;;  %v9389_v6 = vpop.eup %9388  ;;  %v6158_v18 = vxor.u32 2147483648, %v9387_v41  ;;  %v6353_v59 = vsel %vm16949_vm0, %v6352_v62, %v16947_v23  ;;  %v16960_v26 = vld [vmem:[#allocation46_spill] sm:$0xff] }
 0x784   : > { %v6354_v15 = vsel %vm15692_vm1, %v16943_v8, %v16948_v29  ;;  %v6056_v61 = vsel %vm6049_vm13, %v6052_v48, %v6055_v53  ;;  %v5953_v52 = vsel %vm5942_vm3, nan, %v5952_v2  ;;  %vm6153_vm5 = vcmp.lt.s32.totalorder %v6152_v56, 2  ;;  %v16961_v2 = vld [vmem:[#allocation43_spill] sm:$0xff] }
 0x785   : > { %9394 = vcosq.f32 %v6354_v15  ;;  %v6057_v39 = vsel %vm6046_vm4, nan, %v6056_v61  ;;  %v6155_v13 = vxor.u32 2147483648, %v9389_v6  ;;  %vm6154_vm11 = vcmp.eq.s32.totalorder %v6152_v56, 0 }
 0x786   : > { %v7729_v36 = vpack.c.bf16 %v6057_v39, %v5953_v52  ;;  %vm6157_vm12 = vcmp.eq.s32.totalorder %v6152_v56, 2  ;;  %v6355_v57 = vsel %vm15692_vm1, 0, %v6353_v59  ;;  %vm6150_vm9 = vweird.f32 %v14090_v3 }
 0x787   : > { %vm6254_vm8 = vweird.f32 %v14269_v35  ;;  %9396 = vsinq.f32 %v6354_v15  ;;  %v16951_v44 = vand.u32 2147483647, %v16950_v21  ;;  %v6456_v33 = vsub.s32 4, %v16954_v19 }
 0x788   : > { %8850 = vmatmul.mubr.bf16.gmra.mrb[28].mxu0 %v7729_v36  ;;  %v6156_v63 = vsel %vm6154_vm11, %v9387_v41, %v6155_v13  ;;  %v6159_v27 = vsel %vm6157_vm12, %v6158_v18, %v9389_v6  ;;  %vm6257_vm3 = vcmp.lt.s32.totalorder %v6256_v12, 2  ;;  %v6359_v54 = vadd.s32 3, %v6355_v57  ;;  %v16966_v57 = vld [vmem:[#allocation68_spill] sm:$0xff] }
 0x789   : > { %vm15715_vm10 = vcmp.le.f32.partialorder %v16951_v44, 0.7853982  ;;  %vm16956_vm4 = vcmp.lt.s32.totalorder %v16950_v21, 0  ;;  %v16957_v5 = vand.u32 2147483647, %v14368_v37  ;;  %v6560_v60 = vsub.s32 4, %v16960_v26 }
 0x78a   : > { %v6458_v46 = vsel %vm15715_vm10, %v16950_v21, %v16955_v50  ;;  %v6457_v14 = vsel %vm16956_vm4, %v6456_v33, %v16954_v19  ;;  %v9391_v31 = vpop.eup %9390  ;;  %v6160_v24 = vsel %vm6153_vm5, %v6156_v63, %v6159_v27  ;;  %vm6258_vm15 = vcmp.eq.s32.totalorder %v6256_v12, 0 }
 0x78b   : > { %9398 = vcosq.f32 %v6458_v46  ;;  %vm15729_vm7 = vcmp.le.f32.partialorder %v16957_v5, 0.7853982  ;;  %v6459_v38 = vsel %vm15715_vm10, 0, %v6457_v14  ;;  %v9393_v55 = vpop.eup %9392  ;;  %vm6261_vm6 = vcmp.eq.s32.totalorder %v6256_v12, 2 }
 0x78c   : > { %9400 = vsinq.f32 %v6458_v46  ;;  %v6562_v53 = vsel %vm15729_vm7, %v14368_v37, %v16961_v2  ;;  %v6262_v23 = vxor.u32 2147483648, %v9391_v31  ;;  %v6259_v62 = vxor.u32 2147483648, %v9393_v55  ;;  %v16972_v2 = vld [vmem:[#allocation69_spill] sm:$0xff] }
 0x78d   : > { %v6463_v41 = vadd.s32 3, %v6459_v38  ;;  %vm16962_vm1 = vcmp.lt.s32.totalorder %v14368_v37, 0  ;;  %9402 = vcosq.f32 %v6562_v53  ;;  %v6360_v15 = vand.u32 3, %v6359_v54 }
 0x78e   : > { %v6561_v48 = vsel %vm16962_vm1, %v6560_v60, %v16960_v26  ;;  %v6263_v29 = vsel %vm6261_vm6, %v6262_v23, %v9393_v55  ;;  %9404 = vsinq.f32 %v6562_v53  ;;  %v6260_v18 = vsel %vm6258_vm15, %v9391_v31, %v6259_v62  ;;  %v16968_v31 = vld [vmem:[#allocation65_spill] sm:$0xff]  ;;  %v16973_v55 = vld [vmem:[#allocation11_spill] sm:$0xff]  ;;  %v16985_v26 = vld [vmem:[#allocation22_spill] sm:$0xff] }
 0x78f   : > { %v6563_v6 = vsel %vm15729_vm7, 0, %v6561_v48  ;;  %v9395_v61 = vpop.eup %9394  ;;  %v6464_v56 = vand.u32 3, %v6463_v41  ;;  %v16963_v52 = vand.u32 2147483647, %v14547_v20  ;;  %v6264_v13 = vsel %vm6257_vm3, %v6260_v18, %v6263_v29 }
 0x790   : > { %v6567_v59 = vadd.s32 3, %v6563_v6  ;;  %v6366_v36 = vxor.u32 2147483648, %v9395_v61  ;;  %v6664_v44 = vsub.s32 4, %v16966_v57  ;;  %v6161_v19 = vsel %vm6150_vm9, nan, %v6160_v24 }
 0x791   : > { %vm15748_vm13 = vcmp.le.f32.partialorder %v16963_v52, 0.7853982  ;;  %v6265_v33 = vsel %vm6254_vm8, nan, %v6264_v13  ;;  %vm6358_vm0 = vweird.f32 %v16943_v8  ;;  %vm6462_vm5 = vweird.f32 %v16950_v21  ;;  %v9397_v12 = vpop.eup %9396  ;;  %v16975_v8 = vld [vmem:[#allocation52_spill] sm:$0xff] }
 0x792   : > { %v6666_v42 = vsel %vm15748_vm13, %v14547_v20, %v15046_v43  ;;  %v7730_v63 = vpack.c.bf16 %v6265_v33, %v6161_v19  ;;  %vm6361_vm11 = vcmp.lt.s32.totalorder %v6360_v15, 2  ;;  %vm16967_vm12 = vcmp.lt.s32.totalorder %v14547_v20, 0  ;;  %v16979_v19 = vld [vmem:[#allocation70_spill] sm:$0xff] }
 0x793   : > { %v6665_v27 = vsel %vm16967_vm12, %v6664_v44, %v16966_v57  ;;  %9406 = vcosq.f32 %v6666_v42  ;;  %v6363_v50 = vxor.u32 2147483648, %v9397_v12  ;;  %vm6365_vm10 = vcmp.eq.s32.totalorder %v6360_v15, 2 }
 0x794   : > { %v6667_v3 = vsel %vm15748_vm13, 0, %v6665_v27  ;;  %9408 = vsinq.f32 %v6666_v42  ;;  %8853 = vmatprep.mubr.bf16.mxu0 %v7730_v63  ;;  %vm6362_vm9 = vcmp.eq.s32.totalorder %v6360_v15, 0  ;;  %v6367_v43 = vsel %vm6365_vm10, %v6366_v36, %v9397_v12 }
 0x795   : > { %v9399_v35 = vpop.eup %9398  ;;  %vm6465_vm8 = vcmp.lt.s32.totalorder %v6464_v56, 2  ;;  %v6568_v46 = vand.u32 3, %v6567_v59  ;;  %v6364_v14 = vsel %vm6362_vm9, %v9395_v61, %v6363_v50  ;;  %v6671_v34 = vadd.s32 3, %v6667_v3  ;;  %v16980_v50 = vld [vmem:[#allocation72_spill] sm:$0xff] }
 0x796   : > { %v9401_v54 = vpop.eup %9400  ;;  %v6470_v5 = vxor.u32 2147483648, %v9399_v35  ;;  %v16969_v38 = vand.u32 2147483647, %v16968_v31  ;;  %vm6469_vm4 = vcmp.eq.s32.totalorder %v6464_v56, 2  ;;  %v6768_v53 = vsub.s32 4, %v16972_v2 }
 0x797   : > { %v6467_v60 = vxor.u32 2147483648, %v9401_v54  ;;  %v9403_v23 = vpop.eup %9402  ;;  %v6368_v62 = vsel %vm6361_vm11, %v6364_v14, %v6367_v43  ;;  %vm6466_vm7 = vcmp.eq.s32.totalorder %v6464_v56, 0  ;;  %vm16974_vm15 = vcmp.lt.s32.totalorder %v16968_v31, 0 }
 0x798   : > { %vm15771_vm3 = vcmp.le.f32.partialorder %v16969_v38, 0.7853982  ;;  %v6471_v41 = vsel %vm6469_vm4, %v6470_v5, %v9401_v54  ;;  %v9405_v48 = vpop.eup %9404  ;;  %v6574_v6 = vxor.u32 2147483648, %v9403_v23  ;;  %v6769_v61 = vsel %vm16974_vm15, %v6768_v53, %v16972_v2  ;;  %v17001_v5 = vld [vmem:[#allocation73_spill] sm:$0xff] }
 0x799   : > { %v6770_v24 = vsel %vm15771_vm3, %v16968_v31, %v16973_v55  ;;  %v6468_v29 = vsel %vm6466_vm7, %v9399_v35, %v6467_v60  ;;  %vm6570_vm6 = vcmp.eq.s32.totalorder %v6568_v46, 0  ;;  %v6571_v59 = vxor.u32 2147483648, %v9405_v48 }
 0x79a   : > { %9410 = vcosq.f32 %v6770_v24  ;;  %v6472_v18 = vsel %vm6465_vm8, %v6468_v29, %v6471_v41  ;;  %v6672_v52 = vand.u32 3, %v6671_v34  ;;  %v6369_v15 = vsel %vm6358_vm0, nan, %v6368_v62 }
 0x79b   : > { %9412 = vsinq.f32 %v6770_v24  ;;  %v6473_v39 = vsel %vm6462_vm5, nan, %v6472_v18  ;;  %vm6573_vm1 = vcmp.eq.s32.totalorder %v6568_v46, 2  ;;  %v6771_v13 = vsel %vm15771_vm3, 0, %v6769_v61 }
 0x79c   : > { %vm7516_vm13 = vcmp.lt.s32.totalorder %v14994_v51, 0  ;;  %vm7308_vm11 = vcmp.lt.s32.totalorder %v15024_v0, 0  ;;  %v7731_v36 = vpack.c.bf16 %v6473_v39, %v6369_v15  ;;  %vm6566_vm12 = vweird.f32 %v14368_v37 }
 0x79d   : > { %v6572_v56 = vsel %vm6570_vm6, %v9403_v23, %v6571_v59  ;;  %v6575_v57 = vsel %vm6573_vm1, %v6574_v6, %v9405_v48  ;;  %v9407_v44 = vpop.eup %9406  ;;  %vm7620_vm10 = vcmp.lt.s32.totalorder %v15122_v17, 0  ;;  %vm6569_vm0 = vcmp.lt.s32.totalorder %v6568_v46, 2 }
 0x79e   : > { %vm6670_vm9 = vweird.f32 %v14547_v20  ;;  %v16976_v21 = vand.u32 2147483647, %v16975_v8  ;;  %v6872_v33 = vsub.s32 4, %v16979_v19  ;;  %v9409_v12 = vpop.eup %9408  ;;  %8854 = vmatmul.mubr.bf16.gmra.mrb[32].mxu0 %v7731_v36  ;;  %vm6677_vm8 = vcmp.eq.s32.totalorder %v6672_v52, 2  ;;  %v16991_v36 = vld [vmem:[#allocation61_spill] sm:$0xff] }
 0x79f   : > { %v6678_v63 = vxor.u32 2147483648, %v9407_v44  ;;  %v6775_v27 = vadd.s32 3, %v6771_v13  ;;  %v6576_v35 = vsel %vm6569_vm0, %v6572_v56, %v6575_v57  ;;  %v6675_v43 = vxor.u32 2147483648, %v9409_v12 }
 0x7a0   : > { %vm15798_vm5 = vcmp.le.f32.partialorder %v16976_v21, 0.7853982  ;;  %vm16981_vm3 = vcmp.lt.s32.totalorder %v16975_v8, 0  ;;  %vm6673_vm4 = vcmp.lt.s32.totalorder %v6672_v52, 2  ;;  %vm6674_vm7 = vcmp.eq.s32.totalorder %v6672_v52, 0  ;;  %v16995_v21 = vld [vmem:[#allocation71_spill] sm:$0xff] }
 0x7a1   : > { %v6874_v3 = vsel %vm15798_vm5, %v16975_v8, %v16980_v50  ;;  %v6873_v46 = vsel %vm16981_vm3, %v6872_v33, %v16979_v19  ;;  %v6679_v54 = vsel %vm6677_vm8, %v6678_v63, %v9409_v12  ;;  %v16982_v14 = vand.u32 2147483647, %v14720_v30  ;;  %v16996_v63 = vld [vmem:[#allocation14_spill] sm:$0xff] }
 0x7a2   : > { %9414 = vcosq.f32 %v6874_v3  ;;  %v6676_v34 = vsel %vm6674_vm7, %v9407_v44, %v6675_v43  ;;  %v6875_v38 = vsel %vm15798_vm5, 0, %v6873_v46  ;;  %v6976_v60 = vsub.s32 4, %v16985_v26 }
 0x7a3   : > { %vm15812_vm15 = vcmp.le.f32.partialorder %v16982_v14, 0.7853982  ;;  %9416 = vsinq.f32 %v6874_v3  ;;  %v6577_v53 = vsel %vm6566_vm12, nan, %v6576_v35  ;;  %v6680_v55 = vsel %vm6673_vm4, %v6676_v34, %v6679_v54 }
 0x7a4   : > { %v9411_v2 = vpop.eup %9410  ;;  %v6879_v24 = vadd.s32 3, %v6875_v38  ;;  %v6978_v23 = vsel %vm15812_vm15, %v14720_v30, %v15200_v4  ;;  %v6681_v41 = vsel %vm6670_vm9, nan, %v6680_v55  ;;  %v6776_v48 = vand.u32 3, %v6775_v27 }
 0x7a5   : > { %v9413_v62 = vpop.eup %9412  ;;  %vm16986_vm6 = vcmp.lt.s32.totalorder %v14720_v30, 0  ;;  %9418 = vcosq.f32 %v6978_v23  ;;  %vm7412_vm1 = vcmp.lt.s32.totalorder %v15179_v45, 0  ;;  %v7732_v37 = vpack.c.bf16 %v6681_v41, %v6577_v53 }
 0x7a6   : > { %v6977_v29 = vsel %vm16986_vm6, %v6976_v60, %v16985_v26  ;;  %v6779_v6 = vxor.u32 2147483648, %v9413_v62  ;;  %v6782_v61 = vxor.u32 2147483648, %v9411_v2  ;;  %v15836_v4 = vsel %vm7516_vm13, %v7598_v25, %v15348_v16 }
 0x7a7   : > { %v15843_v20 = vsel %vm7308_vm11, %v7390_v11, %v15454_v1  ;;  %v6880_v18 = vand.u32 3, %v6879_v24  ;;  %9420 = vsinq.f32 %v6978_v23  ;;  %v15850_v59 = vsel %vm7620_vm10, %v7702_v58, %v15472_v49  ;;  %8857 = vmatprep.mubr.bf16.mxu0 %v7732_v37  ;;  %v16990_v49 = vld [vmem:[#allocation74_spill] sm:$0xff]  ;;  %v17005_v11 = vld [vmem:[#allocation23_spill] sm:$0xff] }
 0x7a8   : > { %v15857_v16 = vsel %vm7412_vm1, %v7494_v47, %v15554_v28  ;;  %v6979_v25 = vsel %vm15812_vm15, 0, %v6977_v29  ;;  %v16987_v1 = vand.u32 2147483647, %v14861_v22  ;;  %vm6778_vm0 = vcmp.eq.s32.totalorder %v6776_v48, 0 }
 0x7a9   : > { %vm6781_vm9 = vcmp.eq.s32.totalorder %v6776_v48, 2  ;;  %v7080_v58 = vsub.s32 4, %v16990_v49  ;;  %vm6777_vm5 = vcmp.lt.s32.totalorder %v6776_v48, 2  ;;  %v6780_v47 = vsel %vm6778_vm0, %v9411_v2, %v6779_v6 }
 0x7aa   : > { %vm15863_vm12 = vcmp.le.f32.partialorder %v16987_v1, 0.7853982  ;;  %v6783_v52 = vsel %vm6781_vm9, %v6782_v61, %v9413_v62  ;;  %vm6882_vm8 = vcmp.eq.s32.totalorder %v6880_v18, 0  ;;  %v6983_v39 = vadd.s32 3, %v6979_v25 }
 0x7ab   : > { %v7082_v28 = vsel %vm15863_vm12, %v14861_v22, %v15445_v7  ;;  %v7081_v13 = vsel %vm6996_vm2, %v7080_v58, %v16990_v49  ;;  %v16992_v56 = vand.u32 2147483647, %v16991_v36  ;;  %v7184_v42 = vsub.s32 4, %v16995_v21 }
 0x7ac   : > { %9422 = vcosq.f32 %v7082_v28  ;;  %v9415_v15 = vpop.eup %9414  ;;  %v7083_v7 = vsel %vm15863_vm12, 0, %v7081_v13  ;;  %v6784_v33 = vsel %vm6777_vm5, %v6780_v47, %v6783_v52  ;;  %vm6885_vm4 = vcmp.eq.s32.totalorder %v6880_v18, 2 }
 0x7ad   : > { %vm15877_vm3 = vcmp.le.f32.partialorder %v16992_v56, 0.7853982  ;;  %v6886_v44 = vxor.u32 2147483648, %v9415_v15  ;;  %9424 = vsinq.f32 %v7082_v28  ;;  %v9417_v19 = vpop.eup %9416  ;;  %v7087_v12 = vadd.s32 3, %v7083_v7 }
 0x7ae   : > { %v7186_v27 = vsel %vm15877_vm3, %v16991_v36, %v16996_v63  ;;  %v6883_v50 = vxor.u32 2147483648, %v9417_v19  ;;  %vm16997_vm2 = vcmp.lt.s32.totalorder %v16991_v36, 0  ;;  %v6984_v46 = vand.u32 3, %v6983_v39 }
 0x7af   : > { %v6887_v3 = vsel %vm6885_vm4, %v6886_v44, %v9417_v19  ;;  %v7185_v35 = vsel %vm16997_vm2, %v7184_v42, %v16995_v21  ;;  %9426 = vcosq.f32 %v7186_v27  ;;  %v9419_v43 = vpop.eup %9418  ;;  %v16998_v54 = vand.u32 2147483647, %v14789_v9 }
 0x7b0   : > { %9428 = vsinq.f32 %v7186_v27  ;;  %v7288_v34 = vsub.s32 4, %v17001_v5  ;;  %vm6881_vm15 = vcmp.lt.s32.totalorder %v6880_v18, 2  ;;  %v6884_v38 = vsel %vm6882_vm8, %v9415_v15, %v6883_v50 }
 0x7b1   : > { %vm15893_vm7 = vcmp.le.f32.partialorder %v16998_v54, 0.7853982  ;;  %v6990_v26 = vxor.u32 2147483648, %v9419_v43  ;;  %v9421_v2 = vpop.eup %9420  ;;  %vm6774_vm6 = vweird.f32 %v16968_v31  ;;  %vm6878_vm12 = vweird.f32 %v16975_v8 }
 0x7b2   : > { %v7290_v60 = vsel %vm15893_vm7, %v14789_v9, %v15430_v32  ;;  %v6888_v53 = vsel %vm6881_vm15, %v6884_v38, %v6887_v3  ;;  %v7187_v55 = vsel %vm15877_vm3, 0, %v7185_v35  ;;  %v6785_v24 = vsel %vm6774_vm6, nan, %v6784_v33 }
 0x7b3   : > { %v6889_v23 = vsel %vm6878_vm12, nan, %v6888_v53  ;;  %vm6982_vm0 = vweird.f32 %v14720_v30  ;;  %v6987_v62 = vxor.u32 2147483648, %v9421_v2  ;;  %v7088_v41 = vand.u32 3, %v7087_v12 }
 0x7b4   : > { %v7733_v48 = vpack.c.bf16 %v6889_v23, %v6785_v24  ;;  %vm6989_vm9 = vcmp.eq.s32.totalorder %v6984_v46, 2  ;;  %v7289_v32 = vsel %vm7204_vm14, %v7288_v34, %v17001_v5  ;;  %9430 = vcosq.f32 %v7290_v60 }
 0x7b5   : > { %vm6985_vm5 = vcmp.lt.s32.totalorder %v6984_v46, 2  ;;  %vm6986_vm8 = vcmp.eq.s32.totalorder %v6984_v46, 0  ;;  %v6991_v8 = vsel %vm6989_vm9, %v6990_v26, %v9421_v2  ;;  %v7191_v29 = vadd.s32 3, %v7187_v55 }
 0x7b6   : > { %v9423_v31 = vpop.eup %9422  ;;  %8858 = vmatmul.mubr.bf16.gmra.mrb[36].mxu0 %v7733_v48  ;;  %v6988_v37 = vsel %vm6986_vm8, %v9419_v43, %v6987_v62  ;;  %v7291_v61 = vsel %vm15893_vm7, 0, %v7289_v32  ;;  %9432 = vsinq.f32 %v7290_v60  ;;  %vm7090_vm3 = vcmp.eq.s32.totalorder %v7088_v41, 0 }
 0x7b7   : > { %v7094_v6 = vxor.u32 2147483648, %v9423_v31  ;;  %v9425_v18 = vpop.eup %9424  ;;  %vm7093_vm4 = vcmp.eq.s32.totalorder %v7088_v41, 2  ;;  %v17002_v25 = vand.u32 2147483647, %v15024_v0  ;;  %v7392_v49 = vsub.s32 4, %v17005_v11 }
 0x7b8   : > { %v7091_v58 = vxor.u32 2147483648, %v9425_v18  ;;  %v7295_v47 = vadd.s32 3, %v7291_v61  ;;  %v6992_v39 = vsel %vm6985_vm5, %v6988_v37, %v6991_v8  ;;  %v7192_v13 = vand.u32 3, %v7191_v29 }
 0x7b9   : > { %vm15915_vm2 = vcmp.le.f32.partialorder %v17002_v25, 0.7853982  ;;  %v7095_v28 = vsel %vm7093_vm4, %v7094_v6, %v9425_v18  ;;  %v9427_v15 = vpop.eup %9426  ;;  %v7393_v56 = vsel %vm7308_vm11, %v7392_v49, %v17005_v11  ;;  %vm7089_vm14 = vcmp.lt.s32.totalorder %v7088_v41, 2 }
 0x7ba   : > { %v7394_v52 = vsel %vm15915_vm2, %v15024_v0, %v15843_v20  ;;  %v9429_v57 = vpop.eup %9428  ;;  %v7092_v44 = vsel %vm7090_vm3, %v9423_v31, %v7091_v58  ;;  %v7198_v7 = vxor.u32 2147483648, %v9427_v15  ;;  %vm7086_vm7 = vweird.f32 %v14861_v22 }
 0x7bb   : > { %9434 = vcosq.f32 %v7394_v52  ;;  %v7096_v21 = vsel %vm7089_vm14, %v7092_v44, %v7095_v28  ;;  %v7195_v42 = vxor.u32 2147483648, %v9429_v57  ;;  %v7395_v20 = vsel %vm15915_vm2, 0, %v7393_v56 }
 0x7bc   : > { %9436 = vsinq.f32 %v7394_v52  ;;  %v6993_v19 = vsel %vm6982_vm0, nan, %v6992_v39  ;;  %v7097_v33 = vsel %vm7086_vm7, nan, %v7096_v21  ;;  %vm7190_vm15 = vweird.f32 %v16991_v36 }
 0x7bd   : > { %vm7294_vm11 = vweird.f32 %v14789_v9  ;;  %v7296_v12 = vand.u32 3, %v7295_v47  ;;  %v17006_v63 = vand.u32 2147483647, %v15179_v45  ;;  %v7734_v22 = vpack.c.bf16 %v7097_v33, %v6993_v19 }
 0x7be   : > { %vm7197_vm12 = vcmp.eq.s32.totalorder %v7192_v13, 2  ;;  %v7496_v50 = vsub.s32 4, %v15358_v10  ;;  %v9431_v3 = vpop.eup %9430  ;;  %vm7194_vm0 = vcmp.eq.s32.totalorder %v7192_v13, 0  ;;  %v7399_v43 = vadd.s32 3, %v7395_v20 }
 0x7bf   : > { %vm15937_vm6 = vcmp.le.f32.partialorder %v17006_v63, 0.7853982  ;;  %v7199_v35 = vsel %vm7197_vm12, %v7198_v7, %v9429_v57  ;;  %8861 = vmatprep.mubr.bf16.mxu0 %v7734_v22  ;;  %v7196_v46 = vsel %vm7194_vm0, %v9427_v15, %v7195_v42  ;;  %v7302_v54 = vxor.u32 2147483648, %v9431_v3 }
 0x7c0   : > { %v7498_v30 = vsel %vm15937_vm6, %v15179_v45, %v15857_v16  ;;  %v7497_v14 = vsel %vm7412_vm1, %v7496_v50, %v15358_v10  ;;  %v9433_v5 = vpop.eup %9432  ;;  %vm7193_vm9 = vcmp.lt.s32.totalorder %v7192_v13, 2  ;;  %vm7297_vm5 = vcmp.lt.s32.totalorder %v7296_v12, 2  ;;  %v17012_v10 = vld [vmem:[#allocation75_spill] sm:$0xff] }
 0x7c1   : > { %9438 = vcosq.f32 %v7498_v30  ;;  %vm7301_vm8 = vcmp.eq.s32.totalorder %v7296_v12, 2  ;;  %v7499_v16 = vsel %vm15937_vm6, 0, %v7497_v14  ;;  %vm7298_vm3 = vcmp.eq.s32.totalorder %v7296_v12, 0 }
 0x7c2   : > { %9440 = vsinq.f32 %v7498_v30  ;;  %v7299_v34 = vxor.u32 2147483648, %v9433_v5  ;;  %v7303_v38 = vsel %vm7301_vm8, %v7302_v54, %v9433_v5  ;;  %v17009_v26 = vand.u32 2147483647, %v14994_v51 }
 0x7c3   : > { %v7200_v2 = vsel %vm7193_vm9, %v7196_v46, %v7199_v35  ;;  %v7503_v53 = vadd.s32 3, %v7499_v16  ;;  %v7600_v55 = vsub.s32 4, %v17012_v10  ;;  %v7400_v41 = vand.u32 3, %v7399_v43 }
 0x7c4   : > { %vm15953_vm4 = vcmp.le.f32.partialorder %v17009_v26, 0.7853982  ;;  %v7300_v62 = vsel %vm7298_vm3, %v9431_v3, %v7299_v34  ;;  %v7704_v48 = vsub.s32 4, %v15292_v40  ;;  %v7201_v37 = vsel %vm7190_vm15, nan, %v7200_v2 }
 0x7c5   : > { %v7602_v24 = vsel %vm15953_vm4, %v14994_v51, %v15836_v4  ;;  %v9435_v23 = vpop.eup %9434  ;;  %v7304_v31 = vsel %vm7297_vm5, %v7300_v62, %v7303_v38  ;;  %v7601_v29 = vsel %vm7516_vm13, %v7600_v55, %v17012_v10  ;;  %v7504_v18 = vand.u32 3, %v7503_v53  ;;  %v15996_v38 = vld [vmem:[%s16108_s6] ss:$0 sm:$0xff] }
 0x7c6   : > { %9442 = vcosq.f32 %v7602_v24  ;;  %v9437_v32 = vpop.eup %9436  ;;  %v7406_v8 = vxor.u32 2147483648, %v9435_v23  ;;  %v7305_v4 = vsel %vm7294_vm11, nan, %v7304_v31  ;;  %v7603_v25 = vsel %vm15953_vm4, 0, %v7601_v29 }
 0x7c7   : > { %9444 = vsinq.f32 %v7602_v24  ;;  %v7403_v6 = vxor.u32 2147483648, %v9437_v32  ;;  %v7735_v61 = vpack.c.bf16 %v7305_v4, %v7201_v37  ;;  %v17013_v1 = vand.u32 2147483647, %v15122_v17 }
 0x7c8   : > { %vm7402_vm13 = vcmp.eq.s32.totalorder %v7400_v41, 0  ;;  %vm7405_vm2 = vcmp.eq.s32.totalorder %v7400_v41, 2  ;;  %v7705_v36 = vsel %vm7620_vm10, %v7704_v48, %v15292_v40  ;;  %v7607_v15 = vadd.s32 3, %v7603_v25 }
 0x7c9   : > { %vm15975_vm1 = vcmp.le.f32.partialorder %v17013_v1, 0.7853982  ;;  %8862 = vmatmul.mubr.bf16.gmra.mrb[40].mxu0 %v7735_v61  ;;  %v7404_v58 = vsel %vm7402_vm13, %v9435_v23, %v7403_v6  ;;  %v7407_v28 = vsel %vm7405_vm2, %v7406_v8, %v9437_v32  ;;  %vm7401_vm14 = vcmp.lt.s32.totalorder %v7400_v41, 2 }
 0x7ca   : > { %v7706_v9 = vsel %vm15975_vm1, %v15122_v17, %v15850_v59  ;;  %v7707_v39 = vsel %vm15975_vm1, 0, %v7705_v36  ;;  %vm7509_vm10 = vcmp.eq.s32.totalorder %v7504_v18, 2  ;;  %v7408_v40 = vsel %vm7401_vm14, %v7404_v58, %v7407_v28 }
 0x7cb   : > { %v9439_v49 = vpop.eup %9438  ;;  %9446 = vcosq.f32 %v7706_v9  ;;  %vm7506_vm7 = vcmp.eq.s32.totalorder %v7504_v18, 0  ;;  %vm7505_vm15 = vcmp.lt.s32.totalorder %v7504_v18, 2  ;;  %v7711_v57 = vadd.s32 3, %v7707_v39 }
 0x7cc   : > { %v9441_v47 = vpop.eup %9440  ;;  %v7510_v52 = vxor.u32 2147483648, %v9439_v49  ;;  %9448 = vsinq.f32 %v7706_v9  ;;  %vm7398_vm11 = vweird.f32 %v15024_v0  ;;  %vm7502_vm6 = vweird.f32 %v15179_v45 }
 0x7cd   : > { %v7507_v13 = vxor.u32 2147483648, %v9441_v47  ;;  %v7608_v21 = vand.u32 3, %v7607_v15  ;;  %v7409_v20 = vsel %vm7398_vm11, nan, %v7408_v40  ;;  %v7712_v27 = vand.u32 3, %v7711_v57 }
 0x7ce   : > { %v7511_v56 = vsel %vm7509_vm10, %v7510_v52, %v9441_v47  ;;  %vm7606_vm4 = vweird.f32 %v14994_v51  ;;  %vm7710_vm1 = vweird.f32 %v15122_v17 }
 0x7cf   : > { %v7508_v59 = vsel %vm7506_vm7, %v9439_v49, %v7507_v13  ;;  %vm7610_vm12 = vcmp.eq.s32.totalorder %v7608_v21, 0  ;;  %vm7613_vm0 = vcmp.eq.s32.totalorder %v7608_v21, 2  ;;  %vm7609_vm9 = vcmp.lt.s32.totalorder %v7608_v21, 2 }
 0x7d0   : > { %v9443_v44 = vpop.eup %9442  ;;  %v7512_v7 = vsel %vm7505_vm15, %v7508_v59, %v7511_v56  ;;  %vm7717_vm5 = vcmp.eq.s32.totalorder %v7712_v27, 2  ;;  %vm7714_vm8 = vcmp.eq.s32.totalorder %v7712_v27, 0  ;;  %vm7713_vm3 = vcmp.lt.s32.totalorder %v7712_v27, 2 }
 0x7d1   : > { %v9445_v42 = vpop.eup %9444  ;;  %v7513_v19 = vsel %vm7502_vm6, nan, %v7512_v7  ;;  %v7614_v33 = vxor.u32 2147483648, %v9443_v44 }
 0x7d2   : > { %v7736_v12 = vpack.c.bf16 %v7513_v19, %v7409_v20  ;;  %v7611_v63 = vxor.u32 2147483648, %v9445_v42 }
 0x7d3   : > { %v7615_v30 = vsel %vm7613_vm0, %v7614_v33, %v9445_v42 }
 0x7d4   : > { %8865 = vmatprep.mubr.bf16.mxu0 %v7736_v12  ;;  %v7612_v50 = vsel %vm7610_vm12, %v9443_v44, %v7611_v63 }
 0x7d5   : > { %v9447_v22 = vpop.eup %9446  ;;  %v7616_v45 = vsel %vm7609_vm9, %v7612_v50, %v7615_v30 }
 0x7d6   : > { %v9449_v3 = vpop.eup %9448  ;;  %v7718_v35 = vxor.u32 2147483648, %v9447_v22  ;;  %v7617_v14 = vsel %vm7606_vm4, nan, %v7616_v45 }
 0x7d7   : > { %v7715_v0 = vxor.u32 2147483648, %v9449_v3 }
 0x7d8   : > { %v7719_v43 = vsel %vm7717_vm5, %v7718_v35, %v9449_v3 }
 0x7d9   : > { %v7716_v46 = vsel %vm7714_vm8, %v9447_v22, %v7715_v0 }
 0x7da   : > { %v7720_v54 = vsel %vm7713_vm3, %v7716_v46, %v7719_v43 }
 0x7db   : > { %v7721_v5 = vsel %vm7710_vm1, nan, %v7720_v54 }
 0x7dc   : > { %v7737_v16 = vpack.c.bf16 %v7721_v5, %v7617_v14 }
 0x7de   : > { %8866 = vmatmul.mubr.bf16.gmra.mrb[44].mxu0 %v7737_v16 }
 0x80e   : > { %v8839_v34 = vpop.f32.mrb[16].mxu0 }
 0x80f   : > { %v7843_v26 = vpop.f32.mrb[17].mxu0  ;;  %v7852_v51 = vadd.f32 %v8839_v34, %v15996_v38 }
 0x810   : > { %v8840_v60 = vpop.f32.mrb[18].mxu0  ;;  %v7844_v53 = vadd.f32 %v15996_v38, %v7843_v26 }
 0x811   : > { %v7855_v17 = vadd.f32 %v8840_v60, %v15996_v38  ;;  %v7846_v2 = vpop.f32.mrb[19].mxu0 }
 0x812   : > { %v7847_v10 = vadd.f32 %v15996_v38, %v7846_v2 }
 0x813   : > { %v8584_v55 = vpack.c.bf16 %v7855_v17, %v7852_v51 }
 0x814   : > { %v8579_v24 = vpack.c.bf16 %v7847_v10, %v7844_v53 }
 0x815   : > { %8656 = vst [vmem:[%s16004_s22 + $0x8] sm:$0xff] %v8584_v55  }
 0x816   : > { %8580 = vst [vmem:[%s16004_s22] sm:$0xff] %v8579_v24  }
 0x82e   : > { %v8843_v23 = vpop.f32.mrb[20].mxu0 }
 0x82f   : > { %v7859_v62 = vpop.f32.mrb[21].mxu0  ;;  %v7868_v48 = vadd.f32 %v8843_v23, %v15996_v38 }
 0x830   : > { %v8844_v41 = vpop.f32.mrb[22].mxu0  ;;  %v7860_v8 = vadd.f32 %v15996_v38, %v7859_v62 }
 0x831   : > { %v7871_v32 = vadd.f32 %v8844_v41, %v15996_v38  ;;  %v7862_v31 = vpop.f32.mrb[23].mxu0 }
 0x832   : > { %v7863_v29 = vadd.f32 %v15996_v38, %v7862_v31 }
 0x833   : > { %v8594_v37 = vpack.c.bf16 %v7871_v32, %v7868_v48 }
 0x834   : > { %v8589_v4 = vpack.c.bf16 %v7863_v29, %v7860_v8 }
 0x835   : > { %8658 = vst [vmem:[%s16004_s22 + $0x18] sm:$0xff] %v8594_v37  }
 0x836   : > { %8657 = vst [vmem:[%s16004_s22 + $0x10] sm:$0xff] %v8589_v4  }
 0x845   : > { %v8847_v6 = vpop.f32.mrb[24].mxu0 }
 0x846   : > { %v7875_v61 = vpop.f32.mrb[25].mxu0  ;;  %v7884_v25 = vadd.f32 %v8847_v6, %v15996_v38 }
 0x847   : > { %v8848_v18 = vpop.f32.mrb[26].mxu0  ;;  %v7876_v36 = vadd.f32 %v15996_v38, %v7875_v61 }
 0x848   : > { %v7887_v1 = vadd.f32 %v8848_v18, %v15996_v38  ;;  %v7878_v11 = vpop.f32.mrb[27].mxu0 }
 0x849   : > { %v7879_v9 = vadd.f32 %v15996_v38, %v7878_v11 }
 0x84a   : > { %v8604_v49 = vpack.c.bf16 %v7887_v1, %v7884_v25 }
 0x84b   : > { %v8599_v58 = vpack.c.bf16 %v7879_v9, %v7876_v36 }
 0x84c   : > { %8660 = vst [vmem:[%s16004_s22 + $0x28] sm:$0xff] %v8604_v49  }
 0x84d   : > { %8659 = vst [vmem:[%s16004_s22 + $0x20] sm:$0xff] %v8599_v58  }
 0x85b   : > { %v8851_v28 = vpop.f32.mrb[28].mxu0 }
 0x85c   : > { %v7891_v47 = vpop.f32.mrb[29].mxu0  ;;  %v7900_v15 = vadd.f32 %v8851_v28, %v15996_v38 }
 0x85d   : > { %v8852_v52 = vpop.f32.mrb[30].mxu0  ;;  %v7892_v40 = vadd.f32 %v15996_v38, %v7891_v47 }
 0x85e   : > { %v7903_v39 = vadd.f32 %v8852_v52, %v15996_v38  ;;  %v7894_v13 = vpop.f32.mrb[31].mxu0 }
 0x85f   : > { %v7895_v56 = vadd.f32 %v15996_v38, %v7894_v13 }
 0x860   : > { %v8614_v59 = vpack.c.bf16 %v7903_v39, %v7900_v15 }
 0x861   : > { %v8609_v57 = vpack.c.bf16 %v7895_v56, %v7892_v40 }
 0x862   : > { %8662 = vst [vmem:[%s16004_s22 + $0x38] sm:$0xff] %v8614_v59  }
 0x863   : > { %8661 = vst [vmem:[%s16004_s22 + $0x30] sm:$0xff] %v8609_v57  }
 0x871   : > { %v8855_v44 = vpop.f32.mrb[32].mxu0 }
 0x872   : > { %v7907_v7 = vpop.f32.mrb[33].mxu0  ;;  %v7916_v42 = vadd.f32 %v8855_v44, %v15996_v38 }
 0x873   : > { %v8856_v21 = vpop.f32.mrb[34].mxu0  ;;  %v7908_v33 = vadd.f32 %v15996_v38, %v7907_v7 }
 0x874   : > { %v7919_v20 = vadd.f32 %v8856_v21, %v15996_v38  ;;  %v7910_v19 = vpop.f32.mrb[35].mxu0 }
 0x875   : > { %v7911_v12 = vadd.f32 %v15996_v38, %v7910_v19 }
 0x876   : > { %v8624_v63 = vpack.c.bf16 %v7919_v20, %v7916_v42 }
 0x877   : > { %v8619_v27 = vpack.c.bf16 %v7911_v12, %v7908_v33 }
 0x878   : > { %8664 = vst [vmem:[%s16004_s22 + $0x48] sm:$0xff] %v8624_v63  }
 0x879   : > { %8663 = vst [vmem:[%s16004_s22 + $0x40] sm:$0xff] %v8619_v27  }
 0x889   : > { %v8859_v22 = vpop.f32.mrb[36].mxu0 }
 0x88a   : > { %v7923_v50 = vpop.f32.mrb[37].mxu0  ;;  %v7932_v3 = vadd.f32 %v8859_v22, %v15996_v38 }
 0x88b   : > { %v8860_v30 = vpop.f32.mrb[38].mxu0  ;;  %v7924_v45 = vadd.f32 %v15996_v38, %v7923_v50 }
 0x88c   : > { %v7935_v35 = vadd.f32 %v8860_v30, %v15996_v38  ;;  %v7926_v0 = vpop.f32.mrb[39].mxu0 }
 0x88d   : > { %v7927_v43 = vadd.f32 %v15996_v38, %v7926_v0 }
 0x88e   : > { %v8634_v46 = vpack.c.bf16 %v7935_v35, %v7932_v3 }
 0x88f   : > { %v8629_v54 = vpack.c.bf16 %v7927_v43, %v7924_v45 }
 0x890   : > { %8666 = vst [vmem:[%s16004_s22 + $0x58] sm:$0xff] %v8634_v46  }
 0x891   : > { %8665 = vst [vmem:[%s16004_s22 + $0x50] sm:$0xff] %v8629_v54  }
 0x89c   : > { %v8863_v14 = vpop.f32.mrb[40].mxu0 }
 0x89d   : > { %v7939_v5 = vpop.f32.mrb[41].mxu0  ;;  %v7948_v34 = vadd.f32 %v8863_v14, %v15996_v38 }
 0x89e   : > { %v8864_v16 = vpop.f32.mrb[42].mxu0  ;;  %v7940_v51 = vadd.f32 %v15996_v38, %v7939_v5 }
 0x89f   : > { %v7951_v26 = vadd.f32 %v8864_v16, %v15996_v38  ;;  %v7942_v60 = vpop.f32.mrb[43].mxu0 }
 0x8a0   : > { %v7943_v17 = vadd.f32 %v15996_v38, %v7942_v60 }
 0x8a1   : > { %v8644_v2 = vpack.c.bf16 %v7951_v26, %v7948_v34 }
 0x8a2   : > { %v8639_v53 = vpack.c.bf16 %v7943_v17, %v7940_v51 }
 0x8a3   : > { %8668 = vst [vmem:[%s16004_s22 + $0x68] sm:$0xff] %v8644_v2  }
 0x8a4   : > { %8667 = vst [vmem:[%s16004_s22 + $0x60] sm:$0xff] %v8639_v53  }
 0x8b1   : > { %v8867_v10 = vpop.f32.mrb[44].mxu0 }
 0x8b2   : > { %v7955_v55 = vpop.f32.mrb[45].mxu0  ;;  %v7964_v23 = vadd.f32 %v8867_v10, %v15996_v38 }
 0x8b3   : > { %v8868_v24 = vpop.f32.mrb[46].mxu0  ;;  %v7956_v48 = vadd.f32 %v15996_v38, %v7955_v55 }
 0x8b4   : > { %v7967_v62 = vadd.f32 %v8868_v24, %v15996_v38  ;;  %v7958_v41 = vpop.f32.mrb[47].mxu0 }
 0x8b5   : > { %v7959_v32 = vadd.f32 %v15996_v38, %v7958_v41 }
 0x8b6   : > { %v8654_v31 = vpack.c.bf16 %v7967_v62, %v7964_v23 }
 0x8b7   : > { %v8649_v8 = vpack.c.bf16 %v7959_v32, %v7956_v48 }
 0x8b8   : > { %8670 = vst [vmem:[%s16004_s22 + $0x78] sm:$0xff] %v8654_v31  }
 0x8b9   : > { %8669 = vst [vmem:[%s16004_s22 + $0x70] sm:$0xff] %v8649_v8  }
 0x8ba   : > { %9471 = shalt.err (!%p9468_p3)
}
 0x8bb   : > { %s9472_s18 = scalar_lea.hbm %s16053_s13, 2048  ;;  %s9476_s21 = scalar_lea.hbm %s16109_s7, 16384 }
 0x8bc   : > { %p9473_p4 = scmp.ne.s32.totalorder %s16053_s13, %s9472_s18  ;;  %p9477_p9 = scmp.lt.u32.totalorder %s16053_s13, %s16109_s7 }
 0x8bd   : > { %p9478_p10 = scmp.lt.u32.totalorder %s9476_s21, %s9472_s18  ;;  %p9480_p12 = scmp.lt.u32.totalorder %s9472_s18, %s16053_s13 }
 0x8be   : > { %p9474_p7 = pnand %p9473_p4, %p9609_p5 }
 0x8bf   : > { %p9479_p11 = por %p9478_p10, %p9477_p9 }
 0x8c0   : > { %p9475_p8 = pneg %p9474_p7 }
 0x8c1   : > { %p9481_p13 = por %p9480_p12, %p9479_p11 }
 0x8c3   : > { %p9482_p0 = pnand %p9481_p13, %p9475_p8 }
 0x8c5   : > { %9485 = shalt.err (!%p9482_p0)
}
 0x8c6   : > { %s9529_s8 = smov 64   ;;  %s9530_s9 = smov 4  }
 0x8c7   : > { %9129 = dma.vmem_to_hbm [thread:$0]  (%p9609_p5), %s16055_s29, 2048, %s16053_s13, %s16061_s28, %s9529_s8, %s9529_s8, %s9530_s9  }
 0x8c8 PF: > { %p9135_p1 = scmp.ge.s32.totalorder %s9520_s27, 2  ;;  %s8159_s14 = sand.u32 1, %s9508_s24  }
 0x8c9   : > { %s8160_s15 = scalar_lea.sflag [#allocation3], %s8159_s14 }
 0x8ca   : > { %p9132_p2 = pnand %p9135_p1, %p9613_p6 }
 0x8cc   : > { %9503 = dma.done.wait (!%p9132_p2), %s8160_s15, 2048  }
 0x8cd   : > { %9505 = vsyncadd (!%p9132_p2), %s8160_s15, 4294965248  ;;  %p17_p3 = scmp.ge.s32.totalorder %s9596_s30, 10   ;;  %s17016_s24 = smov %s9512_s25 }
 0x8ce   : > { %s17017_s25 = smov %s9516_s26  ;;  %s17018_s26 = smov %s9607_s10 }
 0x8cf   : > { %s17019_s27 = smov %s9596_s30  ;;  %19 = sbr.rel (!%p17_p3) target bundleno = 3 (0x3), region = 83 }
 0x8d6   :  { %8165 = vsyncpa [#allocation3], 1 }
 0x8d7   :  { %8167 = vsyncpa [#allocation3 + $0x1], 1 }

</bundles_post_ra>
